<compile_context>
chip_gen: v7x
topology: tpu7x:2x2x1
jax: 0.10.0
libtpu: 0.0.40
codegen_flags: <defaults>
</compile_context>

<pallas_src>
import math

import numpy as np
import jax
import jax.numpy as jnp
from jax.experimental import pallas as pl
from jax.experimental.pallas import tpu as pltpu  # noqa: F401  (TPU backend; no extra params needed)

# ----------------------------- configuration ---------------------------------
N = 2              # batch
C_IN = 4           # in_channels
SEQ_LEN = 128      # seq_length
PATCH = 16         # patch_size
N_PATCH = SEQ_LEN // PATCH          # 8 patches
MASK_RATIO = 0.5
ENC_DIM, ENC_HEADS, ENC_DEPTH = 32, 4, 2
DEC_DIM, DEC_HEADS = 32, 4          # module builds dec_blocks with range(enc_depth)
MLP_RATIO = 2.0
HID = round(ENC_DIM * MLP_RATIO)    # 64 (enc and dec share dims in this config)
ART_DIM = 16
ART_KS = (9, 9, 9)
# TODO(synk): program_conv_filters is replaced by fixed strides giving conv lengths
# 16 -> 8 -> 4 -> 4 (final length 4 lies in the module's required [2, 5] band).
ART_STRIDES = (2, 2, 1)
EPS = 1e-6          # norm_layer and art_norm_layer both use eps=1e-06 in the module

PD = PATCH * C_IN                         # 64 flattened patch width
LF = N_PATCH                              # 8
L_KEEP = round(LF * (1.0 - MASK_RATIO))   # 4
T_ENC = L_KEEP + 1                        # 5
T_DEC = LF + 1                            # 9
NT_ENC = N * T_ENC                        # 10
NT_DEC = N * T_DEC                        # 18
NPAT = N * LF                             # 16


def _conv_louts(lin, ks, strides):
    outs = []
    for k, s in zip(ks, strides):
        lin = (lin + 2 * (k // 2) - k) // s + 1
        outs.append(lin)
    return tuple(outs)


ART_LOUTS = _conv_louts(PATCH, ART_KS, ART_STRIDES)        # (8, 4, 4)
ART_LOD = tuple(l * ART_DIM for l in ART_LOUTS)            # (128, 64, 64)
ART_LIN = (PD, ART_LOD[0], ART_LOD[1])                     # (64, 128, 64)
ART_CW_OFF = (0, ART_LOD[0], ART_LOD[0] + ART_LOD[1])      # (0, 128, 192)
ART_CW_W = sum(ART_LOD)                                    # 256
ART_CW_R = max(ART_LIN)                                    # 128
ART_POOL_R = max(ART_LOD)                                  # 128
ART_HALF = ART_DIM // 2                                    # 8

# packed selection-slab column offsets (data-dependent matrices, built per forward call)
SEL_GSEL = 0
SEL_RMAT = SEL_GSEL + NPAT
SEL_ASEL = SEL_RMAT + NT_ENC
SEL_MSEL = SEL_ASEL + NPAT
SEL_BDE = SEL_MSEL + 1
SEL_BDD = SEL_BDE + NT_ENC
SEL_W = SEL_BDD + NT_DEC                                   # 71 lanes total

# packed encoder-weight slab row offsets: [enc_proj_w; dec_proj_w; norm_g; norm_b; dec_proj_b]
EW_DPROJ = PD
EW_NG = PD + ENC_DIM
EW_NB = EW_NG + 1
EW_DPB = EW_NB + 1

# packed decoder-tail slab row offsets: [pred_w; dec_norm_g; dec_norm_b; pred_b]
DT_NG = DEC_DIM
DT_NB = DT_NG + 1
DT_PB = DT_NB + 1


def _block_diag_bias_np(nb, t):
    r = np.arange(nb * t)
    return np.where((r[:, None] // t) == (r[None, :] // t), 0.0, -1e30).astype(np.float32)


_BD_ENC_NP = _block_diag_bias_np(N, T_ENC)   # prevents cross-batch attention (encoder rows)
_BD_DEC_NP = _block_diag_bias_np(N, T_DEC)   # prevents cross-batch attention (decoder rows)


# ----------------------------- in-kernel helpers ------------------------------


def _ln(x, g, b):
    mu = jnp.mean(x, axis=-1, keepdims=True)
    var = jnp.mean((x - mu) ** 2, axis=-1, keepdims=True)
    return (x - mu) * jax.lax.rsqrt(var + EPS) * g + b


def _gelu(x):
    # TODO(synk): tanh-approx GELU (EUP tanh per perf review); differs from exact erf GELU by <~1e-3.
    return 0.5 * x * (1.0 + jnp.tanh(0.7978845608028654 * (x + 0.044715 * x * x * x)))


def _tblock_stack(x, bd, qw_ref, qb_ref, ln_ref, w1_ref, w2_ref, mb_ref,
                  block_off, depth, heads):
    """Pre-LN transformer blocks on a flattened (N*T, D) slab.

    `bd` is a block-diagonal additive bias so both batch elements run through one set of
    matmuls.  q/k/v are computed with ONE fused (nt,D)@(D,3D) matmul; heads are static
    lane slices of the fused result, re-concatenated and sent through ONE out-projection.
    """
    nt, dim = x.shape
    dh = dim // heads
    scale = 1.0 / math.sqrt(dh)
    for d in range(depth):
        blk = block_off + d
        y = _ln(x, ln_ref[blk, 0:1, :], ln_ref[blk, 1:2, :])
        qkv = jnp.dot(y, qw_ref[blk, :, 0:3 * dim],
                      preferred_element_type=jnp.float32) + qb_ref[blk, :, 0:3 * dim]
        heads_out = []
        for h in range(heads):
            lo = h * dh
            qh = qkv[:, lo:lo + dh]
            kh = qkv[:, dim + lo:dim + lo + dh]
            vh = qkv[:, 2 * dim + lo:2 * dim + lo + dh]
            s = jax.lax.dot_general(qh, kh, (((1,), (1,)), ((), ())),
                                    preferred_element_type=jnp.float32) * scale + bd
            s = s - jnp.max(s, axis=-1, keepdims=True)
            p = jnp.exp(s)
            p = p * pl.reciprocal(jnp.sum(p, axis=-1, keepdims=True), approx=True)
            heads_out.append(jnp.dot(p, vh, preferred_element_type=jnp.float32))
        ao = jnp.concatenate(heads_out, axis=-1)                        # (nt, dim)
        x = x + jnp.dot(ao, qw_ref[blk, :, 3 * dim:4 * dim],
                        preferred_element_type=jnp.float32) + qb_ref[blk, :, 3 * dim:4 * dim]
        y2 = _ln(x, ln_ref[blk, 2:3, :], ln_ref[blk, 3:4, :])
        hmid = _gelu(jnp.dot(y2, w1_ref[blk], preferred_element_type=jnp.float32)
                     + mb_ref[blk, :, 0:HID])
        x = x + jnp.dot(hmid, w2_ref[blk], preferred_element_type=jnp.float32) \
              + mb_ref[blk, :, HID:HID + dim]
    return x


def _artifact_head(xp, acw_ref, apool_ref, abct_ref, avec_ref, afc_ref):
    """art_net on the (N*l_full, patch*C) slab -> (N*l_full, 1) artifact score.

    Conv1d layers are pre-lowered to dense matmuls at init time; BatchNorm1d (training
    statistics) uses per-channel pool / broadcast matmuls so everything stays 2-D and
    lane-dense in VMEM.  BN scale is folded into a single channel vector (perf review)."""
    h = xp
    nrows = xp.shape[0]
    for i in range(3):
        cw = acw_ref[0:ART_LIN[i], ART_CW_OFF[i]:ART_CW_OFF[i] + ART_LOD[i]]
        cb = avec_ref[i:i + 1, 0:ART_LOD[i]]
        pool = apool_ref[0:ART_LOD[i], i * ART_DIM:(i + 1) * ART_DIM]
        bct = abct_ref[:, ART_CW_OFF[i]:ART_CW_OFF[i] + ART_LOD[i]]
        bng = avec_ref[3 + i:4 + i, 0:ART_DIM]
        bnb = avec_ref[6 + i:7 + i, 0:ART_DIM]
        h = jnp.dot(h, cw, preferred_element_type=jnp.float32) + cb
        inv_den = 1.0 / float(nrows * ART_LOUTS[i])
        chm = jnp.dot(jnp.sum(h, axis=0, keepdims=True), pool,
                      preferred_element_type=jnp.float32) * inv_den       # (1, C) mean
        hc = h - jnp.dot(chm, bct, preferred_element_type=jnp.float32)
        cvar = jnp.dot(jnp.sum(hc * hc, axis=0, keepdims=True), pool,
                       preferred_element_type=jnp.float32) * inv_den      # (1, C) biased var
        scale_c = jax.lax.rsqrt(cvar + EPS) * bng                         # fold gamma into scale
        h = hc * jnp.dot(scale_c, bct, preferred_element_type=jnp.float32) \
            + jnp.dot(bnb, bct, preferred_element_type=jnp.float32)
        h = _gelu(h)
    # AdaptiveAvgPool1d(1) + Flatten == per-channel mean over length.
    pool_last = apool_ref[0:ART_LOD[2], 2 * ART_DIM:3 * ART_DIM]
    pooled = jnp.dot(h, pool_last, preferred_element_type=jnp.float32) * (1.0 / float(ART_LOUTS[2]))
    z = jnp.dot(pooled, afc_ref[:, 0:ART_HALF], preferred_element_type=jnp.float32)  # fc1 (no bias)
    mu = jnp.mean(z, axis=0, keepdims=True)
    var = jnp.mean((z - mu) ** 2, axis=0, keepdims=True)
    z = (z - mu) * jax.lax.rsqrt(var + EPS) * avec_ref[9:10, 0:ART_HALF] \
        + avec_ref[10:11, 0:ART_HALF]
    z = _gelu(z)
    return (jnp.dot(z, afc_ref[0:ART_HALF, ART_HALF:ART_HALF + 1],
                    preferred_element_type=jnp.float32)
            + avec_ref[11:12, 0:1])


# ----------------------------- the fused kernel -------------------------------


def _mae_fused_kernel(patches_ref, sel_ref, add_ref,
                      qw_ref, qb_ref, ln_ref, w1_ref, w2_ref, mb_ref,
                      encw_ref, dectail_ref,
                      acw_ref, apool_ref, abct_ref, avec_ref, afc_ref,
                      o_ref):
    xp = patches_ref[...]                                              # (N*LF, PD)

    # packed, data-dependent selection matrices and attention bias masks
    gsel = sel_ref[0:NT_ENC, SEL_GSEL:SEL_GSEL + NPAT]
    rmat = sel_ref[0:NT_DEC, SEL_RMAT:SEL_RMAT + NT_ENC]
    asel = sel_ref[0:NT_DEC, SEL_ASEL:SEL_ASEL + NPAT]
    msel = sel_ref[0:NT_DEC, SEL_MSEL:SEL_MSEL + 1]
    bd_enc = sel_ref[0:NT_ENC, SEL_BDE:SEL_BDE + NT_ENC]
    bd_dec = sel_ref[0:NT_DEC, SEL_BDD:SEL_BDD + NT_DEC]

    # -------- artifact head (per-patch artifact score) -------------------------------
    art = _artifact_head(xp, acw_ref, apool_ref, abct_ref, avec_ref, afc_ref)  # (N*LF, 1)

    # -------- encoder: patch-proj + masking-select + blocks + LN + dec_proj ----------
    tok = jnp.dot(jnp.dot(gsel, xp, preferred_element_type=jnp.float32),
                  encw_ref[0:PD, :], preferred_element_type=jnp.float32) \
          + add_ref[0:NT_ENC, :]
    tok = _tblock_stack(tok, bd_enc, qw_ref, qb_ref, ln_ref, w1_ref, w2_ref, mb_ref,
                        block_off=0, depth=ENC_DEPTH, heads=ENC_HEADS)
    tok = _ln(tok, encw_ref[EW_NG:EW_NG + 1, :], encw_ref[EW_NB:EW_NB + 1, :])
    enc = jnp.dot(tok, encw_ref[EW_DPROJ:EW_DPROJ + ENC_DIM, :],
                  preferred_element_type=jnp.float32) + encw_ref[EW_DPB:EW_DPB + 1, :]

    # -------- decoder: un-shuffle + mask tokens + blocks + LN + pred head -------------
    xd = jnp.dot(rmat, enc, preferred_element_type=jnp.float32) \
         + add_ref[NT_ENC:NT_ENC + NT_DEC, :]
    xd = _tblock_stack(xd, bd_dec, qw_ref, qb_ref, ln_ref, w1_ref, w2_ref, mb_ref,
                       block_off=ENC_DEPTH, depth=ENC_DEPTH, heads=DEC_HEADS)
    xd = _ln(xd, dectail_ref[DT_NG:DT_NG + 1, 0:DEC_DIM],
             dectail_ref[DT_NB:DT_NB + 1, 0:DEC_DIM])
    pred = jnp.dot(xd, dectail_ref[0:DEC_DIM, :], preferred_element_type=jnp.float32) \
           + dectail_ref[DT_PB:DT_PB + 1, :]                           # (NT_DEC, PD)

    # -------- per-patch reconstruction MSE + masked artifact MSE loss -----------------
    desired = jnp.dot(asel, xp, preferred_element_type=jnp.float32)    # patches -> token rows
    diff = desired - pred
    rec = jnp.mean(diff * diff, axis=-1, keepdims=True)                # (NT_DEC, 1)
    art_tok = jnp.dot(asel, art, preferred_element_type=jnp.float32)   # (NT_DEC, 1)
    d = art_tok * msel - rec * msel
    num = jnp.sum(d * d * msel, axis=0, keepdims=True)
    den = jnp.sum(msel, axis=0, keepdims=True)
    o_ref[...] = num / den                                             # exact division (loss)


# ----------------------------- parameters ------------------------------------


def sincos_pos_embed(seq_len, dim):
    pos = jnp.arange(seq_len, dtype=jnp.float32)[:, None]
    omega = 1.0 / (10000.0 ** (jnp.arange(dim // 2, dtype=jnp.float32) / (dim / 2.0)))
    ang = pos * omega[None, :]
    pe = jnp.concatenate([jnp.sin(ang), jnp.cos(ang)], axis=-1)
    pe = jnp.concatenate([jnp.zeros((1, dim), jnp.float32), pe], axis=0)  # class-token row
    return pe[None].astype(jnp.float32)                                   # (1, seq_len+1, dim)


def conv_as_dense(w_conv, bias, lin, stride):
    """Lower Conv1d(W (Cout,Cin,k), pad=k//2, stride) on channel-last flat input
    (rows, Lin*Cin) to one dense matmul (Lin*Cin, Lout*Cout); zero padding folded in."""
    cout, cin, k = w_conv.shape
    pad = k // 2
    lout = (lin + 2 * pad - k) // stride + 1
    a = jnp.arange(lin)[:, None, None]
    b = jnp.arange(lout)[None, :, None]
    t = jnp.arange(k)[None, None, :]
    sel = (a + pad == b * stride + t).astype(jnp.float32)                # (Lin, Lout, k)
    wmat = jnp.einsum('abt,oit->aibo', sel, w_conv).reshape(lin * cin, lout * cout)
    bfull = jnp.tile(bias, (lout,)).reshape(1, lout * cout)
    poolm = jnp.tile(jnp.eye(cout, dtype=jnp.float32), (lout, 1))        # (Lout*C, C)
    bcast = jnp.tile(jnp.eye(cout, dtype=jnp.float32), (1, lout))        # (C, Lout*C)
    return wmat, bfull, poolm, bcast, lout


def init_params(key):
    keys = iter(jax.random.split(key, 48))
    f32 = jnp.float32

    def w(shape, std=0.02):
        return (std * jax.random.normal(next(keys), shape)).astype(f32)

    zeros = lambda s: jnp.zeros(s, f32)
    ones = lambda s: jnp.ones(s, f32)

    # ---- transformer blocks (encoder blocks then decoder blocks in one depth-stacked slab)
    def tblock(dim, hid):
        return dict(
            qkvo_w=jnp.concatenate([w((dim, 3 * dim)), w((dim, dim))], axis=1),  # [Wq|Wk|Wv|Wo]
            qkvo_b=zeros((1, 4 * dim)),
            ln=jnp.concatenate([ones((1, dim)), zeros((1, dim)),
                                ones((1, dim)), zeros((1, dim))], axis=0),       # [g1;b1;g2;b2]
            w1=w((dim, hid)), w2=w((hid, dim)),
            mlp_b=zeros((1, hid + dim)),
        )

    blocks = ([tblock(ENC_DIM, HID) for _ in range(ENC_DEPTH)]
              + [tblock(DEC_DIM, HID) for _ in range(ENC_DEPTH)])
    stack = lambda k: jnp.stack([b[k] for b in blocks], axis=0)

    # ---- encoder / decoder tails packed into two slabs ----
    enc_proj_w = w((PD, ENC_DIM))
    dec_proj_w = w((ENC_DIM, DEC_DIM))
    enc_w = jnp.concatenate([enc_proj_w, dec_proj_w,
                             ones((1, ENC_DIM)), zeros((1, ENC_DIM)),    # enc_norm gamma, beta
                             zeros((1, DEC_DIM))], axis=0)               # dec_proj bias
    pred_w = w((DEC_DIM, PD))
    padpd = lambda v: jnp.pad(v, ((0, 0), (0, PD - v.shape[1])))
    dec_tail = jnp.concatenate([pred_w,
                                padpd(ones((1, DEC_DIM))),               # dec_norm gamma
                                padpd(zeros((1, DEC_DIM))),              # dec_norm beta
                                zeros((1, PD))], axis=0)                 # pred bias

    # ---- artifact conv stack: canonical Conv1d weights densified + packed at init ----
    cw_mats, pool_mats, bct_mats, cb_rows = [], [], [], []
    lin, cin = PATCH, C_IN
    for k, s in zip(ART_KS, ART_STRIDES):
        wc = w((ART_DIM, cin, k), std=math.sqrt(1.0 / (cin * k)))
        wm, bf, pm, bm, lout = conv_as_dense(wc, zeros((ART_DIM,)), lin, s)
        cw_mats.append(wm); pool_mats.append(pm); bct_mats.append(bm); cb_rows.append(bf)
        lin, cin = lout, ART_DIM

    art_cw = jnp.zeros((ART_CW_R, ART_CW_W), f32)
    art_pool = jnp.zeros((ART_POOL_R, 3 * ART_DIM), f32)
    art_bct = jnp.zeros((ART_DIM, ART_CW_W), f32)
    art_vecs = jnp.zeros((12, ART_POOL_R), f32)
    for i in range(3):
        art_cw = art_cw.at[0:ART_LIN[i], ART_CW_OFF[i]:ART_CW_OFF[i] + ART_LOD[i]].set(cw_mats[i])
        art_pool = art_pool.at[0:ART_LOD[i], i * ART_DIM:(i + 1) * ART_DIM].set(pool_mats[i])
        art_bct = art_bct.at[:, ART_CW_OFF[i]:ART_CW_OFF[i] + ART_LOD[i]].set(bct_mats[i])
        art_vecs = art_vecs.at[i:i + 1, 0:ART_LOD[i]].set(cb_rows[i])              # conv biases
        art_vecs = art_vecs.at[3 + i:4 + i, 0:ART_DIM].set(ones((1, ART_DIM)))     # BN gamma
        # rows 6..8 (BN beta) stay zero
    art_vecs = art_vecs.at[9:10, 0:ART_HALF].set(ones((1, ART_HALF)))              # bn4 gamma
    # row 10 (bn4 beta) and row 11 (fc2 bias) stay zero
    art_fc = jnp.zeros((ART_DIM, ART_HALF + 1), f32)
    art_fc = art_fc.at[:, 0:ART_HALF].set(w((ART_DIM, ART_HALF)))                  # fc1 (no bias)
    art_fc = art_fc.at[0:ART_HALF, ART_HALF:ART_HALF + 1].set(w((ART_HALF, 1)))    # fc2

    return dict(
        qkvo_w=stack('qkvo_w'), qkvo_b=stack('qkvo_b'), ln_gb=stack('ln'),
        mlp_w1=stack('w1'), mlp_w2=stack('w2'), mlp_b=stack('mlp_b'),
        enc_w=enc_w, dec_tail=dec_tail,
        enc_proj_b=zeros((1, ENC_DIM)),
        class_token=w((1, 1, ENC_DIM)),
        mask_token=w((1, 1, DEC_DIM)),
        enc_pos_embed=sincos_pos_embed(N_PATCH, ENC_DIM),
        dec_pos_embed=sincos_pos_embed(N_PATCH, DEC_DIM),
        art_cw=art_cw, art_pool=art_pool, art_bct=art_bct,
        art_vecs=art_vecs, art_fc=art_fc,
    )


# ----------------------------- plain-JAX glue --------------------------------


def forward(params, eeg, age, mask_noise):
    del age  # use_age == 'no' and art_use_age == 'no'
    assert eeg.shape == (N, C_IN, SEQ_LEN) and mask_noise.shape == (N, LF)
    f32 = jnp.float32

    # patchify once (NClp -> NlpC); feeds encoder, artifact head and reconstruction target
    patches = eeg.reshape(N, C_IN, LF, PATCH).transpose(0, 2, 3, 1).reshape(N * LF, PD)

    # ---- random-masking bookkeeping (argsort + tiny one-hot matrices; stays in XLA) ----
    idx_shuffle = jnp.argsort(mask_noise, axis=1)
    idx_keep = idx_shuffle[:, :L_KEEP]
    idx_restore = jnp.argsort(idx_shuffle, axis=1)
    mask = (idx_restore >= L_KEEP).astype(f32)                            # (N, LF)

    eyeb = jnp.eye(N, dtype=f32)
    keep_oh = (idx_keep[..., None] == jnp.arange(LF)[None, None, :]).astype(f32)
    keep_aug = jnp.concatenate([jnp.zeros((N, 1, LF), f32), keep_oh], axis=1)
    gsel = jnp.einsum('bij,bc->bicj', keep_aug, eyeb).reshape(NT_ENC, NPAT)

    col = jnp.where(idx_restore < L_KEEP, idx_restore + 1, -1)
    rest_oh = (col[..., None] == jnp.arange(T_ENC)[None, None, :]).astype(f32)
    cls_row = jnp.zeros((N, 1, T_ENC), f32).at[:, 0, 0].set(1.0)
    rest_aug = jnp.concatenate([cls_row, rest_oh], axis=1)
    rmat = jnp.einsum('bij,bc->bicj', rest_aug, eyeb).reshape(NT_DEC, NT_ENC)

    pad_eye = jnp.concatenate([jnp.zeros((1, LF), f32), jnp.eye(LF, dtype=f32)], axis=0)
    asel = jnp.einsum('ij,bc->bicj', pad_eye, eyeb).reshape(NT_DEC, NPAT)

    msel = jnp.pad(mask, ((0, 0), (1, 0))).reshape(NT_DEC, 1)

    # ---- fold biases / positional embeddings / tokens into one small "add" slab ------
    cls_sel = jnp.tile(jnp.concatenate([jnp.ones((1, 1), f32),
                                        jnp.zeros((L_KEEP, 1), f32)], axis=0), (N, 1))
    pos_pat = jnp.tile(params['enc_pos_embed'][0, 1:, :], (N, 1))         # (N*LF, D)
    cls_tok = params['class_token'][0] + params['enc_pos_embed'][0, :1, :]
    enc_add = jnp.dot(gsel, params['enc_proj_b'] + pos_pat) + cls_sel * cls_tok
    dec_pos = jnp.tile(params['dec_pos_embed'][0], (N, 1))                # (NT_DEC, D)
    dec_add = msel * params['mask_token'][0] + dec_pos
    add_slab = jnp.concatenate([enc_add, dec_add], axis=0)                # (NT_ENC+NT_DEC, D)

    # ---- pack all per-call selection matrices into ONE lane-dense slab (single DMA) ---
    pad18 = lambda a: jnp.pad(a, ((0, NT_DEC - a.shape[0]), (0, 0)))
    sel_slab = jnp.concatenate(
        [pad18(gsel), rmat, asel, msel,
         pad18(jnp.asarray(_BD_ENC_NP)), jnp.asarray(_BD_DEC_NP)], axis=1)  # (NT_DEC, SEL_W)

    # ---- single fused pallas_call: artifact head + encoder + decoder + loss ----------
    loss = pl.pallas_call(
        _mae_fused_kernel,
        out_shape=jax.ShapeDtypeStruct((1, 1), jnp.float32),
    )(patches, sel_slab, add_slab,
      params['qkvo_w'], params['qkvo_b'], params['ln_gb'],
      params['mlp_w1'], params['mlp_w2'], params['mlp_b'],
      params['enc_w'], params['dec_tail'],
      params['art_cw'], params['art_pool'], params['art_bct'],
      params['art_vecs'], params['art_fc'])
    return loss[0, 0]


# ----------------------------- main -------------------------------------------

if __name__ == "__main__":
    key = jax.random.PRNGKey(0)
    k_eeg, k_age, k_mask = jax.random.split(key, 3)
    eeg = jax.random.normal(k_eeg, (N, C_IN, SEQ_LEN), dtype=jnp.float32)
    age = jax.random.normal(k_age, (N,), dtype=jnp.float32)      # unused (use_age='no')
    mask_noise = jax.random.uniform(k_mask, (N, N_PATCH), dtype=jnp.float32)

    params = init_params(jax.random.PRNGKey(1234))
    loss = jax.jit(forward)(params, eeg, age, mask_noise)
    loss = jax.block_until_ready(loss)
    assert bool(jnp.isfinite(loss))
    print("KERNEL_OK")
</pallas_src>

<mosaic_0001>
module attributes {stable_mosaic.version = 11 : i64} {
  func.func @_mae_fused_kernel(%arg0: memref<16x64xf32, #tpu.memory_space<vmem>>, %arg1: memref<18x71xf32, #tpu.memory_space<vmem>>, %arg2: memref<28x32xf32, #tpu.memory_space<vmem>>, %arg3: memref<4x32x128xf32, #tpu.memory_space<vmem>>, %arg4: memref<4x1x128xf32, #tpu.memory_space<vmem>>, %arg5: memref<4x4x32xf32, #tpu.memory_space<vmem>>, %arg6: memref<4x32x64xf32, #tpu.memory_space<vmem>>, %arg7: memref<4x64x32xf32, #tpu.memory_space<vmem>>, %arg8: memref<4x1x96xf32, #tpu.memory_space<vmem>>, %arg9: memref<99x32xf32, #tpu.memory_space<vmem>>, %arg10: memref<35x64xf32, #tpu.memory_space<vmem>>, %arg11: memref<128x256xf32, #tpu.memory_space<vmem>>, %arg12: memref<128x48xf32, #tpu.memory_space<vmem>>, %arg13: memref<16x256xf32, #tpu.memory_space<vmem>>, %arg14: memref<12x128xf32, #tpu.memory_space<vmem>>, %arg15: memref<16x9xf32, #tpu.memory_space<vmem>>, %arg16: memref<1x1xf32, #tpu.memory_space<vmem>>) attributes {dimension_semantics = [], scalar_prefetch = 0 : i64, scratch_operands = 0 : i64, tpu.core_type = #tpu.core_type<tc>} {
    %c0 = arith.constant 0 : index
    %c0_0 = arith.constant 0 : index
    %0 = vector.load %arg0[%c0, %c0_0] : memref<16x64xf32, #tpu.memory_space<vmem>>, vector<16x64xf32>
    %c0_1 = arith.constant 0 : index
    %c0_2 = arith.constant 0 : index
    %1 = vector.load %arg1[%c0_1, %c0_2] : memref<18x71xf32, #tpu.memory_space<vmem>>, vector<10x16xf32>
    %c0_3 = arith.constant 0 : index
    %c16 = arith.constant 16 : index
    %2 = vector.load %arg1[%c0_3, %c16] : memref<18x71xf32, #tpu.memory_space<vmem>>, vector<18x10xf32>
    %c0_4 = arith.constant 0 : index
    %c26 = arith.constant 26 : index
    %3 = vector.load %arg1[%c0_4, %c26] : memref<18x71xf32, #tpu.memory_space<vmem>>, vector<18x16xf32>
    %c0_5 = arith.constant 0 : index
    %c42 = arith.constant 42 : index
    %4 = vector.load %arg1[%c0_5, %c42] : memref<18x71xf32, #tpu.memory_space<vmem>>, vector<18x1xf32>
    %c0_6 = arith.constant 0 : index
    %c43 = arith.constant 43 : index
    %5 = vector.load %arg1[%c0_6, %c43] : memref<18x71xf32, #tpu.memory_space<vmem>>, vector<10x10xf32>
    %c0_7 = arith.constant 0 : index
    %c53 = arith.constant 53 : index
    %6 = vector.load %arg1[%c0_7, %c53] : memref<18x71xf32, #tpu.memory_space<vmem>>, vector<18x18xf32>
    %c0_8 = arith.constant 0 : index
    %c0_9 = arith.constant 0 : index
    %7 = vector.load %arg11[%c0_8, %c0_9] : memref<128x256xf32, #tpu.memory_space<vmem>>, vector<64x128xf32>
    %c0_10 = arith.constant 0 : index
    %c0_11 = arith.constant 0 : index
    %8 = vector.load %arg14[%c0_10, %c0_11] : memref<12x128xf32, #tpu.memory_space<vmem>>, vector<1x128xf32>
    %c0_12 = arith.constant 0 : index
    %c0_13 = arith.constant 0 : index
    %9 = vector.load %arg12[%c0_12, %c0_13] : memref<128x48xf32, #tpu.memory_space<vmem>>, vector<128x16xf32>
    %c0_14 = arith.constant 0 : index
    %c0_15 = arith.constant 0 : index
    %10 = vector.load %arg13[%c0_14, %c0_15] : memref<16x256xf32, #tpu.memory_space<vmem>>, vector<16x128xf32>
    %c3 = arith.constant 3 : index
    %c0_16 = arith.constant 0 : index
    %11 = vector.load %arg14[%c3, %c0_16] : memref<12x128xf32, #tpu.memory_space<vmem>>, vector<1x16xf32>
    %c6 = arith.constant 6 : index
    %c0_17 = arith.constant 0 : index
    %12 = vector.load %arg14[%c6, %c0_17] : memref<12x128xf32, #tpu.memory_space<vmem>>, vector<1x16xf32>
    %cst = arith.constant dense<0.000000e+00> : vector<16x128xf32>
    %13 = tpu.matmul %0, %7, %cst {dimension_numbers = #tpu.dot_dimension_numbers<[1], [0], [0], [1], [0, 0, 1, 1], [], []>} : vector<16x64xf32>, vector<64x128xf32>, vector<16x128xf32> -> vector<16x128xf32>
    %14 = vector.broadcast %8 : vector<1x128xf32> to vector<16x128xf32>
    %15 = arith.addf %13, %14 : vector<16x128xf32>
    %cst_18 = arith.constant dense<0.000000e+00> : vector<128xf32>
    %16 = vector.multi_reduction <add>, %15, %cst_18 [0] : vector<16x128xf32> to vector<128xf32>
    %17 = vector.shape_cast %16 : vector<128xf32> to vector<1x128xf32>
    %cst_19 = arith.constant dense<0.000000e+00> : vector<1x16xf32>
    %18 = tpu.matmul %17, %9, %cst_19 {dimension_numbers = #tpu.dot_dimension_numbers<[1], [0], [0], [1], [0, 0, 1, 1], [], []>} : vector<1x128xf32>, vector<128x16xf32>, vector<1x16xf32> -> vector<1x16xf32>
    %cst_20 = arith.constant 7.812500e-03 : f32
    %19 = vector.broadcast %cst_20 : f32 to vector<1x16xf32>
    %20 = arith.mulf %18, %19 : vector<1x16xf32>
    %cst_21 = arith.constant dense<0.000000e+00> : vector<1x128xf32>
    %21 = tpu.matmul %20, %10, %cst_21 {dimension_numbers = #tpu.dot_dimension_numbers<[1], [0], [0], [1], [0, 0, 1, 1], [], []>} : vector<1x16xf32>, vector<16x128xf32>, vector<1x128xf32> -> vector<1x128xf32>
    %22 = vector.broadcast %21 : vector<1x128xf32> to vector<16x128xf32>
    %23 = arith.subf %15, %22 : vector<16x128xf32>
    %24 = arith.mulf %23, %23 : vector<16x128xf32>
    %cst_22 = arith.constant dense<0.000000e+00> : vector<128xf32>
    %25 = vector.multi_reduction <add>, %24, %cst_22 [0] : vector<16x128xf32> to vector<128xf32>
    %26 = vector.shape_cast %25 : vector<128xf32> to vector<1x128xf32>
    %cst_23 = arith.constant dense<0.000000e+00> : vector<1x16xf32>
    %27 = tpu.matmul %26, %9, %cst_23 {dimension_numbers = #tpu.dot_dimension_numbers<[1], [0], [0], [1], [0, 0, 1, 1], [], []>} : vector<1x128xf32>, vector<128x16xf32>, vector<1x16xf32> -> vector<1x16xf32>
    %cst_24 = arith.constant 7.812500e-03 : f32
    %28 = vector.broadcast %cst_24 : f32 to vector<1x16xf32>
    %29 = arith.mulf %27, %28 : vector<1x16xf32>
    %cst_25 = arith.constant 9.99999997E-7 : f32
    %30 = vector.broadcast %cst_25 : f32 to vector<1x16xf32>
    %31 = arith.addf %29, %30 : vector<1x16xf32>
    %32 = math.rsqrt %31 : vector<1x16xf32>
    %33 = arith.mulf %32, %11 : vector<1x16xf32>
    %cst_26 = arith.constant dense<0.000000e+00> : vector<1x128xf32>
    %34 = tpu.matmul %33, %10, %cst_26 {dimension_numbers = #tpu.dot_dimension_numbers<[1], [0], [0], [1], [0, 0, 1, 1], [], []>} : vector<1x16xf32>, vector<16x128xf32>, vector<1x128xf32> -> vector<1x128xf32>
    %35 = vector.broadcast %34 : vector<1x128xf32> to vector<16x128xf32>
    %36 = arith.mulf %23, %35 : vector<16x128xf32>
    %cst_27 = arith.constant dense<0.000000e+00> : vector<1x128xf32>
    %37 = tpu.matmul %12, %10, %cst_27 {dimension_numbers = #tpu.dot_dimension_numbers<[1], [0], [0], [1], [0, 0, 1, 1], [], []>} : vector<1x16xf32>, vector<16x128xf32>, vector<1x128xf32> -> vector<1x128xf32>
    %38 = vector.broadcast %37 : vector<1x128xf32> to vector<16x128xf32>
    %39 = arith.addf %36, %38 : vector<16x128xf32>
    %cst_28 = arith.constant 5.000000e-01 : f32
    %40 = vector.broadcast %cst_28 : f32 to vector<16x128xf32>
    %41 = arith.mulf %40, %39 : vector<16x128xf32>
    %cst_29 = arith.constant 4.471500e-02 : f32
    %42 = vector.broadcast %cst_29 : f32 to vector<16x128xf32>
    %43 = arith.mulf %42, %39 : vector<16x128xf32>
    %44 = arith.mulf %43, %39 : vector<16x128xf32>
    %45 = arith.mulf %44, %39 : vector<16x128xf32>
    %46 = arith.addf %39, %45 : vector<16x128xf32>
    %cst_30 = arith.constant 0.797884583 : f32
    %47 = vector.broadcast %cst_30 : f32 to vector<16x128xf32>
    %48 = arith.mulf %47, %46 : vector<16x128xf32>
    %49 = math.tanh %48 : vector<16x128xf32>
    %cst_31 = arith.constant 1.000000e+00 : f32
    %50 = vector.broadcast %cst_31 : f32 to vector<16x128xf32>
    %51 = arith.addf %50, %49 : vector<16x128xf32>
    %52 = arith.mulf %41, %51 : vector<16x128xf32>
    %c0_32 = arith.constant 0 : index
    %c128 = arith.constant 128 : index
    %53 = vector.load %arg11[%c0_32, %c128] : memref<128x256xf32, #tpu.memory_space<vmem>>, vector<128x64xf32>
    %c1 = arith.constant 1 : index
    %c0_33 = arith.constant 0 : index
    %54 = vector.load %arg14[%c1, %c0_33] : memref<12x128xf32, #tpu.memory_space<vmem>>, vector<1x64xf32>
    %c0_34 = arith.constant 0 : index
    %c16_35 = arith.constant 16 : index
    %55 = vector.load %arg12[%c0_34, %c16_35] : memref<128x48xf32, #tpu.memory_space<vmem>>, vector<64x16xf32>
    %c0_36 = arith.constant 0 : index
    %c128_37 = arith.constant 128 : index
    %56 = vector.load %arg13[%c0_36, %c128_37] : memref<16x256xf32, #tpu.memory_space<vmem>>, vector<16x64xf32>
    %c4 = arith.constant 4 : index
    %c0_38 = arith.constant 0 : index
    %57 = vector.load %arg14[%c4, %c0_38] : memref<12x128xf32, #tpu.memory_space<vmem>>, vector<1x16xf32>
    %c7 = arith.constant 7 : index
    %c0_39 = arith.constant 0 : index
    %58 = vector.load %arg14[%c7, %c0_39] : memref<12x128xf32, #tpu.memory_space<vmem>>, vector<1x16xf32>
    %cst_40 = arith.constant dense<0.000000e+00> : vector<16x64xf32>
    %59 = tpu.matmul %52, %53, %cst_40 {dimension_numbers = #tpu.dot_dimension_numbers<[1], [0], [0], [1], [0, 0, 1, 1], [], []>} : vector<16x128xf32>, vector<128x64xf32>, vector<16x64xf32> -> vector<16x64xf32>
    %60 = vector.broadcast %54 : vector<1x64xf32> to vector<16x64xf32>
    %61 = arith.addf %59, %60 : vector<16x64xf32>
    %cst_41 = arith.constant dense<0.000000e+00> : vector<64xf32>
    %62 = vector.multi_reduction <add>, %61, %cst_41 [0] : vector<16x64xf32> to vector<64xf32>
    %63 = vector.shape_cast %62 : vector<64xf32> to vector<1x64xf32>
    %cst_42 = arith.constant dense<0.000000e+00> : vector<1x16xf32>
    %64 = tpu.matmul %63, %55, %cst_42 {dimension_numbers = #tpu.dot_dimension_numbers<[1], [0], [0], [1], [0, 0, 1, 1], [], []>} : vector<1x64xf32>, vector<64x16xf32>, vector<1x16xf32> -> vector<1x16xf32>
    %cst_43 = arith.constant 1.562500e-02 : f32
    %65 = vector.broadcast %cst_43 : f32 to vector<1x16xf32>
    %66 = arith.mulf %64, %65 : vector<1x16xf32>
    %cst_44 = arith.constant dense<0.000000e+00> : vector<1x64xf32>
    %67 = tpu.matmul %66, %56, %cst_44 {dimension_numbers = #tpu.dot_dimension_numbers<[1], [0], [0], [1], [0, 0, 1, 1], [], []>} : vector<1x16xf32>, vector<16x64xf32>, vector<1x64xf32> -> vector<1x64xf32>
    %68 = vector.broadcast %67 : vector<1x64xf32> to vector<16x64xf32>
    %69 = arith.subf %61, %68 : vector<16x64xf32>
    %70 = arith.mulf %69, %69 : vector<16x64xf32>
    %cst_45 = arith.constant dense<0.000000e+00> : vector<64xf32>
    %71 = vector.multi_reduction <add>, %70, %cst_45 [0] : vector<16x64xf32> to vector<64xf32>
    %72 = vector.shape_cast %71 : vector<64xf32> to vector<1x64xf32>
    %cst_46 = arith.constant dense<0.000000e+00> : vector<1x16xf32>
    %73 = tpu.matmul %72, %55, %cst_46 {dimension_numbers = #tpu.dot_dimension_numbers<[1], [0], [0], [1], [0, 0, 1, 1], [], []>} : vector<1x64xf32>, vector<64x16xf32>, vector<1x16xf32> -> vector<1x16xf32>
    %cst_47 = arith.constant 1.562500e-02 : f32
    %74 = vector.broadcast %cst_47 : f32 to vector<1x16xf32>
    %75 = arith.mulf %73, %74 : vector<1x16xf32>
    %cst_48 = arith.constant 9.99999997E-7 : f32
    %76 = vector.broadcast %cst_48 : f32 to vector<1x16xf32>
    %77 = arith.addf %75, %76 : vector<1x16xf32>
    %78 = math.rsqrt %77 : vector<1x16xf32>
    %79 = arith.mulf %78, %57 : vector<1x16xf32>
    %cst_49 = arith.constant dense<0.000000e+00> : vector<1x64xf32>
    %80 = tpu.matmul %79, %56, %cst_49 {dimension_numbers = #tpu.dot_dimension_numbers<[1], [0], [0], [1], [0, 0, 1, 1], [], []>} : vector<1x16xf32>, vector<16x64xf32>, vector<1x64xf32> -> vector<1x64xf32>
    %81 = vector.broadcast %80 : vector<1x64xf32> to vector<16x64xf32>
    %82 = arith.mulf %69, %81 : vector<16x64xf32>
    %cst_50 = arith.constant dense<0.000000e+00> : vector<1x64xf32>
    %83 = tpu.matmul %58, %56, %cst_50 {dimension_numbers = #tpu.dot_dimension_numbers<[1], [0], [0], [1], [0, 0, 1, 1], [], []>} : vector<1x16xf32>, vector<16x64xf32>, vector<1x64xf32> -> vector<1x64xf32>
    %84 = vector.broadcast %83 : vector<1x64xf32> to vector<16x64xf32>
    %85 = arith.addf %82, %84 : vector<16x64xf32>
    %cst_51 = arith.constant 5.000000e-01 : f32
    %86 = vector.broadcast %cst_51 : f32 to vector<16x64xf32>
    %87 = arith.mulf %86, %85 : vector<16x64xf32>
    %cst_52 = arith.constant 4.471500e-02 : f32
    %88 = vector.broadcast %cst_52 : f32 to vector<16x64xf32>
    %89 = arith.mulf %88, %85 : vector<16x64xf32>
    %90 = arith.mulf %89, %85 : vector<16x64xf32>
    %91 = arith.mulf %90, %85 : vector<16x64xf32>
    %92 = arith.addf %85, %91 : vector<16x64xf32>
    %cst_53 = arith.constant 0.797884583 : f32
    %93 = vector.broadcast %cst_53 : f32 to vector<16x64xf32>
    %94 = arith.mulf %93, %92 : vector<16x64xf32>
    %95 = math.tanh %94 : vector<16x64xf32>
    %cst_54 = arith.constant 1.000000e+00 : f32
    %96 = vector.broadcast %cst_54 : f32 to vector<16x64xf32>
    %97 = arith.addf %96, %95 : vector<16x64xf32>
    %98 = arith.mulf %87, %97 : vector<16x64xf32>
    %c0_55 = arith.constant 0 : index
    %c192 = arith.constant 192 : index
    %99 = vector.load %arg11[%c0_55, %c192] : memref<128x256xf32, #tpu.memory_space<vmem>>, vector<64x64xf32>
    %c2 = arith.constant 2 : index
    %c0_56 = arith.constant 0 : index
    %100 = vector.load %arg14[%c2, %c0_56] : memref<12x128xf32, #tpu.memory_space<vmem>>, vector<1x64xf32>
    %c0_57 = arith.constant 0 : index
    %c32 = arith.constant 32 : index
    %101 = vector.load %arg12[%c0_57, %c32] : memref<128x48xf32, #tpu.memory_space<vmem>>, vector<64x16xf32>
    %c0_58 = arith.constant 0 : index
    %c192_59 = arith.constant 192 : index
    %102 = vector.load %arg13[%c0_58, %c192_59] : memref<16x256xf32, #tpu.memory_space<vmem>>, vector<16x64xf32>
    %c5 = arith.constant 5 : index
    %c0_60 = arith.constant 0 : index
    %103 = vector.load %arg14[%c5, %c0_60] : memref<12x128xf32, #tpu.memory_space<vmem>>, vector<1x16xf32>
    %c8 = arith.constant 8 : index
    %c0_61 = arith.constant 0 : index
    %104 = vector.load %arg14[%c8, %c0_61] : memref<12x128xf32, #tpu.memory_space<vmem>>, vector<1x16xf32>
    %cst_62 = arith.constant dense<0.000000e+00> : vector<16x64xf32>
    %105 = tpu.matmul %98, %99, %cst_62 {dimension_numbers = #tpu.dot_dimension_numbers<[1], [0], [0], [1], [0, 0, 1, 1], [], []>} : vector<16x64xf32>, vector<64x64xf32>, vector<16x64xf32> -> vector<16x64xf32>
    %106 = vector.broadcast %100 : vector<1x64xf32> to vector<16x64xf32>
    %107 = arith.addf %105, %106 : vector<16x64xf32>
    %cst_63 = arith.constant dense<0.000000e+00> : vector<64xf32>
    %108 = vector.multi_reduction <add>, %107, %cst_63 [0] : vector<16x64xf32> to vector<64xf32>
    %109 = vector.shape_cast %108 : vector<64xf32> to vector<1x64xf32>
    %cst_64 = arith.constant dense<0.000000e+00> : vector<1x16xf32>
    %110 = tpu.matmul %109, %101, %cst_64 {dimension_numbers = #tpu.dot_dimension_numbers<[1], [0], [0], [1], [0, 0, 1, 1], [], []>} : vector<1x64xf32>, vector<64x16xf32>, vector<1x16xf32> -> vector<1x16xf32>
    %cst_65 = arith.constant 1.562500e-02 : f32
    %111 = vector.broadcast %cst_65 : f32 to vector<1x16xf32>
    %112 = arith.mulf %110, %111 : vector<1x16xf32>
    %cst_66 = arith.constant dense<0.000000e+00> : vector<1x64xf32>
    %113 = tpu.matmul %112, %102, %cst_66 {dimension_numbers = #tpu.dot_dimension_numbers<[1], [0], [0], [1], [0, 0, 1, 1], [], []>} : vector<1x16xf32>, vector<16x64xf32>, vector<1x64xf32> -> vector<1x64xf32>
    %114 = vector.broadcast %113 : vector<1x64xf32> to vector<16x64xf32>
    %115 = arith.subf %107, %114 : vector<16x64xf32>
    %116 = arith.mulf %115, %115 : vector<16x64xf32>
    %cst_67 = arith.constant dense<0.000000e+00> : vector<64xf32>
    %117 = vector.multi_reduction <add>, %116, %cst_67 [0] : vector<16x64xf32> to vector<64xf32>
    %118 = vector.shape_cast %117 : vector<64xf32> to vector<1x64xf32>
    %cst_68 = arith.constant dense<0.000000e+00> : vector<1x16xf32>
    %119 = tpu.matmul %118, %101, %cst_68 {dimension_numbers = #tpu.dot_dimension_numbers<[1], [0], [0], [1], [0, 0, 1, 1], [], []>} : vector<1x64xf32>, vector<64x16xf32>, vector<1x16xf32> -> vector<1x16xf32>
    %cst_69 = arith.constant 1.562500e-02 : f32
    %120 = vector.broadcast %cst_69 : f32 to vector<1x16xf32>
    %121 = arith.mulf %119, %120 : vector<1x16xf32>
    %cst_70 = arith.constant 9.99999997E-7 : f32
    %122 = vector.broadcast %cst_70 : f32 to vector<1x16xf32>
    %123 = arith.addf %121, %122 : vector<1x16xf32>
    %124 = math.rsqrt %123 : vector<1x16xf32>
    %125 = arith.mulf %124, %103 : vector<1x16xf32>
    %cst_71 = arith.constant dense<0.000000e+00> : vector<1x64xf32>
    %126 = tpu.matmul %125, %102, %cst_71 {dimension_numbers = #tpu.dot_dimension_numbers<[1], [0], [0], [1], [0, 0, 1, 1], [], []>} : vector<1x16xf32>, vector<16x64xf32>, vector<1x64xf32> -> vector<1x64xf32>
    %127 = vector.broadcast %126 : vector<1x64xf32> to vector<16x64xf32>
    %128 = arith.mulf %115, %127 : vector<16x64xf32>
    %cst_72 = arith.constant dense<0.000000e+00> : vector<1x64xf32>
    %129 = tpu.matmul %104, %102, %cst_72 {dimension_numbers = #tpu.dot_dimension_numbers<[1], [0], [0], [1], [0, 0, 1, 1], [], []>} : vector<1x16xf32>, vector<16x64xf32>, vector<1x64xf32> -> vector<1x64xf32>
    %130 = vector.broadcast %129 : vector<1x64xf32> to vector<16x64xf32>
    %131 = arith.addf %128, %130 : vector<16x64xf32>
    %cst_73 = arith.constant 5.000000e-01 : f32
    %132 = vector.broadcast %cst_73 : f32 to vector<16x64xf32>
    %133 = arith.mulf %132, %131 : vector<16x64xf32>
    %cst_74 = arith.constant 4.471500e-02 : f32
    %134 = vector.broadcast %cst_74 : f32 to vector<16x64xf32>
    %135 = arith.mulf %134, %131 : vector<16x64xf32>
    %136 = arith.mulf %135, %131 : vector<16x64xf32>
    %137 = arith.mulf %136, %131 : vector<16x64xf32>
    %138 = arith.addf %131, %137 : vector<16x64xf32>
    %cst_75 = arith.constant 0.797884583 : f32
    %139 = vector.broadcast %cst_75 : f32 to vector<16x64xf32>
    %140 = arith.mulf %139, %138 : vector<16x64xf32>
    %141 = math.tanh %140 : vector<16x64xf32>
    %cst_76 = arith.constant 1.000000e+00 : f32
    %142 = vector.broadcast %cst_76 : f32 to vector<16x64xf32>
    %143 = arith.addf %142, %141 : vector<16x64xf32>
    %144 = arith.mulf %133, %143 : vector<16x64xf32>
    %c0_77 = arith.constant 0 : index
    %c32_78 = arith.constant 32 : index
    %145 = vector.load %arg12[%c0_77, %c32_78] : memref<128x48xf32, #tpu.memory_space<vmem>>, vector<64x16xf32>
    %cst_79 = arith.constant dense<0.000000e+00> : vector<16x16xf32>
    %146 = tpu.matmul %144, %145, %cst_79 {dimension_numbers = #tpu.dot_dimension_numbers<[1], [0], [0], [1], [0, 0, 1, 1], [], []>} : vector<16x64xf32>, vector<64x16xf32>, vector<16x16xf32> -> vector<16x16xf32>
    %cst_80 = arith.constant 2.500000e-01 : f32
    %147 = vector.broadcast %cst_80 : f32 to vector<16x16xf32>
    %148 = arith.mulf %146, %147 : vector<16x16xf32>
    %c0_81 = arith.constant 0 : index
    %c0_82 = arith.constant 0 : index
    %149 = vector.load %arg15[%c0_81, %c0_82] : memref<16x9xf32, #tpu.memory_space<vmem>>, vector<16x8xf32>
    %cst_83 = arith.constant dense<0.000000e+00> : vector<16x8xf32>
    %150 = tpu.matmul %148, %149, %cst_83 {dimension_numbers = #tpu.dot_dimension_numbers<[1], [0], [0], [1], [0, 0, 1, 1], [], []>} : vector<16x16xf32>, vector<16x8xf32>, vector<16x8xf32> -> vector<16x8xf32>
    %cst_84 = arith.constant dense<0.000000e+00> : vector<8xf32>
    %151 = vector.multi_reduction <add>, %150, %cst_84 [0] : vector<16x8xf32> to vector<8xf32>
    %152 = vector.shape_cast %151 : vector<8xf32> to vector<1x8xf32>
    %cst_85 = arith.constant 1.600000e+01 : f32
    %153 = vector.broadcast %cst_85 : f32 to vector<1x8xf32>
    %154 = arith.divf %152, %153 : vector<1x8xf32>
    %155 = vector.broadcast %154 : vector<1x8xf32> to vector<16x8xf32>
    %156 = arith.subf %150, %155 : vector<16x8xf32>
    %157 = arith.mulf %156, %156 : vector<16x8xf32>
    %cst_86 = arith.constant dense<0.000000e+00> : vector<8xf32>
    %158 = vector.multi_reduction <add>, %157, %cst_86 [0] : vector<16x8xf32> to vector<8xf32>
    %159 = vector.shape_cast %158 : vector<8xf32> to vector<1x8xf32>
    %cst_87 = arith.constant 1.600000e+01 : f32
    %160 = vector.broadcast %cst_87 : f32 to vector<1x8xf32>
    %161 = arith.divf %159, %160 : vector<1x8xf32>
    %162 = vector.broadcast %154 : vector<1x8xf32> to vector<16x8xf32>
    %163 = arith.subf %150, %162 : vector<16x8xf32>
    %cst_88 = arith.constant 9.99999997E-7 : f32
    %164 = vector.broadcast %cst_88 : f32 to vector<1x8xf32>
    %165 = arith.addf %161, %164 : vector<1x8xf32>
    %166 = math.rsqrt %165 : vector<1x8xf32>
    %167 = vector.broadcast %166 : vector<1x8xf32> to vector<16x8xf32>
    %168 = arith.mulf %163, %167 : vector<16x8xf32>
    %c9 = arith.constant 9 : index
    %c0_89 = arith.constant 0 : index
    %169 = vector.load %arg14[%c9, %c0_89] : memref<12x128xf32, #tpu.memory_space<vmem>>, vector<1x8xf32>
    %170 = vector.broadcast %169 : vector<1x8xf32> to vector<16x8xf32>
    %171 = arith.mulf %168, %170 : vector<16x8xf32>
    %c10 = arith.constant 10 : index
    %c0_90 = arith.constant 0 : index
    %172 = vector.load %arg14[%c10, %c0_90] : memref<12x128xf32, #tpu.memory_space<vmem>>, vector<1x8xf32>
    %173 = vector.broadcast %172 : vector<1x8xf32> to vector<16x8xf32>
    %174 = arith.addf %171, %173 : vector<16x8xf32>
    %cst_91 = arith.constant 5.000000e-01 : f32
    %175 = vector.broadcast %cst_91 : f32 to vector<16x8xf32>
    %176 = arith.mulf %175, %174 : vector<16x8xf32>
    %cst_92 = arith.constant 4.471500e-02 : f32
    %177 = vector.broadcast %cst_92 : f32 to vector<16x8xf32>
    %178 = arith.mulf %177, %174 : vector<16x8xf32>
    %179 = arith.mulf %178, %174 : vector<16x8xf32>
    %180 = arith.mulf %179, %174 : vector<16x8xf32>
    %181 = arith.addf %174, %180 : vector<16x8xf32>
    %cst_93 = arith.constant 0.797884583 : f32
    %182 = vector.broadcast %cst_93 : f32 to vector<16x8xf32>
    %183 = arith.mulf %182, %181 : vector<16x8xf32>
    %184 = math.tanh %183 : vector<16x8xf32>
    %cst_94 = arith.constant 1.000000e+00 : f32
    %185 = vector.broadcast %cst_94 : f32 to vector<16x8xf32>
    %186 = arith.addf %185, %184 : vector<16x8xf32>
    %187 = arith.mulf %176, %186 : vector<16x8xf32>
    %c0_95 = arith.constant 0 : index
    %c8_96 = arith.constant 8 : index
    %188 = vector.load %arg15[%c0_95, %c8_96] : memref<16x9xf32, #tpu.memory_space<vmem>>, vector<8x1xf32>
    %cst_97 = arith.constant dense<0.000000e+00> : vector<16x1xf32>
    %189 = tpu.matmul %187, %188, %cst_97 {dimension_numbers = #tpu.dot_dimension_numbers<[1], [0], [0], [1], [0, 0, 1, 1], [], []>} : vector<16x8xf32>, vector<8x1xf32>, vector<16x1xf32> -> vector<16x1xf32>
    %c11 = arith.constant 11 : index
    %c0_98 = arith.constant 0 : index
    %190 = vector.load %arg14[%c11, %c0_98] : memref<12x128xf32, #tpu.memory_space<vmem>>, vector<1x1xf32>
    %191 = vector.broadcast %190 : vector<1x1xf32> to vector<16x1xf32>
    %192 = arith.addf %189, %191 : vector<16x1xf32>
    %cst_99 = arith.constant dense<0.000000e+00> : vector<10x64xf32>
    %193 = tpu.matmul %1, %0, %cst_99 {dimension_numbers = #tpu.dot_dimension_numbers<[1], [0], [0], [1], [0, 0, 1, 1], [], []>} : vector<10x16xf32>, vector<16x64xf32>, vector<10x64xf32> -> vector<10x64xf32>
    %c0_100 = arith.constant 0 : index
    %c0_101 = arith.constant 0 : index
    %194 = vector.load %arg9[%c0_100, %c0_101] : memref<99x32xf32, #tpu.memory_space<vmem>>, vector<64x32xf32>
    %cst_102 = arith.constant dense<0.000000e+00> : vector<10x32xf32>
    %195 = tpu.matmul %193, %194, %cst_102 {dimension_numbers = #tpu.dot_dimension_numbers<[1], [0], [0], [1], [0, 0, 1, 1], [], []>} : vector<10x64xf32>, vector<64x32xf32>, vector<10x32xf32> -> vector<10x32xf32>
    %c0_103 = arith.constant 0 : index
    %c0_104 = arith.constant 0 : index
    %196 = vector.load %arg2[%c0_103, %c0_104] : memref<28x32xf32, #tpu.memory_space<vmem>>, vector<10x32xf32>
    %197 = arith.addf %195, %196 : vector<10x32xf32>
    %c0_105 = arith.constant 0 : index
    %c0_106 = arith.constant 0 : index
    %c0_107 = arith.constant 0 : index
    %198 = vector.load %arg5[%c0_105, %c0_106, %c0_107] : memref<4x4x32xf32, #tpu.memory_space<vmem>>, vector<1x1x32xf32>
    %199 = vector.shape_cast %198 : vector<1x1x32xf32> to vector<1x32xf32>
    %c0_108 = arith.constant 0 : index
    %c1_109 = arith.constant 1 : index
    %c0_110 = arith.constant 0 : index
    %200 = vector.load %arg5[%c0_108, %c1_109, %c0_110] : memref<4x4x32xf32, #tpu.memory_space<vmem>>, vector<1x1x32xf32>
    %201 = vector.shape_cast %200 : vector<1x1x32xf32> to vector<1x32xf32>
    %cst_111 = arith.constant dense<0.000000e+00> : vector<10xf32>
    %202 = vector.multi_reduction <add>, %197, %cst_111 [1] : vector<10x32xf32> to vector<10xf32>
    %203 = vector.shape_cast %202 : vector<10xf32> to vector<10x1xf32>
    %cst_112 = arith.constant 3.200000e+01 : f32
    %204 = vector.broadcast %cst_112 : f32 to vector<10x1xf32>
    %205 = arith.divf %203, %204 : vector<10x1xf32>
    %206 = vector.broadcast %205 : vector<10x1xf32> to vector<10x32xf32>
    %207 = arith.subf %197, %206 : vector<10x32xf32>
    %208 = arith.mulf %207, %207 : vector<10x32xf32>
    %cst_113 = arith.constant dense<0.000000e+00> : vector<10xf32>
    %209 = vector.multi_reduction <add>, %208, %cst_113 [1] : vector<10x32xf32> to vector<10xf32>
    %210 = vector.shape_cast %209 : vector<10xf32> to vector<10x1xf32>
    %cst_114 = arith.constant 3.200000e+01 : f32
    %211 = vector.broadcast %cst_114 : f32 to vector<10x1xf32>
    %212 = arith.divf %210, %211 : vector<10x1xf32>
    %213 = vector.broadcast %205 : vector<10x1xf32> to vector<10x32xf32>
    %214 = arith.subf %197, %213 : vector<10x32xf32>
    %cst_115 = arith.constant 9.99999997E-7 : f32
    %215 = vector.broadcast %cst_115 : f32 to vector<10x1xf32>
    %216 = arith.addf %212, %215 : vector<10x1xf32>
    %217 = math.rsqrt %216 : vector<10x1xf32>
    %218 = vector.broadcast %217 : vector<10x1xf32> to vector<10x32xf32>
    %219 = arith.mulf %214, %218 : vector<10x32xf32>
    %220 = vector.broadcast %199 : vector<1x32xf32> to vector<10x32xf32>
    %221 = arith.mulf %219, %220 : vector<10x32xf32>
    %222 = vector.broadcast %201 : vector<1x32xf32> to vector<10x32xf32>
    %223 = arith.addf %221, %222 : vector<10x32xf32>
    %c0_116 = arith.constant 0 : index
    %c0_117 = arith.constant 0 : index
    %c0_118 = arith.constant 0 : index
    %224 = vector.load %arg3[%c0_116, %c0_117, %c0_118] : memref<4x32x128xf32, #tpu.memory_space<vmem>>, vector<1x32x96xf32>
    %225 = vector.shape_cast %224 : vector<1x32x96xf32> to vector<32x96xf32>
    %cst_119 = arith.constant dense<0.000000e+00> : vector<10x96xf32>
    %226 = tpu.matmul %223, %225, %cst_119 {dimension_numbers = #tpu.dot_dimension_numbers<[1], [0], [0], [1], [0, 0, 1, 1], [], []>} : vector<10x32xf32>, vector<32x96xf32>, vector<10x96xf32> -> vector<10x96xf32>
    %c0_120 = arith.constant 0 : index
    %c0_121 = arith.constant 0 : index
    %c0_122 = arith.constant 0 : index
    %227 = vector.load %arg4[%c0_120, %c0_121, %c0_122] : memref<4x1x128xf32, #tpu.memory_space<vmem>>, vector<1x1x96xf32>
    %228 = vector.shape_cast %227 : vector<1x1x96xf32> to vector<1x96xf32>
    %229 = vector.broadcast %228 : vector<1x96xf32> to vector<10x96xf32>
    %230 = arith.addf %226, %229 : vector<10x96xf32>
    %231 = vector.extract_strided_slice %230 {offsets = [0, 0], sizes = [10, 8], strides = [1, 1]} : vector<10x96xf32> to vector<10x8xf32>
    %232 = vector.extract_strided_slice %230 {offsets = [0, 32], sizes = [10, 8], strides = [1, 1]} : vector<10x96xf32> to vector<10x8xf32>
    %233 = vector.extract_strided_slice %230 {offsets = [0, 64], sizes = [10, 8], strides = [1, 1]} : vector<10x96xf32> to vector<10x8xf32>
    %cst_123 = arith.constant dense<0.000000e+00> : vector<10x10xf32>
    %234 = tpu.matmul %231, %232, %cst_123 {dimension_numbers = #tpu.dot_dimension_numbers<[1], [1], [0], [0], [0, 0, 1, 0], [], []>} : vector<10x8xf32>, vector<10x8xf32>, vector<10x10xf32> -> vector<10x10xf32>
    %cst_124 = arith.constant 0.353553385 : f32
    %235 = vector.broadcast %cst_124 : f32 to vector<10x10xf32>
    %236 = arith.mulf %234, %235 : vector<10x10xf32>
    %237 = arith.addf %236, %5 : vector<10x10xf32>
    %cst_125 = arith.constant dense<0xFF800000> : vector<10xf32>
    %238 = vector.multi_reduction <maximumf>, %237, %cst_125 [1] : vector<10x10xf32> to vector<10xf32>
    %239 = vector.shape_cast %238 : vector<10xf32> to vector<10x1xf32>
    %240 = vector.broadcast %239 : vector<10x1xf32> to vector<10x10xf32>
    %241 = arith.subf %237, %240 : vector<10x10xf32>
    %242 = math.exp %241 : vector<10x10xf32>
    %cst_126 = arith.constant dense<0.000000e+00> : vector<10xf32>
    %243 = vector.multi_reduction <add>, %242, %cst_126 [1] : vector<10x10xf32> to vector<10xf32>
    %244 = vector.shape_cast %243 : vector<10xf32> to vector<10x1xf32>
    %245 = tpu.reciprocal %244 {approx = true} : vector<10x1xf32> -> vector<10x1xf32>
    %246 = vector.broadcast %245 : vector<10x1xf32> to vector<10x10xf32>
    %247 = arith.mulf %242, %246 : vector<10x10xf32>
    %cst_127 = arith.constant dense<0.000000e+00> : vector<10x8xf32>
    %248 = tpu.matmul %247, %233, %cst_127 {dimension_numbers = #tpu.dot_dimension_numbers<[1], [0], [0], [1], [0, 0, 1, 1], [], []>} : vector<10x10xf32>, vector<10x8xf32>, vector<10x8xf32> -> vector<10x8xf32>
    %249 = vector.extract_strided_slice %230 {offsets = [0, 8], sizes = [10, 8], strides = [1, 1]} : vector<10x96xf32> to vector<10x8xf32>
    %250 = vector.extract_strided_slice %230 {offsets = [0, 40], sizes = [10, 8], strides = [1, 1]} : vector<10x96xf32> to vector<10x8xf32>
    %251 = vector.extract_strided_slice %230 {offsets = [0, 72], sizes = [10, 8], strides = [1, 1]} : vector<10x96xf32> to vector<10x8xf32>
    %cst_128 = arith.constant dense<0.000000e+00> : vector<10x10xf32>
    %252 = tpu.matmul %249, %250, %cst_128 {dimension_numbers = #tpu.dot_dimension_numbers<[1], [1], [0], [0], [0, 0, 1, 0], [], []>} : vector<10x8xf32>, vector<10x8xf32>, vector<10x10xf32> -> vector<10x10xf32>
    %cst_129 = arith.constant 0.353553385 : f32
    %253 = vector.broadcast %cst_129 : f32 to vector<10x10xf32>
    %254 = arith.mulf %252, %253 : vector<10x10xf32>
    %255 = arith.addf %254, %5 : vector<10x10xf32>
    %cst_130 = arith.constant dense<0xFF800000> : vector<10xf32>
    %256 = vector.multi_reduction <maximumf>, %255, %cst_130 [1] : vector<10x10xf32> to vector<10xf32>
    %257 = vector.shape_cast %256 : vector<10xf32> to vector<10x1xf32>
    %258 = vector.broadcast %257 : vector<10x1xf32> to vector<10x10xf32>
    %259 = arith.subf %255, %258 : vector<10x10xf32>
    %260 = math.exp %259 : vector<10x10xf32>
    %cst_131 = arith.constant dense<0.000000e+00> : vector<10xf32>
    %261 = vector.multi_reduction <add>, %260, %cst_131 [1] : vector<10x10xf32> to vector<10xf32>
    %262 = vector.shape_cast %261 : vector<10xf32> to vector<10x1xf32>
    %263 = tpu.reciprocal %262 {approx = true} : vector<10x1xf32> -> vector<10x1xf32>
    %264 = vector.broadcast %263 : vector<10x1xf32> to vector<10x10xf32>
    %265 = arith.mulf %260, %264 : vector<10x10xf32>
    %cst_132 = arith.constant dense<0.000000e+00> : vector<10x8xf32>
    %266 = tpu.matmul %265, %251, %cst_132 {dimension_numbers = #tpu.dot_dimension_numbers<[1], [0], [0], [1], [0, 0, 1, 1], [], []>} : vector<10x10xf32>, vector<10x8xf32>, vector<10x8xf32> -> vector<10x8xf32>
    %267 = vector.extract_strided_slice %230 {offsets = [0, 16], sizes = [10, 8], strides = [1, 1]} : vector<10x96xf32> to vector<10x8xf32>
    %268 = vector.extract_strided_slice %230 {offsets = [0, 48], sizes = [10, 8], strides = [1, 1]} : vector<10x96xf32> to vector<10x8xf32>
    %269 = vector.extract_strided_slice %230 {offsets = [0, 80], sizes = [10, 8], strides = [1, 1]} : vector<10x96xf32> to vector<10x8xf32>
    %cst_133 = arith.constant dense<0.000000e+00> : vector<10x10xf32>
    %270 = tpu.matmul %267, %268, %cst_133 {dimension_numbers = #tpu.dot_dimension_numbers<[1], [1], [0], [0], [0, 0, 1, 0], [], []>} : vector<10x8xf32>, vector<10x8xf32>, vector<10x10xf32> -> vector<10x10xf32>
    %cst_134 = arith.constant 0.353553385 : f32
    %271 = vector.broadcast %cst_134 : f32 to vector<10x10xf32>
    %272 = arith.mulf %270, %271 : vector<10x10xf32>
    %273 = arith.addf %272, %5 : vector<10x10xf32>
    %cst_135 = arith.constant dense<0xFF800000> : vector<10xf32>
    %274 = vector.multi_reduction <maximumf>, %273, %cst_135 [1] : vector<10x10xf32> to vector<10xf32>
    %275 = vector.shape_cast %274 : vector<10xf32> to vector<10x1xf32>
    %276 = vector.broadcast %275 : vector<10x1xf32> to vector<10x10xf32>
    %277 = arith.subf %273, %276 : vector<10x10xf32>
    %278 = math.exp %277 : vector<10x10xf32>
    %cst_136 = arith.constant dense<0.000000e+00> : vector<10xf32>
    %279 = vector.multi_reduction <add>, %278, %cst_136 [1] : vector<10x10xf32> to vector<10xf32>
    %280 = vector.shape_cast %279 : vector<10xf32> to vector<10x1xf32>
    %281 = tpu.reciprocal %280 {approx = true} : vector<10x1xf32> -> vector<10x1xf32>
    %282 = vector.broadcast %281 : vector<10x1xf32> to vector<10x10xf32>
    %283 = arith.mulf %278, %282 : vector<10x10xf32>
    %cst_137 = arith.constant dense<0.000000e+00> : vector<10x8xf32>
    %284 = tpu.matmul %283, %269, %cst_137 {dimension_numbers = #tpu.dot_dimension_numbers<[1], [0], [0], [1], [0, 0, 1, 1], [], []>} : vector<10x10xf32>, vector<10x8xf32>, vector<10x8xf32> -> vector<10x8xf32>
    %285 = vector.extract_strided_slice %230 {offsets = [0, 24], sizes = [10, 8], strides = [1, 1]} : vector<10x96xf32> to vector<10x8xf32>
    %286 = vector.extract_strided_slice %230 {offsets = [0, 56], sizes = [10, 8], strides = [1, 1]} : vector<10x96xf32> to vector<10x8xf32>
    %287 = vector.extract_strided_slice %230 {offsets = [0, 88], sizes = [10, 8], strides = [1, 1]} : vector<10x96xf32> to vector<10x8xf32>
    %cst_138 = arith.constant dense<0.000000e+00> : vector<10x10xf32>
    %288 = tpu.matmul %285, %286, %cst_138 {dimension_numbers = #tpu.dot_dimension_numbers<[1], [1], [0], [0], [0, 0, 1, 0], [], []>} : vector<10x8xf32>, vector<10x8xf32>, vector<10x10xf32> -> vector<10x10xf32>
    %cst_139 = arith.constant 0.353553385 : f32
    %289 = vector.broadcast %cst_139 : f32 to vector<10x10xf32>
    %290 = arith.mulf %288, %289 : vector<10x10xf32>
    %291 = arith.addf %290, %5 : vector<10x10xf32>
    %cst_140 = arith.constant dense<0xFF800000> : vector<10xf32>
    %292 = vector.multi_reduction <maximumf>, %291, %cst_140 [1] : vector<10x10xf32> to vector<10xf32>
    %293 = vector.shape_cast %292 : vector<10xf32> to vector<10x1xf32>
    %294 = vector.broadcast %293 : vector<10x1xf32> to vector<10x10xf32>
    %295 = arith.subf %291, %294 : vector<10x10xf32>
    %296 = math.exp %295 : vector<10x10xf32>
    %cst_141 = arith.constant dense<0.000000e+00> : vector<10xf32>
    %297 = vector.multi_reduction <add>, %296, %cst_141 [1] : vector<10x10xf32> to vector<10xf32>
    %298 = vector.shape_cast %297 : vector<10xf32> to vector<10x1xf32>
    %299 = tpu.reciprocal %298 {approx = true} : vector<10x1xf32> -> vector<10x1xf32>
    %300 = vector.broadcast %299 : vector<10x1xf32> to vector<10x10xf32>
    %301 = arith.mulf %296, %300 : vector<10x10xf32>
    %cst_142 = arith.constant dense<0.000000e+00> : vector<10x8xf32>
    %302 = tpu.matmul %301, %287, %cst_142 {dimension_numbers = #tpu.dot_dimension_numbers<[1], [0], [0], [1], [0, 0, 1, 1], [], []>} : vector<10x10xf32>, vector<10x8xf32>, vector<10x8xf32> -> vector<10x8xf32>
    %303 = tpu.concatenate %248, %266, %284, %302 in 1 : vector<10x8xf32>, vector<10x8xf32>, vector<10x8xf32>, vector<10x8xf32> -> vector<10x32xf32>
    %c0_143 = arith.constant 0 : index
    %c0_144 = arith.constant 0 : index
    %c96 = arith.constant 96 : index
    %304 = vector.load %arg3[%c0_143, %c0_144, %c96] : memref<4x32x128xf32, #tpu.memory_space<vmem>>, vector<1x32x32xf32>
    %305 = vector.shape_cast %304 : vector<1x32x32xf32> to vector<32x32xf32>
    %cst_145 = arith.constant dense<0.000000e+00> : vector<10x32xf32>
    %306 = tpu.matmul %303, %305, %cst_145 {dimension_numbers = #tpu.dot_dimension_numbers<[1], [0], [0], [1], [0, 0, 1, 1], [], []>} : vector<10x32xf32>, vector<32x32xf32>, vector<10x32xf32> -> vector<10x32xf32>
    %307 = arith.addf %197, %306 : vector<10x32xf32>
    %c0_146 = arith.constant 0 : index
    %c0_147 = arith.constant 0 : index
    %c96_148 = arith.constant 96 : index
    %308 = vector.load %arg4[%c0_146, %c0_147, %c96_148] : memref<4x1x128xf32, #tpu.memory_space<vmem>>, vector<1x1x32xf32>
    %309 = vector.shape_cast %308 : vector<1x1x32xf32> to vector<1x32xf32>
    %310 = vector.broadcast %309 : vector<1x32xf32> to vector<10x32xf32>
    %311 = arith.addf %307, %310 : vector<10x32xf32>
    %c0_149 = arith.constant 0 : index
    %c2_150 = arith.constant 2 : index
    %c0_151 = arith.constant 0 : index
    %312 = vector.load %arg5[%c0_149, %c2_150, %c0_151] : memref<4x4x32xf32, #tpu.memory_space<vmem>>, vector<1x1x32xf32>
    %313 = vector.shape_cast %312 : vector<1x1x32xf32> to vector<1x32xf32>
    %c0_152 = arith.constant 0 : index
    %c3_153 = arith.constant 3 : index
    %c0_154 = arith.constant 0 : index
    %314 = vector.load %arg5[%c0_152, %c3_153, %c0_154] : memref<4x4x32xf32, #tpu.memory_space<vmem>>, vector<1x1x32xf32>
    %315 = vector.shape_cast %314 : vector<1x1x32xf32> to vector<1x32xf32>
    %cst_155 = arith.constant dense<0.000000e+00> : vector<10xf32>
    %316 = vector.multi_reduction <add>, %311, %cst_155 [1] : vector<10x32xf32> to vector<10xf32>
    %317 = vector.shape_cast %316 : vector<10xf32> to vector<10x1xf32>
    %cst_156 = arith.constant 3.200000e+01 : f32
    %318 = vector.broadcast %cst_156 : f32 to vector<10x1xf32>
    %319 = arith.divf %317, %318 : vector<10x1xf32>
    %320 = vector.broadcast %319 : vector<10x1xf32> to vector<10x32xf32>
    %321 = arith.subf %311, %320 : vector<10x32xf32>
    %322 = arith.mulf %321, %321 : vector<10x32xf32>
    %cst_157 = arith.constant dense<0.000000e+00> : vector<10xf32>
    %323 = vector.multi_reduction <add>, %322, %cst_157 [1] : vector<10x32xf32> to vector<10xf32>
    %324 = vector.shape_cast %323 : vector<10xf32> to vector<10x1xf32>
    %cst_158 = arith.constant 3.200000e+01 : f32
    %325 = vector.broadcast %cst_158 : f32 to vector<10x1xf32>
    %326 = arith.divf %324, %325 : vector<10x1xf32>
    %327 = vector.broadcast %319 : vector<10x1xf32> to vector<10x32xf32>
    %328 = arith.subf %311, %327 : vector<10x32xf32>
    %cst_159 = arith.constant 9.99999997E-7 : f32
    %329 = vector.broadcast %cst_159 : f32 to vector<10x1xf32>
    %330 = arith.addf %326, %329 : vector<10x1xf32>
    %331 = math.rsqrt %330 : vector<10x1xf32>
    %332 = vector.broadcast %331 : vector<10x1xf32> to vector<10x32xf32>
    %333 = arith.mulf %328, %332 : vector<10x32xf32>
    %334 = vector.broadcast %313 : vector<1x32xf32> to vector<10x32xf32>
    %335 = arith.mulf %333, %334 : vector<10x32xf32>
    %336 = vector.broadcast %315 : vector<1x32xf32> to vector<10x32xf32>
    %337 = arith.addf %335, %336 : vector<10x32xf32>
    %c0_160 = arith.constant 0 : index
    %c0_161 = arith.constant 0 : index
    %c0_162 = arith.constant 0 : index
    %338 = vector.load %arg6[%c0_160, %c0_161, %c0_162] : memref<4x32x64xf32, #tpu.memory_space<vmem>>, vector<1x32x64xf32>
    %339 = vector.shape_cast %338 : vector<1x32x64xf32> to vector<32x64xf32>
    %cst_163 = arith.constant dense<0.000000e+00> : vector<10x64xf32>
    %340 = tpu.matmul %337, %339, %cst_163 {dimension_numbers = #tpu.dot_dimension_numbers<[1], [0], [0], [1], [0, 0, 1, 1], [], []>} : vector<10x32xf32>, vector<32x64xf32>, vector<10x64xf32> -> vector<10x64xf32>
    %c0_164 = arith.constant 0 : index
    %c0_165 = arith.constant 0 : index
    %c0_166 = arith.constant 0 : index
    %341 = vector.load %arg8[%c0_164, %c0_165, %c0_166] : memref<4x1x96xf32, #tpu.memory_space<vmem>>, vector<1x1x64xf32>
    %342 = vector.shape_cast %341 : vector<1x1x64xf32> to vector<1x64xf32>
    %343 = vector.broadcast %342 : vector<1x64xf32> to vector<10x64xf32>
    %344 = arith.addf %340, %343 : vector<10x64xf32>
    %cst_167 = arith.constant 5.000000e-01 : f32
    %345 = vector.broadcast %cst_167 : f32 to vector<10x64xf32>
    %346 = arith.mulf %345, %344 : vector<10x64xf32>
    %cst_168 = arith.constant 4.471500e-02 : f32
    %347 = vector.broadcast %cst_168 : f32 to vector<10x64xf32>
    %348 = arith.mulf %347, %344 : vector<10x64xf32>
    %349 = arith.mulf %348, %344 : vector<10x64xf32>
    %350 = arith.mulf %349, %344 : vector<10x64xf32>
    %351 = arith.addf %344, %350 : vector<10x64xf32>
    %cst_169 = arith.constant 0.797884583 : f32
    %352 = vector.broadcast %cst_169 : f32 to vector<10x64xf32>
    %353 = arith.mulf %352, %351 : vector<10x64xf32>
    %354 = math.tanh %353 : vector<10x64xf32>
    %cst_170 = arith.constant 1.000000e+00 : f32
    %355 = vector.broadcast %cst_170 : f32 to vector<10x64xf32>
    %356 = arith.addf %355, %354 : vector<10x64xf32>
    %357 = arith.mulf %346, %356 : vector<10x64xf32>
    %c0_171 = arith.constant 0 : index
    %c0_172 = arith.constant 0 : index
    %c0_173 = arith.constant 0 : index
    %358 = vector.load %arg7[%c0_171, %c0_172, %c0_173] : memref<4x64x32xf32, #tpu.memory_space<vmem>>, vector<1x64x32xf32>
    %359 = vector.shape_cast %358 : vector<1x64x32xf32> to vector<64x32xf32>
    %cst_174 = arith.constant dense<0.000000e+00> : vector<10x32xf32>
    %360 = tpu.matmul %357, %359, %cst_174 {dimension_numbers = #tpu.dot_dimension_numbers<[1], [0], [0], [1], [0, 0, 1, 1], [], []>} : vector<10x64xf32>, vector<64x32xf32>, vector<10x32xf32> -> vector<10x32xf32>
    %361 = arith.addf %311, %360 : vector<10x32xf32>
    %c0_175 = arith.constant 0 : index
    %c0_176 = arith.constant 0 : index
    %c64 = arith.constant 64 : index
    %362 = vector.load %arg8[%c0_175, %c0_176, %c64] : memref<4x1x96xf32, #tpu.memory_space<vmem>>, vector<1x1x32xf32>
    %363 = vector.shape_cast %362 : vector<1x1x32xf32> to vector<1x32xf32>
    %364 = vector.broadcast %363 : vector<1x32xf32> to vector<10x32xf32>
    %365 = arith.addf %361, %364 : vector<10x32xf32>
    %c1_177 = arith.constant 1 : index
    %c0_178 = arith.constant 0 : index
    %c0_179 = arith.constant 0 : index
    %366 = vector.load %arg5[%c1_177, %c0_178, %c0_179] : memref<4x4x32xf32, #tpu.memory_space<vmem>>, vector<1x1x32xf32>
    %367 = vector.shape_cast %366 : vector<1x1x32xf32> to vector<1x32xf32>
    %c1_180 = arith.constant 1 : index
    %c1_181 = arith.constant 1 : index
    %c0_182 = arith.constant 0 : index
    %368 = vector.load %arg5[%c1_180, %c1_181, %c0_182] : memref<4x4x32xf32, #tpu.memory_space<vmem>>, vector<1x1x32xf32>
    %369 = vector.shape_cast %368 : vector<1x1x32xf32> to vector<1x32xf32>
    %cst_183 = arith.constant dense<0.000000e+00> : vector<10xf32>
    %370 = vector.multi_reduction <add>, %365, %cst_183 [1] : vector<10x32xf32> to vector<10xf32>
    %371 = vector.shape_cast %370 : vector<10xf32> to vector<10x1xf32>
    %cst_184 = arith.constant 3.200000e+01 : f32
    %372 = vector.broadcast %cst_184 : f32 to vector<10x1xf32>
    %373 = arith.divf %371, %372 : vector<10x1xf32>
    %374 = vector.broadcast %373 : vector<10x1xf32> to vector<10x32xf32>
    %375 = arith.subf %365, %374 : vector<10x32xf32>
    %376 = arith.mulf %375, %375 : vector<10x32xf32>
    %cst_185 = arith.constant dense<0.000000e+00> : vector<10xf32>
    %377 = vector.multi_reduction <add>, %376, %cst_185 [1] : vector<10x32xf32> to vector<10xf32>
    %378 = vector.shape_cast %377 : vector<10xf32> to vector<10x1xf32>
    %cst_186 = arith.constant 3.200000e+01 : f32
    %379 = vector.broadcast %cst_186 : f32 to vector<10x1xf32>
    %380 = arith.divf %378, %379 : vector<10x1xf32>
    %381 = vector.broadcast %373 : vector<10x1xf32> to vector<10x32xf32>
    %382 = arith.subf %365, %381 : vector<10x32xf32>
    %cst_187 = arith.constant 9.99999997E-7 : f32
    %383 = vector.broadcast %cst_187 : f32 to vector<10x1xf32>
    %384 = arith.addf %380, %383 : vector<10x1xf32>
    %385 = math.rsqrt %384 : vector<10x1xf32>
    %386 = vector.broadcast %385 : vector<10x1xf32> to vector<10x32xf32>
    %387 = arith.mulf %382, %386 : vector<10x32xf32>
    %388 = vector.broadcast %367 : vector<1x32xf32> to vector<10x32xf32>
    %389 = arith.mulf %387, %388 : vector<10x32xf32>
    %390 = vector.broadcast %369 : vector<1x32xf32> to vector<10x32xf32>
    %391 = arith.addf %389, %390 : vector<10x32xf32>
    %c1_188 = arith.constant 1 : index
    %c0_189 = arith.constant 0 : index
    %c0_190 = arith.constant 0 : index
    %392 = vector.load %arg3[%c1_188, %c0_189, %c0_190] : memref<4x32x128xf32, #tpu.memory_space<vmem>>, vector<1x32x96xf32>
    %393 = vector.shape_cast %392 : vector<1x32x96xf32> to vector<32x96xf32>
    %cst_191 = arith.constant dense<0.000000e+00> : vector<10x96xf32>
    %394 = tpu.matmul %391, %393, %cst_191 {dimension_numbers = #tpu.dot_dimension_numbers<[1], [0], [0], [1], [0, 0, 1, 1], [], []>} : vector<10x32xf32>, vector<32x96xf32>, vector<10x96xf32> -> vector<10x96xf32>
    %c1_192 = arith.constant 1 : index
    %c0_193 = arith.constant 0 : index
    %c0_194 = arith.constant 0 : index
    %395 = vector.load %arg4[%c1_192, %c0_193, %c0_194] : memref<4x1x128xf32, #tpu.memory_space<vmem>>, vector<1x1x96xf32>
    %396 = vector.shape_cast %395 : vector<1x1x96xf32> to vector<1x96xf32>
    %397 = vector.broadcast %396 : vector<1x96xf32> to vector<10x96xf32>
    %398 = arith.addf %394, %397 : vector<10x96xf32>
    %399 = vector.extract_strided_slice %398 {offsets = [0, 0], sizes = [10, 8], strides = [1, 1]} : vector<10x96xf32> to vector<10x8xf32>
    %400 = vector.extract_strided_slice %398 {offsets = [0, 32], sizes = [10, 8], strides = [1, 1]} : vector<10x96xf32> to vector<10x8xf32>
    %401 = vector.extract_strided_slice %398 {offsets = [0, 64], sizes = [10, 8], strides = [1, 1]} : vector<10x96xf32> to vector<10x8xf32>
    %cst_195 = arith.constant dense<0.000000e+00> : vector<10x10xf32>
    %402 = tpu.matmul %399, %400, %cst_195 {dimension_numbers = #tpu.dot_dimension_numbers<[1], [1], [0], [0], [0, 0, 1, 0], [], []>} : vector<10x8xf32>, vector<10x8xf32>, vector<10x10xf32> -> vector<10x10xf32>
    %cst_196 = arith.constant 0.353553385 : f32
    %403 = vector.broadcast %cst_196 : f32 to vector<10x10xf32>
    %404 = arith.mulf %402, %403 : vector<10x10xf32>
    %405 = arith.addf %404, %5 : vector<10x10xf32>
    %cst_197 = arith.constant dense<0xFF800000> : vector<10xf32>
    %406 = vector.multi_reduction <maximumf>, %405, %cst_197 [1] : vector<10x10xf32> to vector<10xf32>
    %407 = vector.shape_cast %406 : vector<10xf32> to vector<10x1xf32>
    %408 = vector.broadcast %407 : vector<10x1xf32> to vector<10x10xf32>
    %409 = arith.subf %405, %408 : vector<10x10xf32>
    %410 = math.exp %409 : vector<10x10xf32>
    %cst_198 = arith.constant dense<0.000000e+00> : vector<10xf32>
    %411 = vector.multi_reduction <add>, %410, %cst_198 [1] : vector<10x10xf32> to vector<10xf32>
    %412 = vector.shape_cast %411 : vector<10xf32> to vector<10x1xf32>
    %413 = tpu.reciprocal %412 {approx = true} : vector<10x1xf32> -> vector<10x1xf32>
    %414 = vector.broadcast %413 : vector<10x1xf32> to vector<10x10xf32>
    %415 = arith.mulf %410, %414 : vector<10x10xf32>
    %cst_199 = arith.constant dense<0.000000e+00> : vector<10x8xf32>
    %416 = tpu.matmul %415, %401, %cst_199 {dimension_numbers = #tpu.dot_dimension_numbers<[1], [0], [0], [1], [0, 0, 1, 1], [], []>} : vector<10x10xf32>, vector<10x8xf32>, vector<10x8xf32> -> vector<10x8xf32>
    %417 = vector.extract_strided_slice %398 {offsets = [0, 8], sizes = [10, 8], strides = [1, 1]} : vector<10x96xf32> to vector<10x8xf32>
    %418 = vector.extract_strided_slice %398 {offsets = [0, 40], sizes = [10, 8], strides = [1, 1]} : vector<10x96xf32> to vector<10x8xf32>
    %419 = vector.extract_strided_slice %398 {offsets = [0, 72], sizes = [10, 8], strides = [1, 1]} : vector<10x96xf32> to vector<10x8xf32>
    %cst_200 = arith.constant dense<0.000000e+00> : vector<10x10xf32>
    %420 = tpu.matmul %417, %418, %cst_200 {dimension_numbers = #tpu.dot_dimension_numbers<[1], [1], [0], [0], [0, 0, 1, 0], [], []>} : vector<10x8xf32>, vector<10x8xf32>, vector<10x10xf32> -> vector<10x10xf32>
    %cst_201 = arith.constant 0.353553385 : f32
    %421 = vector.broadcast %cst_201 : f32 to vector<10x10xf32>
    %422 = arith.mulf %420, %421 : vector<10x10xf32>
    %423 = arith.addf %422, %5 : vector<10x10xf32>
    %cst_202 = arith.constant dense<0xFF800000> : vector<10xf32>
    %424 = vector.multi_reduction <maximumf>, %423, %cst_202 [1] : vector<10x10xf32> to vector<10xf32>
    %425 = vector.shape_cast %424 : vector<10xf32> to vector<10x1xf32>
    %426 = vector.broadcast %425 : vector<10x1xf32> to vector<10x10xf32>
    %427 = arith.subf %423, %426 : vector<10x10xf32>
    %428 = math.exp %427 : vector<10x10xf32>
    %cst_203 = arith.constant dense<0.000000e+00> : vector<10xf32>
    %429 = vector.multi_reduction <add>, %428, %cst_203 [1] : vector<10x10xf32> to vector<10xf32>
    %430 = vector.shape_cast %429 : vector<10xf32> to vector<10x1xf32>
    %431 = tpu.reciprocal %430 {approx = true} : vector<10x1xf32> -> vector<10x1xf32>
    %432 = vector.broadcast %431 : vector<10x1xf32> to vector<10x10xf32>
    %433 = arith.mulf %428, %432 : vector<10x10xf32>
    %cst_204 = arith.constant dense<0.000000e+00> : vector<10x8xf32>
    %434 = tpu.matmul %433, %419, %cst_204 {dimension_numbers = #tpu.dot_dimension_numbers<[1], [0], [0], [1], [0, 0, 1, 1], [], []>} : vector<10x10xf32>, vector<10x8xf32>, vector<10x8xf32> -> vector<10x8xf32>
    %435 = vector.extract_strided_slice %398 {offsets = [0, 16], sizes = [10, 8], strides = [1, 1]} : vector<10x96xf32> to vector<10x8xf32>
    %436 = vector.extract_strided_slice %398 {offsets = [0, 48], sizes = [10, 8], strides = [1, 1]} : vector<10x96xf32> to vector<10x8xf32>
    %437 = vector.extract_strided_slice %398 {offsets = [0, 80], sizes = [10, 8], strides = [1, 1]} : vector<10x96xf32> to vector<10x8xf32>
    %cst_205 = arith.constant dense<0.000000e+00> : vector<10x10xf32>
    %438 = tpu.matmul %435, %436, %cst_205 {dimension_numbers = #tpu.dot_dimension_numbers<[1], [1], [0], [0], [0, 0, 1, 0], [], []>} : vector<10x8xf32>, vector<10x8xf32>, vector<10x10xf32> -> vector<10x10xf32>
    %cst_206 = arith.constant 0.353553385 : f32
    %439 = vector.broadcast %cst_206 : f32 to vector<10x10xf32>
    %440 = arith.mulf %438, %439 : vector<10x10xf32>
    %441 = arith.addf %440, %5 : vector<10x10xf32>
    %cst_207 = arith.constant dense<0xFF800000> : vector<10xf32>
    %442 = vector.multi_reduction <maximumf>, %441, %cst_207 [1] : vector<10x10xf32> to vector<10xf32>
    %443 = vector.shape_cast %442 : vector<10xf32> to vector<10x1xf32>
    %444 = vector.broadcast %443 : vector<10x1xf32> to vector<10x10xf32>
    %445 = arith.subf %441, %444 : vector<10x10xf32>
    %446 = math.exp %445 : vector<10x10xf32>
    %cst_208 = arith.constant dense<0.000000e+00> : vector<10xf32>
    %447 = vector.multi_reduction <add>, %446, %cst_208 [1] : vector<10x10xf32> to vector<10xf32>
    %448 = vector.shape_cast %447 : vector<10xf32> to vector<10x1xf32>
    %449 = tpu.reciprocal %448 {approx = true} : vector<10x1xf32> -> vector<10x1xf32>
    %450 = vector.broadcast %449 : vector<10x1xf32> to vector<10x10xf32>
    %451 = arith.mulf %446, %450 : vector<10x10xf32>
    %cst_209 = arith.constant dense<0.000000e+00> : vector<10x8xf32>
    %452 = tpu.matmul %451, %437, %cst_209 {dimension_numbers = #tpu.dot_dimension_numbers<[1], [0], [0], [1], [0, 0, 1, 1], [], []>} : vector<10x10xf32>, vector<10x8xf32>, vector<10x8xf32> -> vector<10x8xf32>
    %453 = vector.extract_strided_slice %398 {offsets = [0, 24], sizes = [10, 8], strides = [1, 1]} : vector<10x96xf32> to vector<10x8xf32>
    %454 = vector.extract_strided_slice %398 {offsets = [0, 56], sizes = [10, 8], strides = [1, 1]} : vector<10x96xf32> to vector<10x8xf32>
    %455 = vector.extract_strided_slice %398 {offsets = [0, 88], sizes = [10, 8], strides = [1, 1]} : vector<10x96xf32> to vector<10x8xf32>
    %cst_210 = arith.constant dense<0.000000e+00> : vector<10x10xf32>
    %456 = tpu.matmul %453, %454, %cst_210 {dimension_numbers = #tpu.dot_dimension_numbers<[1], [1], [0], [0], [0, 0, 1, 0], [], []>} : vector<10x8xf32>, vector<10x8xf32>, vector<10x10xf32> -> vector<10x10xf32>
    %cst_211 = arith.constant 0.353553385 : f32
    %457 = vector.broadcast %cst_211 : f32 to vector<10x10xf32>
    %458 = arith.mulf %456, %457 : vector<10x10xf32>
    %459 = arith.addf %458, %5 : vector<10x10xf32>
    %cst_212 = arith.constant dense<0xFF800000> : vector<10xf32>
    %460 = vector.multi_reduction <maximumf>, %459, %cst_212 [1] : vector<10x10xf32> to vector<10xf32>
    %461 = vector.shape_cast %460 : vector<10xf32> to vector<10x1xf32>
    %462 = vector.broadcast %461 : vector<10x1xf32> to vector<10x10xf32>
    %463 = arith.subf %459, %462 : vector<10x10xf32>
    %464 = math.exp %463 : vector<10x10xf32>
    %cst_213 = arith.constant dense<0.000000e+00> : vector<10xf32>
    %465 = vector.multi_reduction <add>, %464, %cst_213 [1] : vector<10x10xf32> to vector<10xf32>
    %466 = vector.shape_cast %465 : vector<10xf32> to vector<10x1xf32>
    %467 = tpu.reciprocal %466 {approx = true} : vector<10x1xf32> -> vector<10x1xf32>
    %468 = vector.broadcast %467 : vector<10x1xf32> to vector<10x10xf32>
    %469 = arith.mulf %464, %468 : vector<10x10xf32>
    %cst_214 = arith.constant dense<0.000000e+00> : vector<10x8xf32>
    %470 = tpu.matmul %469, %455, %cst_214 {dimension_numbers = #tpu.dot_dimension_numbers<[1], [0], [0], [1], [0, 0, 1, 1], [], []>} : vector<10x10xf32>, vector<10x8xf32>, vector<10x8xf32> -> vector<10x8xf32>
    %471 = tpu.concatenate %416, %434, %452, %470 in 1 : vector<10x8xf32>, vector<10x8xf32>, vector<10x8xf32>, vector<10x8xf32> -> vector<10x32xf32>
    %c1_215 = arith.constant 1 : index
    %c0_216 = arith.constant 0 : index
    %c96_217 = arith.constant 96 : index
    %472 = vector.load %arg3[%c1_215, %c0_216, %c96_217] : memref<4x32x128xf32, #tpu.memory_space<vmem>>, vector<1x32x32xf32>
    %473 = vector.shape_cast %472 : vector<1x32x32xf32> to vector<32x32xf32>
    %cst_218 = arith.constant dense<0.000000e+00> : vector<10x32xf32>
    %474 = tpu.matmul %471, %473, %cst_218 {dimension_numbers = #tpu.dot_dimension_numbers<[1], [0], [0], [1], [0, 0, 1, 1], [], []>} : vector<10x32xf32>, vector<32x32xf32>, vector<10x32xf32> -> vector<10x32xf32>
    %475 = arith.addf %365, %474 : vector<10x32xf32>
    %c1_219 = arith.constant 1 : index
    %c0_220 = arith.constant 0 : index
    %c96_221 = arith.constant 96 : index
    %476 = vector.load %arg4[%c1_219, %c0_220, %c96_221] : memref<4x1x128xf32, #tpu.memory_space<vmem>>, vector<1x1x32xf32>
    %477 = vector.shape_cast %476 : vector<1x1x32xf32> to vector<1x32xf32>
    %478 = vector.broadcast %477 : vector<1x32xf32> to vector<10x32xf32>
    %479 = arith.addf %475, %478 : vector<10x32xf32>
    %c1_222 = arith.constant 1 : index
    %c2_223 = arith.constant 2 : index
    %c0_224 = arith.constant 0 : index
    %480 = vector.load %arg5[%c1_222, %c2_223, %c0_224] : memref<4x4x32xf32, #tpu.memory_space<vmem>>, vector<1x1x32xf32>
    %481 = vector.shape_cast %480 : vector<1x1x32xf32> to vector<1x32xf32>
    %c1_225 = arith.constant 1 : index
    %c3_226 = arith.constant 3 : index
    %c0_227 = arith.constant 0 : index
    %482 = vector.load %arg5[%c1_225, %c3_226, %c0_227] : memref<4x4x32xf32, #tpu.memory_space<vmem>>, vector<1x1x32xf32>
    %483 = vector.shape_cast %482 : vector<1x1x32xf32> to vector<1x32xf32>
    %cst_228 = arith.constant dense<0.000000e+00> : vector<10xf32>
    %484 = vector.multi_reduction <add>, %479, %cst_228 [1] : vector<10x32xf32> to vector<10xf32>
    %485 = vector.shape_cast %484 : vector<10xf32> to vector<10x1xf32>
    %cst_229 = arith.constant 3.200000e+01 : f32
    %486 = vector.broadcast %cst_229 : f32 to vector<10x1xf32>
    %487 = arith.divf %485, %486 : vector<10x1xf32>
    %488 = vector.broadcast %487 : vector<10x1xf32> to vector<10x32xf32>
    %489 = arith.subf %479, %488 : vector<10x32xf32>
    %490 = arith.mulf %489, %489 : vector<10x32xf32>
    %cst_230 = arith.constant dense<0.000000e+00> : vector<10xf32>
    %491 = vector.multi_reduction <add>, %490, %cst_230 [1] : vector<10x32xf32> to vector<10xf32>
    %492 = vector.shape_cast %491 : vector<10xf32> to vector<10x1xf32>
    %cst_231 = arith.constant 3.200000e+01 : f32
    %493 = vector.broadcast %cst_231 : f32 to vector<10x1xf32>
    %494 = arith.divf %492, %493 : vector<10x1xf32>
    %495 = vector.broadcast %487 : vector<10x1xf32> to vector<10x32xf32>
    %496 = arith.subf %479, %495 : vector<10x32xf32>
    %cst_232 = arith.constant 9.99999997E-7 : f32
    %497 = vector.broadcast %cst_232 : f32 to vector<10x1xf32>
    %498 = arith.addf %494, %497 : vector<10x1xf32>
    %499 = math.rsqrt %498 : vector<10x1xf32>
    %500 = vector.broadcast %499 : vector<10x1xf32> to vector<10x32xf32>
    %501 = arith.mulf %496, %500 : vector<10x32xf32>
    %502 = vector.broadcast %481 : vector<1x32xf32> to vector<10x32xf32>
    %503 = arith.mulf %501, %502 : vector<10x32xf32>
    %504 = vector.broadcast %483 : vector<1x32xf32> to vector<10x32xf32>
    %505 = arith.addf %503, %504 : vector<10x32xf32>
    %c1_233 = arith.constant 1 : index
    %c0_234 = arith.constant 0 : index
    %c0_235 = arith.constant 0 : index
    %506 = vector.load %arg6[%c1_233, %c0_234, %c0_235] : memref<4x32x64xf32, #tpu.memory_space<vmem>>, vector<1x32x64xf32>
    %507 = vector.shape_cast %506 : vector<1x32x64xf32> to vector<32x64xf32>
    %cst_236 = arith.constant dense<0.000000e+00> : vector<10x64xf32>
    %508 = tpu.matmul %505, %507, %cst_236 {dimension_numbers = #tpu.dot_dimension_numbers<[1], [0], [0], [1], [0, 0, 1, 1], [], []>} : vector<10x32xf32>, vector<32x64xf32>, vector<10x64xf32> -> vector<10x64xf32>
    %c1_237 = arith.constant 1 : index
    %c0_238 = arith.constant 0 : index
    %c0_239 = arith.constant 0 : index
    %509 = vector.load %arg8[%c1_237, %c0_238, %c0_239] : memref<4x1x96xf32, #tpu.memory_space<vmem>>, vector<1x1x64xf32>
    %510 = vector.shape_cast %509 : vector<1x1x64xf32> to vector<1x64xf32>
    %511 = vector.broadcast %510 : vector<1x64xf32> to vector<10x64xf32>
    %512 = arith.addf %508, %511 : vector<10x64xf32>
    %cst_240 = arith.constant 5.000000e-01 : f32
    %513 = vector.broadcast %cst_240 : f32 to vector<10x64xf32>
    %514 = arith.mulf %513, %512 : vector<10x64xf32>
    %cst_241 = arith.constant 4.471500e-02 : f32
    %515 = vector.broadcast %cst_241 : f32 to vector<10x64xf32>
    %516 = arith.mulf %515, %512 : vector<10x64xf32>
    %517 = arith.mulf %516, %512 : vector<10x64xf32>
    %518 = arith.mulf %517, %512 : vector<10x64xf32>
    %519 = arith.addf %512, %518 : vector<10x64xf32>
    %cst_242 = arith.constant 0.797884583 : f32
    %520 = vector.broadcast %cst_242 : f32 to vector<10x64xf32>
    %521 = arith.mulf %520, %519 : vector<10x64xf32>
    %522 = math.tanh %521 : vector<10x64xf32>
    %cst_243 = arith.constant 1.000000e+00 : f32
    %523 = vector.broadcast %cst_243 : f32 to vector<10x64xf32>
    %524 = arith.addf %523, %522 : vector<10x64xf32>
    %525 = arith.mulf %514, %524 : vector<10x64xf32>
    %c1_244 = arith.constant 1 : index
    %c0_245 = arith.constant 0 : index
    %c0_246 = arith.constant 0 : index
    %526 = vector.load %arg7[%c1_244, %c0_245, %c0_246] : memref<4x64x32xf32, #tpu.memory_space<vmem>>, vector<1x64x32xf32>
    %527 = vector.shape_cast %526 : vector<1x64x32xf32> to vector<64x32xf32>
    %cst_247 = arith.constant dense<0.000000e+00> : vector<10x32xf32>
    %528 = tpu.matmul %525, %527, %cst_247 {dimension_numbers = #tpu.dot_dimension_numbers<[1], [0], [0], [1], [0, 0, 1, 1], [], []>} : vector<10x64xf32>, vector<64x32xf32>, vector<10x32xf32> -> vector<10x32xf32>
    %529 = arith.addf %479, %528 : vector<10x32xf32>
    %c1_248 = arith.constant 1 : index
    %c0_249 = arith.constant 0 : index
    %c64_250 = arith.constant 64 : index
    %530 = vector.load %arg8[%c1_248, %c0_249, %c64_250] : memref<4x1x96xf32, #tpu.memory_space<vmem>>, vector<1x1x32xf32>
    %531 = vector.shape_cast %530 : vector<1x1x32xf32> to vector<1x32xf32>
    %532 = vector.broadcast %531 : vector<1x32xf32> to vector<10x32xf32>
    %533 = arith.addf %529, %532 : vector<10x32xf32>
    %c96_251 = arith.constant 96 : index
    %c0_252 = arith.constant 0 : index
    %534 = vector.load %arg9[%c96_251, %c0_252] : memref<99x32xf32, #tpu.memory_space<vmem>>, vector<1x32xf32>
    %c97 = arith.constant 97 : index
    %c0_253 = arith.constant 0 : index
    %535 = vector.load %arg9[%c97, %c0_253] : memref<99x32xf32, #tpu.memory_space<vmem>>, vector<1x32xf32>
    %cst_254 = arith.constant dense<0.000000e+00> : vector<10xf32>
    %536 = vector.multi_reduction <add>, %533, %cst_254 [1] : vector<10x32xf32> to vector<10xf32>
    %537 = vector.shape_cast %536 : vector<10xf32> to vector<10x1xf32>
    %cst_255 = arith.constant 3.200000e+01 : f32
    %538 = vector.broadcast %cst_255 : f32 to vector<10x1xf32>
    %539 = arith.divf %537, %538 : vector<10x1xf32>
    %540 = vector.broadcast %539 : vector<10x1xf32> to vector<10x32xf32>
    %541 = arith.subf %533, %540 : vector<10x32xf32>
    %542 = arith.mulf %541, %541 : vector<10x32xf32>
    %cst_256 = arith.constant dense<0.000000e+00> : vector<10xf32>
    %543 = vector.multi_reduction <add>, %542, %cst_256 [1] : vector<10x32xf32> to vector<10xf32>
    %544 = vector.shape_cast %543 : vector<10xf32> to vector<10x1xf32>
    %cst_257 = arith.constant 3.200000e+01 : f32
    %545 = vector.broadcast %cst_257 : f32 to vector<10x1xf32>
    %546 = arith.divf %544, %545 : vector<10x1xf32>
    %547 = vector.broadcast %539 : vector<10x1xf32> to vector<10x32xf32>
    %548 = arith.subf %533, %547 : vector<10x32xf32>
    %cst_258 = arith.constant 9.99999997E-7 : f32
    %549 = vector.broadcast %cst_258 : f32 to vector<10x1xf32>
    %550 = arith.addf %546, %549 : vector<10x1xf32>
    %551 = math.rsqrt %550 : vector<10x1xf32>
    %552 = vector.broadcast %551 : vector<10x1xf32> to vector<10x32xf32>
    %553 = arith.mulf %548, %552 : vector<10x32xf32>
    %554 = vector.broadcast %534 : vector<1x32xf32> to vector<10x32xf32>
    %555 = arith.mulf %553, %554 : vector<10x32xf32>
    %556 = vector.broadcast %535 : vector<1x32xf32> to vector<10x32xf32>
    %557 = arith.addf %555, %556 : vector<10x32xf32>
    %c64_259 = arith.constant 64 : index
    %c0_260 = arith.constant 0 : index
    %558 = vector.load %arg9[%c64_259, %c0_260] : memref<99x32xf32, #tpu.memory_space<vmem>>, vector<32x32xf32>
    %cst_261 = arith.constant dense<0.000000e+00> : vector<10x32xf32>
    %559 = tpu.matmul %557, %558, %cst_261 {dimension_numbers = #tpu.dot_dimension_numbers<[1], [0], [0], [1], [0, 0, 1, 1], [], []>} : vector<10x32xf32>, vector<32x32xf32>, vector<10x32xf32> -> vector<10x32xf32>
    %c98 = arith.constant 98 : index
    %c0_262 = arith.constant 0 : index
    %560 = vector.load %arg9[%c98, %c0_262] : memref<99x32xf32, #tpu.memory_space<vmem>>, vector<1x32xf32>
    %561 = vector.broadcast %560 : vector<1x32xf32> to vector<10x32xf32>
    %562 = arith.addf %559, %561 : vector<10x32xf32>
    %cst_263 = arith.constant dense<0.000000e+00> : vector<18x32xf32>
    %563 = tpu.matmul %2, %562, %cst_263 {dimension_numbers = #tpu.dot_dimension_numbers<[1], [0], [0], [1], [0, 0, 1, 1], [], []>} : vector<18x10xf32>, vector<10x32xf32>, vector<18x32xf32> -> vector<18x32xf32>
    %c10_264 = arith.constant 10 : index
    %c0_265 = arith.constant 0 : index
    %564 = vector.load %arg2[%c10_264, %c0_265] : memref<28x32xf32, #tpu.memory_space<vmem>>, vector<18x32xf32>
    %565 = arith.addf %563, %564 : vector<18x32xf32>
    %c2_266 = arith.constant 2 : index
    %c0_267 = arith.constant 0 : index
    %c0_268 = arith.constant 0 : index
    %566 = vector.load %arg5[%c2_266, %c0_267, %c0_268] : memref<4x4x32xf32, #tpu.memory_space<vmem>>, vector<1x1x32xf32>
    %567 = vector.shape_cast %566 : vector<1x1x32xf32> to vector<1x32xf32>
    %c2_269 = arith.constant 2 : index
    %c1_270 = arith.constant 1 : index
    %c0_271 = arith.constant 0 : index
    %568 = vector.load %arg5[%c2_269, %c1_270, %c0_271] : memref<4x4x32xf32, #tpu.memory_space<vmem>>, vector<1x1x32xf32>
    %569 = vector.shape_cast %568 : vector<1x1x32xf32> to vector<1x32xf32>
    %cst_272 = arith.constant dense<0.000000e+00> : vector<18xf32>
    %570 = vector.multi_reduction <add>, %565, %cst_272 [1] : vector<18x32xf32> to vector<18xf32>
    %571 = vector.shape_cast %570 : vector<18xf32> to vector<18x1xf32>
    %cst_273 = arith.constant 3.200000e+01 : f32
    %572 = vector.broadcast %cst_273 : f32 to vector<18x1xf32>
    %573 = arith.divf %571, %572 : vector<18x1xf32>
    %574 = vector.broadcast %573 : vector<18x1xf32> to vector<18x32xf32>
    %575 = arith.subf %565, %574 : vector<18x32xf32>
    %576 = arith.mulf %575, %575 : vector<18x32xf32>
    %cst_274 = arith.constant dense<0.000000e+00> : vector<18xf32>
    %577 = vector.multi_reduction <add>, %576, %cst_274 [1] : vector<18x32xf32> to vector<18xf32>
    %578 = vector.shape_cast %577 : vector<18xf32> to vector<18x1xf32>
    %cst_275 = arith.constant 3.200000e+01 : f32
    %579 = vector.broadcast %cst_275 : f32 to vector<18x1xf32>
    %580 = arith.divf %578, %579 : vector<18x1xf32>
    %581 = vector.broadcast %573 : vector<18x1xf32> to vector<18x32xf32>
    %582 = arith.subf %565, %581 : vector<18x32xf32>
    %cst_276 = arith.constant 9.99999997E-7 : f32
    %583 = vector.broadcast %cst_276 : f32 to vector<18x1xf32>
    %584 = arith.addf %580, %583 : vector<18x1xf32>
    %585 = math.rsqrt %584 : vector<18x1xf32>
    %586 = vector.broadcast %585 : vector<18x1xf32> to vector<18x32xf32>
    %587 = arith.mulf %582, %586 : vector<18x32xf32>
    %588 = vector.broadcast %567 : vector<1x32xf32> to vector<18x32xf32>
    %589 = arith.mulf %587, %588 : vector<18x32xf32>
    %590 = vector.broadcast %569 : vector<1x32xf32> to vector<18x32xf32>
    %591 = arith.addf %589, %590 : vector<18x32xf32>
    %c2_277 = arith.constant 2 : index
    %c0_278 = arith.constant 0 : index
    %c0_279 = arith.constant 0 : index
    %592 = vector.load %arg3[%c2_277, %c0_278, %c0_279] : memref<4x32x128xf32, #tpu.memory_space<vmem>>, vector<1x32x96xf32>
    %593 = vector.shape_cast %592 : vector<1x32x96xf32> to vector<32x96xf32>
    %cst_280 = arith.constant dense<0.000000e+00> : vector<18x96xf32>
    %594 = tpu.matmul %591, %593, %cst_280 {dimension_numbers = #tpu.dot_dimension_numbers<[1], [0], [0], [1], [0, 0, 1, 1], [], []>} : vector<18x32xf32>, vector<32x96xf32>, vector<18x96xf32> -> vector<18x96xf32>
    %c2_281 = arith.constant 2 : index
    %c0_282 = arith.constant 0 : index
    %c0_283 = arith.constant 0 : index
    %595 = vector.load %arg4[%c2_281, %c0_282, %c0_283] : memref<4x1x128xf32, #tpu.memory_space<vmem>>, vector<1x1x96xf32>
    %596 = vector.shape_cast %595 : vector<1x1x96xf32> to vector<1x96xf32>
    %597 = vector.broadcast %596 : vector<1x96xf32> to vector<18x96xf32>
    %598 = arith.addf %594, %597 : vector<18x96xf32>
    %599 = vector.extract_strided_slice %598 {offsets = [0, 0], sizes = [18, 8], strides = [1, 1]} : vector<18x96xf32> to vector<18x8xf32>
    %600 = vector.extract_strided_slice %598 {offsets = [0, 32], sizes = [18, 8], strides = [1, 1]} : vector<18x96xf32> to vector<18x8xf32>
    %601 = vector.extract_strided_slice %598 {offsets = [0, 64], sizes = [18, 8], strides = [1, 1]} : vector<18x96xf32> to vector<18x8xf32>
    %cst_284 = arith.constant dense<0.000000e+00> : vector<18x18xf32>
    %602 = tpu.matmul %599, %600, %cst_284 {dimension_numbers = #tpu.dot_dimension_numbers<[1], [1], [0], [0], [0, 0, 1, 0], [], []>} : vector<18x8xf32>, vector<18x8xf32>, vector<18x18xf32> -> vector<18x18xf32>
    %cst_285 = arith.constant 0.353553385 : f32
    %603 = vector.broadcast %cst_285 : f32 to vector<18x18xf32>
    %604 = arith.mulf %602, %603 : vector<18x18xf32>
    %605 = arith.addf %604, %6 : vector<18x18xf32>
    %cst_286 = arith.constant dense<0xFF800000> : vector<18xf32>
    %606 = vector.multi_reduction <maximumf>, %605, %cst_286 [1] : vector<18x18xf32> to vector<18xf32>
    %607 = vector.shape_cast %606 : vector<18xf32> to vector<18x1xf32>
    %608 = vector.broadcast %607 : vector<18x1xf32> to vector<18x18xf32>
    %609 = arith.subf %605, %608 : vector<18x18xf32>
    %610 = math.exp %609 : vector<18x18xf32>
    %cst_287 = arith.constant dense<0.000000e+00> : vector<18xf32>
    %611 = vector.multi_reduction <add>, %610, %cst_287 [1] : vector<18x18xf32> to vector<18xf32>
    %612 = vector.shape_cast %611 : vector<18xf32> to vector<18x1xf32>
    %613 = tpu.reciprocal %612 {approx = true} : vector<18x1xf32> -> vector<18x1xf32>
    %614 = vector.broadcast %613 : vector<18x1xf32> to vector<18x18xf32>
    %615 = arith.mulf %610, %614 : vector<18x18xf32>
    %cst_288 = arith.constant dense<0.000000e+00> : vector<18x8xf32>
    %616 = tpu.matmul %615, %601, %cst_288 {dimension_numbers = #tpu.dot_dimension_numbers<[1], [0], [0], [1], [0, 0, 1, 1], [], []>} : vector<18x18xf32>, vector<18x8xf32>, vector<18x8xf32> -> vector<18x8xf32>
    %617 = vector.extract_strided_slice %598 {offsets = [0, 8], sizes = [18, 8], strides = [1, 1]} : vector<18x96xf32> to vector<18x8xf32>
    %618 = vector.extract_strided_slice %598 {offsets = [0, 40], sizes = [18, 8], strides = [1, 1]} : vector<18x96xf32> to vector<18x8xf32>
    %619 = vector.extract_strided_slice %598 {offsets = [0, 72], sizes = [18, 8], strides = [1, 1]} : vector<18x96xf32> to vector<18x8xf32>
    %cst_289 = arith.constant dense<0.000000e+00> : vector<18x18xf32>
    %620 = tpu.matmul %617, %618, %cst_289 {dimension_numbers = #tpu.dot_dimension_numbers<[1], [1], [0], [0], [0, 0, 1, 0], [], []>} : vector<18x8xf32>, vector<18x8xf32>, vector<18x18xf32> -> vector<18x18xf32>
    %cst_290 = arith.constant 0.353553385 : f32
    %621 = vector.broadcast %cst_290 : f32 to vector<18x18xf32>
    %622 = arith.mulf %620, %621 : vector<18x18xf32>
    %623 = arith.addf %622, %6 : vector<18x18xf32>
    %cst_291 = arith.constant dense<0xFF800000> : vector<18xf32>
    %624 = vector.multi_reduction <maximumf>, %623, %cst_291 [1] : vector<18x18xf32> to vector<18xf32>
    %625 = vector.shape_cast %624 : vector<18xf32> to vector<18x1xf32>
    %626 = vector.broadcast %625 : vector<18x1xf32> to vector<18x18xf32>
    %627 = arith.subf %623, %626 : vector<18x18xf32>
    %628 = math.exp %627 : vector<18x18xf32>
    %cst_292 = arith.constant dense<0.000000e+00> : vector<18xf32>
    %629 = vector.multi_reduction <add>, %628, %cst_292 [1] : vector<18x18xf32> to vector<18xf32>
    %630 = vector.shape_cast %629 : vector<18xf32> to vector<18x1xf32>
    %631 = tpu.reciprocal %630 {approx = true} : vector<18x1xf32> -> vector<18x1xf32>
    %632 = vector.broadcast %631 : vector<18x1xf32> to vector<18x18xf32>
    %633 = arith.mulf %628, %632 : vector<18x18xf32>
    %cst_293 = arith.constant dense<0.000000e+00> : vector<18x8xf32>
    %634 = tpu.matmul %633, %619, %cst_293 {dimension_numbers = #tpu.dot_dimension_numbers<[1], [0], [0], [1], [0, 0, 1, 1], [], []>} : vector<18x18xf32>, vector<18x8xf32>, vector<18x8xf32> -> vector<18x8xf32>
    %635 = vector.extract_strided_slice %598 {offsets = [0, 16], sizes = [18, 8], strides = [1, 1]} : vector<18x96xf32> to vector<18x8xf32>
    %636 = vector.extract_strided_slice %598 {offsets = [0, 48], sizes = [18, 8], strides = [1, 1]} : vector<18x96xf32> to vector<18x8xf32>
    %637 = vector.extract_strided_slice %598 {offsets = [0, 80], sizes = [18, 8], strides = [1, 1]} : vector<18x96xf32> to vector<18x8xf32>
    %cst_294 = arith.constant dense<0.000000e+00> : vector<18x18xf32>
    %638 = tpu.matmul %635, %636, %cst_294 {dimension_numbers = #tpu.dot_dimension_numbers<[1], [1], [0], [0], [0, 0, 1, 0], [], []>} : vector<18x8xf32>, vector<18x8xf32>, vector<18x18xf32> -> vector<18x18xf32>
    %cst_295 = arith.constant 0.353553385 : f32
    %639 = vector.broadcast %cst_295 : f32 to vector<18x18xf32>
    %640 = arith.mulf %638, %639 : vector<18x18xf32>
    %641 = arith.addf %640, %6 : vector<18x18xf32>
    %cst_296 = arith.constant dense<0xFF800000> : vector<18xf32>
    %642 = vector.multi_reduction <maximumf>, %641, %cst_296 [1] : vector<18x18xf32> to vector<18xf32>
    %643 = vector.shape_cast %642 : vector<18xf32> to vector<18x1xf32>
    %644 = vector.broadcast %643 : vector<18x1xf32> to vector<18x18xf32>
    %645 = arith.subf %641, %644 : vector<18x18xf32>
    %646 = math.exp %645 : vector<18x18xf32>
    %cst_297 = arith.constant dense<0.000000e+00> : vector<18xf32>
    %647 = vector.multi_reduction <add>, %646, %cst_297 [1] : vector<18x18xf32> to vector<18xf32>
    %648 = vector.shape_cast %647 : vector<18xf32> to vector<18x1xf32>
    %649 = tpu.reciprocal %648 {approx = true} : vector<18x1xf32> -> vector<18x1xf32>
    %650 = vector.broadcast %649 : vector<18x1xf32> to vector<18x18xf32>
    %651 = arith.mulf %646, %650 : vector<18x18xf32>
    %cst_298 = arith.constant dense<0.000000e+00> : vector<18x8xf32>
    %652 = tpu.matmul %651, %637, %cst_298 {dimension_numbers = #tpu.dot_dimension_numbers<[1], [0], [0], [1], [0, 0, 1, 1], [], []>} : vector<18x18xf32>, vector<18x8xf32>, vector<18x8xf32> -> vector<18x8xf32>
    %653 = vector.extract_strided_slice %598 {offsets = [0, 24], sizes = [18, 8], strides = [1, 1]} : vector<18x96xf32> to vector<18x8xf32>
    %654 = vector.extract_strided_slice %598 {offsets = [0, 56], sizes = [18, 8], strides = [1, 1]} : vector<18x96xf32> to vector<18x8xf32>
    %655 = vector.extract_strided_slice %598 {offsets = [0, 88], sizes = [18, 8], strides = [1, 1]} : vector<18x96xf32> to vector<18x8xf32>
    %cst_299 = arith.constant dense<0.000000e+00> : vector<18x18xf32>
    %656 = tpu.matmul %653, %654, %cst_299 {dimension_numbers = #tpu.dot_dimension_numbers<[1], [1], [0], [0], [0, 0, 1, 0], [], []>} : vector<18x8xf32>, vector<18x8xf32>, vector<18x18xf32> -> vector<18x18xf32>
    %cst_300 = arith.constant 0.353553385 : f32
    %657 = vector.broadcast %cst_300 : f32 to vector<18x18xf32>
    %658 = arith.mulf %656, %657 : vector<18x18xf32>
    %659 = arith.addf %658, %6 : vector<18x18xf32>
    %cst_301 = arith.constant dense<0xFF800000> : vector<18xf32>
    %660 = vector.multi_reduction <maximumf>, %659, %cst_301 [1] : vector<18x18xf32> to vector<18xf32>
    %661 = vector.shape_cast %660 : vector<18xf32> to vector<18x1xf32>
    %662 = vector.broadcast %661 : vector<18x1xf32> to vector<18x18xf32>
    %663 = arith.subf %659, %662 : vector<18x18xf32>
    %664 = math.exp %663 : vector<18x18xf32>
    %cst_302 = arith.constant dense<0.000000e+00> : vector<18xf32>
    %665 = vector.multi_reduction <add>, %664, %cst_302 [1] : vector<18x18xf32> to vector<18xf32>
    %666 = vector.shape_cast %665 : vector<18xf32> to vector<18x1xf32>
    %667 = tpu.reciprocal %666 {approx = true} : vector<18x1xf32> -> vector<18x1xf32>
    %668 = vector.broadcast %667 : vector<18x1xf32> to vector<18x18xf32>
    %669 = arith.mulf %664, %668 : vector<18x18xf32>
    %cst_303 = arith.constant dense<0.000000e+00> : vector<18x8xf32>
    %670 = tpu.matmul %669, %655, %cst_303 {dimension_numbers = #tpu.dot_dimension_numbers<[1], [0], [0], [1], [0, 0, 1, 1], [], []>} : vector<18x18xf32>, vector<18x8xf32>, vector<18x8xf32> -> vector<18x8xf32>
    %671 = tpu.concatenate %616, %634, %652, %670 in 1 : vector<18x8xf32>, vector<18x8xf32>, vector<18x8xf32>, vector<18x8xf32> -> vector<18x32xf32>
    %c2_304 = arith.constant 2 : index
    %c0_305 = arith.constant 0 : index
    %c96_306 = arith.constant 96 : index
    %672 = vector.load %arg3[%c2_304, %c0_305, %c96_306] : memref<4x32x128xf32, #tpu.memory_space<vmem>>, vector<1x32x32xf32>
    %673 = vector.shape_cast %672 : vector<1x32x32xf32> to vector<32x32xf32>
    %cst_307 = arith.constant dense<0.000000e+00> : vector<18x32xf32>
    %674 = tpu.matmul %671, %673, %cst_307 {dimension_numbers = #tpu.dot_dimension_numbers<[1], [0], [0], [1], [0, 0, 1, 1], [], []>} : vector<18x32xf32>, vector<32x32xf32>, vector<18x32xf32> -> vector<18x32xf32>
    %675 = arith.addf %565, %674 : vector<18x32xf32>
    %c2_308 = arith.constant 2 : index
    %c0_309 = arith.constant 0 : index
    %c96_310 = arith.constant 96 : index
    %676 = vector.load %arg4[%c2_308, %c0_309, %c96_310] : memref<4x1x128xf32, #tpu.memory_space<vmem>>, vector<1x1x32xf32>
    %677 = vector.shape_cast %676 : vector<1x1x32xf32> to vector<1x32xf32>
    %678 = vector.broadcast %677 : vector<1x32xf32> to vector<18x32xf32>
    %679 = arith.addf %675, %678 : vector<18x32xf32>
    %c2_311 = arith.constant 2 : index
    %c2_312 = arith.constant 2 : index
    %c0_313 = arith.constant 0 : index
    %680 = vector.load %arg5[%c2_311, %c2_312, %c0_313] : memref<4x4x32xf32, #tpu.memory_space<vmem>>, vector<1x1x32xf32>
    %681 = vector.shape_cast %680 : vector<1x1x32xf32> to vector<1x32xf32>
    %c2_314 = arith.constant 2 : index
    %c3_315 = arith.constant 3 : index
    %c0_316 = arith.constant 0 : index
    %682 = vector.load %arg5[%c2_314, %c3_315, %c0_316] : memref<4x4x32xf32, #tpu.memory_space<vmem>>, vector<1x1x32xf32>
    %683 = vector.shape_cast %682 : vector<1x1x32xf32> to vector<1x32xf32>
    %cst_317 = arith.constant dense<0.000000e+00> : vector<18xf32>
    %684 = vector.multi_reduction <add>, %679, %cst_317 [1] : vector<18x32xf32> to vector<18xf32>
    %685 = vector.shape_cast %684 : vector<18xf32> to vector<18x1xf32>
    %cst_318 = arith.constant 3.200000e+01 : f32
    %686 = vector.broadcast %cst_318 : f32 to vector<18x1xf32>
    %687 = arith.divf %685, %686 : vector<18x1xf32>
    %688 = vector.broadcast %687 : vector<18x1xf32> to vector<18x32xf32>
    %689 = arith.subf %679, %688 : vector<18x32xf32>
    %690 = arith.mulf %689, %689 : vector<18x32xf32>
    %cst_319 = arith.constant dense<0.000000e+00> : vector<18xf32>
    %691 = vector.multi_reduction <add>, %690, %cst_319 [1] : vector<18x32xf32> to vector<18xf32>
    %692 = vector.shape_cast %691 : vector<18xf32> to vector<18x1xf32>
    %cst_320 = arith.constant 3.200000e+01 : f32
    %693 = vector.broadcast %cst_320 : f32 to vector<18x1xf32>
    %694 = arith.divf %692, %693 : vector<18x1xf32>
    %695 = vector.broadcast %687 : vector<18x1xf32> to vector<18x32xf32>
    %696 = arith.subf %679, %695 : vector<18x32xf32>
    %cst_321 = arith.constant 9.99999997E-7 : f32
    %697 = vector.broadcast %cst_321 : f32 to vector<18x1xf32>
    %698 = arith.addf %694, %697 : vector<18x1xf32>
    %699 = math.rsqrt %698 : vector<18x1xf32>
    %700 = vector.broadcast %699 : vector<18x1xf32> to vector<18x32xf32>
    %701 = arith.mulf %696, %700 : vector<18x32xf32>
    %702 = vector.broadcast %681 : vector<1x32xf32> to vector<18x32xf32>
    %703 = arith.mulf %701, %702 : vector<18x32xf32>
    %704 = vector.broadcast %683 : vector<1x32xf32> to vector<18x32xf32>
    %705 = arith.addf %703, %704 : vector<18x32xf32>
    %c2_322 = arith.constant 2 : index
    %c0_323 = arith.constant 0 : index
    %c0_324 = arith.constant 0 : index
    %706 = vector.load %arg6[%c2_322, %c0_323, %c0_324] : memref<4x32x64xf32, #tpu.memory_space<vmem>>, vector<1x32x64xf32>
    %707 = vector.shape_cast %706 : vector<1x32x64xf32> to vector<32x64xf32>
    %cst_325 = arith.constant dense<0.000000e+00> : vector<18x64xf32>
    %708 = tpu.matmul %705, %707, %cst_325 {dimension_numbers = #tpu.dot_dimension_numbers<[1], [0], [0], [1], [0, 0, 1, 1], [], []>} : vector<18x32xf32>, vector<32x64xf32>, vector<18x64xf32> -> vector<18x64xf32>
    %c2_326 = arith.constant 2 : index
    %c0_327 = arith.constant 0 : index
    %c0_328 = arith.constant 0 : index
    %709 = vector.load %arg8[%c2_326, %c0_327, %c0_328] : memref<4x1x96xf32, #tpu.memory_space<vmem>>, vector<1x1x64xf32>
    %710 = vector.shape_cast %709 : vector<1x1x64xf32> to vector<1x64xf32>
    %711 = vector.broadcast %710 : vector<1x64xf32> to vector<18x64xf32>
    %712 = arith.addf %708, %711 : vector<18x64xf32>
    %cst_329 = arith.constant 5.000000e-01 : f32
    %713 = vector.broadcast %cst_329 : f32 to vector<18x64xf32>
    %714 = arith.mulf %713, %712 : vector<18x64xf32>
    %cst_330 = arith.constant 4.471500e-02 : f32
    %715 = vector.broadcast %cst_330 : f32 to vector<18x64xf32>
    %716 = arith.mulf %715, %712 : vector<18x64xf32>
    %717 = arith.mulf %716, %712 : vector<18x64xf32>
    %718 = arith.mulf %717, %712 : vector<18x64xf32>
    %719 = arith.addf %712, %718 : vector<18x64xf32>
    %cst_331 = arith.constant 0.797884583 : f32
    %720 = vector.broadcast %cst_331 : f32 to vector<18x64xf32>
    %721 = arith.mulf %720, %719 : vector<18x64xf32>
    %722 = math.tanh %721 : vector<18x64xf32>
    %cst_332 = arith.constant 1.000000e+00 : f32
    %723 = vector.broadcast %cst_332 : f32 to vector<18x64xf32>
    %724 = arith.addf %723, %722 : vector<18x64xf32>
    %725 = arith.mulf %714, %724 : vector<18x64xf32>
    %c2_333 = arith.constant 2 : index
    %c0_334 = arith.constant 0 : index
    %c0_335 = arith.constant 0 : index
    %726 = vector.load %arg7[%c2_333, %c0_334, %c0_335] : memref<4x64x32xf32, #tpu.memory_space<vmem>>, vector<1x64x32xf32>
    %727 = vector.shape_cast %726 : vector<1x64x32xf32> to vector<64x32xf32>
    %cst_336 = arith.constant dense<0.000000e+00> : vector<18x32xf32>
    %728 = tpu.matmul %725, %727, %cst_336 {dimension_numbers = #tpu.dot_dimension_numbers<[1], [0], [0], [1], [0, 0, 1, 1], [], []>} : vector<18x64xf32>, vector<64x32xf32>, vector<18x32xf32> -> vector<18x32xf32>
    %729 = arith.addf %679, %728 : vector<18x32xf32>
    %c2_337 = arith.constant 2 : index
    %c0_338 = arith.constant 0 : index
    %c64_339 = arith.constant 64 : index
    %730 = vector.load %arg8[%c2_337, %c0_338, %c64_339] : memref<4x1x96xf32, #tpu.memory_space<vmem>>, vector<1x1x32xf32>
    %731 = vector.shape_cast %730 : vector<1x1x32xf32> to vector<1x32xf32>
    %732 = vector.broadcast %731 : vector<1x32xf32> to vector<18x32xf32>
    %733 = arith.addf %729, %732 : vector<18x32xf32>
    %c3_340 = arith.constant 3 : index
    %c0_341 = arith.constant 0 : index
    %c0_342 = arith.constant 0 : index
    %734 = vector.load %arg5[%c3_340, %c0_341, %c0_342] : memref<4x4x32xf32, #tpu.memory_space<vmem>>, vector<1x1x32xf32>
    %735 = vector.shape_cast %734 : vector<1x1x32xf32> to vector<1x32xf32>
    %c3_343 = arith.constant 3 : index
    %c1_344 = arith.constant 1 : index
    %c0_345 = arith.constant 0 : index
    %736 = vector.load %arg5[%c3_343, %c1_344, %c0_345] : memref<4x4x32xf32, #tpu.memory_space<vmem>>, vector<1x1x32xf32>
    %737 = vector.shape_cast %736 : vector<1x1x32xf32> to vector<1x32xf32>
    %cst_346 = arith.constant dense<0.000000e+00> : vector<18xf32>
    %738 = vector.multi_reduction <add>, %733, %cst_346 [1] : vector<18x32xf32> to vector<18xf32>
    %739 = vector.shape_cast %738 : vector<18xf32> to vector<18x1xf32>
    %cst_347 = arith.constant 3.200000e+01 : f32
    %740 = vector.broadcast %cst_347 : f32 to vector<18x1xf32>
    %741 = arith.divf %739, %740 : vector<18x1xf32>
    %742 = vector.broadcast %741 : vector<18x1xf32> to vector<18x32xf32>
    %743 = arith.subf %733, %742 : vector<18x32xf32>
    %744 = arith.mulf %743, %743 : vector<18x32xf32>
    %cst_348 = arith.constant dense<0.000000e+00> : vector<18xf32>
    %745 = vector.multi_reduction <add>, %744, %cst_348 [1] : vector<18x32xf32> to vector<18xf32>
    %746 = vector.shape_cast %745 : vector<18xf32> to vector<18x1xf32>
    %cst_349 = arith.constant 3.200000e+01 : f32
    %747 = vector.broadcast %cst_349 : f32 to vector<18x1xf32>
    %748 = arith.divf %746, %747 : vector<18x1xf32>
    %749 = vector.broadcast %741 : vector<18x1xf32> to vector<18x32xf32>
    %750 = arith.subf %733, %749 : vector<18x32xf32>
    %cst_350 = arith.constant 9.99999997E-7 : f32
    %751 = vector.broadcast %cst_350 : f32 to vector<18x1xf32>
    %752 = arith.addf %748, %751 : vector<18x1xf32>
    %753 = math.rsqrt %752 : vector<18x1xf32>
    %754 = vector.broadcast %753 : vector<18x1xf32> to vector<18x32xf32>
    %755 = arith.mulf %750, %754 : vector<18x32xf32>
    %756 = vector.broadcast %735 : vector<1x32xf32> to vector<18x32xf32>
    %757 = arith.mulf %755, %756 : vector<18x32xf32>
    %758 = vector.broadcast %737 : vector<1x32xf32> to vector<18x32xf32>
    %759 = arith.addf %757, %758 : vector<18x32xf32>
    %c3_351 = arith.constant 3 : index
    %c0_352 = arith.constant 0 : index
    %c0_353 = arith.constant 0 : index
    %760 = vector.load %arg3[%c3_351, %c0_352, %c0_353] : memref<4x32x128xf32, #tpu.memory_space<vmem>>, vector<1x32x96xf32>
    %761 = vector.shape_cast %760 : vector<1x32x96xf32> to vector<32x96xf32>
    %cst_354 = arith.constant dense<0.000000e+00> : vector<18x96xf32>
    %762 = tpu.matmul %759, %761, %cst_354 {dimension_numbers = #tpu.dot_dimension_numbers<[1], [0], [0], [1], [0, 0, 1, 1], [], []>} : vector<18x32xf32>, vector<32x96xf32>, vector<18x96xf32> -> vector<18x96xf32>
    %c3_355 = arith.constant 3 : index
    %c0_356 = arith.constant 0 : index
    %c0_357 = arith.constant 0 : index
    %763 = vector.load %arg4[%c3_355, %c0_356, %c0_357] : memref<4x1x128xf32, #tpu.memory_space<vmem>>, vector<1x1x96xf32>
    %764 = vector.shape_cast %763 : vector<1x1x96xf32> to vector<1x96xf32>
    %765 = vector.broadcast %764 : vector<1x96xf32> to vector<18x96xf32>
    %766 = arith.addf %762, %765 : vector<18x96xf32>
    %767 = vector.extract_strided_slice %766 {offsets = [0, 0], sizes = [18, 8], strides = [1, 1]} : vector<18x96xf32> to vector<18x8xf32>
    %768 = vector.extract_strided_slice %766 {offsets = [0, 32], sizes = [18, 8], strides = [1, 1]} : vector<18x96xf32> to vector<18x8xf32>
    %769 = vector.extract_strided_slice %766 {offsets = [0, 64], sizes = [18, 8], strides = [1, 1]} : vector<18x96xf32> to vector<18x8xf32>
    %cst_358 = arith.constant dense<0.000000e+00> : vector<18x18xf32>
    %770 = tpu.matmul %767, %768, %cst_358 {dimension_numbers = #tpu.dot_dimension_numbers<[1], [1], [0], [0], [0, 0, 1, 0], [], []>} : vector<18x8xf32>, vector<18x8xf32>, vector<18x18xf32> -> vector<18x18xf32>
    %cst_359 = arith.constant 0.353553385 : f32
    %771 = vector.broadcast %cst_359 : f32 to vector<18x18xf32>
    %772 = arith.mulf %770, %771 : vector<18x18xf32>
    %773 = arith.addf %772, %6 : vector<18x18xf32>
    %cst_360 = arith.constant dense<0xFF800000> : vector<18xf32>
    %774 = vector.multi_reduction <maximumf>, %773, %cst_360 [1] : vector<18x18xf32> to vector<18xf32>
    %775 = vector.shape_cast %774 : vector<18xf32> to vector<18x1xf32>
    %776 = vector.broadcast %775 : vector<18x1xf32> to vector<18x18xf32>
    %777 = arith.subf %773, %776 : vector<18x18xf32>
    %778 = math.exp %777 : vector<18x18xf32>
    %cst_361 = arith.constant dense<0.000000e+00> : vector<18xf32>
    %779 = vector.multi_reduction <add>, %778, %cst_361 [1] : vector<18x18xf32> to vector<18xf32>
    %780 = vector.shape_cast %779 : vector<18xf32> to vector<18x1xf32>
    %781 = tpu.reciprocal %780 {approx = true} : vector<18x1xf32> -> vector<18x1xf32>
    %782 = vector.broadcast %781 : vector<18x1xf32> to vector<18x18xf32>
    %783 = arith.mulf %778, %782 : vector<18x18xf32>
    %cst_362 = arith.constant dense<0.000000e+00> : vector<18x8xf32>
    %784 = tpu.matmul %783, %769, %cst_362 {dimension_numbers = #tpu.dot_dimension_numbers<[1], [0], [0], [1], [0, 0, 1, 1], [], []>} : vector<18x18xf32>, vector<18x8xf32>, vector<18x8xf32> -> vector<18x8xf32>
    %785 = vector.extract_strided_slice %766 {offsets = [0, 8], sizes = [18, 8], strides = [1, 1]} : vector<18x96xf32> to vector<18x8xf32>
    %786 = vector.extract_strided_slice %766 {offsets = [0, 40], sizes = [18, 8], strides = [1, 1]} : vector<18x96xf32> to vector<18x8xf32>
    %787 = vector.extract_strided_slice %766 {offsets = [0, 72], sizes = [18, 8], strides = [1, 1]} : vector<18x96xf32> to vector<18x8xf32>
    %cst_363 = arith.constant dense<0.000000e+00> : vector<18x18xf32>
    %788 = tpu.matmul %785, %786, %cst_363 {dimension_numbers = #tpu.dot_dimension_numbers<[1], [1], [0], [0], [0, 0, 1, 0], [], []>} : vector<18x8xf32>, vector<18x8xf32>, vector<18x18xf32> -> vector<18x18xf32>
    %cst_364 = arith.constant 0.353553385 : f32
    %789 = vector.broadcast %cst_364 : f32 to vector<18x18xf32>
    %790 = arith.mulf %788, %789 : vector<18x18xf32>
    %791 = arith.addf %790, %6 : vector<18x18xf32>
    %cst_365 = arith.constant dense<0xFF800000> : vector<18xf32>
    %792 = vector.multi_reduction <maximumf>, %791, %cst_365 [1] : vector<18x18xf32> to vector<18xf32>
    %793 = vector.shape_cast %792 : vector<18xf32> to vector<18x1xf32>
    %794 = vector.broadcast %793 : vector<18x1xf32> to vector<18x18xf32>
    %795 = arith.subf %791, %794 : vector<18x18xf32>
    %796 = math.exp %795 : vector<18x18xf32>
    %cst_366 = arith.constant dense<0.000000e+00> : vector<18xf32>
    %797 = vector.multi_reduction <add>, %796, %cst_366 [1] : vector<18x18xf32> to vector<18xf32>
    %798 = vector.shape_cast %797 : vector<18xf32> to vector<18x1xf32>
    %799 = tpu.reciprocal %798 {approx = true} : vector<18x1xf32> -> vector<18x1xf32>
    %800 = vector.broadcast %799 : vector<18x1xf32> to vector<18x18xf32>
    %801 = arith.mulf %796, %800 : vector<18x18xf32>
    %cst_367 = arith.constant dense<0.000000e+00> : vector<18x8xf32>
    %802 = tpu.matmul %801, %787, %cst_367 {dimension_numbers = #tpu.dot_dimension_numbers<[1], [0], [0], [1], [0, 0, 1, 1], [], []>} : vector<18x18xf32>, vector<18x8xf32>, vector<18x8xf32> -> vector<18x8xf32>
    %803 = vector.extract_strided_slice %766 {offsets = [0, 16], sizes = [18, 8], strides = [1, 1]} : vector<18x96xf32> to vector<18x8xf32>
    %804 = vector.extract_strided_slice %766 {offsets = [0, 48], sizes = [18, 8], strides = [1, 1]} : vector<18x96xf32> to vector<18x8xf32>
    %805 = vector.extract_strided_slice %766 {offsets = [0, 80], sizes = [18, 8], strides = [1, 1]} : vector<18x96xf32> to vector<18x8xf32>
    %cst_368 = arith.constant dense<0.000000e+00> : vector<18x18xf32>
    %806 = tpu.matmul %803, %804, %cst_368 {dimension_numbers = #tpu.dot_dimension_numbers<[1], [1], [0], [0], [0, 0, 1, 0], [], []>} : vector<18x8xf32>, vector<18x8xf32>, vector<18x18xf32> -> vector<18x18xf32>
    %cst_369 = arith.constant 0.353553385 : f32
    %807 = vector.broadcast %cst_369 : f32 to vector<18x18xf32>
    %808 = arith.mulf %806, %807 : vector<18x18xf32>
    %809 = arith.addf %808, %6 : vector<18x18xf32>
    %cst_370 = arith.constant dense<0xFF800000> : vector<18xf32>
    %810 = vector.multi_reduction <maximumf>, %809, %cst_370 [1] : vector<18x18xf32> to vector<18xf32>
    %811 = vector.shape_cast %810 : vector<18xf32> to vector<18x1xf32>
    %812 = vector.broadcast %811 : vector<18x1xf32> to vector<18x18xf32>
    %813 = arith.subf %809, %812 : vector<18x18xf32>
    %814 = math.exp %813 : vector<18x18xf32>
    %cst_371 = arith.constant dense<0.000000e+00> : vector<18xf32>
    %815 = vector.multi_reduction <add>, %814, %cst_371 [1] : vector<18x18xf32> to vector<18xf32>
    %816 = vector.shape_cast %815 : vector<18xf32> to vector<18x1xf32>
    %817 = tpu.reciprocal %816 {approx = true} : vector<18x1xf32> -> vector<18x1xf32>
    %818 = vector.broadcast %817 : vector<18x1xf32> to vector<18x18xf32>
    %819 = arith.mulf %814, %818 : vector<18x18xf32>
    %cst_372 = arith.constant dense<0.000000e+00> : vector<18x8xf32>
    %820 = tpu.matmul %819, %805, %cst_372 {dimension_numbers = #tpu.dot_dimension_numbers<[1], [0], [0], [1], [0, 0, 1, 1], [], []>} : vector<18x18xf32>, vector<18x8xf32>, vector<18x8xf32> -> vector<18x8xf32>
    %821 = vector.extract_strided_slice %766 {offsets = [0, 24], sizes = [18, 8], strides = [1, 1]} : vector<18x96xf32> to vector<18x8xf32>
    %822 = vector.extract_strided_slice %766 {offsets = [0, 56], sizes = [18, 8], strides = [1, 1]} : vector<18x96xf32> to vector<18x8xf32>
    %823 = vector.extract_strided_slice %766 {offsets = [0, 88], sizes = [18, 8], strides = [1, 1]} : vector<18x96xf32> to vector<18x8xf32>
    %cst_373 = arith.constant dense<0.000000e+00> : vector<18x18xf32>
    %824 = tpu.matmul %821, %822, %cst_373 {dimension_numbers = #tpu.dot_dimension_numbers<[1], [1], [0], [0], [0, 0, 1, 0], [], []>} : vector<18x8xf32>, vector<18x8xf32>, vector<18x18xf32> -> vector<18x18xf32>
    %cst_374 = arith.constant 0.353553385 : f32
    %825 = vector.broadcast %cst_374 : f32 to vector<18x18xf32>
    %826 = arith.mulf %824, %825 : vector<18x18xf32>
    %827 = arith.addf %826, %6 : vector<18x18xf32>
    %cst_375 = arith.constant dense<0xFF800000> : vector<18xf32>
    %828 = vector.multi_reduction <maximumf>, %827, %cst_375 [1] : vector<18x18xf32> to vector<18xf32>
    %829 = vector.shape_cast %828 : vector<18xf32> to vector<18x1xf32>
    %830 = vector.broadcast %829 : vector<18x1xf32> to vector<18x18xf32>
    %831 = arith.subf %827, %830 : vector<18x18xf32>
    %832 = math.exp %831 : vector<18x18xf32>
    %cst_376 = arith.constant dense<0.000000e+00> : vector<18xf32>
    %833 = vector.multi_reduction <add>, %832, %cst_376 [1] : vector<18x18xf32> to vector<18xf32>
    %834 = vector.shape_cast %833 : vector<18xf32> to vector<18x1xf32>
    %835 = tpu.reciprocal %834 {approx = true} : vector<18x1xf32> -> vector<18x1xf32>
    %836 = vector.broadcast %835 : vector<18x1xf32> to vector<18x18xf32>
    %837 = arith.mulf %832, %836 : vector<18x18xf32>
    %cst_377 = arith.constant dense<0.000000e+00> : vector<18x8xf32>
    %838 = tpu.matmul %837, %823, %cst_377 {dimension_numbers = #tpu.dot_dimension_numbers<[1], [0], [0], [1], [0, 0, 1, 1], [], []>} : vector<18x18xf32>, vector<18x8xf32>, vector<18x8xf32> -> vector<18x8xf32>
    %839 = tpu.concatenate %784, %802, %820, %838 in 1 : vector<18x8xf32>, vector<18x8xf32>, vector<18x8xf32>, vector<18x8xf32> -> vector<18x32xf32>
    %c3_378 = arith.constant 3 : index
    %c0_379 = arith.constant 0 : index
    %c96_380 = arith.constant 96 : index
    %840 = vector.load %arg3[%c3_378, %c0_379, %c96_380] : memref<4x32x128xf32, #tpu.memory_space<vmem>>, vector<1x32x32xf32>
    %841 = vector.shape_cast %840 : vector<1x32x32xf32> to vector<32x32xf32>
    %cst_381 = arith.constant dense<0.000000e+00> : vector<18x32xf32>
    %842 = tpu.matmul %839, %841, %cst_381 {dimension_numbers = #tpu.dot_dimension_numbers<[1], [0], [0], [1], [0, 0, 1, 1], [], []>} : vector<18x32xf32>, vector<32x32xf32>, vector<18x32xf32> -> vector<18x32xf32>
    %843 = arith.addf %733, %842 : vector<18x32xf32>
    %c3_382 = arith.constant 3 : index
    %c0_383 = arith.constant 0 : index
    %c96_384 = arith.constant 96 : index
    %844 = vector.load %arg4[%c3_382, %c0_383, %c96_384] : memref<4x1x128xf32, #tpu.memory_space<vmem>>, vector<1x1x32xf32>
    %845 = vector.shape_cast %844 : vector<1x1x32xf32> to vector<1x32xf32>
    %846 = vector.broadcast %845 : vector<1x32xf32> to vector<18x32xf32>
    %847 = arith.addf %843, %846 : vector<18x32xf32>
    %c3_385 = arith.constant 3 : index
    %c2_386 = arith.constant 2 : index
    %c0_387 = arith.constant 0 : index
    %848 = vector.load %arg5[%c3_385, %c2_386, %c0_387] : memref<4x4x32xf32, #tpu.memory_space<vmem>>, vector<1x1x32xf32>
    %849 = vector.shape_cast %848 : vector<1x1x32xf32> to vector<1x32xf32>
    %c3_388 = arith.constant 3 : index
    %c3_389 = arith.constant 3 : index
    %c0_390 = arith.constant 0 : index
    %850 = vector.load %arg5[%c3_388, %c3_389, %c0_390] : memref<4x4x32xf32, #tpu.memory_space<vmem>>, vector<1x1x32xf32>
    %851 = vector.shape_cast %850 : vector<1x1x32xf32> to vector<1x32xf32>
    %cst_391 = arith.constant dense<0.000000e+00> : vector<18xf32>
    %852 = vector.multi_reduction <add>, %847, %cst_391 [1] : vector<18x32xf32> to vector<18xf32>
    %853 = vector.shape_cast %852 : vector<18xf32> to vector<18x1xf32>
    %cst_392 = arith.constant 3.200000e+01 : f32
    %854 = vector.broadcast %cst_392 : f32 to vector<18x1xf32>
    %855 = arith.divf %853, %854 : vector<18x1xf32>
    %856 = vector.broadcast %855 : vector<18x1xf32> to vector<18x32xf32>
    %857 = arith.subf %847, %856 : vector<18x32xf32>
    %858 = arith.mulf %857, %857 : vector<18x32xf32>
    %cst_393 = arith.constant dense<0.000000e+00> : vector<18xf32>
    %859 = vector.multi_reduction <add>, %858, %cst_393 [1] : vector<18x32xf32> to vector<18xf32>
    %860 = vector.shape_cast %859 : vector<18xf32> to vector<18x1xf32>
    %cst_394 = arith.constant 3.200000e+01 : f32
    %861 = vector.broadcast %cst_394 : f32 to vector<18x1xf32>
    %862 = arith.divf %860, %861 : vector<18x1xf32>
    %863 = vector.broadcast %855 : vector<18x1xf32> to vector<18x32xf32>
    %864 = arith.subf %847, %863 : vector<18x32xf32>
    %cst_395 = arith.constant 9.99999997E-7 : f32
    %865 = vector.broadcast %cst_395 : f32 to vector<18x1xf32>
    %866 = arith.addf %862, %865 : vector<18x1xf32>
    %867 = math.rsqrt %866 : vector<18x1xf32>
    %868 = vector.broadcast %867 : vector<18x1xf32> to vector<18x32xf32>
    %869 = arith.mulf %864, %868 : vector<18x32xf32>
    %870 = vector.broadcast %849 : vector<1x32xf32> to vector<18x32xf32>
    %871 = arith.mulf %869, %870 : vector<18x32xf32>
    %872 = vector.broadcast %851 : vector<1x32xf32> to vector<18x32xf32>
    %873 = arith.addf %871, %872 : vector<18x32xf32>
    %c3_396 = arith.constant 3 : index
    %c0_397 = arith.constant 0 : index
    %c0_398 = arith.constant 0 : index
    %874 = vector.load %arg6[%c3_396, %c0_397, %c0_398] : memref<4x32x64xf32, #tpu.memory_space<vmem>>, vector<1x32x64xf32>
    %875 = vector.shape_cast %874 : vector<1x32x64xf32> to vector<32x64xf32>
    %cst_399 = arith.constant dense<0.000000e+00> : vector<18x64xf32>
    %876 = tpu.matmul %873, %875, %cst_399 {dimension_numbers = #tpu.dot_dimension_numbers<[1], [0], [0], [1], [0, 0, 1, 1], [], []>} : vector<18x32xf32>, vector<32x64xf32>, vector<18x64xf32> -> vector<18x64xf32>
    %c3_400 = arith.constant 3 : index
    %c0_401 = arith.constant 0 : index
    %c0_402 = arith.constant 0 : index
    %877 = vector.load %arg8[%c3_400, %c0_401, %c0_402] : memref<4x1x96xf32, #tpu.memory_space<vmem>>, vector<1x1x64xf32>
    %878 = vector.shape_cast %877 : vector<1x1x64xf32> to vector<1x64xf32>
    %879 = vector.broadcast %878 : vector<1x64xf32> to vector<18x64xf32>
    %880 = arith.addf %876, %879 : vector<18x64xf32>
    %cst_403 = arith.constant 5.000000e-01 : f32
    %881 = vector.broadcast %cst_403 : f32 to vector<18x64xf32>
    %882 = arith.mulf %881, %880 : vector<18x64xf32>
    %cst_404 = arith.constant 4.471500e-02 : f32
    %883 = vector.broadcast %cst_404 : f32 to vector<18x64xf32>
    %884 = arith.mulf %883, %880 : vector<18x64xf32>
    %885 = arith.mulf %884, %880 : vector<18x64xf32>
    %886 = arith.mulf %885, %880 : vector<18x64xf32>
    %887 = arith.addf %880, %886 : vector<18x64xf32>
    %cst_405 = arith.constant 0.797884583 : f32
    %888 = vector.broadcast %cst_405 : f32 to vector<18x64xf32>
    %889 = arith.mulf %888, %887 : vector<18x64xf32>
    %890 = math.tanh %889 : vector<18x64xf32>
    %cst_406 = arith.constant 1.000000e+00 : f32
    %891 = vector.broadcast %cst_406 : f32 to vector<18x64xf32>
    %892 = arith.addf %891, %890 : vector<18x64xf32>
    %893 = arith.mulf %882, %892 : vector<18x64xf32>
    %c3_407 = arith.constant 3 : index
    %c0_408 = arith.constant 0 : index
    %c0_409 = arith.constant 0 : index
    %894 = vector.load %arg7[%c3_407, %c0_408, %c0_409] : memref<4x64x32xf32, #tpu.memory_space<vmem>>, vector<1x64x32xf32>
    %895 = vector.shape_cast %894 : vector<1x64x32xf32> to vector<64x32xf32>
    %cst_410 = arith.constant dense<0.000000e+00> : vector<18x32xf32>
    %896 = tpu.matmul %893, %895, %cst_410 {dimension_numbers = #tpu.dot_dimension_numbers<[1], [0], [0], [1], [0, 0, 1, 1], [], []>} : vector<18x64xf32>, vector<64x32xf32>, vector<18x32xf32> -> vector<18x32xf32>
    %897 = arith.addf %847, %896 : vector<18x32xf32>
    %c3_411 = arith.constant 3 : index
    %c0_412 = arith.constant 0 : index
    %c64_413 = arith.constant 64 : index
    %898 = vector.load %arg8[%c3_411, %c0_412, %c64_413] : memref<4x1x96xf32, #tpu.memory_space<vmem>>, vector<1x1x32xf32>
    %899 = vector.shape_cast %898 : vector<1x1x32xf32> to vector<1x32xf32>
    %900 = vector.broadcast %899 : vector<1x32xf32> to vector<18x32xf32>
    %901 = arith.addf %897, %900 : vector<18x32xf32>
    %c32_414 = arith.constant 32 : index
    %c0_415 = arith.constant 0 : index
    %902 = vector.load %arg10[%c32_414, %c0_415] : memref<35x64xf32, #tpu.memory_space<vmem>>, vector<1x32xf32>
    %c33 = arith.constant 33 : index
    %c0_416 = arith.constant 0 : index
    %903 = vector.load %arg10[%c33, %c0_416] : memref<35x64xf32, #tpu.memory_space<vmem>>, vector<1x32xf32>
    %cst_417 = arith.constant dense<0.000000e+00> : vector<18xf32>
    %904 = vector.multi_reduction <add>, %901, %cst_417 [1] : vector<18x32xf32> to vector<18xf32>
    %905 = vector.shape_cast %904 : vector<18xf32> to vector<18x1xf32>
    %cst_418 = arith.constant 3.200000e+01 : f32
    %906 = vector.broadcast %cst_418 : f32 to vector<18x1xf32>
    %907 = arith.divf %905, %906 : vector<18x1xf32>
    %908 = vector.broadcast %907 : vector<18x1xf32> to vector<18x32xf32>
    %909 = arith.subf %901, %908 : vector<18x32xf32>
    %910 = arith.mulf %909, %909 : vector<18x32xf32>
    %cst_419 = arith.constant dense<0.000000e+00> : vector<18xf32>
    %911 = vector.multi_reduction <add>, %910, %cst_419 [1] : vector<18x32xf32> to vector<18xf32>
    %912 = vector.shape_cast %911 : vector<18xf32> to vector<18x1xf32>
    %cst_420 = arith.constant 3.200000e+01 : f32
    %913 = vector.broadcast %cst_420 : f32 to vector<18x1xf32>
    %914 = arith.divf %912, %913 : vector<18x1xf32>
    %915 = vector.broadcast %907 : vector<18x1xf32> to vector<18x32xf32>
    %916 = arith.subf %901, %915 : vector<18x32xf32>
    %cst_421 = arith.constant 9.99999997E-7 : f32
    %917 = vector.broadcast %cst_421 : f32 to vector<18x1xf32>
    %918 = arith.addf %914, %917 : vector<18x1xf32>
    %919 = math.rsqrt %918 : vector<18x1xf32>
    %920 = vector.broadcast %919 : vector<18x1xf32> to vector<18x32xf32>
    %921 = arith.mulf %916, %920 : vector<18x32xf32>
    %922 = vector.broadcast %902 : vector<1x32xf32> to vector<18x32xf32>
    %923 = arith.mulf %921, %922 : vector<18x32xf32>
    %924 = vector.broadcast %903 : vector<1x32xf32> to vector<18x32xf32>
    %925 = arith.addf %923, %924 : vector<18x32xf32>
    %c0_422 = arith.constant 0 : index
    %c0_423 = arith.constant 0 : index
    %926 = vector.load %arg10[%c0_422, %c0_423] : memref<35x64xf32, #tpu.memory_space<vmem>>, vector<32x64xf32>
    %cst_424 = arith.constant dense<0.000000e+00> : vector<18x64xf32>
    %927 = tpu.matmul %925, %926, %cst_424 {dimension_numbers = #tpu.dot_dimension_numbers<[1], [0], [0], [1], [0, 0, 1, 1], [], []>} : vector<18x32xf32>, vector<32x64xf32>, vector<18x64xf32> -> vector<18x64xf32>
    %c34 = arith.constant 34 : index
    %c0_425 = arith.constant 0 : index
    %928 = vector.load %arg10[%c34, %c0_425] : memref<35x64xf32, #tpu.memory_space<vmem>>, vector<1x64xf32>
    %929 = vector.broadcast %928 : vector<1x64xf32> to vector<18x64xf32>
    %930 = arith.addf %927, %929 : vector<18x64xf32>
    %cst_426 = arith.constant dense<0.000000e+00> : vector<18x64xf32>
    %931 = tpu.matmul %3, %0, %cst_426 {dimension_numbers = #tpu.dot_dimension_numbers<[1], [0], [0], [1], [0, 0, 1, 1], [], []>} : vector<18x16xf32>, vector<16x64xf32>, vector<18x64xf32> -> vector<18x64xf32>
    %932 = arith.subf %931, %930 : vector<18x64xf32>
    %933 = arith.mulf %932, %932 : vector<18x64xf32>
    %cst_427 = arith.constant dense<0.000000e+00> : vector<18xf32>
    %934 = vector.multi_reduction <add>, %933, %cst_427 [1] : vector<18x64xf32> to vector<18xf32>
    %935 = vector.shape_cast %934 : vector<18xf32> to vector<18x1xf32>
    %cst_428 = arith.constant 6.400000e+01 : f32
    %936 = vector.broadcast %cst_428 : f32 to vector<18x1xf32>
    %937 = arith.divf %935, %936 : vector<18x1xf32>
    %cst_429 = arith.constant dense<0.000000e+00> : vector<18x1xf32>
    %938 = tpu.matmul %3, %192, %cst_429 {dimension_numbers = #tpu.dot_dimension_numbers<[1], [0], [0], [1], [0, 0, 1, 1], [], []>} : vector<18x16xf32>, vector<16x1xf32>, vector<18x1xf32> -> vector<18x1xf32>
    %939 = arith.mulf %938, %4 : vector<18x1xf32>
    %940 = arith.mulf %937, %4 : vector<18x1xf32>
    %941 = arith.subf %939, %940 : vector<18x1xf32>
    %942 = arith.mulf %941, %941 : vector<18x1xf32>
    %943 = arith.mulf %942, %4 : vector<18x1xf32>
    %cst_430 = arith.constant dense<0.000000e+00> : vector<1xf32>
    %944 = vector.multi_reduction <add>, %943, %cst_430 [0] : vector<18x1xf32> to vector<1xf32>
    %945 = vector.shape_cast %944 : vector<1xf32> to vector<1x1xf32>
    %cst_431 = arith.constant dense<0.000000e+00> : vector<1xf32>
    %946 = vector.multi_reduction <add>, %4, %cst_431 [0] : vector<18x1xf32> to vector<1xf32>
    %947 = vector.shape_cast %946 : vector<1xf32> to vector<1x1xf32>
    %948 = arith.divf %945, %947 : vector<1x1xf32>
    %c0_432 = arith.constant 0 : index
    %c0_433 = arith.constant 0 : index
    %949 = vector.load %arg16[%c0_432, %c0_433] : memref<1x1xf32, #tpu.memory_space<vmem>>, vector<1x1xf32>
    tpu.vector_store %arg16[%c0_432, %c0_433], %948 {strides = array<i32>} : memref<1x1xf32, #tpu.memory_space<vmem>>, vector<1x1xf32>,
    return
  }
}

</mosaic_0001>

<bundles_post_ra>
// kernel: mul.22
= control target key start
LH: loop header
LB: loop body
LE: loop exit
PB: predicated region body
PF: predicated region fallthrough
CT: control target
= control target key end

     0   :  { %vm7_vm0 = vcmask 72704   ;;  %vm13_vm1 = vcmask 146504   ;;  %s39_s0 = inlined_call_operand.vmem [shape: f32[2,9], index: 0, kind: input, shape index: {}]   ;;  %s40_s1 = inlined_call_operand.vmem [shape: f32[18], index: 1, kind: output, shape index: {}]  }
   0x1   :  { %v4_v0 = vld [vmem:[%s39_s0] sm:$0x3]  ;;  %s22_s0 = smov 9  }
   0x2   :  { %5 = vst [vmem:[#allocation1] sm:$0x3] %v4_v0 }
   0x9   :  { %v10_v1 = vld [vmem:[#allocation1 + $0x1] sm:$0x1]   ;;  %v6_v2 = vld [vmem:[#allocation1] sm:$0x1]  }
   0xa   :  { %11 = vrot.lane.b32.xlu0 %v10_v1, %s22_s0  ;;  %8 = vst.msk [vmem:[#allocation0] sm:$0x1] %vm7_vm0, %v6_v2  }
  0x7c   :  { %v12_v3 = vpop.permute.xlu0 %11  }
  0x7d   :  { %14 = vst.msk [vmem:[#allocation0] sm:$0x1] %vm13_vm1, %v12_v3  }
  0x84   :  { %v18_v4 = vld [vmem:[#allocation0] sm:$0x1] }
  0x85   :  { %20 = vst [vmem:[%s40_s1] sm:$0x1] %v18_v4 }

// kernel: tile.23
= control target key start
LH: loop header
LB: loop body
LE: loop exit
PB: predicated region body
PF: predicated region fallthrough
CT: control target
= control target key end

     0   :  { %vm3_vm0 = vcmask 261120   ;;  %s6_s6 = smov 3  ;;  %s48_s0 = inlined_call_operand.vmem [shape: f32[2,9,32], index: 0, kind: input, shape index: {}]   ;;  %s49_s1 = inlined_call_operand.vmem [shape: f32[18,32], index: 1, kind: output, shape index: {}]  }
   0x1   :  { %v2_v0 = vld [vmem:[%s48_s0] sm:$0xff]   ;;  %v18_v2 = vld [vmem:[%s48_s0 + $0x11] sm:$0xff]  }
   0x2   :  { %v16_v1 = vld [vmem:[%s48_s0 + $0x8] ss:$8 sm:%s6_s6]   ;;  %4 = vst.msk [vmem:[%s49_s1] sm:$0xff] %vm3_vm0, %v2_v0   ;;  %19 = vst.msk [vmem:[%s49_s1 + $0xa] sm:$0xff] %vm3_vm0, %v18_v2  }
   0x3   :  { %17 = vst.msk [vmem:[%s49_s1 + $0x8] sm:$0x3] %vm3_vm0, %v16_v1  }

// kernel: forward.1
= control target key start
LH: loop header
LB: loop body
LE: loop exit
PB: predicated region body
PF: predicated region fallthrough
CT: control target
= control target key end

     0   :  { %s13976_s0 = inlined_call_operand.vmem [shape: f32[16,64], index: 0, kind: input, shape index: {}]   ;;  %s13977_s1 = inlined_call_operand.vmem [shape: f32[18,71], index: 1, kind: input, shape index: {}]   ;;  %s13978_s2 = inlined_call_operand.vmem [shape: f32[28,32], index: 2, kind: input, shape index: {}]   ;;  %s13979_s3 = inlined_call_operand.vmem [shape: f32[4,32,128], index: 3, kind: input, shape index: {}]   ;;  %s13980_s4 = inlined_call_operand.vmem [shape: f32[4,1,128], index: 4, kind: input, shape index: {}]   ;;  %s13981_s5 = inlined_call_operand.vmem [shape: f32[4,4,32], index: 5, kind: input, shape index: {}]   ;;  %s13982_s6 = inlined_call_operand.vmem [shape: f32[4,32,64], index: 6, kind: input, shape index: {}]   ;;  %s13983_s7 = inlined_call_operand.vmem [shape: f32[4,64,32], index: 7, kind: input, shape index: {}]   ;;  %s13984_s8 = inlined_call_operand.vmem [shape: f32[4,1,96], index: 8, kind: input, shape index: {}]   ;;  %s13985_s9 = inlined_call_operand.vmem [shape: f32[99,32], index: 9, kind: input, shape index: {}]   ;;  %s13986_s10 = inlined_call_operand.vmem [shape: f32[35,64], index: 10, kind: input, shape index: {}]   ;;  %s13987_s11 = inlined_call_operand.vmem [shape: f32[128,256], index: 11, kind: input, shape index: {}]   ;;  %s13988_s12 = inlined_call_operand.vmem [shape: f32[128,48], index: 12, kind: input, shape index: {}]   ;;  %s13989_s13 = inlined_call_operand.vmem [shape: f32[16,256], index: 13, kind: input, shape index: {}]   ;;  %s13990_s14 = inlined_call_operand.vmem [shape: f32[12,128], index: 14, kind: input, shape index: {}]   ;;  %s13991_s15 = inlined_call_operand.vmem [shape: f32[16,9], index: 15, kind: input, shape index: {}]   ;;  %s13992_s16 = inlined_call_operand.hbm [shape: f32[1,1], index: 16, kind: output, shape index: {}]  }
   0x1   :  { %14016 = sst [smem:[#allocation5_spill]] %s13976_s0 }
   0x2   :  { %v60_v0 = vld [vmem:[%s13987_s11] sm:$0xff]  ;;  %v61_v1 = vld [vmem:[%s13987_s11 + $0x10] sm:$0xff]  ;;  %vm93_vm0 = vcmask 523264   ;;  %v11654_v5 = vmov 0.0|0.0   ;;  %s14017_s20 = sld [smem:[#allocation5_spill]]  ;;  %v11797_v12 = vld [vmem:[%s13988_s12 + $0x8] sm:$0xff] }
   0x3   :  { %v62_v2 = vld [vmem:[%s13987_s11 + $0x20] sm:$0xff]  ;;  %v10538_v3 = vpack.c.bf16 %v61_v1, %v60_v0  ;;  %v63_v4 = vld [vmem:[%s13987_s11 + $0x30] sm:$0xff]  ;;  %10554 = vmatprep.subr.bf16.mxu1 %v11654_v5  ;;  %v11813_v16 = vld [vmem:[%s13988_s12 + $0x18] sm:$0xff] }
   0x4   :  { %v10542_v6 = vpack.c.bf16 %v63_v4, %v62_v2  ;;  %v64_v7 = vld [vmem:[%s13987_s11 + $0x40] sm:$0xff]  ;;  %v65_v8 = vld [vmem:[%s13987_s11 + $0x50] sm:$0xff] }
   0x5   :  { %10539 = vmatprep.subr.bf16.mxu0 %v10538_v3  ;;  %v11792_v11 = vld [vmem:[%s13988_s12] sm:$0xff]  ;;  %v11808_v15 = vld [vmem:[%s13988_s12 + $0x10] sm:$0xff]  ;;  %v10546_v17 = vpack.c.bf16 %v65_v8, %v64_v7 }
   0x6   :  { %10541 = vmatpush3.bf16.msra.mxu0 %v10538_v3  ;;  %v11803_v14 = vpack.c.bf16 %v11797_v12, %v11792_v11  ;;  %v66_v18 = vld [vmem:[%s13987_s11 + $0x60] sm:$0xff]  ;;  %v67_v19 = vld [vmem:[%s13987_s11 + $0x70] sm:$0xff]  ;;  %v11824_v20 = vpack.c.bf16 %v11813_v16, %v11808_v15 }
   0x7   :  { %10543 = vmatprep.subr.bf16.mxu0 %v10542_v6 }
   0x8   :  { %v54_v9 = vld [vmem:[%s14017_s20] sm:$0xff]  ;;  %v55_v10 = vld [vmem:[%s14017_s20 + $0x8] sm:$0xff]  ;;  %10556 = vmatpush3.bf16.msra.mxu1 %v11803_v14 }
   0x9   :  { %9540 = vmatprep.mubr.msk.f32.mxu0 %vm93_vm0, %v54_v9  ;;  %v11799_v13 = vpack.c.bf16 %v55_v10, %v54_v9 }
   0xa   :  { %21 = vsyncpa [#allocation3], 0  ;;  %10557 = vmatprep.subr.bf16.mxu1 %v11654_v5  ;;  %v11830_v21 = vld [vmem:[%s13988_s12 + $0x20] sm:$0xff]  ;;  %v11835_v22 = vld [vmem:[%s13988_s12 + $0x28] sm:$0xff]  ;;  %10545 = vmatpush3.bf16.msra.mxu0 %v10542_v6  ;;  %v10550_v23 = vpack.c.bf16 %v67_v19, %v66_v18  ;;  %vm11655_vm1 = vmmov 0   ;;  %v11656_v40 = vmov 0.0   ;;  %v327_v59 = vlaneseq }
   0xb   :  { %10547 = vmatprep.subr.bf16.mxu0 %v10546_v17  ;;  %v11840_v24 = vpack.c.bf16 %v11835_v22, %v11830_v21  ;;  %v11846_v25 = vld [vmem:[%s13988_s12 + $0x30] sm:$0xff]  ;;  %v11851_v26 = vld [vmem:[%s13988_s12 + $0x38] sm:$0xff]  ;;  %v77_v28 = vld [vmem:[%s13988_s12 + $0x40] sm:$0xff]  ;;  %9575 = vmatprep.mubr.msk.f32.mxu1 %vm11655_vm1, %v11656_v40  ;;  %vm253_vm2 = vcmask 130048   ;;  %s11657_s23 = smov 112   ;;  %s11659_s17 = smov 96  }
   0xc   :  { %10559 = vmatpush3.bf16.msra.mxu1 %v11824_v20  ;;  %v11856_v27 = vpack.c.bf16 %v11851_v26, %v11846_v25  ;;  %v78_v29 = vld [vmem:[%s13988_s12 + $0x48] sm:$0xff]  ;;  %v79_v31 = vld [vmem:[%s13988_s12 + $0x50] sm:$0xff]  ;;  %v80_v32 = vld [vmem:[%s13988_s12 + $0x58] sm:$0xff]  ;;  %v328_v60 = vshrl.u32 %v327_v59, 7  ;;  %s14014_s28 = smov 120   ;;  %vm1910_vm3 = vcmask 64512  }
   0xd   :  { %10560 = vmatprep.subr.bf16.mxu1 %v11654_v5  ;;  %v10567_v30 = vpack.c.bf16 %v78_v29, %v77_v28  ;;  %v10570_v33 = vpack.c.bf16 %v80_v32, %v79_v31  ;;  %v81_v34 = vld [vmem:[%s13988_s12 + $0x60] sm:$0xff]  ;;  %v82_v35 = vld [vmem:[%s13988_s12 + $0x68] sm:$0xff]  ;;  %v83_v37 = vld [vmem:[%s13988_s12 + $0x70] sm:$0xff]  ;;  %vm2241_vm4 = vcmask 254976   ;;  %vm2237_vm5 = vcmask 261120   ;;  %s11662_s26 = smov 85  }
   0xe   :  { %10549 = vmatpush3.bf16.msra.mxu0 %v10546_v17  ;;  %v10573_v36 = vpack.c.bf16 %v82_v35, %v81_v34  ;;  %v84_v38 = vld [vmem:[%s13988_s12 + $0x78] sm:$0xff]  ;;  %v8730_v41 = vld [vmem:[%s13990_s14] ss:$0 sm:$0xff]  ;;  %v86_v54 = vld [vmem:[%s13989_s13 + $0x10] sm:$0xff]  ;;  %v11923_v61 = vsub.s32 0, %v328_v60  ;;  %vm2473_vm7 = vcmask 74752  }
   0xf   :  { %10551 = vmatprep.subr.bf16.mxu0 %v10550_v23  ;;  %v10576_v39 = vpack.c.bf16 %v84_v38, %v83_v37  ;;  %v85_v53 = vld [vmem:[%s13989_s13] sm:$0xff]  ;;  %v11954_v31 = vld [vmem:[%s13987_s11 + $0x18] sm:$0xff]  ;;  %vm12356_vm6 = vmpackc.low %vm1910_vm3, %vm1910_vm3  ;;  %vm2469_vm8 = vcmask 80896   ;;  %vm2504_vm9 = vcmask 1041408   ;;  %vm11663_vm10 = vmmov 1   ;;  %s14012_s27 = smov 80  }
  0x10   :  { %10562 = vmatpush3.bf16.msra.mxu1 %v11840_v24  ;;  %v10579_v55 = vpack.c.bf16 %v86_v54, %v85_v53  ;;  %v88_v29 = vld [vmem:[%s13990_s14 + $0x6] sm:$0x1]  ;;  %v11966_v34 = vld [vmem:[%s13987_s11 + $0x38] sm:$0xff]  ;;  %vm12387_vm11 = vmpackc.low %vm2504_vm9, %vm11663_vm10  ;;  %s14010_s29 = smov 72   ;;  %s14008_s30 = smov 104   ;;  %vm3225_vm12 = vcmask 195584  }
  0x11   :  { %10563 = vmatprep.subr.bf16.mxu1 %v11654_v5  ;;  %v11978_v37 = vld [vmem:[%s13987_s11 + $0x58] sm:$0xff]  ;;  %s14004_s12 = smov 48   ;;  %s14002_s0 = smov 32   ;;  %vm5418_vm13 = vcmask 146432   ;;  %vm5425_vm14 = vcmask 140288   ;;  %vm8558_vm15 = vcmask 517120  }
  0x12   :  { %10553 = vmatpush3.bf16.msra.mxu0 %v10550_v23  ;;  %v607_v53 = vld [vmem:[%s13987_s11 + $0xf8] sm:$0xff]  ;;  %s14000_s18 = smov 40   ;;  %s13998_s19 = smov 8  }
  0x13   :  { %10578 = vmatprep.subr.bf16.mxu0 %v11654_v5  ;;  %s13996_s20 = smov 16   ;;  %s13994_s21 = smov 24  }
  0x14   :  { %10565 = vmatpush3.bf16.msra.mxu1 %v11856_v27  ;;  %s14022_s25 = smov 32   ;;  %s14025_s22 = smov 16  }
  0x15   :  { %9541 = vmatmul.mubr.msk.f32.vlgmr.msra.gmra.mrb[0].mxu0 %vm93_vm0, %v55_v10  ;;  %10566 = vmatprep.subr.bf16.mxu1 %v11654_v5 }
  0x16   :  { %9582 = vmatprep.mubr.msk.f32.mxu0 %vm11655_vm1, %v11656_v40  ;;  %10580 = vmatpush3.bf16.msra.mxu0 %v10579_v55 }
  0x17   :  { %10581 = vmatprep.subr.bf16.mxu0 %v11654_v5 }
  0x18   :  { %10568 = vmatpush3.bf16.msra.mxu1 %v10567_v30 }
  0x19   :  { %10569 = vmatprep.subr.bf16.mxu1 %v11654_v5 }
  0x1c   :  { %10571 = vmatpush3.bf16.msra.mxu1 %v10570_v33 }
  0x1d   :  { %10572 = vmatprep.subr.bf16.mxu1 %v11654_v5 }
  0x20   :  { %10574 = vmatpush3.bf16.msra.mxu1 %v10573_v36 }
  0x21   :  { %10575 = vmatprep.subr.bf16.mxu1 %v11654_v5 }
  0x24   :  { %10577 = vmatpush3.bf16.msra.mxu1 %v10576_v39 }
  0x25   :  { %10605 = vmatprep.subr.bf16.mxu1 %v11654_v5 }
  0xe8   :  { %v9542_v42 = vpop.f32.mrb[0].mxu0 }
  0xe9   :  { %v172_v43 = vadd.f32 %v9542_v42, %v8730_v41  ;;  %v166_v44 = vpop.f32.mrb[1].mxu0 }
  0xea   :  { %v167_v45 = vadd.f32 %v8730_v41, %v166_v44  ;;  %v11990_v41 = vld [vmem:[%s13987_s11 + $0x78] sm:$0xff] }
  0xeb   :  { %v601_v44 = vld [vmem:[%s13987_s11 + $0x98] sm:$0xff] }
  0xec   :  { %v175_v46 = vadd.f32 %v172_v43, %v167_v45 }
  0xee   :  { %v176_v47 = vrot.slane %v175_v46, 4 }
  0xf0   :  { %v177_v48 = vadd.f32 %v176_v47, %v175_v46  ;;  %v602_v46 = vld [vmem:[%s13987_s11 + $0xa8] sm:$0xff]  ;;  %v603_v47 = vld [vmem:[%s13987_s11 + $0xb8] sm:$0xff] }
  0xf2   :  { %v178_v49 = vrot.slane %v177_v48, 2 }
  0xf4   :  { %v179_v50 = vadd.f32 %v178_v49, %v177_v48  ;;  %v10631_v48 = vpack.c.bf16 %v603_v47, %v602_v46  ;;  %v604_v49 = vld [vmem:[%s13987_s11 + $0xc8] sm:$0xff] }
  0xf6   :  { %v180_v51 = vrot.slane %v179_v50, 1 }
  0xf8   :  { %v181_v52 = vadd.f32 %v180_v51, %v179_v50  ;;  %v605_v50 = vld [vmem:[%s13987_s11 + $0xd8] sm:$0xff] }
  0xf9   :  { %v10635_v51 = vpack.c.bf16 %v605_v50, %v604_v49 }
  0xfa   :  { %9576 = vmatmul.mubr.f32.vlgmr.msra.gmra.mrb[0].mxu1 %v181_v52  ;;  %v606_v52 = vld [vmem:[%s13987_s11 + $0xe8] sm:$0xff] }
  0xfb   :  { %9624 = vmatprep.mubr.msk.f32.mxu1 %vm11655_vm1, %v11656_v40  ;;  %10607 = vmatpush3.bf16.msra.mxu1 %v10579_v55  ;;  %v10639_v54 = vpack.c.bf16 %v607_v53, %v606_v52  ;;  %v12061_v52 = vld [vmem:[%s13989_s13 + $0x18] sm:$0xff] }
  0xfc   :  { %10608 = vmatprep.subr.bf16.mxu1 %v11654_v5 }
 0x1cd   :  { %v248_v56 = vpop.f32.mrb[0].mxu1 }
 0x1ce   :  { %v252_v57 = vmul.f32 0.0078125, %v248_v56  ;;  %v9577_v58 = vpop.f32.mrb[1].mxu1  ;;  %v12025_v56 = vpack.i.bf16 %v11835_v22, %v11830_v21 }
 0x1cf   :  { %v12037_v58 = vpack.i.bf16 %v11851_v26, %v11846_v25 }
 0x1d0   :  { %9583 = vmatmul.mubr.msk.f32.vlgmr.msra.gmra.mrb[2].mxu0 %vm253_vm2, %v252_v57  ;;  %v12031_v57 = vpack.i.bf16 %v11813_v16, %v11808_v15  ;;  %11116 = vrot.lane.b32.xlu1 %v12025_v56, %s11657_s23 }
 0x1d1   :  { %10583 = vmatpush3.bf16.msra.mxu0 %v11803_v14  ;;  %9617 = vmatprep.mubr.msk.f32.mxu0 %vm11655_vm1, %v11656_v40 }
 0x1d2   :  { %10584 = vmatprep.subr.bf16.mxu0 %v11654_v5 }
 0x1d4   :  { %11121 = vrot.lane.b32.xlu1 %v12037_v58, %s11657_s23 }
 0x1d5   :  { %10586 = vmatpush3.bf16.msra.mxu0 %v11824_v20 }
 0x1d6   :  { %10587 = vmatprep.subr.bf16.mxu0 %v11654_v5 }
 0x1d9   :  { %10589 = vmatpush3.bf16.msra.mxu0 %v11840_v24  ;;  %v87_v24 = vld [vmem:[%s13990_s14 + $0x3] sm:$0x1] }
 0x1da   :  { %10590 = vmatprep.subr.bf16.mxu0 %v11654_v5 }
 0x1dd   :  { %10592 = vmatpush3.bf16.msra.mxu0 %v11856_v27 }
 0x1de   :  { %10593 = vmatprep.subr.bf16.mxu0 %v11654_v5 }
 0x1e1   :  { %10595 = vmatpush3.bf16.msra.mxu0 %v10567_v30  ;;  %v11949_v30 = vld [vmem:[%s13987_s11 + $0x8] sm:$0xff] }
 0x1e2   :  { %10596 = vmatprep.subr.bf16.mxu0 %v11654_v5  ;;  %v10611_v32 = vpack.c.bf16 %v11954_v31, %v11949_v30 }
 0x1e5   :  { %10598 = vmatpush3.bf16.msra.mxu0 %v10570_v33  ;;  %v11961_v33 = vld [vmem:[%s13987_s11 + $0x28] sm:$0xff] }
 0x1e6   :  { %10599 = vmatprep.subr.bf16.mxu0 %v11654_v5  ;;  %v10615_v35 = vpack.c.bf16 %v11966_v34, %v11961_v33 }
 0x1e9   :  { %10601 = vmatpush3.bf16.msra.mxu0 %v10573_v36  ;;  %v11973_v36 = vld [vmem:[%s13987_s11 + $0x48] sm:$0xff] }
 0x1ea   :  { %10602 = vmatprep.subr.bf16.mxu0 %v11654_v5  ;;  %v10619_v38 = vpack.c.bf16 %v11978_v37, %v11973_v36 }
 0x1ed   :  { %10604 = vmatpush3.bf16.msra.mxu0 %v10576_v39  ;;  %v11985_v39 = vld [vmem:[%s13987_s11 + $0x68] sm:$0xff] }
 0x1ee   :  { %10643 = vmatprep.subr.bf16.mxu0 %v11654_v5  ;;  %v10623_v42 = vpack.c.bf16 %v11990_v41, %v11985_v39 }
 0x2a3   :  { %v323_v62 = vpop.f32.mrb[2].mxu0 }
 0x2a4   :  { %v330_v63 = vrot.slane %v323_v62, %v11923_v61  ;;  %v9584_v0 = vpop.f32.mrb[3].mxu0 }
 0x2a6   :  { %v11926_v1 = vsub.f32 %v167_v45, %v330_v63  ;;  %v11928_v2 = vsub.f32 %v172_v43, %v330_v63  ;;  %v600_v43 = vld [vmem:[%s13987_s11 + $0x88] sm:$0xff] }
 0x2a7   :  { %v10627_v45 = vpack.c.bf16 %v601_v44, %v600_v43  ;;  %v11117_v43 = vpop.permute.xlu1 %11116 }
 0x2a8   :  { %v333_v3 = vmul.f32 %v11926_v1, %v11926_v1  ;;  %v334_v4 = vmul.f32 %v11928_v2, %v11928_v2  ;;  %v11119_v44 = vunpack.i.h.bf16 %v11117_v43 }
 0x2aa   :  { %v335_v6 = vadd.f32 %v334_v4, %v333_v3 }
 0x2ab   :  { %v11122_v47 = vpop.permute.xlu1 %11121 }
 0x2ac   :  { %v336_v7 = vrot.slane %v335_v6, 4  ;;  %v11123_v49 = vunpack.i.l.bf16 %v11122_v47 }
 0x2ae   :  { %v337_v8 = vadd.f32 %v336_v7, %v335_v6 }
 0x2b0   :  { %v338_v9 = vrot.slane %v337_v8, 2 }
 0x2b2   :  { %v339_v10 = vadd.f32 %v338_v9, %v337_v8 }
 0x2b4   :  { %v340_v14 = vrot.slane %v339_v10, 1 }
 0x2b6   :  { %v341_v17 = vadd.f32 %v340_v14, %v339_v10 }
 0x2b8   :  { %9618 = vmatmul.mubr.f32.vlgmr.msra.gmra.mrb[4].mxu0 %v341_v17 }
 0x2b9   :  { %9685 = vmatprep.mubr.msk.f32.mxu0 %vm11655_vm1, %v11656_v40 }
 0x38b   :  { %v408_v18 = vpop.f32.mrb[4].mxu0 }
 0x38c   :  { %v412_v19 = vmul.f32 0.0078125, %v408_v18  ;;  %v9619_v20 = vpop.f32.mrb[5].mxu0 }
 0x38e   :  { %v413_v23 = vadd.f32 1e-06, %v412_v19 }
 0x390   :  { %11370 = vrsqrt.f32 %v413_v23 }
 0x39a   :  { %v11371_v27 = vpop.eup %11370 }
 0x39b   :  { %v415_v28 = vmul.f32 %v11371_v27, %v87_v24 }
 0x39d   :  { %9625 = vmatmul.mubr.msk.f32.vlgmr.msra.gmra.mrb[2].mxu1 %vm253_vm2, %v415_v28 }
 0x39e   :  { %10610 = vmatpush3.bf16.msra.mxu1 %v10579_v55  ;;  %9631 = vmatprep.mubr.msk.f32.mxu1 %vm11655_vm1, %v11656_v40  ;;  %v12021_v55 = vpack.i.bf16 %v11797_v12, %v11792_v11 }
 0x39f   :  { %10612 = vmatprep.subr.bf16.mxu1 %v10611_v32 }
 0x3a0   :  { %11106 = vrot.lane.b32.xlu0 %v12021_v55, %s11657_s23 }
 0x3a1   :  { %9632 = vmatmul.mubr.msk.f32.vlgmr.msra.gmra.mrb[4].mxu1 %vm253_vm2, %v88_v29 }
 0x3a2   :  { %10614 = vmatpush3.bf16.msra.mxu1 %v10611_v32 }
 0x3a3   :  { %10616 = vmatprep.subr.bf16.mxu1 %v10615_v35 }
 0x3a4   :  { %11111 = vrot.lane.b32.xlu0 %v12031_v57, %s11657_s23 }
 0x3a6   :  { %10618 = vmatpush3.bf16.msra.mxu1 %v10615_v35 }
 0x3a7   :  { %10620 = vmatprep.subr.bf16.mxu1 %v10619_v38 }
 0x3aa   :  { %10622 = vmatpush3.bf16.msra.mxu1 %v10619_v38 }
 0x3ab   :  { %10624 = vmatprep.subr.bf16.mxu1 %v10623_v42 }
 0x3ae   :  { %10626 = vmatpush3.bf16.msra.mxu1 %v10623_v42 }
 0x3af   :  { %10628 = vmatprep.subr.bf16.mxu1 %v10627_v45 }
 0x3b2   :  { %10630 = vmatpush3.bf16.msra.mxu1 %v10627_v45  ;;  %v11118_v45 = vunpack.i.l.bf16 %v11117_v43 }
 0x3b3   :  { %10632 = vmatprep.subr.bf16.mxu1 %v10631_v48 }
 0x3b4   :  { %v10650_v46 = vpack.c.bf16 %v11119_v44, %v11118_v45 }
 0x3b6   :  { %10634 = vmatpush3.bf16.msra.mxu1 %v10631_v48  ;;  %v11124_v48 = vunpack.i.h.bf16 %v11122_v47 }
 0x3b7   :  { %10636 = vmatprep.subr.bf16.mxu1 %v10635_v51 }
 0x3b8   :  { %v10653_v50 = vpack.c.bf16 %v11124_v48, %v11123_v49 }
 0x3ba   :  { %10638 = vmatpush3.bf16.msra.mxu1 %v10635_v51  ;;  %v12056_v51 = vld [vmem:[%s13989_s13 + $0x8] sm:$0xff]  ;;  %s11658_s13 = smov 64  }
 0x3bb   :  { %10640 = vmatprep.subr.bf16.mxu1 %v10639_v54  ;;  %v12065_v53 = vpack.c.bf16 %v12061_v52, %v12056_v51 }
 0x3be   :  { %10642 = vmatpush3.bf16.msra.mxu1 %v10639_v54  ;;  %v8736_v54 = vld [vmem:[%s13990_s14 + $0x1] ss:$0 sm:$0xff] }
 0x3bf   :  { %10670 = vmatprep.subr.bf16.mxu1 %v11654_v5 }
 0x470   :  { %v485_v11 = vpop.f32.mrb[2].mxu1 }
 0x471   :  { %v492_v12 = vrot.slane %v485_v11, %v11923_v61  ;;  %v9626_v21 = vpop.f32.mrb[3].mxu1 }
 0x473   :  { %v493_v15 = vmul.f32 %v492_v12, %v11926_v1  ;;  %v494_v16 = vmul.f32 %v492_v12, %v11928_v2  ;;  %v11107_v1 = vpop.permute.xlu0 %11106 }
 0x474   :  { %v564_v22 = vpop.f32.mrb[4].mxu1  ;;  %v11109_v14 = vunpack.i.h.bf16 %v11107_v1  ;;  %v11108_v2 = vunpack.i.l.bf16 %v11107_v1 }
 0x475   :  { %v571_v59 = vrot.slane %v564_v22, %v11923_v61  ;;  %v9633_v60 = vpop.f32.mrb[5].mxu1 }
 0x476   :  { %v10644_v17 = vpack.c.bf16 %v11109_v14, %v11108_v2 }
 0x477   :  { %v572_v25 = vadd.f32 %v571_v59, %v493_v15  ;;  %v573_v26 = vadd.f32 %v571_v59, %v494_v16  ;;  %v11112_v32 = vpop.permute.xlu0 %11111 }
 0x478   :  { %10645 = vmatpush3.bf16.msra.mxu0 %v10644_v17  ;;  %v11114_v35 = vunpack.i.h.bf16 %v11112_v32  ;;  %v11113_v38 = vunpack.i.l.bf16 %v11112_v32  ;;  %v11125_v32 = vpack.i.bf16 %v11954_v31, %v11949_v30 }
 0x479   :  { %v576_v62 = vmul.f32 0.044715, %v572_v25  ;;  %v577_v63 = vmul.f32 0.044715, %v573_v26  ;;  %10646 = vmatprep.subr.bf16.mxu0 %v11654_v5  ;;  %v574_v20 = vmul.f32 0.5, %v572_v25  ;;  %v575_v24 = vmul.f32 0.5, %v573_v26 }
 0x47a   :  { %v10647_v42 = vpack.c.bf16 %v11114_v35, %v11113_v38  ;;  %v11130_v35 = vpack.i.bf16 %v11966_v34, %v11961_v33  ;;  %11126 = vrot.lane.b32.xlu0 %v11125_v32, %s11658_s13  ;;  %v11135_v38 = vpack.i.bf16 %v11978_v37, %v11973_v36  ;;  %v619_v33 = vld [vmem:[%s13990_s14 + $0x4] sm:$0x1]  ;;  %v620_v36 = vld [vmem:[%s13990_s14 + $0x7] sm:$0x1] }
 0x47b   :  { %v579_v0 = vmul.f32 %v577_v63, %v573_v26  ;;  %v578_v3 = vmul.f32 %v576_v62, %v572_v25 }
 0x47c   :  { %10648 = vmatpush3.bf16.msra.mxu0 %v10647_v42  ;;  %11131 = vrot.lane.b32.xlu1 %v11130_v35, %s11658_s13 }
 0x47d   :  { %v581_v4 = vmul.f32 %v579_v0, %v573_v26  ;;  %v580_v6 = vmul.f32 %v578_v3, %v572_v25  ;;  %10649 = vmatprep.subr.bf16.mxu0 %v11654_v5 }
 0x47e   :  { %11136 = vrot.lane.b32.xlu0 %v11135_v38, %s11658_s13 }
 0x47f   :  { %v582_v7 = vadd.f32 %v580_v6, %v572_v25  ;;  %v583_v8 = vadd.f32 %v581_v4, %v573_v26 }
 0x480   :  { %10651 = vmatpush3.bf16.msra.mxu0 %v10650_v46 }
 0x481   :  { %v584_v9 = vmul.f32 0.7978846, %v582_v7  ;;  %v585_v10 = vmul.f32 0.7978846, %v583_v8  ;;  %10652 = vmatprep.subr.bf16.mxu0 %v11654_v5 }
 0x482   :  { %11146 = vrot.lane.b32.xlu0 %v12021_v55, %s11659_s17 }
 0x483   :  { %11372 = vtanh.f32 %v584_v9 }
 0x484   :  { %11374 = vtanh.f32 %v585_v10  ;;  %10654 = vmatpush3.bf16.msra.mxu0 %v10653_v50 }
 0x485   :  { %10655 = vmatprep.subr.bf16.mxu0 %v11654_v5 }
 0x486   :  { %11156 = vrot.lane.b32.xlu0 %v12025_v56, %s11659_s17 }
 0x48d   :  { %v11373_v18 = vpop.eup %11372 }
 0x48e   :  { %v11375_v19 = vpop.eup %11374  ;;  %v588_v23 = vadd.f32 1.0, %v11373_v18 }
 0x48f   :  { %v589_v27 = vadd.f32 1.0, %v11375_v19 }
 0x490   :  { %v590_v28 = vmul.f32 %v588_v23, %v574_v20 }
 0x491   :  { %v591_v29 = vmul.f32 %v589_v27, %v575_v24 }
 0x492   :  { %9666 = vmatprep.mubr.f32.mxu1 %v590_v28 }
 0x493   :  { %9667 = vmatmul.mubr.f32.vlgmr.msra.gmra.mrb[6].mxu1 %v591_v29 }
 0x494   :  { %9718 = vmatprep.mubr.msk.f32.mxu1 %vm11655_vm1, %v11656_v40  ;;  %10672 = vmatpush3.bf16.msra.mxu1 %v12065_v53 }
 0x495   :  { %10673 = vmatprep.subr.bf16.mxu1 %v11654_v5 }
 0x4ec   :  { %v11127_v37 = vpop.permute.xlu0 %11126 }
 0x4ee   :  { %v11132_v47 = vpop.permute.xlu1 %11131 }
 0x4ef   :  { %v11134_v48 = vunpack.i.h.bf16 %v11132_v47  ;;  %v11133_v49 = vunpack.i.l.bf16 %v11132_v47 }
 0x566   :  { %v9668_v11 = vpop.f32.mrb[6].mxu1 }
 0x567   :  { %v697_v12 = vadd.f32 %v9668_v11, %v8736_v54  ;;  %v691_v21 = vpop.f32.mrb[7].mxu1  ;;  %v10680_v11 = vpack.c.bf16 %v11134_v48, %v11133_v49 }
 0x568   :  { %v692_v22 = vadd.f32 %v8736_v54, %v691_v21 }
 0x569   :  { %v701_v15 = vsel %vm93_vm0, %v697_v12, 0.0 }
 0x56a   :  { %v700_v16 = vsel %vm93_vm0, %v692_v22, 0.0 }
 0x56b   :  { %v702_v59 = vadd.f32 %v701_v15, %v700_v16 }
 0x56d   :  { %v703_v60 = vrot.slane %v702_v59, 4 }
 0x56f   :  { %v704_v25 = vadd.f32 %v703_v60, %v702_v59 }
 0x571   :  { %v705_v26 = vrot.slane %v704_v25, 2 }
 0x573   :  { %v706_v62 = vadd.f32 %v705_v26, %v704_v25 }
 0x575   :  { %v707_v63 = vrot.slane %v706_v62, 1 }
 0x577   :  { %v708_v0 = vadd.f32 %v707_v63, %v706_v62 }
 0x579   :  { %9686 = vmatmul.mubr.msk.f32.vlgmr.msra.gmra.mrb[6].mxu0 %vm93_vm0, %v708_v0 }
 0x57a   :  { %10657 = vmatpush3.bf16.msra.mxu0 %v12065_v53  ;;  %9692 = vmatprep.mubr.msk.f32.mxu0 %vm11655_vm1, %v11656_v40 }
 0x57b   :  { %10658 = vmatprep.subr.bf16.mxu0 %v11654_v5 }
 0x64c   :  { %v810_v3 = vpop.f32.mrb[6].mxu0 }
 0x64d   :  { %v814_v4 = vmul.f32 0.015625, %v810_v3  ;;  %v9687_v6 = vpop.f32.mrb[7].mxu0 }
 0x64f   :  { %9693 = vmatmul.mubr.msk.f32.vlgmr.msra.gmra.mrb[8].mxu0 %vm253_vm2, %v814_v4 }
 0x650   :  { %10660 = vmatpush3.bf16.msra.mxu0 %v10644_v17  ;;  %9711 = vmatprep.mubr.msk.f32.mxu0 %vm11655_vm1, %v11656_v40 }
 0x651   :  { %10661 = vmatprep.subr.bf16.mxu0 %v11654_v5 }
 0x654   :  { %10663 = vmatpush3.bf16.msra.mxu0 %v10647_v42  ;;  %v11140_v42 = vpack.i.bf16 %v11990_v41, %v11985_v39  ;;  %v11129_v39 = vunpack.i.h.bf16 %v11127_v37  ;;  %v11128_v41 = vunpack.i.l.bf16 %v11127_v37 }
 0x655   :  { %10664 = vmatprep.subr.bf16.mxu0 %v11654_v5 }
 0x656   :  { %11141 = vrot.lane.b32.xlu1 %v11140_v42, %s11658_s13 }
 0x658   :  { %10666 = vmatpush3.bf16.msra.mxu0 %v10650_v46  ;;  %v10676_v46 = vpack.c.bf16 %v11129_v39, %v11128_v41  ;;  %v11165_v41 = vpack.i.bf16 %v12061_v52, %v12056_v51 }
 0x659   :  { %10667 = vmatprep.subr.bf16.mxu0 %v11654_v5 }
 0x65a   :  { %11151 = vrot.lane.b32.xlu1 %v12031_v57, %s11659_s17  ;;  %11166 = vrot.lane.b32.xlu0 %v11165_v41, %s11658_s13 }
 0x65c   :  { %10669 = vmatpush3.bf16.msra.mxu0 %v10653_v50  ;;  %v11137_v50 = vpop.permute.xlu0 %11136 }
 0x65d   :  { %10692 = vmatprep.subr.bf16.mxu0 %v11654_v5  ;;  %v11138_v54 = vunpack.i.l.bf16 %v11137_v50 }
 0x65e   :  { %11161 = vrot.lane.b32.xlu1 %v12037_v58, %s11659_s17 }
 0x722   :  { %v884_v7 = vpop.f32.mrb[8].mxu0 }
 0x723   :  { %v891_v8 = vrot.slane %v884_v7, %v11923_v61  ;;  %v9694_v9 = vpop.f32.mrb[9].mxu0 }
 0x725   :  { %v12087_v10 = vsub.f32 %v692_v22, %v891_v8  ;;  %v12089_v1 = vsub.f32 %v697_v12, %v891_v8  ;;  %v11142_v12 = vpop.permute.xlu1 %11141 }
 0x726   :  { %v11144_v22 = vunpack.i.h.bf16 %v11142_v12  ;;  %v11143_v15 = vunpack.i.l.bf16 %v11142_v12 }
 0x727   :  { %v894_v14 = vmul.f32 %v12087_v10, %v12087_v10  ;;  %v895_v2 = vmul.f32 %v12089_v1, %v12089_v1 }
 0x728   :  { %v10688_v16 = vpack.c.bf16 %v11144_v22, %v11143_v15 }
 0x729   :  { %v896_v17 = vsel %vm93_vm0, %v894_v14, 0.0  ;;  %v897_v18 = vsel %vm93_vm0, %v895_v2, 0.0  ;;  %v11152_v38 = vpop.permute.xlu1 %11151 }
 0x72a   :  { %v898_v19 = vadd.f32 %v897_v18, %v896_v17  ;;  %v11154_v42 = vunpack.i.h.bf16 %v11152_v38 }
 0x72c   :  { %v899_v20 = vrot.slane %v898_v19, 4 }
 0x72e   :  { %v900_v23 = vadd.f32 %v899_v20, %v898_v19 }
 0x730   :  { %v901_v24 = vrot.slane %v900_v23, 2 }
 0x732   :  { %v902_v27 = vadd.f32 %v901_v24, %v900_v23 }
 0x734   :  { %v903_v28 = vrot.slane %v902_v27, 1 }
 0x736   :  { %v904_v29 = vadd.f32 %v903_v28, %v902_v27 }
 0x738   :  { %9712 = vmatmul.mubr.msk.f32.vlgmr.msra.gmra.mrb[10].mxu0 %vm93_vm0, %v904_v29 }
 0x739   :  { %9763 = vmatprep.mubr.msk.f32.mxu0 %vm11655_vm1, %v11656_v40 }
 0x80b   :  { %v974_v43 = vpop.f32.mrb[10].mxu0 }
 0x80c   :  { %v978_v30 = vmul.f32 0.015625, %v974_v43  ;;  %v9713_v31 = vpop.f32.mrb[11].mxu0  ;;  %v11153_v43 = vunpack.i.l.bf16 %v11152_v38 }
 0x80e   :  { %v979_v44 = vadd.f32 1e-06, %v978_v30  ;;  %v12144_v30 = vpack.c.bf16 %v11154_v42, %v11153_v43 }
 0x810   :  { %11376 = vrsqrt.f32 %v979_v44 }
 0x81a   :  { %v11377_v34 = vpop.eup %11376 }
 0x81b   :  { %v981_v45 = vmul.f32 %v11377_v34, %v619_v33 }
 0x81d   :  { %9719 = vmatmul.mubr.msk.f32.vlgmr.msra.gmra.mrb[8].mxu1 %vm253_vm2, %v981_v45  ;;  %v11162_v45 = vpop.permute.xlu1 %11161 }
 0x81e   :  { %10675 = vmatpush3.bf16.msra.mxu1 %v12065_v53  ;;  %9725 = vmatprep.mubr.msk.f32.mxu1 %vm11655_vm1, %v11656_v40  ;;  %v11139_v53 = vunpack.i.h.bf16 %v11137_v50  ;;  %v11163_v37 = vunpack.i.l.bf16 %v11162_v45 }
 0x81f   :  { %10677 = vmatprep.subr.bf16.mxu1 %v10676_v46 }
 0x820   :  { %v10684_v21 = vpack.c.bf16 %v11139_v53, %v11138_v54 }
 0x821   :  { %9726 = vmatmul.mubr.msk.f32.vlgmr.msra.gmra.mrb[10].mxu1 %vm253_vm2, %v620_v36  ;;  %v11164_v36 = vunpack.i.h.bf16 %v11162_v45 }
 0x822   :  { %10679 = vmatpush3.bf16.msra.mxu1 %v10676_v46  ;;  %v8742_v46 = vld [vmem:[%s13990_s14 + $0x2] ss:$0 sm:$0xff] }
 0x823   :  { %10681 = vmatprep.subr.bf16.mxu1 %v10680_v11  ;;  %v12152_v39 = vpack.c.bf16 %v11164_v36, %v11163_v37 }
 0x826   :  { %10683 = vmatpush3.bf16.msra.mxu1 %v10680_v11 }
 0x827   :  { %10685 = vmatprep.subr.bf16.mxu1 %v10684_v21 }
 0x82a   :  { %10687 = vmatpush3.bf16.msra.mxu1 %v10684_v21 }
 0x82b   :  { %10689 = vmatprep.subr.bf16.mxu1 %v10688_v16 }
 0x82e   :  { %10691 = vmatpush3.bf16.msra.mxu1 %v10688_v16 }
 0x82f   :  { %10704 = vmatprep.subr.bf16.mxu1 %v11654_v5 }
 0x8f0   :  { %v1051_v59 = vpop.f32.mrb[8].mxu1 }
 0x8f1   :  { %v1058_v60 = vrot.slane %v1051_v59, %v11923_v61  ;;  %v9720_v25 = vpop.f32.mrb[9].mxu1 }
 0x8f3   :  { %v1059_v62 = vmul.f32 %v1058_v60, %v12087_v10  ;;  %v1060_v63 = vmul.f32 %v1058_v60, %v12089_v1  ;;  %v11147_v10 = vpop.permute.xlu0 %11146 }
 0x8f4   :  { %v1130_v26 = vpop.f32.mrb[10].mxu1  ;;  %v11149_v18 = vunpack.i.h.bf16 %v11147_v10  ;;  %v11148_v1 = vunpack.i.l.bf16 %v11147_v10 }
 0x8f5   :  { %v1137_v55 = vrot.slane %v1130_v26, %v11923_v61  ;;  %v9727_v0 = vpop.f32.mrb[11].mxu1 }
 0x8f6   :  { %v12136_v19 = vpack.c.bf16 %v11149_v18, %v11148_v1 }
 0x8f7   :  { %v1138_v3 = vadd.f32 %v1137_v55, %v1059_v62  ;;  %v1139_v57 = vadd.f32 %v1137_v55, %v1060_v63  ;;  %v11157_v31 = vpop.permute.xlu0 %11156 }
 0x8f8   :  { %10694 = vmatpush3.bf16.msra.mxu0 %v12136_v19  ;;  %v11159_v44 = vunpack.i.h.bf16 %v11157_v31  ;;  %v11158_v33 = vunpack.i.l.bf16 %v11157_v31 }
 0x8f9   :  { %v1142_v4 = vmul.f32 0.044715, %v1138_v3  ;;  %v1143_v6 = vmul.f32 0.044715, %v1139_v57  ;;  %10695 = vmatprep.subr.bf16.mxu0 %v11654_v5  ;;  %v1141_v24 = vmul.f32 0.5, %v1139_v57  ;;  %v1140_v28 = vmul.f32 0.5, %v1138_v3 }
 0x8fa   :  { %v12148_v34 = vpack.c.bf16 %v11159_v44, %v11158_v33 }
 0x8fb   :  { %v1144_v56 = vmul.f32 %v1142_v4, %v1138_v3  ;;  %v1145_v7 = vmul.f32 %v1143_v6, %v1139_v57  ;;  %v11167_v21 = vpop.permute.xlu0 %11166 }
 0x8fc   :  { %10697 = vmatpush3.bf16.msra.mxu0 %v12144_v30  ;;  %v11169_v22 = vunpack.i.h.bf16 %v11167_v21  ;;  %v11168_v15 = vunpack.i.l.bf16 %v11167_v21 }
 0x8fd   :  { %v1146_v8 = vmul.f32 %v1144_v56, %v1138_v3  ;;  %v1147_v58 = vmul.f32 %v1145_v7, %v1139_v57  ;;  %10698 = vmatprep.subr.bf16.mxu0 %v11654_v5 }
 0x8fe   :  { %v10705_v52 = vpack.c.bf16 %v11169_v22, %v11168_v15 }
 0x8ff   :  { %v1149_v9 = vadd.f32 %v1147_v58, %v1139_v57  ;;  %v1148_v14 = vadd.f32 %v1146_v8, %v1138_v3 }
 0x900   :  { %10700 = vmatpush3.bf16.msra.mxu0 %v12148_v34 }
 0x901   :  { %v1151_v2 = vmul.f32 0.7978846, %v1149_v9  ;;  %v1150_v17 = vmul.f32 0.7978846, %v1148_v14  ;;  %10701 = vmatprep.subr.bf16.mxu0 %v11654_v5 }
 0x903   :  { %11378 = vtanh.f32 %v1151_v2 }
 0x904   :  { %11380 = vtanh.f32 %v1150_v17  ;;  %10703 = vmatpush3.bf16.msra.mxu0 %v12152_v39 }
 0x905   :  { %10719 = vmatprep.subr.bf16.mxu0 %v11654_v5 }
 0x90d   :  { %v11379_v20 = vpop.eup %11378 }
 0x90e   :  { %v11381_v23 = vpop.eup %11380  ;;  %v1155_v27 = vadd.f32 1.0, %v11379_v20 }
 0x90f   :  { %v1154_v29 = vadd.f32 1.0, %v11381_v23 }
 0x910   :  { %v1157_v32 = vmul.f32 %v1155_v27, %v1141_v24  ;;  %v1167_v27 = vld [vmem:[%s13990_s14 + $0x5] sm:$0x1] }
 0x911   :  { %v1156_v35 = vmul.f32 %v1154_v29, %v1140_v28 }
 0x913   :  { %9744 = vmatprep.mubr.msk.f32.mxu1 %vm93_vm0, %v1156_v35 }
 0x914   :  { %9745 = vmatmul.mubr.msk.f32.vlgmr.msra.gmra.mrb[12].mxu1 %vm93_vm0, %v1157_v32  ;;  %v1168_v32 = vld [vmem:[%s13990_s14 + $0x8] sm:$0x1] }
 0x915   :  { %9770 = vmatprep.mubr.msk.f32.mxu1 %vm11655_vm1, %v11656_v40  ;;  %10706 = vmatpush3.bf16.msra.mxu1 %v10705_v52 }
 0x916   :  { %10707 = vmatprep.subr.bf16.mxu1 %v11654_v5 }
 0x9e7   :  { %v9746_v47 = vpop.f32.mrb[12].mxu1 }
 0x9e8   :  { %v1283_v48 = vadd.f32 %v9746_v47, %v8742_v46  ;;  %v1277_v49 = vpop.f32.mrb[13].mxu1 }
 0x9e9   :  { %v1278_v50 = vadd.f32 %v8742_v46, %v1277_v49 }
 0x9ea   :  { %v1287_v53 = vsel %vm93_vm0, %v1283_v48, 0.0 }
 0x9eb   :  { %v1286_v54 = vsel %vm93_vm0, %v1278_v50, 0.0 }
 0x9ec   :  { %v1288_v11 = vadd.f32 %v1287_v53, %v1286_v54 }
 0x9ee   :  { %v1289_v12 = vrot.slane %v1288_v11, 4 }
 0x9f0   :  { %v1290_v51 = vadd.f32 %v1289_v12, %v1288_v11 }
 0x9f2   :  { %v1291_v16 = vrot.slane %v1290_v51, 2 }
 0x9f4   :  { %v1292_v59 = vadd.f32 %v1291_v16, %v1290_v51  ;;  %v1827_v51 = vld [vmem:[%s13991_s15] sm:$0xff] }
 0x9f5   :  { %1979 = vrot.lane.b32.xlu1 %v1827_v51, %s14014_s28 }
 0x9f6   :  { %v1293_v60 = vrot.slane %v1292_v59, 1 }
 0x9f8   :  { %v1294_v25 = vadd.f32 %v1293_v60, %v1292_v59 }
 0x9fa   :  { %9764 = vmatmul.mubr.msk.f32.vlgmr.msra.gmra.mrb[12].mxu0 %vm93_vm0, %v1294_v25 }
 0x9fb   :  { %10721 = vmatpush3.bf16.msra.mxu0 %v10705_v52  ;;  %9796 = vmatprep.mubr.msk.f32.mxu0 %vm11655_vm1, %v11656_v40 }
 0x9fc   :  { %10722 = vmatprep.subr.bf16.mxu0 %v11654_v5 }
 0xacd   :  { %v1388_v26 = vpop.f32.mrb[12].mxu0 }
 0xace   :  { %v1392_v62 = vmul.f32 0.015625, %v1388_v26  ;;  %v9765_v63 = vpop.f32.mrb[13].mxu0 }
 0xacf   :  { %v2144_v63 = vld [vmem:[%s13985_s9] sm:$0xff] }
 0xad0   :  { %9771 = vmatmul.mubr.msk.f32.vlgmr.msra.gmra.mrb[14].mxu1 %vm253_vm2, %v1392_v62  ;;  %v1980_v62 = vpop.permute.xlu1 %1979 }
 0xad1   :  { %10709 = vmatpush3.bf16.msra.mxu1 %v12136_v19  ;;  %9789 = vmatprep.mubr.msk.f32.mxu1 %vm11655_vm1, %v11656_v40 }
 0xad2   :  { %10710 = vmatprep.subr.bf16.mxu1 %v11654_v5 }
 0xad5   :  { %10712 = vmatpush3.bf16.msra.mxu1 %v12144_v30 }
 0xad6   :  { %10713 = vmatprep.subr.bf16.mxu1 %v11654_v5 }
 0xad9   :  { %10715 = vmatpush3.bf16.msra.mxu1 %v12148_v34 }
 0xada   :  { %10716 = vmatprep.subr.bf16.mxu1 %v11654_v5 }
 0xadd   :  { %10718 = vmatpush3.bf16.msra.mxu1 %v12152_v39 }
 0xba3   :  { %v1470_v55 = vpop.f32.mrb[14].mxu1 }
 0xba4   :  { %v1477_v0 = vrot.slane %v1470_v55, %v11923_v61  ;;  %v9772_v3 = vpop.f32.mrb[15].mxu1  ;;  %v2145_v55 = vld [vmem:[%s13985_s9 + $0x8] sm:$0xff] }
 0xba5   :  { %v10749_v3 = vpack.c.bf16 %v2145_v55, %v2144_v63 }
 0xba6   :  { %v1478_v57 = vsub.f32 %v1278_v50, %v1477_v0  ;;  %v1479_v4 = vsub.f32 %v1283_v48, %v1477_v0  ;;  %v2146_v0 = vld [vmem:[%s13985_s9 + $0x10] sm:$0xff] }
 0xba8   :  { %v1480_v6 = vmul.f32 %v1478_v57, %v1478_v57  ;;  %v1481_v56 = vmul.f32 %v1479_v4, %v1479_v4 }
 0xbaa   :  { %v1482_v7 = vsel %vm93_vm0, %v1480_v6, 0.0  ;;  %v1483_v8 = vsel %vm93_vm0, %v1481_v56, 0.0  ;;  %v2148_v6 = vld [vmem:[%s13985_s9 + $0x20] sm:$0xff]  ;;  %v2149_v56 = vld [vmem:[%s13985_s9 + $0x28] sm:$0xff] }
 0xbab   :  { %v1484_v58 = vadd.f32 %v1483_v8, %v1482_v7  ;;  %v10757_v7 = vpack.c.bf16 %v2149_v56, %v2148_v6  ;;  %v8756_v56 = vld [vmem:[%s13990_s14 + $0xb] ss:$0 sm:$0xff] }
 0xbad   :  { %v1485_v9 = vrot.slane %v1484_v58, 4 }
 0xbaf   :  { %v1486_v14 = vadd.f32 %v1485_v9, %v1484_v58 }
 0xbb1   :  { %v1487_v2 = vrot.slane %v1486_v14, 2 }
 0xbb3   :  { %v1488_v17 = vadd.f32 %v1487_v2, %v1486_v14 }
 0xbb5   :  { %v1489_v10 = vrot.slane %v1488_v17, 1 }
 0xbb7   :  { %v1490_v18 = vadd.f32 %v1489_v10, %v1488_v17 }
 0xbb9   :  { %9790 = vmatmul.mubr.msk.f32.vlgmr.msra.gmra.mrb[16].mxu1 %vm93_vm0, %v1490_v18 }
 0xc8c   :  { %v1560_v1 = vpop.f32.mrb[16].mxu1 }
 0xc8d   :  { %v1564_v20 = vmul.f32 0.015625, %v1560_v1  ;;  %v9791_v23 = vpop.f32.mrb[17].mxu1 }
 0xc8f   :  { %v1565_v24 = vadd.f32 1e-06, %v1564_v20 }
 0xc91   :  { %11382 = vrsqrt.f32 %v1565_v24 }
 0xc9b   :  { %v11383_v28 = vpop.eup %11382 }
 0xc9c   :  { %v1567_v29 = vmul.f32 %v11383_v28, %v1167_v27 }
 0xc9e   :  { %9797 = vmatmul.mubr.msk.f32.vlgmr.msra.gmra.mrb[14].mxu0 %vm253_vm2, %v1567_v29 }
 0xc9f   :  { %10724 = vmatpush3.bf16.msra.mxu0 %v10705_v52  ;;  %9803 = vmatprep.mubr.msk.f32.mxu0 %vm11655_vm1, %v11656_v40  ;;  %v1828_v52 = vld [vmem:[%s13991_s15 + $0x8] sm:$0xff]  ;;  %s14006_s15 = smov 56  }
 0xca0   :  { %10726 = vmatprep.subr.bf16.mxu0 %v12136_v19  ;;  %v10741_v16 = vpack.c.bf16 %v1828_v52, %v1827_v51 }
 0xca2   :  { %9804 = vmatmul.mubr.msk.f32.vlgmr.msra.gmra.mrb[16].mxu0 %vm253_vm2, %v1168_v32  ;;  %10742 = vmatprep.subr.bf16.mxu1 %v10741_v16 }
 0xca3   :  { %10728 = vmatpush3.bf16.msra.mxu0 %v12136_v19  ;;  %10744 = vmatpush3.bf16.msra.mxu1 %v10741_v16 }
 0xca4   :  { %10730 = vmatprep.subr.bf16.mxu0 %v12144_v30  ;;  %9832 = vmatprep.subr.mxu1 %v1980_v62 }
 0xca7   :  { %10732 = vmatpush3.bf16.msra.mxu0 %v12144_v30 }
 0xca8   :  { %10734 = vmatprep.subr.bf16.mxu0 %v12148_v34 }
 0xcab   :  { %10736 = vmatpush3.bf16.msra.mxu0 %v12148_v34 }
 0xcac   :  { %10738 = vmatprep.subr.bf16.mxu0 %v12152_v39 }
 0xcaf   :  { %10740 = vmatpush3.bf16.msra.mxu0 %v12152_v39 }
 0xcb0   :  { %10750 = vmatprep.subr.bf16.mxu0 %v10749_v3 }
 0xd71   :  { %v1637_v35 = vpop.f32.mrb[14].mxu0 }
 0xd72   :  { %v1644_v38 = vrot.slane %v1637_v35, %v11923_v61  ;;  %v9798_v42 = vpop.f32.mrb[15].mxu0 }
 0xd74   :  { %v1645_v31 = vmul.f32 %v1644_v38, %v1478_v57  ;;  %v1646_v44 = vmul.f32 %v1644_v38, %v1479_v4  ;;  %v2147_v57 = vld [vmem:[%s13985_s9 + $0x18] sm:$0xff] }
 0xd75   :  { %v1716_v43 = vpop.f32.mrb[16].mxu0  ;;  %v10753_v4 = vpack.c.bf16 %v2147_v57, %v2146_v0  ;;  %v12246_v0 = vld [vmem:[%s13977_s1] sm:$0xff]  ;;  %v2150_v57 = vld [vmem:[%s13985_s9 + $0x30] sm:$0xff] }
 0xd76   :  { %v1723_v19 = vrot.slane %v1716_v43, %v11923_v61  ;;  %v9805_v33 = vpop.f32.mrb[17].mxu0 }
 0xd78   :  { %v1724_v45 = vadd.f32 %v1723_v19, %v1645_v31  ;;  %v1725_v30 = vadd.f32 %v1723_v19, %v1646_v44 }
 0xd7a   :  { %v1728_v36 = vmul.f32 0.044715, %v1724_v45  ;;  %v1729_v37 = vmul.f32 0.044715, %v1725_v30  ;;  %v1727_v11 = vmul.f32 0.5, %v1725_v30  ;;  %v1726_v61 = vmul.f32 0.5, %v1724_v45 }
 0xd7c   :  { %v1730_v41 = vmul.f32 %v1728_v36, %v1724_v45  ;;  %v1731_v34 = vmul.f32 %v1729_v37, %v1725_v30 }
 0xd7e   :  { %v1732_v46 = vmul.f32 %v1730_v41, %v1724_v45  ;;  %v1733_v47 = vmul.f32 %v1731_v34, %v1725_v30  ;;  %v8754_v41 = vld [vmem:[%s13990_s14 + $0x9] ss:$0 sm:$0xff] }
 0xd80   :  { %v1735_v48 = vadd.f32 %v1733_v47, %v1725_v30  ;;  %v1734_v39 = vadd.f32 %v1732_v46, %v1724_v45  ;;  %v8755_v47 = vld [vmem:[%s13990_s14 + $0xa] ss:$0 sm:$0xff]  ;;  %s11661_s14 = smov 88  }
 0xd82   :  { %v1737_v49 = vmul.f32 0.7978846, %v1735_v48  ;;  %v1736_v50 = vmul.f32 0.7978846, %v1734_v39 }
 0xd84   :  { %11384 = vtanh.f32 %v1737_v49 }
 0xd85   :  { %11386 = vtanh.f32 %v1736_v50 }
 0xd8e   :  { %v11385_v53 = vpop.eup %11384 }
 0xd8f   :  { %v11387_v54 = vpop.eup %11386  ;;  %v1741_v12 = vadd.f32 1.0, %v11385_v53 }
 0xd90   :  { %v1740_v21 = vadd.f32 1.0, %v11387_v54 }
 0xd91   :  { %v1743_v22 = vmul.f32 %v1741_v12, %v1727_v11 }
 0xd92   :  { %v1742_v15 = vmul.f32 %v1740_v21, %v1726_v61 }
 0xd94   :  { %9822 = vmatprep.mubr.msk.f32.mxu0 %vm93_vm0, %v1742_v15 }
 0xd95   :  { %9823 = vmatmul.mubr.msk.f32.vlgmr.msra.gmra.mrb[18].mxu0 %vm93_vm0, %v1743_v22 }
 0xd96   :  { %10752 = vmatpush3.bf16.msra.mxu0 %v10749_v3  ;;  %v12256_v3 = vld [vmem:[%s13977_s1 + $0x8] sm:$0x3] }
 0xd97   :  { %10754 = vmatprep.subr.bf16.mxu0 %v10753_v4 }
 0xd9a   :  { %10756 = vmatpush3.bf16.msra.mxu0 %v10753_v4  ;;  %v2151_v4 = vld [vmem:[%s13985_s9 + $0x38] sm:$0xff] }
 0xd9b   :  { %10758 = vmatprep.subr.bf16.mxu0 %v10757_v7  ;;  %v10761_v6 = vpack.c.bf16 %v2151_v4, %v2150_v57 }
 0xd9e   :  { %10760 = vmatpush3.bf16.msra.mxu0 %v10757_v7 }
 0xd9f   :  { %10762 = vmatprep.subr.bf16.mxu0 %v10761_v6 }
 0xda2   :  { %10764 = vmatpush3.bf16.msra.mxu0 %v10761_v6 }
 0xe68   :  { %v9824_v59 = vpop.f32.mrb[18].mxu0 }
 0xe69   :  { %v1816_v60 = vpop.f32.mrb[19].mxu0  ;;  %v1826_v26 = vmul.f32 0.25, %v9824_v59 }
 0xe6a   :  { %v1825_v25 = vmul.f32 0.25, %v1816_v60 }
 0xe6c   :  { %9829 = vmatprep.mubr.msk.f32.mxu1 %vm253_vm2, %v1825_v25 }
 0xe6d   :  { %9830 = vmatmul.mubr.msk.f32.vlgmr.msra.gmra.mrb[18].mxu1 %vm253_vm2, %v1826_v26 }
 0xe6e   :  { %9833 = vmatpush3.msra.mxu1 %v1980_v62 }
 0xe6f   :  { %10746 = vmatprep.subr.bf16.mxu1 %v11799_v13 }
 0xf40   :  { %v9831_v8 = vpop.f32.mrb[18].mxu1 }
 0xf41   :  { %v1912_v58 = vsel %vm1910_vm3, %v9831_v8, 0.0  ;;  %v1901_v9 = vpop.f32.mrb[19].mxu1 }
 0xf42   :  { %v1911_v14 = vsel %vm1910_vm3, %v1901_v9, 0.0 }
 0xf43   :  { %v1913_v2 = vadd.f32 %v1912_v58, %v1911_v14 }
 0xf45   :  { %v1914_v17 = vrot.slane %v1913_v2, 4 }
 0xf47   :  { %v1915_v10 = vadd.f32 %v1914_v17, %v1913_v2 }
 0xf49   :  { %v1916_v18 = vrot.slane %v1915_v10, 2 }
 0xf4b   :  { %v1917_v1 = vadd.f32 %v1916_v18, %v1915_v10  ;;  %v2153_v10 = vld [vmem:[%s13978_s2 + $0x8] sm:$0x3]  ;;  %v2152_v18 = vld [vmem:[%s13978_s2] sm:$0xff] }
 0xf4d   :  { %v1918_v20 = vrot.slane %v1917_v1, 1 }
 0xf4f   :  { %v1919_v23 = vadd.f32 %v1918_v20, %v1917_v1 }
 0xf51   :  { %v1921_v24 = vmul.f32 0.0625, %v1919_v23 }
 0xf53   :  { %v1922_v27 = vsub.f32 %v1901_v9, %v1921_v24  ;;  %v1923_v28 = vsub.f32 %v9831_v8, %v1921_v24 }
 0xf55   :  { %v1924_v29 = vmul.f32 %v1922_v27, %v1922_v27  ;;  %v1925_v32 = vmul.f32 %v1923_v28, %v1923_v28 }
 0xf57   :  { %v1926_v35 = vsel %vm1910_vm3, %v1924_v29, 0.0  ;;  %v1927_v38 = vsel %vm1910_vm3, %v1925_v32, 0.0 }
 0xf58   :  { %v1928_v42 = vadd.f32 %v1927_v38, %v1926_v35 }
 0xf5a   :  { %v1929_v43 = vrot.slane %v1928_v42, 4 }
 0xf5c   :  { %v1930_v31 = vadd.f32 %v1929_v43, %v1928_v42 }
 0xf5e   :  { %v1931_v44 = vrot.slane %v1930_v31, 2 }
 0xf60   :  { %v1932_v19 = vadd.f32 %v1931_v44, %v1930_v31 }
 0xf62   :  { %v1933_v33 = vrot.slane %v1932_v19, 1 }
 0xf64   :  { %v1934_v45 = vadd.f32 %v1933_v33, %v1932_v19 }
 0xf66   :  { %v1935_v30 = vmul.f32 0.0625, %v1934_v45  ;;  %v12298_v45 = vld [vmem:[%s13979_s3] sm:$0xff] }
 0xf68   :  { %v1936_v36 = vadd.f32 1e-06, %v1935_v30  ;;  %v12303_v30 = vld [vmem:[%s13979_s3 + $0x8] sm:$0xff] }
 0xf6a   :  { %11388 = vrsqrt.f32 %v1936_v36  ;;  %v12308_v36 = vld [vmem:[%s13979_s3 + $0x10] sm:$0xff] }
 0xf74   :  { %v11389_v37 = vpop.eup %11388 }
 0xf75   :  { %v1938_v34 = vmul.f32 %v11389_v37, %v1922_v27  ;;  %v1939_v46 = vmul.f32 %v11389_v37, %v1923_v28  ;;  %v10765_v37 = vpack.c.bf16 %v12303_v30, %v12298_v45 }
 0xf77   :  { %v1945_v48 = vmul.f32 %v8754_v41, %v1938_v34  ;;  %v1946_v39 = vmul.f32 %v8754_v41, %v1939_v46  ;;  %v12315_v41 = vld [vmem:[%s13979_s3 + $0x18] sm:$0xff] }
 0xf78   :  { %v10769_v34 = vpack.c.bf16 %v12315_v41, %v12308_v36 }
 0xf79   :  { %v1952_v49 = vadd.f32 %v8755_v47, %v1945_v48  ;;  %v1953_v50 = vadd.f32 %v8755_v47, %v1946_v39 }
 0xf7b   :  { %v1957_v53 = vmul.f32 0.044715, %v1953_v50  ;;  %v1956_v54 = vmul.f32 0.044715, %v1952_v49  ;;  %v1954_v60 = vmul.f32 0.5, %v1952_v49  ;;  %v1955_v26 = vmul.f32 0.5, %v1953_v50 }
 0xf7d   :  { %v1958_v11 = vmul.f32 %v1956_v54, %v1952_v49  ;;  %v1959_v12 = vmul.f32 %v1957_v53, %v1953_v50  ;;  %v8763_v54 = vld [vmem:[%s13981_s5] ss:$0 sm:$0xff] }
 0xf7f   :  { %v1960_v61 = vmul.f32 %v1958_v11, %v1952_v49  ;;  %v1961_v21 = vmul.f32 %v1959_v12, %v1953_v50  ;;  %v8764_v12 = vld [vmem:[%s13981_s5 + $0x1] ss:$0 sm:$0xff] }
 0xf81   :  { %v1962_v22 = vadd.f32 %v1960_v61, %v1952_v49  ;;  %v1963_v15 = vadd.f32 %v1961_v21, %v1953_v50 }
 0xf83   :  { %v1964_v51 = vmul.f32 0.7978846, %v1962_v22  ;;  %v1965_v52 = vmul.f32 0.7978846, %v1963_v15 }
 0xf85   :  { %11390 = vtanh.f32 %v1964_v51 }
 0xf86   :  { %11392 = vtanh.f32 %v1965_v52 }
 0xf8f   :  { %v11391_v16 = vpop.eup %11390 }
 0xf90   :  { %v11393_v59 = vpop.eup %11392  ;;  %v1968_v25 = vadd.f32 1.0, %v11391_v16  ;;  %v12330_v16 = vld [vmem:[%s13980_s4] ss:$0 sm:$0xff] }
 0xf91   :  { %v1969_v62 = vadd.f32 1.0, %v11393_v59 }
 0xf92   :  { %v1970_v63 = vmul.f32 %v1968_v25, %v1954_v60 }
 0xf93   :  { %v1971_v55 = vmul.f32 %v1969_v62, %v1955_v26 }
 0xf94   :  { %9834 = vmatprep.mubr.msk.f32.mxu1 %vm1910_vm3, %v1970_v63 }
 0xf95   :  { %9835 = vmatmul.mubr.msk.f32.vlgmr.msra.gmra.mrb[20].mxu1 %vm1910_vm3, %v1971_v55 }
 0xf96   :  { %10748 = vmatpush3.bf16.msra.mxu1 %v11799_v13  ;;  %9841 = vmatprep.mubr.msk.f32.mxu1 %vm253_vm2, %v12246_v0 }
 0xf97   :  { %10766 = vmatprep.subr.bf16.mxu1 %v10765_v37 }
 0xf99   :  { %9842 = vmatmul.mubr.msk.f32.vlgmr.msra.gmra.mrb[22].mxu1 %vm253_vm2, %v12256_v3 }
 0xf9a   :  { %10768 = vmatpush3.bf16.msra.mxu1 %v10765_v37 }
 0xf9b   :  { %10770 = vmatprep.subr.bf16.mxu1 %v10769_v34 }
 0xf9e   :  { %10772 = vmatpush3.bf16.msra.mxu1 %v10769_v34 }
0x1068   :  { %v9836_v7 = vpop.f32.mrb[20].mxu1 }
0x1069   :  { %v12269_v8 = vadd.f32 %v9836_v7, %v8756_v56  ;;  %v2054_v58 = vpop.f32.mrb[21].mxu1 }
0x106a   :  { %v12271_v9 = vadd.f32 %v8756_v56, %v2054_v58 }
0x106c   :  { %v11079_v14 = vpack.c.bf16 %v12269_v8, %v12271_v9  ;;  %v9843_v2 = vpop.f32.mrb[22].mxu1 }
0x106d   :  { %v2135_v17 = vpop.f32.mrb[23].mxu1 }
0x106e   :  { %9860 = vmatprep.mubr.msk.f32.mxu0 %vm93_vm0, %v2135_v17 }
0x106f   :  { %9861 = vmatmul.mubr.msk.f32.vlgmr.msra.gmra.mrb[20].mxu0 %vm93_vm0, %v9843_v2 }
0x1142   :  { %v9862_v1 = vpop.f32.mrb[20].mxu0 }
0x1143   :  { %v12283_v20 = vadd.f32 %v9862_v1, %v2153_v10  ;;  %v2226_v23 = vpop.f32.mrb[21].mxu0 }
0x1144   :  { %v12285_v24 = vadd.f32 %v2226_v23, %v2152_v18 }
0x1145   :  { %v2242_v27 = vsel %vm2241_vm4, %v12283_v20, 0.0 }
0x1146   :  { %2243 = vadd.xlane.f32.xlu1 %v2242_v27  ;;  %v2238_v28 = vsel %vm2237_vm5, %v12285_v24, 0.0 }
0x1147   :  { %2239 = vadd.xlane.f32.xlu0 %v2238_v28 }
0x11d3   :  { %v2244_v29 = vpop.xlane.xlu1 %2243 }
0x11d4   :  { %v2247_v32 = vmul.f32 0.03125, %v2244_v29  ;;  %v2240_v35 = vpop.xlane.xlu0 %2239 }
0x11d5   :  { %v2246_v38 = vmul.f32 0.03125, %v2240_v35 }
0x11d6   :  { %v2249_v42 = vsub.f32 %v12283_v20, %v2247_v32 }
0x11d7   :  { %v2248_v43 = vsub.f32 %v12285_v24, %v2246_v38 }
0x11d8   :  { %v2251_v19 = vmul.f32 %v2249_v42, %v2249_v42 }
0x11d9   :  { %v2250_v31 = vmul.f32 %v2248_v43, %v2248_v43 }
0x11da   :  { %v2255_v33 = vsel %vm2241_vm4, %v2251_v19, 0.0 }
0x11db   :  { %v2252_v44 = vsel %vm2237_vm5, %v2250_v31, 0.0 }
0x11dc   :  { %2253 = vadd.xlane.f32.xlu0 %v2252_v44 }
0x11e0   :  { %2256 = vadd.xlane.f32.xlu0 %v2255_v33 }
0x1269   :  { %v2254_v46 = vpop.xlane.xlu0 %2253 }
0x126a   :  { %v2258_v47 = vmul.f32 0.03125, %v2254_v46 }
0x126c   :  { %v2260_v48 = vadd.f32 1e-06, %v2258_v47 }
0x126d   :  { %v2257_v39 = vpop.xlane.xlu0 %2256 }
0x126e   :  { %11394 = vrsqrt.f32 %v2260_v48  ;;  %v2259_v49 = vmul.f32 0.03125, %v2257_v39 }
0x1270   :  { %v2261_v50 = vadd.f32 1e-06, %v2259_v49 }
0x1272   :  { %11396 = vrsqrt.f32 %v2261_v50 }
0x1278   :  { %v11395_v53 = vpop.eup %11394 }
0x1279   :  { %v2264_v11 = vmul.f32 %v11395_v53, %v2248_v43 }
0x127b   :  { %v2270_v61 = vmul.f32 %v8763_v54, %v2264_v11  ;;  %v5044_v11 = vld [vmem:[%s13978_s2 + $0xa] sm:$0xff] }
0x127c   :  { %v11397_v21 = vpop.eup %11396 }
0x127d   :  { %v2265_v22 = vmul.f32 %v11397_v21, %v2249_v42  ;;  %v2276_v15 = vadd.f32 %v8764_v12, %v2270_v61 }
0x127f   :  { %v2271_v51 = vmul.f32 %v8763_v54, %v2265_v22  ;;  %9871 = vmatprep.mubr.msk.f32.mxu1 %vm2237_vm5, %v2276_v15 }
0x1281   :  { %v2277_v52 = vadd.f32 %v8764_v12, %v2271_v51 }
0x1283   :  { %9872 = vmatmul.mubr.msk.f32.vlgmr.msra.gmra.mrb[24].mxu1 %vm2237_vm5, %v2277_v52 }
0x1356   :  { %v9873_v59 = vpop.f32.mrb[24].mxu1 }
0x1357   :  { %v12333_v60 = vadd.f32 %v9873_v59, %v12330_v16  ;;  %v2361_v25 = vpop.f32.mrb[25].mxu1 }
0x1358   :  { %v12336_v26 = vadd.f32 %v12330_v16, %v2361_v25 }
0x135a   :  { %9878 = vmatprep.mubr.msk.f32.mxu1 %vm1910_vm3, %v12336_v26  ;;  %v12342_v62 = vpack.i.bf16 %v12333_v60, %v12336_v26 }
0x135c   :  { %11176 = vrot.lane.b32.xlu0 %v12342_v62, %s11661_s14  ;;  %11171 = vrot.lane.b32.xlu1 %v12342_v62, %s11659_s17 }
0x1360   :  { %2582 = vrot.lane.b32.xlu1 %v12336_v26, %s14014_s28  ;;  %2461 = vrot.lane.b32.xlu0 %v12246_v0, %s11662_s26 }
0x1364   :  { %2584 = vrot.lane.b32.xlu1 %v12333_v60, %s14014_s28 }
0x1368   :  { %2463 = vrot.lane.b32.xlu1 %v12256_v3, %s11662_s26  ;;  %s14023_s26 = smov 40  }
0x13ce   :  { %v11177_v63 = vpop.permute.xlu0 %11176  ;;  %v11172_v55 = vpop.permute.xlu1 %11171 }
0x13cf   :  { %v11179_v57 = vunpack.i.h.bf16 %v11177_v63  ;;  %v11178_v4 = vunpack.i.l.bf16 %v11177_v63  ;;  %v11174_v6 = vunpack.i.h.bf16 %v11172_v55  ;;  %v11173_v56 = vunpack.i.l.bf16 %v11172_v55 }
0x13d1   :  { %v10773_v58 = vpack.c.bf16 %v11174_v6, %v11173_v56  ;;  %v10785_v2 = vpack.c.bf16 %v11179_v57, %v11178_v4 }
0x13d2   :  { %v2583_v0 = vpop.permute.xlu1 %2582  ;;  %v12374_v23 = vpop.permute.xlu0 %2461 }
0x13d3   :  { %10775 = vmatprep.subr.msk.bf16.mxu1 %vm12356_vm6, %v10773_v58 }
0x13d4   :  { %10778 = vmatpush3.bf16.xpose.msk.msra.mxu1 %vm12356_vm6, %v10773_v58 }
0x13d5   :  { %10787 = vmatprep.subr.msk.bf16.mxu1 %vm12356_vm6, %v10785_v2 }
0x13d6   :  { %v2585_v3 = vpop.permute.xlu1 %2584 }
0x13da   :  { %v12372_v10 = vpop.permute.xlu1 %2463 }
0x13db   :  { %9879 = vmatmul.mubr.msk.f32.vlgmr.msra.gmra.mrb[26].mxu1 %vm1910_vm3, %v12333_v60 }
0x13dc   :  { %10790 = vmatpush3.bf16.xpose.msk.msra.mxu1 %vm12356_vm6, %v10785_v2  ;;  %9892 = vmatprep.mubr.msk.f32.mxu1 %vm1910_vm3, %v2583_v0 }
0x13e3   :  { %9893 = vmatmul.mubr.msk.f32.vlgmr.msra.gmra.mrb[28].mxu1 %vm1910_vm3, %v2585_v3 }
0x14ae   :  { %v9880_v17 = vpop.f32.mrb[26].mxu1 }
0x14af   :  { %v2460_v18 = vmul.f32 0.35355338, %v9880_v17  ;;  %v2450_v1 = vpop.f32.mrb[27].mxu1 }
0x14b0   :  { %v2459_v27 = vmul.f32 0.35355338, %v2450_v1 }
0x14b1   :  { %v2468_v28 = vadd.f32 %v12372_v10, %v2460_v18 }
0x14b2   :  { %v2467_v29 = vadd.f32 %v12374_v23, %v2459_v27 }
0x14b3   :  { %v2474_v32 = vsel %vm2473_vm7, %v2468_v28, -inf }
0x14b4   :  { %2475 = vmax.xlane.f32.xlu1 %v2474_v32  ;;  %v2470_v35 = vsel %vm2469_vm8, %v2467_v29, -inf }
0x14b5   :  { %2471 = vmax.xlane.f32.xlu0 %v2470_v35 }
0x14b6   :  { %v9894_v38 = vpop.f32.mrb[28].mxu1 }
0x14b7   :  { %v2664_v42 = vpop.f32.mrb[29].mxu1  ;;  %v2674_v43 = vmul.f32 0.35355338, %v9894_v38 }
0x14b8   :  { %v2673_v31 = vmul.f32 0.35355338, %v2664_v42 }
0x14b9   :  { %v2676_v33 = vadd.f32 %v2674_v43, %v12372_v10 }
0x14ba   :  { %v2675_v44 = vadd.f32 %v2673_v31, %v12374_v23 }
0x14bb   :  { %v2680_v37 = vsel %vm2473_vm7, %v2676_v33, -inf }
0x14bc   :  { %v2677_v19 = vsel %vm2469_vm8, %v2675_v44, -inf }
0x14bd   :  { %2678 = vmax.xlane.f32.xlu0 %v2677_v19 }
0x14c1   :  { %2681 = vmax.xlane.f32.xlu0 %v2680_v37 }
0x14c5   :  { %11181 = vrot.lane.b32.xlu1 %v12342_v62, %s11658_s13 }
0x1541   :  { %v2476_v34 = vpop.xlane.xlu1 %2475 }
0x1542   :  { %v2478_v46 = vsub.f32 %v2468_v28, %v2476_v34  ;;  %v2472_v47 = vpop.xlane.xlu0 %2471 }
0x1543   :  { %v2477_v48 = vsub.f32 %v2467_v29, %v2472_v47 }
0x1544   :  { %v2481_v39 = vmul.f32 1.442695, %v2478_v46 }
0x1545   :  { %v2479_v49 = vmul.f32 1.442695, %v2477_v48  ;;  %v11182_v50 = vpop.permute.xlu1 %11181 }
0x1546   :  { %11398 = vpow2.f32 %v2481_v39  ;;  %v11184_v53 = vunpack.i.h.bf16 %v11182_v50  ;;  %v11183_v54 = vunpack.i.l.bf16 %v11182_v50 }
0x1547   :  { %11400 = vpow2.f32 %v2479_v49 }
0x1548   :  { %v10779_v12 = vpack.c.bf16 %v11184_v53, %v11183_v54 }
0x154a   :  { %10781 = vmatprep.subr.msk.bf16.mxu0 %vm12387_vm11, %v10779_v12  ;;  %v2679_v61 = vpop.xlane.xlu0 %2678 }
0x154b   :  { %10784 = vmatpush3.bf16.msk.msra.mxu0 %vm12387_vm11, %v10779_v12  ;;  %v2683_v57 = vsub.f32 %v2675_v44, %v2679_v61 }
0x154d   :  { %v2685_v4 = vmul.f32 1.442695, %v2683_v57 }
0x154e   :  { %v2682_v21 = vpop.xlane.xlu0 %2681 }
0x154f   :  { %v2684_v22 = vsub.f32 %v2676_v33, %v2682_v21 }
0x1550   :  { %v11399_v15 = vpop.eup %11398 }
0x1551   :  { %v11401_v51 = vpop.eup %11400  ;;  %v2687_v52 = vmul.f32 1.442695, %v2684_v22  ;;  %v2486_v59 = vsel %vm2473_vm7, %v11399_v15, 0.0 }
0x1552   :  { %2487 = vadd.xlane.f32.xlu0 %v2486_v59  ;;  %v2483_v25 = vsel %vm2469_vm8, %v11401_v51, 0.0 }
0x1553   :  { %11402 = vpow2.f32 %v2687_v52  ;;  %2484 = vadd.xlane.f32.xlu1 %v2483_v25 }
0x1554   :  { %11404 = vpow2.f32 %v2685_v4 }
0x155d   :  { %v11403_v63 = vpop.eup %11402 }
0x155e   :  { %v2692_v55 = vsel %vm2473_vm7, %v11403_v63, 0.0  ;;  %v11405_v6 = vpop.eup %11404 }
0x155f   :  { %2693 = vadd.xlane.f32.xlu0 %v2692_v55  ;;  %v2689_v56 = vsel %vm2469_vm8, %v11405_v6, 0.0 }
0x1564   :  { %11191 = vrot.lane.b32.xlu1 %v12342_v62, %s14012_s27 }
0x1575   :  { %11186 = vrot.lane.b32.xlu0 %v12342_v62, %s14006_s15 }
0x1579   :  { %2789 = vrot.lane.b32.xlu0 %v12333_v60, %s11657_s23 }
0x1588   :  { %2690 = vadd.xlane.f32.xlu1 %v2689_v56 }
0x1599   :  { %2787 = vrot.lane.b32.xlu1 %v12336_v26, %s11657_s23 }
0x15df   :  { %v2488_v58 = vpop.xlane.xlu0 %2487 }
0x15e0   :  { %11406 = vrcp.f32 %v2488_v58  ;;  %v2485_v2 = vpop.xlane.xlu1 %2484 }
0x15e1   :  { %11408 = vrcp.f32 %v2485_v2 }
0x15e4   :  { %v11192_v27 = vpop.permute.xlu1 %11191 }
0x15e5   :  { %v11194_v29 = vunpack.i.h.bf16 %v11192_v27  ;;  %v11193_v32 = vunpack.i.l.bf16 %v11192_v27 }
0x15e7   :  { %v10797_v43 = vpack.c.bf16 %v11194_v29, %v11193_v32 }
0x15ea   :  { %v11407_v0 = vpop.eup %11406 }
0x15eb   :  { %v11409_v3 = vpop.eup %11408  ;;  %v2492_v1 = vmul.f32 %v11407_v0, %v11399_v15 }
0x15ec   :  { %v2694_v17 = vpop.xlane.xlu0 %2693  ;;  %v2491_v18 = vmul.f32 %v11409_v3, %v11401_v51 }
0x15ed   :  { %11410 = vrcp.f32 %v2694_v17 }
0x15ee   :  { %9885 = vmatprep.mubr.msk.f32.mxu0 %vm2469_vm8, %v2491_v18 }
0x15ef   :  { %9886 = vmatmul.mubr.msk.f32.vlgmr.msra.gmra.mrb[22].mxu0 %vm2469_vm8, %v2492_v1 }
0x15f0   :  { %v11187_v28 = vpop.permute.xlu0 %11186 }
0x15f1   :  { %v11189_v35 = vunpack.i.h.bf16 %v11187_v28  ;;  %v11188_v38 = vunpack.i.l.bf16 %v11187_v28 }
0x15f3   :  { %v10791_v42 = vpack.c.bf16 %v11189_v35, %v11188_v38 }
0x15f4   :  { %v2790_v46 = vpop.permute.xlu0 %2789 }
0x15f5   :  { %10793 = vmatprep.subr.msk.bf16.mxu0 %vm12387_vm11, %v10791_v42 }
0x15f6   :  { %10796 = vmatpush3.bf16.msk.msra.mxu0 %vm12387_vm11, %v10791_v42 }
0x15f7   :  { %10799 = vmatprep.subr.msk.bf16.mxu0 %vm12356_vm6, %v10797_v43  ;;  %v11411_v44 = vpop.eup %11410 }
0x15f8   :  { %v2698_v37 = vmul.f32 %v11411_v44, %v11403_v63 }
0x1615   :  { %v2691_v31 = vpop.xlane.xlu1 %2690 }
0x1616   :  { %11412 = vrcp.f32 %v2691_v31 }
0x1619   :  { %v2788_v34 = vpop.permute.xlu1 %2787 }
0x1620   :  { %v11413_v19 = vpop.eup %11412 }
0x1621   :  { %v2697_v33 = vmul.f32 %v11413_v19, %v11405_v6 }
0x1623   :  { %9899 = vmatprep.mubr.msk.f32.mxu0 %vm2469_vm8, %v2697_v33 }
0x1624   :  { %9900 = vmatmul.mubr.msk.f32.vlgmr.msra.gmra.mrb[24].mxu0 %vm2469_vm8, %v2698_v37 }
0x1625   :  { %10802 = vmatpush3.bf16.xpose.msk.msra.mxu0 %vm12356_vm6, %v10797_v43  ;;  %9906 = vmatprep.mubr.msk.f32.mxu0 %vm1910_vm3, %v2788_v34 }
0x162c   :  { %9907 = vmatmul.mubr.msk.f32.vlgmr.msra.gmra.mrb[26].mxu0 %vm1910_vm3, %v2790_v46 }
0x16c2   :  { %v12421_v47 = vpop.f32.mrb[22].mxu0 }
0x16c3   :  { %v12423_v48 = vpop.f32.mrb[23].mxu0 }
0x16f7   :  { %v12425_v39 = vpop.f32.mrb[24].mxu0 }
0x16f8   :  { %v12427_v49 = vpop.f32.mrb[25].mxu0 }
0x16ff   :  { %v9908_v50 = vpop.f32.mrb[26].mxu0 }
0x1700   :  { %v2879_v53 = vmul.f32 0.35355338, %v9908_v50  ;;  %v2869_v54 = vpop.f32.mrb[27].mxu0 }
0x1701   :  { %v2878_v12 = vmul.f32 0.35355338, %v2869_v54 }
0x1702   :  { %v2881_v61 = vadd.f32 %v2879_v53, %v12372_v10 }
0x1703   :  { %v2880_v21 = vadd.f32 %v2878_v12, %v12374_v23 }
0x1704   :  { %v2885_v22 = vsel %vm2473_vm7, %v2881_v61, -inf }
0x1705   :  { %2886 = vmax.xlane.f32.xlu0 %v2885_v22  ;;  %v2882_v15 = vsel %vm2469_vm8, %v2880_v21, -inf }
0x1706   :  { %2883 = vmax.xlane.f32.xlu1 %v2882_v15 }
0x1792   :  { %v2887_v51 = vpop.xlane.xlu0 %2886 }
0x1793   :  { %v2889_v52 = vsub.f32 %v2881_v61, %v2887_v51  ;;  %v2884_v59 = vpop.xlane.xlu1 %2883 }
0x1794   :  { %v2888_v25 = vsub.f32 %v2880_v21, %v2884_v59 }
0x1795   :  { %v2892_v63 = vmul.f32 1.442695, %v2889_v52 }
0x1796   :  { %v2890_v55 = vmul.f32 1.442695, %v2888_v25 }
0x1797   :  { %11414 = vpow2.f32 %v2892_v63  ;;  %v11210_v63 = vpack.i.bf16 %v12303_v30, %v12298_v45 }
0x1798   :  { %11416 = vpow2.f32 %v2890_v55  ;;  %v11215_v55 = vpack.i.bf16 %v12315_v41, %v12308_v36 }
0x17a1   :  { %v11415_v57 = vpop.eup %11414 }
0x17a2   :  { %v11417_v4 = vpop.eup %11416  ;;  %v2897_v6 = vsel %vm2473_vm7, %v11415_v57, 0.0 }
0x17a3   :  { %2898 = vadd.xlane.f32.xlu1 %v2897_v6  ;;  %v2894_v56 = vsel %vm2469_vm8, %v11417_v4, 0.0 }
0x17a4   :  { %2895 = vadd.xlane.f32.xlu0 %v2894_v56 }
0x17b4   :  { %11201 = vrot.lane.b32.xlu1 %v12342_v62, %s14010_s29 }
0x17b8   :  { %2992 = vrot.lane.b32.xlu1 %v12336_v26, %s14008_s30 }
0x17ba   :  { %11196 = vrot.lane.b32.xlu0 %v12342_v62, %s14004_s12 }
0x17be   :  { %2994 = vrot.lane.b32.xlu0 %v12333_v60, %s14008_s30 }
0x1830   :  { %v2899_v58 = vpop.xlane.xlu1 %2898 }
0x1831   :  { %11418 = vrcp.f32 %v2899_v58  ;;  %v2896_v2 = vpop.xlane.xlu0 %2895 }
0x1832   :  { %11420 = vrcp.f32 %v2896_v2 }
0x1834   :  { %v11202_v0 = vpop.permute.xlu1 %11201 }
0x1835   :  { %v11197_v3 = vpop.permute.xlu0 %11196  ;;  %v11204_v17 = vunpack.i.h.bf16 %v11202_v0  ;;  %v11203_v18 = vunpack.i.l.bf16 %v11202_v0 }
0x1836   :  { %v11199_v1 = vunpack.i.h.bf16 %v11197_v3  ;;  %v11198_v27 = vunpack.i.l.bf16 %v11197_v3 }
0x1837   :  { %v10809_v29 = vpack.c.bf16 %v11204_v17, %v11203_v18 }
0x1838   :  { %v10803_v28 = vpack.c.bf16 %v11199_v1, %v11198_v27  ;;  %v2993_v38 = vpop.permute.xlu1 %2992 }
0x1839   :  { %v2995_v42 = vpop.permute.xlu0 %2994 }
0x183a   :  { %10805 = vmatprep.subr.msk.bf16.mxu1 %vm12387_vm11, %v10803_v28 }
0x183b   :  { %v11419_v26 = vpop.eup %11418  ;;  %10808 = vmatpush3.bf16.msk.msra.mxu1 %vm12387_vm11, %v10803_v28 }
0x183c   :  { %v11421_v60 = vpop.eup %11420  ;;  %10811 = vmatprep.subr.msk.bf16.mxu1 %vm12356_vm6, %v10809_v29  ;;  %v2903_v35 = vmul.f32 %v11419_v26, %v11415_v57 }
0x183d   :  { %v2902_v32 = vmul.f32 %v11421_v60, %v11417_v4 }
0x183f   :  { %9913 = vmatprep.mubr.msk.f32.mxu1 %vm2469_vm8, %v2902_v32 }
0x1840   :  { %9914 = vmatmul.mubr.msk.f32.vlgmr.msra.gmra.mrb[30].mxu1 %vm2469_vm8, %v2903_v35 }
0x1841   :  { %9920 = vmatprep.mubr.msk.f32.mxu1 %vm1910_vm3, %v2993_v38 }
0x1844   :  { %10814 = vmatpush3.bf16.xpose.msk.msra.mxu1 %vm12356_vm6, %v10809_v29 }
0x184b   :  { %9921 = vmatmul.mubr.msk.f32.vlgmr.msra.gmra.mrb[32].mxu1 %vm1910_vm3, %v2995_v42 }
0x1913   :  { %v9915_v43 = vpop.f32.mrb[30].mxu1 }
0x1914   :  { %v2983_v31 = vpop.f32.mrb[31].mxu1 }
0x191e   :  { %v9922_v44 = vpop.f32.mrb[32].mxu1 }
0x191f   :  { %v3084_v19 = vmul.f32 0.35355338, %v9922_v44  ;;  %v3074_v33 = vpop.f32.mrb[33].mxu1 }
0x1920   :  { %v3083_v37 = vmul.f32 0.35355338, %v3074_v33 }
0x1921   :  { %v3086_v34 = vadd.f32 %v3084_v19, %v12372_v10 }
0x1922   :  { %v3085_v46 = vadd.f32 %v3083_v37, %v12374_v23 }
0x1923   :  { %v3090_v50 = vsel %vm2473_vm7, %v3086_v34, -inf }
0x1924   :  { %3091 = vmax.xlane.f32.xlu0 %v3090_v50  ;;  %v3087_v53 = vsel %vm2469_vm8, %v3085_v46, -inf }
0x1925   :  { %3088 = vmax.xlane.f32.xlu1 %v3087_v53 }
0x19b1   :  { %v3092_v54 = vpop.xlane.xlu0 %3091 }
0x19b2   :  { %v3094_v12 = vsub.f32 %v3086_v34, %v3092_v54  ;;  %v3089_v61 = vpop.xlane.xlu1 %3088 }
0x19b3   :  { %v3093_v21 = vsub.f32 %v3085_v46, %v3089_v61 }
0x19b4   :  { %v3097_v22 = vmul.f32 1.442695, %v3094_v12 }
0x19b5   :  { %v3095_v15 = vmul.f32 1.442695, %v3093_v21 }
0x19b6   :  { %11422 = vpow2.f32 %v3097_v22 }
0x19b7   :  { %11424 = vpow2.f32 %v3095_v15 }
0x19c0   :  { %v11423_v51 = vpop.eup %11422 }
0x19c1   :  { %v11425_v52 = vpop.eup %11424  ;;  %v3102_v59 = vsel %vm2473_vm7, %v11423_v51, 0.0 }
0x19c2   :  { %3103 = vadd.xlane.f32.xlu1 %v3102_v59  ;;  %v3099_v25 = vsel %vm2469_vm8, %v11425_v52, 0.0 }
0x19c3   :  { %3100 = vadd.xlane.f32.xlu0 %v3099_v25  ;;  %v3372_v25 = vld [vmem:[%s13982_s6] sm:$0xff] }
0x19d3   :  { %11211 = vrot.lane.b32.xlu1 %v11210_v63, %s14002_s0  ;;  %v3373_v63 = vld [vmem:[%s13982_s6 + $0x8] sm:$0xff] }
0x19d7   :  { %11216 = vrot.lane.b32.xlu1 %v11215_v55, %s14002_s0  ;;  %v3374_v55 = vld [vmem:[%s13982_s6 + $0x10] sm:$0xff] }
0x19d9   :  { %11206 = vrot.lane.b32.xlu0 %v12342_v62, %s14000_s18 }
0x19db   :  { %3201 = vrot.lane.b32.xlu1 %v12425_v39, %s13998_s19 }
0x19dd   :  { %3199 = vrot.lane.b32.xlu0 %v12427_v49, %s13998_s19  ;;  %s14026_s19 = smov 24  }
0x19df   :  { %3209 = vrot.lane.b32.xlu1 %v9915_v43, %s13996_s20 }
0x19e1   :  { %3207 = vrot.lane.b32.xlu0 %v2983_v31, %s13996_s20 }
0x1a4f   :  { %v3104_v45 = vpop.xlane.xlu1 %3103 }
0x1a50   :  { %11426 = vrcp.f32 %v3104_v45  ;;  %v3101_v30 = vpop.xlane.xlu0 %3100  ;;  %v10829_v45 = vpack.c.bf16 %v3373_v63, %v3372_v25 }
0x1a51   :  { %11428 = vrcp.f32 %v3101_v30  ;;  %v3375_v30 = vld [vmem:[%s13982_s6 + $0x18] sm:$0xff] }
0x1a52   :  { %10830 = vmatprep.subr.bf16.mxu1 %v10829_v45 }
0x1a53   :  { %v11212_v56 = vpop.permute.xlu1 %11211  ;;  %10832 = vmatpush3.bf16.msra.mxu1 %v10829_v45 }
0x1a54   :  { %v11207_v36 = vpop.permute.xlu0 %11206  ;;  %v11214_v2 = vunpack.i.h.bf16 %v11212_v56  ;;  %v11213_v0 = vunpack.i.l.bf16 %v11212_v56  ;;  %v8798_v56 = vld [vmem:[%s13981_s5 + $0x2] ss:$0 sm:$0xff] }
0x1a55   :  { %v11209_v41 = vunpack.i.h.bf16 %v11207_v36  ;;  %v11208_v57 = vunpack.i.l.bf16 %v11207_v36  ;;  %v10833_v36 = vpack.c.bf16 %v3375_v30, %v3374_v55 }
0x1a56   :  { %v10821_v18 = vpack.c.bf16 %v11214_v2, %v11213_v0 }
0x1a57   :  { %v10815_v62 = vpack.c.bf16 %v11209_v41, %v11208_v57  ;;  %v11217_v58 = vpop.permute.xlu1 %11216  ;;  %10834 = vmatprep.subr.bf16.mxu1 %v10833_v36 }
0x1a58   :  { %v11219_v3 = vunpack.i.h.bf16 %v11217_v58  ;;  %v11218_v17 = vunpack.i.l.bf16 %v11217_v58  ;;  %v3200_v26 = vpop.permute.xlu0 %3199  ;;  %10836 = vmatpush3.bf16.msra.mxu1 %v10833_v36 }
0x1a59   :  { %10817 = vmatprep.subr.msk.bf16.mxu0 %vm12387_vm11, %v10815_v62  ;;  %v3221_v35 = vsel %vm1910_vm3, %v12423_v48, %v3200_v26  ;;  %v3483_v26 = vld [vmem:[%s13983_s7 + $0x8] sm:$0xff] }
0x1a5a   :  { %v11427_v39 = vpop.eup %11426  ;;  %10820 = vmatpush3.bf16.msk.msra.mxu0 %vm12387_vm11, %v10815_v62  ;;  %v10825_v1 = vpack.c.bf16 %v11219_v3, %v11218_v17  ;;  %v8799_v3 = vld [vmem:[%s13981_s5 + $0x3] ss:$0 sm:$0xff] }
0x1a5b   :  { %v11429_v49 = vpop.eup %11428  ;;  %v3108_v6 = vmul.f32 %v11427_v39, %v11423_v51  ;;  %10822 = vmatprep.subr.bf16.mxu0 %v10821_v18  ;;  %v3202_v29 = vpop.permute.xlu1 %3201 }
0x1a5c   :  { %v3107_v4 = vmul.f32 %v11429_v49, %v11425_v52  ;;  %v3208_v32 = vpop.permute.xlu0 %3207  ;;  %v3222_v42 = vsel %vm1910_vm3, %v12421_v47, %v3202_v29  ;;  %v3482_v29 = vld [vmem:[%s13983_s7] sm:$0xff] }
0x1a5d   :  { %v3223_v43 = vsel %vm253_vm2, %v3221_v35, %v3208_v32  ;;  %v3484_v32 = vld [vmem:[%s13983_s7 + $0x10] sm:$0xff]  ;;  %v3485_v35 = vld [vmem:[%s13983_s7 + $0x18] sm:$0xff] }
0x1a5e   :  { %9927 = vmatprep.mubr.msk.f32.mxu0 %vm2469_vm8, %v3107_v4 }
0x1a5f   :  { %9928 = vmatmul.mubr.msk.f32.vlgmr.msra.gmra.mrb[28].mxu0 %vm2469_vm8, %v3108_v6  ;;  %v3210_v60 = vpop.permute.xlu1 %3209 }
0x1a60   :  { %10824 = vmatpush3.bf16.msra.mxu0 %v10821_v18  ;;  %v3224_v44 = vsel %vm253_vm2, %v3222_v42, %v3210_v60  ;;  %v10837_v60 = vpack.c.bf16 %v3483_v26, %v3482_v29  ;;  %v10841_v42 = vpack.c.bf16 %v3485_v35, %v3484_v32  ;;  %v12581_v29 = vld [vmem:[%s13979_s3 + $0x28] sm:$0xff]  ;;  %v12586_v26 = vld [vmem:[%s13979_s3 + $0x30] sm:$0xff]  ;;  %v12593_v32 = vld [vmem:[%s13979_s3 + $0x38] sm:$0xff] }
0x1a61   :  { %10826 = vmatprep.subr.bf16.mxu0 %v10825_v1  ;;  %v11265_v35 = vpack.i.bf16 %v12593_v32, %v12586_v26 }
0x1a64   :  { %10828 = vmatpush3.bf16.msra.mxu0 %v10825_v1 }
0x1a65   :  { %10838 = vmatprep.subr.bf16.mxu0 %v10837_v60 }
0x1b32   :  { %v9929_v27 = vpop.f32.mrb[28].mxu0 }
0x1b33   :  { %3217 = vrot.lane.b32.xlu1 %v9929_v27, %s13994_s21  ;;  %v3188_v28 = vpop.f32.mrb[29].mxu0 }
0x1b34   :  { %3215 = vrot.lane.b32.xlu0 %v3188_v28, %s13994_s21  ;;  %v8800_v28 = vld [vmem:[%s13984_s8] ss:$0 sm:$0xff]  ;;  %s14024_s21 = smov 8  }
0x1b38   :  { %3327 = vrot.lane.b32.xlu0 %v12330_v16, %s14002_s0  ;;  %s14028_s0 = smov 72  }
0x1ba5   :  { %v3218_v38 = vpop.permute.xlu1 %3217 }
0x1ba6   :  { %v3216_v31 = vpop.permute.xlu0 %3215  ;;  %v3227_v16 = vsel %vm3225_vm12, %v3224_v44, %v3218_v38  ;;  %v3486_v38 = vld [vmem:[%s13983_s7 + $0x20] sm:$0xff]  ;;  %v3488_v44 = vld [vmem:[%s13983_s7 + $0x30] sm:$0xff] }
0x1ba7   :  { %v3226_v19 = vsel %vm3225_vm12, %v3223_v43, %v3216_v31  ;;  %v3487_v43 = vld [vmem:[%s13983_s7 + $0x28] sm:$0xff] }
0x1ba8   :  { %9938 = vmatprep.mubr.msk.f32.mxu0 %vm2237_vm5, %v3226_v19  ;;  %v10845_v31 = vpack.c.bf16 %v3487_v43, %v3486_v38  ;;  %v3489_v19 = vld [vmem:[%s13983_s7 + $0x38] sm:$0xff]  ;;  %v10857_v38 = vpack.c.bf16 %v12593_v32, %v12586_v26 }
0x1ba9   :  { %9939 = vmatmul.mubr.msk.f32.vlgmr.msra.gmra.mrb[30].mxu0 %vm2237_vm5, %v3227_v16  ;;  %v10849_v16 = vpack.c.bf16 %v3489_v19, %v3488_v44 }
0x1baa   :  { %v3328_v37 = vpop.permute.xlu0 %3327  ;;  %10840 = vmatpush3.bf16.msra.mxu0 %v10837_v60 }
0x1bab   :  { %10842 = vmatprep.subr.bf16.mxu0 %v10841_v42 }
0x1bae   :  { %10844 = vmatpush3.bf16.msra.mxu0 %v10841_v42 }
0x1baf   :  { %10846 = vmatprep.subr.bf16.mxu0 %v10845_v31 }
0x1bb2   :  { %10848 = vmatpush3.bf16.msra.mxu0 %v10845_v31 }
0x1bb3   :  { %10850 = vmatprep.subr.bf16.mxu0 %v10849_v16 }
0x1bb6   :  { %10852 = vmatpush3.bf16.msra.mxu0 %v10849_v16 }
0x1c7c   :  { %v9940_v33 = vpop.f32.mrb[30].mxu0 }
0x1c7d   :  { %v3326_v48 = vadd.f32 %v9940_v33, %v12283_v20  ;;  %v3316_v34 = vpop.f32.mrb[31].mxu0 }
0x1c7e   :  { %v3325_v47 = vadd.f32 %v3316_v34, %v12285_v24 }
0x1c7f   :  { %v12497_v46 = vadd.f32 %v3328_v37, %v3326_v48 }
0x1c80   :  { %v12499_v50 = vadd.f32 %v3328_v37, %v3325_v47 }
0x1c81   :  { %v3337_v53 = vsel %vm2241_vm4, %v12497_v46, 0.0 }
0x1c82   :  { %3338 = vadd.xlane.f32.xlu0 %v3337_v53  ;;  %v3334_v54 = vsel %vm2237_vm5, %v12499_v50, 0.0 }
0x1c83   :  { %3335 = vadd.xlane.f32.xlu1 %v3334_v54 }
0x1d0f   :  { %v3339_v12 = vpop.xlane.xlu0 %3338 }
0x1d10   :  { %v3341_v61 = vmul.f32 0.03125, %v3339_v12  ;;  %v3336_v21 = vpop.xlane.xlu1 %3335 }
0x1d11   :  { %v3340_v22 = vmul.f32 0.03125, %v3336_v21 }
0x1d12   :  { %v3343_v20 = vsub.f32 %v12497_v46, %v3341_v61 }
0x1d13   :  { %v3342_v24 = vsub.f32 %v12499_v50, %v3340_v22 }
0x1d14   :  { %v3345_v15 = vmul.f32 %v3343_v20, %v3343_v20 }
0x1d15   :  { %v3344_v51 = vmul.f32 %v3342_v24, %v3342_v24 }
0x1d16   :  { %v3349_v52 = vsel %vm2241_vm4, %v3345_v15, 0.0 }
0x1d17   :  { %3350 = vadd.xlane.f32.xlu1 %v3349_v52  ;;  %v3346_v59 = vsel %vm2237_vm5, %v3344_v51, 0.0 }
0x1d18   :  { %3347 = vadd.xlane.f32.xlu0 %v3346_v59 }
0x1d2e   :  { %3573 = vrot.lane.b32.xlu0 %v8800_v28, %s11658_s13 }
0x1da4   :  { %v3351_v41 = vpop.xlane.xlu1 %3350 }
0x1da5   :  { %v3353_v57 = vmul.f32 0.03125, %v3351_v41  ;;  %v3348_v62 = vpop.xlane.xlu0 %3347 }
0x1da6   :  { %v3352_v39 = vmul.f32 0.03125, %v3348_v62 }
0x1da7   :  { %v3355_v49 = vadd.f32 1e-06, %v3353_v57 }
0x1da8   :  { %v3354_v4 = vadd.f32 1e-06, %v3352_v39 }
0x1da9   :  { %11430 = vrsqrt.f32 %v3355_v49  ;;  %v3574_v57 = vpop.permute.xlu0 %3573 }
0x1daa   :  { %11432 = vrsqrt.f32 %v3354_v4 }
0x1db3   :  { %v11431_v6 = vpop.eup %11430 }
0x1db4   :  { %v11433_v58 = vpop.eup %11432  ;;  %v3359_v2 = vmul.f32 %v11431_v6, %v3343_v20 }
0x1db5   :  { %v3358_v0 = vmul.f32 %v11433_v58, %v3342_v24 }
0x1db6   :  { %v3365_v17 = vmul.f32 %v8798_v56, %v3359_v2 }
0x1db7   :  { %v3364_v18 = vmul.f32 %v8798_v56, %v3358_v0 }
0x1db8   :  { %v3371_v27 = vadd.f32 %v8799_v3, %v3365_v17 }
0x1db9   :  { %v3370_v1 = vadd.f32 %v8799_v3, %v3364_v18 }
0x1dbb   :  { %9949 = vmatprep.mubr.msk.f32.mxu1 %vm2237_vm5, %v3370_v1 }
0x1dbc   :  { %9950 = vmatmul.mubr.msk.f32.vlgmr.msra.gmra.mrb[34].mxu1 %vm2237_vm5, %v3371_v27 }
0x1e8f   :  { %v9951_v33 = vpop.f32.mrb[34].mxu1 }
0x1e90   :  { %v3461_v37 = vadd.f32 %v9951_v33, %v8800_v28  ;;  %v3455_v48 = vpop.f32.mrb[35].mxu1 }
0x1e91   :  { %v3456_v34 = vadd.f32 %v8800_v28, %v3455_v48  ;;  %v12576_v28 = vld [vmem:[%s13979_s3 + $0x20] sm:$0xff] }
0x1e92   :  { %v3467_v47 = vmul.f32 0.044715, %v3461_v37  ;;  %v3465_v55 = vmul.f32 0.5, %v3461_v37  ;;  %v10853_v60 = vpack.c.bf16 %v12581_v29, %v12576_v28 }
0x1e93   :  { %v3466_v53 = vmul.f32 0.044715, %v3456_v34  ;;  %v3464_v25 = vmul.f32 0.5, %v3456_v34 }
0x1e94   :  { %v3469_v54 = vmul.f32 %v3467_v47, %v3461_v37  ;;  %10854 = vmatprep.subr.bf16.mxu1 %v10853_v60 }
0x1e95   :  { %v3468_v12 = vmul.f32 %v3466_v53, %v3456_v34  ;;  %10856 = vmatpush3.bf16.msra.mxu1 %v10853_v60 }
0x1e96   :  { %v3471_v61 = vmul.f32 %v3469_v54, %v3461_v37  ;;  %10858 = vmatprep.subr.bf16.mxu1 %v10857_v38 }
0x1e97   :  { %v3470_v21 = vmul.f32 %v3468_v12, %v3456_v34 }
0x1e98   :  { %v3473_v22 = vadd.f32 %v3471_v61, %v3461_v37  ;;  %v8807_v37 = vld [vmem:[%s13981_s5 + $0x4] ss:$0 sm:$0xff] }
0x1e99   :  { %v3472_v20 = vadd.f32 %v3470_v21, %v3456_v34  ;;  %10860 = vmatpush3.bf16.msra.mxu1 %v10857_v38  ;;  %v8808_v34 = vld [vmem:[%s13981_s5 + $0x5] ss:$0 sm:$0xff] }
0x1e9a   :  { %v3475_v24 = vmul.f32 0.7978846, %v3473_v22  ;;  %v12610_v22 = vld [vmem:[%s13980_s4 + $0x1] ss:$0 sm:$0xff] }
0x1e9b   :  { %v3474_v15 = vmul.f32 0.7978846, %v3472_v20 }
0x1e9c   :  { %11434 = vtanh.f32 %v3475_v24 }
0x1e9d   :  { %11436 = vtanh.f32 %v3474_v15 }
0x1ea6   :  { %v11435_v51 = vpop.eup %11434 }
0x1ea7   :  { %v11437_v52 = vpop.eup %11436  ;;  %v3479_v59 = vadd.f32 1.0, %v11435_v51 }
0x1ea8   :  { %v3478_v63 = vadd.f32 1.0, %v11437_v52 }
0x1ea9   :  { %v3481_v30 = vmul.f32 %v3479_v59, %v3465_v55 }
0x1eaa   :  { %v3480_v45 = vmul.f32 %v3478_v63, %v3464_v25 }
0x1eac   :  { %9968 = vmatprep.mubr.msk.f32.mxu0 %vm93_vm0, %v3480_v45 }
0x1ead   :  { %9969 = vmatmul.mubr.msk.f32.vlgmr.msra.gmra.mrb[32].mxu0 %vm93_vm0, %v3481_v30 }
0x1f80   :  { %v9970_v36 = vpop.f32.mrb[32].mxu0 }
0x1f81   :  { %v3562_v41 = vpop.f32.mrb[33].mxu0  ;;  %v3572_v62 = vadd.f32 %v9970_v36, %v12497_v46 }
0x1f82   :  { %v3571_v39 = vadd.f32 %v3562_v41, %v12499_v50 }
0x1f83   :  { %v12563_v4 = vadd.f32 %v3574_v57, %v3572_v62 }
0x1f84   :  { %v12561_v49 = vadd.f32 %v3574_v57, %v3571_v39 }
0x1f85   :  { %v3584_v56 = vsel %vm2241_vm4, %v12563_v4, 0.0 }
0x1f86   :  { %v3581_v6 = vsel %vm2237_vm5, %v12561_v49, 0.0 }
0x1f87   :  { %3582 = vadd.xlane.f32.xlu1 %v3581_v6 }
0x1f8b   :  { %3585 = vadd.xlane.f32.xlu1 %v3584_v56 }
0x2014   :  { %v3583_v58 = vpop.xlane.xlu1 %3582 }
0x2015   :  { %v3587_v2 = vmul.f32 0.03125, %v3583_v58 }
0x2017   :  { %v3589_v0 = vsub.f32 %v12561_v49, %v3587_v2 }
0x2018   :  { %v3586_v3 = vpop.xlane.xlu1 %3585 }
0x2019   :  { %v3588_v46 = vmul.f32 0.03125, %v3586_v3  ;;  %v3591_v17 = vmul.f32 %v3589_v0, %v3589_v0 }
0x201b   :  { %v3590_v50 = vsub.f32 %v12563_v4, %v3588_v46  ;;  %v3593_v18 = vsel %vm2237_vm5, %v3591_v17, 0.0 }
0x201c   :  { %3594 = vadd.xlane.f32.xlu1 %v3593_v18 }
0x201d   :  { %v3592_v1 = vmul.f32 %v3590_v50, %v3590_v50 }
0x201f   :  { %v3596_v27 = vsel %vm2241_vm4, %v3592_v1, 0.0 }
0x2020   :  { %3597 = vadd.xlane.f32.xlu1 %v3596_v27 }
0x20a9   :  { %v3595_v42 = vpop.xlane.xlu1 %3594 }
0x20aa   :  { %v3599_v43 = vmul.f32 0.03125, %v3595_v42 }
0x20ac   :  { %v3601_v31 = vadd.f32 1e-06, %v3599_v43 }
0x20ad   :  { %v3598_v44 = vpop.xlane.xlu1 %3597 }
0x20ae   :  { %11438 = vrsqrt.f32 %v3601_v31  ;;  %v3600_v19 = vmul.f32 0.03125, %v3598_v44 }
0x20b0   :  { %v3602_v16 = vadd.f32 1e-06, %v3600_v19 }
0x20b2   :  { %11440 = vrsqrt.f32 %v3602_v16 }
0x20b8   :  { %v11439_v33 = vpop.eup %11438 }
0x20b9   :  { %v3605_v48 = vmul.f32 %v11439_v33, %v3589_v0 }
0x20bb   :  { %v3611_v47 = vmul.f32 %v8807_v37, %v3605_v48 }
0x20bc   :  { %v11441_v53 = vpop.eup %11440 }
0x20bd   :  { %v3606_v54 = vmul.f32 %v11441_v53, %v3590_v50  ;;  %v3617_v12 = vadd.f32 %v8808_v34, %v3611_v47 }
0x20bf   :  { %v3612_v61 = vmul.f32 %v8807_v37, %v3606_v54  ;;  %9979 = vmatprep.mubr.msk.f32.mxu1 %vm2237_vm5, %v3617_v12 }
0x20c1   :  { %v3618_v21 = vadd.f32 %v8808_v34, %v3612_v61 }
0x20c3   :  { %9980 = vmatmul.mubr.msk.f32.vlgmr.msra.gmra.mrb[36].mxu1 %vm2237_vm5, %v3618_v21 }
0x2196   :  { %v9981_v20 = vpop.f32.mrb[36].mxu1 }
0x2197   :  { %v12613_v24 = vadd.f32 %v9981_v20, %v12610_v22  ;;  %v3704_v15 = vpop.f32.mrb[37].mxu1 }
0x2198   :  { %v12616_v51 = vadd.f32 %v12610_v22, %v3704_v15 }
0x219a   :  { %9986 = vmatprep.mubr.msk.f32.mxu1 %vm1910_vm3, %v12616_v51  ;;  %v12622_v52 = vpack.i.bf16 %v12613_v24, %v12616_v51 }
0x219c   :  { %11226 = vrot.lane.b32.xlu0 %v12622_v52, %s11661_s14  ;;  %11221 = vrot.lane.b32.xlu1 %v12622_v52, %s11659_s17 }
0x21a0   :  { %3916 = vrot.lane.b32.xlu0 %v12616_v51, %s14014_s28 }
0x21a4   :  { %3918 = vrot.lane.b32.xlu0 %v12613_v24, %s14014_s28 }
0x220e   :  { %v11227_v59 = vpop.permute.xlu0 %11226  ;;  %v11222_v25 = vpop.permute.xlu1 %11221 }
0x220f   :  { %v11229_v63 = vunpack.i.h.bf16 %v11227_v59  ;;  %v11228_v55 = vunpack.i.l.bf16 %v11227_v59  ;;  %v11224_v45 = vunpack.i.h.bf16 %v11222_v25  ;;  %v11223_v30 = vunpack.i.l.bf16 %v11222_v25 }
0x2211   :  { %v10861_v36 = vpack.c.bf16 %v11224_v45, %v11223_v30  ;;  %v10873_v41 = vpack.c.bf16 %v11229_v63, %v11228_v55 }
0x2212   :  { %v3917_v57 = vpop.permute.xlu0 %3916 }
0x2213   :  { %10863 = vmatprep.subr.msk.bf16.mxu1 %vm12356_vm6, %v10861_v36 }
0x2214   :  { %10866 = vmatpush3.bf16.xpose.msk.msra.mxu1 %vm12356_vm6, %v10861_v36 }
0x2215   :  { %10875 = vmatprep.subr.msk.bf16.mxu1 %vm12356_vm6, %v10873_v41 }
0x2216   :  { %v3919_v62 = vpop.permute.xlu0 %3918 }
0x221b   :  { %9987 = vmatmul.mubr.msk.f32.vlgmr.msra.gmra.mrb[38].mxu1 %vm1910_vm3, %v12613_v24 }
0x221c   :  { %10878 = vmatpush3.bf16.xpose.msk.msra.mxu1 %vm12356_vm6, %v10873_v41  ;;  %10000 = vmatprep.mubr.msk.f32.mxu1 %vm1910_vm3, %v3917_v57 }
0x2223   :  { %10001 = vmatmul.mubr.msk.f32.vlgmr.msra.gmra.mrb[40].mxu1 %vm1910_vm3, %v3919_v62 }
0x22ee   :  { %v9988_v39 = vpop.f32.mrb[38].mxu1 }
0x22ef   :  { %v3803_v6 = vmul.f32 0.35355338, %v9988_v39  ;;  %v3793_v56 = vpop.f32.mrb[39].mxu1 }
0x22f0   :  { %v3802_v58 = vmul.f32 0.35355338, %v3793_v56 }
0x22f1   :  { %v3805_v2 = vadd.f32 %v3803_v6, %v12372_v10 }
0x22f2   :  { %v3804_v0 = vadd.f32 %v3802_v58, %v12374_v23 }
0x22f3   :  { %v3809_v3 = vsel %vm2473_vm7, %v3805_v2, -inf }
0x22f4   :  { %3810 = vmax.xlane.f32.xlu1 %v3809_v3  ;;  %v3806_v46 = vsel %vm2469_vm8, %v3804_v0, -inf }
0x22f5   :  { %3807 = vmax.xlane.f32.xlu0 %v3806_v46 }
0x22f6   :  { %v10002_v17 = vpop.f32.mrb[40].mxu1 }
0x22f7   :  { %v3998_v50 = vpop.f32.mrb[41].mxu1  ;;  %v4008_v18 = vmul.f32 0.35355338, %v10002_v17 }
0x22f8   :  { %v4007_v1 = vmul.f32 0.35355338, %v3998_v50 }
0x22f9   :  { %v4010_v38 = vadd.f32 %v4008_v18, %v12372_v10 }
0x22fa   :  { %v4009_v27 = vadd.f32 %v4007_v1, %v12374_v23 }
0x22fb   :  { %v4014_v42 = vsel %vm2473_vm7, %v4010_v38, -inf }
0x22fc   :  { %v4011_v60 = vsel %vm2469_vm8, %v4009_v27, -inf }
0x22fd   :  { %4012 = vmax.xlane.f32.xlu0 %v4011_v60 }
0x2301   :  { %4015 = vmax.xlane.f32.xlu0 %v4014_v42 }
0x2305   :  { %11231 = vrot.lane.b32.xlu1 %v12622_v52, %s11658_s13 }
0x2381   :  { %v3811_v43 = vpop.xlane.xlu1 %3810 }
0x2382   :  { %v3813_v31 = vsub.f32 %v3805_v2, %v3811_v43  ;;  %v3808_v44 = vpop.xlane.xlu0 %3807 }
0x2383   :  { %v3812_v19 = vsub.f32 %v3804_v0, %v3808_v44 }
0x2384   :  { %v3816_v16 = vmul.f32 1.442695, %v3813_v31 }
0x2385   :  { %v3814_v33 = vmul.f32 1.442695, %v3812_v19  ;;  %v11232_v37 = vpop.permute.xlu1 %11231 }
0x2386   :  { %11442 = vpow2.f32 %v3816_v16  ;;  %v11234_v48 = vunpack.i.h.bf16 %v11232_v37  ;;  %v11233_v34 = vunpack.i.l.bf16 %v11232_v37 }
0x2387   :  { %11444 = vpow2.f32 %v3814_v33 }
0x2388   :  { %v10867_v47 = vpack.c.bf16 %v11234_v48, %v11233_v34 }
0x238a   :  { %10869 = vmatprep.subr.msk.bf16.mxu0 %vm12387_vm11, %v10867_v47  ;;  %v4013_v53 = vpop.xlane.xlu0 %4012 }
0x238b   :  { %10872 = vmatpush3.bf16.msk.msra.mxu0 %vm12387_vm11, %v10867_v47  ;;  %v4017_v55 = vsub.f32 %v4009_v27, %v4013_v53 }
0x238d   :  { %v4019_v45 = vmul.f32 1.442695, %v4017_v55 }
0x238e   :  { %v4016_v54 = vpop.xlane.xlu0 %4015 }
0x238f   :  { %v4018_v12 = vsub.f32 %v4010_v38, %v4016_v54 }
0x2390   :  { %v11443_v61 = vpop.eup %11442 }
0x2391   :  { %v11445_v21 = vpop.eup %11444  ;;  %v4021_v20 = vmul.f32 1.442695, %v4018_v12  ;;  %v3821_v15 = vsel %vm2473_vm7, %v11443_v61, 0.0 }
0x2392   :  { %3822 = vadd.xlane.f32.xlu0 %v3821_v15  ;;  %v3818_v59 = vsel %vm2469_vm8, %v11445_v21, 0.0 }
0x2393   :  { %11446 = vpow2.f32 %v4021_v20  ;;  %3819 = vadd.xlane.f32.xlu1 %v3818_v59 }
0x2394   :  { %11448 = vpow2.f32 %v4019_v45 }
0x239d   :  { %v11447_v25 = vpop.eup %11446 }
0x239e   :  { %v4026_v63 = vsel %vm2473_vm7, %v11447_v25, 0.0  ;;  %v11449_v30 = vpop.eup %11448 }
0x239f   :  { %4027 = vadd.xlane.f32.xlu0 %v4026_v63  ;;  %v4023_v36 = vsel %vm2469_vm8, %v11449_v30, 0.0 }
0x23a4   :  { %11241 = vrot.lane.b32.xlu1 %v12622_v52, %s14012_s27  ;;  %s11674_s27 = smov 75  }
0x23b5   :  { %11236 = vrot.lane.b32.xlu0 %v12622_v52, %s14006_s15  ;;  %s14029_s15 = smov 104  }
0x23b9   :  { %4123 = vrot.lane.b32.xlu0 %v12613_v24, %s11657_s23 }
0x23c8   :  { %4024 = vadd.xlane.f32.xlu1 %v4023_v36 }
0x23d9   :  { %4121 = vrot.lane.b32.xlu1 %v12616_v51, %s11657_s23 }
0x241f   :  { %v3823_v41 = vpop.xlane.xlu0 %3822 }
0x2420   :  { %11450 = vrcp.f32 %v3823_v41  ;;  %v3820_v57 = vpop.xlane.xlu1 %3819 }
0x2421   :  { %11452 = vrcp.f32 %v3820_v57 }
0x2424   :  { %v11242_v2 = vpop.permute.xlu1 %11241 }
0x2425   :  { %v11244_v3 = vunpack.i.h.bf16 %v11242_v2  ;;  %v11243_v46 = vunpack.i.l.bf16 %v11242_v2 }
0x2427   :  { %v10885_v1 = vpack.c.bf16 %v11244_v3, %v11243_v46 }
0x242a   :  { %v11451_v62 = vpop.eup %11450 }
0x242b   :  { %v11453_v39 = vpop.eup %11452  ;;  %v3827_v58 = vmul.f32 %v11451_v62, %v11443_v61 }
0x242c   :  { %v4028_v6 = vpop.xlane.xlu0 %4027  ;;  %v3826_v56 = vmul.f32 %v11453_v39, %v11445_v21 }
0x242d   :  { %11454 = vrcp.f32 %v4028_v6 }
0x242e   :  { %9993 = vmatprep.mubr.msk.f32.mxu0 %vm2469_vm8, %v3826_v56 }
0x242f   :  { %9994 = vmatmul.mubr.msk.f32.vlgmr.msra.gmra.mrb[34].mxu0 %vm2469_vm8, %v3827_v58 }
0x2430   :  { %v11237_v0 = vpop.permute.xlu0 %11236 }
0x2431   :  { %v11239_v17 = vunpack.i.h.bf16 %v11237_v0  ;;  %v11238_v50 = vunpack.i.l.bf16 %v11237_v0 }
0x2433   :  { %v10879_v18 = vpack.c.bf16 %v11239_v17, %v11238_v50 }
0x2434   :  { %v4124_v44 = vpop.permute.xlu0 %4123 }
0x2435   :  { %10881 = vmatprep.subr.msk.bf16.mxu0 %vm12387_vm11, %v10879_v18 }
0x2436   :  { %10884 = vmatpush3.bf16.msk.msra.mxu0 %vm12387_vm11, %v10879_v18 }
0x2437   :  { %10887 = vmatprep.subr.msk.bf16.mxu0 %vm12356_vm6, %v10885_v1  ;;  %v11455_v60 = vpop.eup %11454 }
0x2438   :  { %v4032_v43 = vmul.f32 %v11455_v60, %v11447_v25 }
0x2455   :  { %v4025_v27 = vpop.xlane.xlu1 %4024 }
0x2456   :  { %11456 = vrcp.f32 %v4025_v27 }
0x2459   :  { %v4122_v31 = vpop.permute.xlu1 %4121 }
0x2460   :  { %v11457_v38 = vpop.eup %11456 }
0x2461   :  { %v4031_v42 = vmul.f32 %v11457_v38, %v11449_v30 }
0x2463   :  { %10007 = vmatprep.mubr.msk.f32.mxu0 %vm2469_vm8, %v4031_v42 }
0x2464   :  { %10008 = vmatmul.mubr.msk.f32.vlgmr.msra.gmra.mrb[36].mxu0 %vm2469_vm8, %v4032_v43 }
0x2465   :  { %10890 = vmatpush3.bf16.xpose.msk.msra.mxu0 %vm12356_vm6, %v10885_v1  ;;  %10014 = vmatprep.mubr.msk.f32.mxu0 %vm1910_vm3, %v4122_v31 }
0x246c   :  { %10015 = vmatmul.mubr.msk.f32.vlgmr.msra.gmra.mrb[38].mxu0 %vm1910_vm3, %v4124_v44 }
0x2502   :  { %v12684_v19 = vpop.f32.mrb[34].mxu0 }
0x2503   :  { %v12686_v16 = vpop.f32.mrb[35].mxu0 }
0x2537   :  { %v12688_v33 = vpop.f32.mrb[36].mxu0 }
0x2538   :  { %v12690_v37 = vpop.f32.mrb[37].mxu0 }
0x253f   :  { %v10016_v48 = vpop.f32.mrb[38].mxu0 }
0x2540   :  { %v4213_v34 = vmul.f32 0.35355338, %v10016_v48  ;;  %v4203_v47 = vpop.f32.mrb[39].mxu0 }
0x2541   :  { %v4212_v53 = vmul.f32 0.35355338, %v4203_v47 }
0x2542   :  { %v4215_v54 = vadd.f32 %v4213_v34, %v12372_v10 }
0x2543   :  { %v4214_v12 = vadd.f32 %v4212_v53, %v12374_v23 }
0x2544   :  { %v4219_v61 = vsel %vm2473_vm7, %v4215_v54, -inf }
0x2545   :  { %4220 = vmax.xlane.f32.xlu0 %v4219_v61  ;;  %v4216_v21 = vsel %vm2469_vm8, %v4214_v12, -inf }
0x2546   :  { %4217 = vmax.xlane.f32.xlu1 %v4216_v21 }
0x25d2   :  { %v4221_v20 = vpop.xlane.xlu0 %4220 }
0x25d3   :  { %v4223_v15 = vsub.f32 %v4215_v54, %v4221_v20  ;;  %v4218_v59 = vpop.xlane.xlu1 %4217 }
0x25d4   :  { %v4222_v25 = vsub.f32 %v4214_v12, %v4218_v59 }
0x25d5   :  { %v4226_v63 = vmul.f32 1.442695, %v4223_v15 }
0x25d6   :  { %v4224_v55 = vmul.f32 1.442695, %v4222_v25  ;;  %v11260_v25 = vpack.i.bf16 %v12581_v29, %v12576_v28 }
0x25d7   :  { %11458 = vpow2.f32 %v4226_v63 }
0x25d8   :  { %11460 = vpow2.f32 %v4224_v55 }
0x25e1   :  { %v11459_v45 = vpop.eup %11458 }
0x25e2   :  { %v11461_v30 = vpop.eup %11460  ;;  %v4231_v36 = vsel %vm2473_vm7, %v11459_v45, 0.0 }
0x25e3   :  { %4232 = vadd.xlane.f32.xlu1 %v4231_v36  ;;  %v4228_v41 = vsel %vm2469_vm8, %v11461_v30, 0.0 }
0x25e4   :  { %4229 = vadd.xlane.f32.xlu0 %v4228_v41 }
0x25f4   :  { %11251 = vrot.lane.b32.xlu1 %v12622_v52, %s14010_s29  ;;  %s14031_s29 = smov 48  }
0x25f8   :  { %4326 = vrot.lane.b32.xlu1 %v12616_v51, %s14008_s30 }
0x25fa   :  { %11246 = vrot.lane.b32.xlu0 %v12622_v52, %s14004_s12  ;;  %s14027_s12 = smov 80  }
0x25fe   :  { %4328 = vrot.lane.b32.xlu0 %v12613_v24, %s14008_s30 }
0x2670   :  { %v4233_v57 = vpop.xlane.xlu1 %4232 }
0x2671   :  { %11462 = vrcp.f32 %v4233_v57  ;;  %v4230_v62 = vpop.xlane.xlu0 %4229 }
0x2672   :  { %11464 = vrcp.f32 %v4230_v62 }
0x2674   :  { %v11252_v39 = vpop.permute.xlu1 %11251 }
0x2675   :  { %v11247_v6 = vpop.permute.xlu0 %11246  ;;  %v11254_v56 = vunpack.i.h.bf16 %v11252_v39  ;;  %v11253_v58 = vunpack.i.l.bf16 %v11252_v39 }
0x2676   :  { %v11249_v2 = vunpack.i.h.bf16 %v11247_v6  ;;  %v11248_v0 = vunpack.i.l.bf16 %v11247_v6 }
0x2677   :  { %v10897_v46 = vpack.c.bf16 %v11254_v56, %v11253_v58 }
0x2678   :  { %v10891_v3 = vpack.c.bf16 %v11249_v2, %v11248_v0  ;;  %v4327_v18 = vpop.permute.xlu1 %4326 }
0x2679   :  { %v4329_v1 = vpop.permute.xlu0 %4328 }
0x267a   :  { %10893 = vmatprep.subr.msk.bf16.mxu1 %vm12387_vm11, %v10891_v3 }
0x267b   :  { %v11463_v51 = vpop.eup %11462  ;;  %10896 = vmatpush3.bf16.msk.msra.mxu1 %vm12387_vm11, %v10891_v3 }
0x267c   :  { %v11465_v24 = vpop.eup %11464  ;;  %10899 = vmatprep.subr.msk.bf16.mxu1 %vm12356_vm6, %v10897_v46  ;;  %v4237_v50 = vmul.f32 %v11463_v51, %v11459_v45 }
0x267d   :  { %v4236_v17 = vmul.f32 %v11465_v24, %v11461_v30 }
0x267f   :  { %10021 = vmatprep.mubr.msk.f32.mxu1 %vm2469_vm8, %v4236_v17 }
0x2680   :  { %10022 = vmatmul.mubr.msk.f32.vlgmr.msra.gmra.mrb[42].mxu1 %vm2469_vm8, %v4237_v50 }
0x2681   :  { %10028 = vmatprep.mubr.msk.f32.mxu1 %vm1910_vm3, %v4327_v18 }
0x2684   :  { %10902 = vmatpush3.bf16.xpose.msk.msra.mxu1 %vm12356_vm6, %v10897_v46 }
0x268b   :  { %10029 = vmatmul.mubr.msk.f32.vlgmr.msra.gmra.mrb[44].mxu1 %vm1910_vm3, %v4329_v1 }
0x2753   :  { %v10023_v27 = vpop.f32.mrb[42].mxu1 }
0x2754   :  { %v4317_v60 = vpop.f32.mrb[43].mxu1 }
0x275e   :  { %v10030_v38 = vpop.f32.mrb[44].mxu1 }
0x275f   :  { %v4418_v42 = vmul.f32 0.35355338, %v10030_v38  ;;  %v4408_v43 = vpop.f32.mrb[45].mxu1 }
0x2760   :  { %v4417_v31 = vmul.f32 0.35355338, %v4408_v43 }
0x2761   :  { %v4420_v44 = vadd.f32 %v4418_v42, %v12372_v10 }
0x2762   :  { %v4419_v48 = vadd.f32 %v4417_v31, %v12374_v23 }
0x2763   :  { %v4424_v34 = vsel %vm2473_vm7, %v4420_v44, -inf }
0x2764   :  { %4425 = vmax.xlane.f32.xlu0 %v4424_v34  ;;  %v4421_v47 = vsel %vm2469_vm8, %v4419_v48, -inf }
0x2765   :  { %4422 = vmax.xlane.f32.xlu1 %v4421_v47 }
0x27f1   :  { %v4426_v53 = vpop.xlane.xlu0 %4425 }
0x27f2   :  { %v4428_v54 = vsub.f32 %v4420_v44, %v4426_v53  ;;  %v4423_v12 = vpop.xlane.xlu1 %4422 }
0x27f3   :  { %v4427_v61 = vsub.f32 %v4419_v48, %v4423_v12 }
0x27f4   :  { %v4431_v21 = vmul.f32 1.442695, %v4428_v54 }
0x27f5   :  { %v4429_v20 = vmul.f32 1.442695, %v4427_v61 }
0x27f6   :  { %11466 = vpow2.f32 %v4431_v21 }
0x27f7   :  { %11468 = vpow2.f32 %v4429_v20 }
0x2800   :  { %v11467_v15 = vpop.eup %11466 }
0x2801   :  { %v11469_v59 = vpop.eup %11468  ;;  %v4436_v10 = vsel %vm2473_vm7, %v11467_v15, 0.0 }
0x2802   :  { %4437 = vadd.xlane.f32.xlu1 %v4436_v10  ;;  %v4433_v23 = vsel %vm2469_vm8, %v11469_v59, 0.0  ;;  %v8853_v10 = vld [vmem:[%s13982_s6 + $0x30] sm:$0xff] }
0x2803   :  { %4434 = vadd.xlane.f32.xlu0 %v4433_v23 }
0x2813   :  { %11261 = vrot.lane.b32.xlu1 %v11260_v25, %s14022_s25  ;;  %v8854_v25 = vld [vmem:[%s13982_s6 + $0x38] sm:$0xff] }
0x2817   :  { %11266 = vrot.lane.b32.xlu1 %v11265_v35, %s14022_s25 }
0x2819   :  { %11256 = vrot.lane.b32.xlu0 %v12622_v52, %s14023_s26 }
0x281b   :  { %4535 = vrot.lane.b32.xlu1 %v12688_v33, %s14024_s21 }
0x281d   :  { %4533 = vrot.lane.b32.xlu0 %v12690_v37, %s14024_s21 }
0x281f   :  { %4543 = vrot.lane.b32.xlu1 %v10023_v27, %s14025_s22 }
0x2821   :  { %4541 = vrot.lane.b32.xlu0 %v4317_v60, %s14025_s22 }
0x288f   :  { %v4438_v28 = vpop.xlane.xlu1 %4437 }
0x2890   :  { %11470 = vrcp.f32 %v4438_v28  ;;  %v4435_v29 = vpop.xlane.xlu0 %4434  ;;  %v10921_v28 = vpack.c.bf16 %v8854_v25, %v8853_v10 }
0x2891   :  { %11472 = vrcp.f32 %v4435_v29 }
0x2893   :  { %v11262_v45 = vpop.permute.xlu1 %11261 }
0x2894   :  { %v11257_v63 = vpop.permute.xlu0 %11256  ;;  %v11264_v36 = vunpack.i.h.bf16 %v11262_v45  ;;  %v11263_v41 = vunpack.i.l.bf16 %v11262_v45 }
0x2895   :  { %v11259_v26 = vunpack.i.h.bf16 %v11257_v63  ;;  %v11258_v32 = vunpack.i.l.bf16 %v11257_v63 }
0x2896   :  { %v10909_v39 = vpack.c.bf16 %v11264_v36, %v11263_v41  ;;  %v8850_v36 = vld [vmem:[%s13981_s5 + $0x7] ss:$0 sm:$0xff] }
0x2897   :  { %v10903_v35 = vpack.c.bf16 %v11259_v26, %v11258_v32  ;;  %v11267_v30 = vpop.permute.xlu1 %11266 }
0x2898   :  { %v11269_v57 = vunpack.i.h.bf16 %v11267_v30  ;;  %v11268_v62 = vunpack.i.l.bf16 %v11267_v30  ;;  %v4534_v0 = vpop.permute.xlu0 %4533 }
0x2899   :  { %10905 = vmatprep.subr.msk.bf16.mxu0 %vm12387_vm11, %v10903_v35  ;;  %v4555_v51 = vsel %vm1910_vm3, %v12686_v16, %v4534_v0  ;;  %v8861_v0 = vld [vmem:[%s13983_s7 + $0x50] sm:$0xff] }
0x289a   :  { %v11471_v52 = vpop.eup %11470  ;;  %10908 = vmatpush3.bf16.msk.msra.mxu0 %vm12387_vm11, %v10903_v35  ;;  %v10913_v6 = vpack.c.bf16 %v11269_v57, %v11268_v62 }
0x289b   :  { %v11473_v33 = vpop.eup %11472  ;;  %v4442_v55 = vmul.f32 %v11471_v52, %v11467_v15  ;;  %10910 = vmatprep.subr.bf16.mxu0 %v10909_v39  ;;  %v4536_v2 = vpop.permute.xlu1 %4535  ;;  %v8851_v15 = vld [vmem:[%s13982_s6 + $0x20] sm:$0xff] }
0x289c   :  { %v4441_v37 = vmul.f32 %v11473_v33, %v11469_v59  ;;  %v4542_v46 = vpop.permute.xlu0 %4541  ;;  %v4556_v17 = vsel %vm1910_vm3, %v12684_v19, %v4536_v2  ;;  %v8852_v59 = vld [vmem:[%s13982_s6 + $0x28] sm:$0xff] }
0x289d   :  { %v4557_v50 = vsel %vm253_vm2, %v4555_v51, %v4542_v46  ;;  %v10917_v23 = vpack.c.bf16 %v8852_v59, %v8851_v15  ;;  %v8863_v46 = vld [vmem:[%s13983_s7 + $0x60] sm:$0xff] }
0x289e   :  { %10035 = vmatprep.mubr.msk.f32.mxu0 %vm2469_vm8, %v4441_v37  ;;  %v8849_v37 = vld [vmem:[%s13981_s5 + $0x6] ss:$0 sm:$0xff] }
0x289f   :  { %10036 = vmatmul.mubr.msk.f32.vlgmr.msra.gmra.mrb[40].mxu0 %vm2469_vm8, %v4442_v55  ;;  %v4544_v3 = vpop.permute.xlu1 %4543  ;;  %10918 = vmatprep.subr.bf16.mxu1 %v10917_v23 }
0x28a0   :  { %10912 = vmatpush3.bf16.msra.mxu0 %v10909_v39  ;;  %v4558_v1 = vsel %vm253_vm2, %v4556_v17, %v4544_v3  ;;  %10920 = vmatpush3.bf16.msra.mxu1 %v10917_v23  ;;  %v8862_v3 = vld [vmem:[%s13983_s7 + $0x58] sm:$0xff] }
0x28a1   :  { %10914 = vmatprep.subr.bf16.mxu0 %v10913_v6  ;;  %10922 = vmatprep.subr.bf16.mxu1 %v10921_v28  ;;  %v10929_v51 = vpack.c.bf16 %v8862_v3, %v8861_v0  ;;  %v12855_v3 = vld [vmem:[%s13977_s1 + $0x8] sm:$0xff] }
0x28a4   :  { %10916 = vmatpush3.bf16.msra.mxu0 %v10913_v6  ;;  %10924 = vmatpush3.bf16.msra.mxu1 %v10921_v28  ;;  %v8856_v6 = vld [vmem:[%s13984_s8 + $0x1] ss:$0 sm:$0xff] }
0x2972   :  { %v10037_v56 = vpop.f32.mrb[40].mxu0 }
0x2973   :  { %4551 = vrot.lane.b32.xlu1 %v10037_v56, %s14026_s19  ;;  %v4522_v58 = vpop.f32.mrb[41].mxu0  ;;  %v8859_v56 = vld [vmem:[%s13983_s7 + $0x40] sm:$0xff] }
0x2974   :  { %4549 = vrot.lane.b32.xlu0 %v4522_v58, %s14026_s19  ;;  %v8860_v58 = vld [vmem:[%s13983_s7 + $0x48] sm:$0xff] }
0x2975   :  { %v10925_v2 = vpack.c.bf16 %v8860_v58, %v8859_v56  ;;  %v4956_v56 = vld [vmem:[%s13985_s9 + $0x50] sm:$0xff] }
0x2977   :  { %10926 = vmatprep.subr.bf16.mxu0 %v10925_v2 }
0x2978   :  { %4660 = vrot.lane.b32.xlu0 %v12610_v22, %s14022_s25 }
0x29e5   :  { %v4552_v24 = vpop.permute.xlu1 %4551 }
0x29e6   :  { %v4550_v18 = vpop.permute.xlu0 %4549  ;;  %v4560_v22 = vsel %vm3225_vm12, %v4558_v1, %v4552_v24  ;;  %v8864_v24 = vld [vmem:[%s13983_s7 + $0x68] sm:$0xff] }
0x29e7   :  { %v4559_v27 = vsel %vm3225_vm12, %v4557_v50, %v4550_v18  ;;  %v10933_v17 = vpack.c.bf16 %v8864_v24, %v8863_v46  ;;  %v8865_v50 = vld [vmem:[%s13983_s7 + $0x70] sm:$0xff]  ;;  %v8866_v18 = vld [vmem:[%s13983_s7 + $0x78] sm:$0xff] }
0x29e8   :  { %10046 = vmatprep.mubr.msk.f32.mxu0 %vm2237_vm5, %v4559_v27  ;;  %v10937_v1 = vpack.c.bf16 %v8866_v18, %v8865_v50  ;;  %v12862_v46 = vld [vmem:[%s13977_s1 + $0x10] sm:$0x3] }
0x29e9   :  { %10047 = vmatmul.mubr.msk.f32.vlgmr.msra.gmra.mrb[42].mxu0 %vm2237_vm5, %v4560_v22 }
0x29ea   :  { %v4661_v38 = vpop.permute.xlu0 %4660  ;;  %10928 = vmatpush3.bf16.msra.mxu0 %v10925_v2  ;;  %v4957_v2 = vld [vmem:[%s13985_s9 + $0x58] sm:$0xff] }
0x29eb   :  { %10930 = vmatprep.subr.bf16.mxu0 %v10929_v51  ;;  %v10945_v0 = vpack.c.bf16 %v4957_v2, %v4956_v56 }
0x29ee   :  { %10932 = vmatpush3.bf16.msra.mxu0 %v10929_v51 }
0x29ef   :  { %10934 = vmatprep.subr.bf16.mxu0 %v10933_v17 }
0x29f2   :  { %10936 = vmatpush3.bf16.msra.mxu0 %v10933_v17 }
0x29f3   :  { %10938 = vmatprep.subr.bf16.mxu0 %v10937_v1 }
0x29f6   :  { %10940 = vmatpush3.bf16.msra.mxu0 %v10937_v1 }
0x29f7   :  { %10953 = vmatprep.subr.bf16.mxu0 %v11654_v5 }
0x2abc   :  { %v10048_v60 = vpop.f32.mrb[42].mxu0 }
0x2abd   :  { %v4659_v16 = vadd.f32 %v10048_v60, %v12563_v4  ;;  %v4649_v42 = vpop.f32.mrb[43].mxu0 }
0x2abe   :  { %v4658_v19 = vadd.f32 %v4649_v42, %v12561_v49 }
0x2abf   :  { %v12761_v43 = vadd.f32 %v4661_v38, %v4659_v16 }
0x2ac0   :  { %v12763_v31 = vadd.f32 %v4661_v38, %v4658_v19 }
0x2ac1   :  { %v4670_v44 = vsel %vm2241_vm4, %v12761_v43, 0.0 }
0x2ac2   :  { %4671 = vadd.xlane.f32.xlu0 %v4670_v44  ;;  %v4667_v48 = vsel %vm2237_vm5, %v12763_v31, 0.0 }
0x2ac3   :  { %4668 = vadd.xlane.f32.xlu1 %v4667_v48 }
0x2b4f   :  { %v4672_v34 = vpop.xlane.xlu0 %4671 }
0x2b50   :  { %v4674_v47 = vmul.f32 0.03125, %v4672_v34  ;;  %v4669_v53 = vpop.xlane.xlu1 %4668 }
0x2b51   :  { %v4673_v54 = vmul.f32 0.03125, %v4669_v53 }
0x2b52   :  { %v4676_v4 = vsub.f32 %v12761_v43, %v4674_v47 }
0x2b53   :  { %v4675_v49 = vsub.f32 %v12763_v31, %v4673_v54 }
0x2b54   :  { %v4678_v12 = vmul.f32 %v4676_v4, %v4676_v4 }
0x2b55   :  { %v4677_v61 = vmul.f32 %v4675_v49, %v4675_v49 }
0x2b56   :  { %v4682_v21 = vsel %vm2241_vm4, %v4678_v12, 0.0 }
0x2b57   :  { %4683 = vadd.xlane.f32.xlu1 %v4682_v21  ;;  %v4679_v20 = vsel %vm2237_vm5, %v4677_v61, 0.0 }
0x2b58   :  { %4680 = vadd.xlane.f32.xlu0 %v4679_v20 }
0x2b6e   :  { %4909 = vrot.lane.b32.xlu0 %v8856_v6, %s11658_s13 }
0x2b72   :  { %5051 = vrot.lane.b32.xlu0 %v12855_v3, %s11657_s23 }
0x2b76   :  { %5053 = vrot.lane.b32.xlu0 %v12862_v46, %s11657_s23 }
0x2be4   :  { %v4684_v29 = vpop.xlane.xlu1 %4683 }
0x2be5   :  { %v4686_v63 = vmul.f32 0.03125, %v4684_v29  ;;  %v4681_v26 = vpop.xlane.xlu0 %4680 }
0x2be6   :  { %v4685_v32 = vmul.f32 0.03125, %v4681_v26 }
0x2be7   :  { %v4688_v35 = vadd.f32 1e-06, %v4686_v63 }
0x2be8   :  { %v4687_v52 = vadd.f32 1e-06, %v4685_v32 }
0x2be9   :  { %11474 = vrsqrt.f32 %v4688_v35  ;;  %v4910_v28 = vpop.permute.xlu0 %4909 }
0x2bea   :  { %11476 = vrsqrt.f32 %v4687_v52 }
0x2bf3   :  { %v11475_v33 = vpop.eup %11474 }
0x2bf4   :  { %v11477_v55 = vpop.eup %11476  ;;  %v4692_v45 = vmul.f32 %v11475_v33, %v4676_v4 }
0x2bf5   :  { %v4691_v30 = vmul.f32 %v11477_v55, %v4675_v49 }
0x2bf6   :  { %v4698_v41 = vmul.f32 %v8849_v37, %v4692_v45 }
0x2bf7   :  { %v4697_v57 = vmul.f32 %v8849_v37, %v4691_v30 }
0x2bf8   :  { %v4704_v39 = vadd.f32 %v8850_v36, %v4698_v41 }
0x2bf9   :  { %v4703_v62 = vadd.f32 %v8850_v36, %v4697_v57 }
0x2bfb   :  { %10057 = vmatprep.mubr.msk.f32.mxu1 %vm2237_vm5, %v4703_v62  ;;  %v12835_v62 = vld [vmem:[%s13977_s1] sm:$0xff] }
0x2bfc   :  { %10058 = vmatmul.mubr.msk.f32.vlgmr.msra.gmra.mrb[46].mxu1 %vm2237_vm5, %v4704_v39  ;;  %v4954_v39 = vld [vmem:[%s13985_s9 + $0x40] sm:$0xff] }
0x2ccf   :  { %v10059_v27 = vpop.f32.mrb[46].mxu1 }
0x2cd0   :  { %v4796_v22 = vadd.f32 %v10059_v27, %v8856_v6  ;;  %v4790_v60 = vpop.f32.mrb[47].mxu1 }
0x2cd1   :  { %v4791_v38 = vadd.f32 %v8856_v6, %v4790_v60  ;;  %v4955_v6 = vld [vmem:[%s13985_s9 + $0x48] sm:$0xff] }
0x2cd2   :  { %v4802_v16 = vmul.f32 0.044715, %v4796_v22  ;;  %v4800_v15 = vmul.f32 0.5, %v4796_v22  ;;  %v10941_v58 = vpack.c.bf16 %v4955_v6, %v4954_v39 }
0x2cd3   :  { %v4801_v42 = vmul.f32 0.044715, %v4791_v38  ;;  %v4799_v21 = vmul.f32 0.5, %v4791_v38 }
0x2cd4   :  { %v4804_v19 = vmul.f32 %v4802_v16, %v4796_v22  ;;  %10942 = vmatprep.subr.bf16.mxu1 %v10941_v58 }
0x2cd5   :  { %v4803_v44 = vmul.f32 %v4801_v42, %v4791_v38  ;;  %10944 = vmatpush3.bf16.msra.mxu1 %v10941_v58 }
0x2cd6   :  { %v4806_v48 = vmul.f32 %v4804_v19, %v4796_v22  ;;  %10946 = vmatprep.subr.bf16.mxu1 %v10945_v0 }
0x2cd7   :  { %v4805_v34 = vmul.f32 %v4803_v44, %v4791_v38 }
0x2cd8   :  { %v4808_v47 = vadd.f32 %v4806_v48, %v4796_v22  ;;  %v8869_v22 = vld [vmem:[%s13985_s9 + $0x60] ss:$0 sm:$0xff] }
0x2cd9   :  { %v4807_v53 = vadd.f32 %v4805_v34, %v4791_v38  ;;  %10948 = vmatpush3.bf16.msra.mxu1 %v10945_v0  ;;  %v8870_v38 = vld [vmem:[%s13985_s9 + $0x61] ss:$0 sm:$0xff] }
0x2cda   :  { %v4810_v54 = vmul.f32 0.7978846, %v4808_v47  ;;  %10949 = vmatprep.subr.bf16.mxu1 %v11654_v5  ;;  %v8871_v47 = vld [vmem:[%s13985_s9 + $0x62] ss:$0 sm:$0xff]  ;;  %s14030_s9 = smov 56  }
0x2cdb   :  { %v4809_v4 = vmul.f32 0.7978846, %v4807_v53 }
0x2cdc   :  { %11478 = vtanh.f32 %v4810_v54 }
0x2cdd   :  { %11480 = vtanh.f32 %v4809_v4 }
0x2ce6   :  { %v11479_v49 = vpop.eup %11478 }
0x2ce7   :  { %v11481_v12 = vpop.eup %11480  ;;  %v4814_v61 = vadd.f32 1.0, %v11479_v49 }
0x2ce8   :  { %v4813_v20 = vadd.f32 1.0, %v11481_v12 }
0x2ce9   :  { %v4816_v10 = vmul.f32 %v4814_v61, %v4800_v15 }
0x2cea   :  { %v4815_v59 = vmul.f32 %v4813_v20, %v4799_v21  ;;  %v5052_v21 = vpop.permute.xlu0 %5051 }
0x2cec   :  { %10076 = vmatprep.mubr.msk.f32.mxu0 %vm93_vm0, %v4815_v59 }
0x2ced   :  { %10077 = vmatmul.mubr.msk.f32.vlgmr.msra.gmra.mrb[44].mxu0 %vm93_vm0, %v4816_v10 }
0x2cee   :  { %10111 = vmatprep.mubr.msk.f32.mxu0 %vm11655_vm1, %v11656_v40  ;;  %v5054_v20 = vpop.permute.xlu0 %5053 }
0x2dc0   :  { %v10078_v23 = vpop.f32.mrb[44].mxu0 }
0x2dc1   :  { %v4898_v25 = vpop.f32.mrb[45].mxu0  ;;  %v4908_v29 = vadd.f32 %v10078_v23, %v12761_v43  ;;  %v5045_v23 = vld [vmem:[%s13978_s2 + $0x12] sm:$0xff] }
0x2dc2   :  { %v4907_v63 = vadd.f32 %v4898_v25, %v12763_v31 }
0x2dc3   :  { %v4913_v32 = vadd.f32 %v4910_v28, %v4908_v29 }
0x2dc4   :  { %v4912_v26 = vadd.f32 %v4910_v28, %v4907_v63 }
0x2dc5   :  { %v4919_v52 = vsel %vm2241_vm4, %v4913_v32, 0.0 }
0x2dc6   :  { %v4916_v35 = vsel %vm2237_vm5, %v4912_v26, 0.0 }
0x2dc7   :  { %4917 = vadd.xlane.f32.xlu1 %v4916_v35 }
0x2dcb   :  { %4920 = vadd.xlane.f32.xlu1 %v4919_v52 }
0x2e54   :  { %v4918_v33 = vpop.xlane.xlu1 %4917 }
0x2e55   :  { %v4922_v37 = vmul.f32 0.03125, %v4918_v33 }
0x2e57   :  { %v4924_v55 = vsub.f32 %v4912_v26, %v4922_v37  ;;  %v5046_v26 = vld [vmem:[%s13978_s2 + $0x1a] sm:$0x3] }
0x2e58   :  { %v4921_v45 = vpop.xlane.xlu1 %4920 }
0x2e59   :  { %v4923_v30 = vmul.f32 0.03125, %v4921_v45  ;;  %v4926_v36 = vmul.f32 %v4924_v55, %v4924_v55 }
0x2e5b   :  { %v4925_v41 = vsub.f32 %v4913_v32, %v4923_v30  ;;  %v4928_v57 = vsel %vm2237_vm5, %v4926_v36, 0.0 }
0x2e5c   :  { %4929 = vadd.xlane.f32.xlu1 %v4928_v57 }
0x2e5d   :  { %v4927_v43 = vmul.f32 %v4925_v41, %v4925_v41 }
0x2e5f   :  { %v4931_v31 = vsel %vm2241_vm4, %v4927_v43, 0.0 }
0x2e60   :  { %4932 = vadd.xlane.f32.xlu1 %v4931_v31 }
0x2e71   :  { %5049 = vrot.lane.b32.xlu1 %v12835_v62, %s11657_s23 }
0x2ee9   :  { %v4930_v51 = vpop.xlane.xlu1 %4929 }
0x2eea   :  { %v4934_v24 = vmul.f32 0.03125, %v4930_v51 }
0x2eec   :  { %v4936_v17 = vadd.f32 1e-06, %v4934_v24  ;;  %v12921_v24 = vld [vmem:[%s13979_s3 + $0x40] sm:$0xff] }
0x2eed   :  { %v4933_v50 = vpop.xlane.xlu1 %4932 }
0x2eee   :  { %11482 = vrsqrt.f32 %v4936_v17  ;;  %v4935_v18 = vmul.f32 0.03125, %v4933_v50  ;;  %v12926_v17 = vld [vmem:[%s13979_s3 + $0x48] sm:$0xff] }
0x2eef   :  { %v10954_v50 = vpack.c.bf16 %v12926_v17, %v12921_v24 }
0x2ef0   :  { %v4937_v1 = vadd.f32 1e-06, %v4935_v18  ;;  %v12934_v18 = vld [vmem:[%s13979_s3 + $0x50] sm:$0xff] }
0x2ef1   :  { %v5050_v61 = vpop.permute.xlu1 %5049  ;;  %10955 = vmatpush3.bf16.msra.mxu0 %v10954_v50 }
0x2ef2   :  { %11484 = vrsqrt.f32 %v4937_v1  ;;  %10956 = vmatprep.subr.bf16.mxu0 %v11654_v5  ;;  %v12939_v1 = vld [vmem:[%s13979_s3 + $0x58] sm:$0xff] }
0x2ef8   :  { %v11483_v27 = vpop.eup %11482 }
0x2ef9   :  { %v4940_v60 = vmul.f32 %v11483_v27, %v4924_v55  ;;  %v10957_v27 = vpack.c.bf16 %v12939_v1, %v12934_v18 }
0x2efb   :  { %v4946_v16 = vmul.f32 %v8869_v22, %v4940_v60  ;;  %10958 = vmatpush3.bf16.msra.mxu0 %v10957_v27 }
0x2efc   :  { %v11485_v42 = vpop.eup %11484  ;;  %10963 = vmatprep.subr.bf16.mxu0 %v11654_v5 }
0x2efd   :  { %v4941_v19 = vmul.f32 %v11485_v42, %v4925_v41  ;;  %v4952_v44 = vadd.f32 %v8870_v38, %v4946_v16 }
0x2eff   :  { %v4947_v48 = vmul.f32 %v8869_v22, %v4941_v19  ;;  %10087 = vmatprep.mubr.msk.f32.mxu1 %vm2237_vm5, %v4952_v44 }
0x2f01   :  { %v4953_v34 = vadd.f32 %v8870_v38, %v4947_v48 }
0x2f03   :  { %10088 = vmatmul.mubr.msk.f32.vlgmr.msra.gmra.mrb[48].mxu1 %vm2237_vm5, %v4953_v34 }
0x2f04   :  { %10094 = vmatprep.mubr.msk.f32.mxu1 %vm11655_vm1, %v11656_v40 }
0x2fd6   :  { %v10089_v53 = vpop.f32.mrb[48].mxu1 }
0x2fd7   :  { %v5041_v54 = vadd.f32 %v10089_v53, %v8871_v47  ;;  %v5035_v4 = vpop.f32.mrb[49].mxu1  ;;  %v8880_v53 = vld [vmem:[%s13981_s5 + $0x8] ss:$0 sm:$0xff] }
0x2fd8   :  { %v5036_v49 = vadd.f32 %v8871_v47, %v5035_v4  ;;  %v8881_v4 = vld [vmem:[%s13981_s5 + $0x9] ss:$0 sm:$0xff] }
0x2fda   :  { %v10950_v12 = vpack.c.bf16 %v5041_v54, %v5036_v49 }
0x2fdc   :  { %10952 = vmatpush3.bf16.msk.msra.mxu1 %vm12387_vm11, %v10950_v12 }
0x2fdd   :  { %10959 = vmatprep.subr.bf16.mxu1 %v11654_v5 }
0x2fdf   :  { %10095 = vmatmul.mubr.msk.f32.vlgmr.msra.gmra.mrb[50].mxu1 %vm2469_vm8, %v5050_v61 }
0x2fe0   :  { %10097 = vmatprep.mubr.msk.f32.mxu1 %vm11655_vm1, %v11656_v40 }
0x2fe3   :  { %10098 = vmatmul.mubr.msk.f32.gmra.mrb[52].mxu1 %vm2469_vm8, %v5052_v21 }
0x2fe4   :  { %10100 = vmatprep.mubr.msk.f32.mxu1 %vm11655_vm1, %v11656_v40 }
0x2fe7   :  { %10101 = vmatmul.mubr.msk.f32.gmra.mrb[54].mxu1 %vm2469_vm8, %v5054_v20 }
0x2fe8   :  { %10126 = vmatprep.mubr.msk.f32.mxu1 %vm11655_vm1, %v11656_v40 }
0x30b2   :  { %v5130_v15 = vpop.f32.mrb[50].mxu1 }
0x30b3   :  { %v12894_v59 = vadd.f32 %v5130_v15, %v5044_v11  ;;  %v10096_v10 = vpop.f32.mrb[51].mxu1 }
0x30b5   :  { %v5147_v25 = vsel %vm2237_vm5, %v12894_v59, 0.0 }
0x30b6   :  { %5148 = vadd.xlane.f32.xlu0 %v5147_v25  ;;  %v5135_v28 = vpop.f32.mrb[52].mxu1 }
0x30b7   :  { %v12901_v29 = vadd.f32 %v5135_v28, %v5045_v23  ;;  %v10099_v63 = vpop.f32.mrb[53].mxu1 }
0x30b9   :  { %v5150_v32 = vsel %vm2237_vm5, %v12901_v29, 0.0 }
0x30ba   :  { %5151 = vadd.xlane.f32.xlu1 %v5150_v32  ;;  %v5140_v35 = vpop.f32.mrb[54].mxu1 }
0x30bb   :  { %v12908_v52 = vadd.f32 %v5140_v35, %v5046_v26  ;;  %v10102_v33 = vpop.f32.mrb[55].mxu1  ;;  %v12962_v26 = vld [vmem:[%s13980_s4 + $0x2] ss:$0 sm:$0xff] }
0x30bd   :  { %v5153_v37 = vsel %vm2241_vm4, %v12908_v52, 0.0 }
0x30be   :  { %5154 = vadd.xlane.f32.xlu0 %v5153_v37 }
0x3143   :  { %v5149_v55 = vpop.xlane.xlu0 %5148 }
0x3144   :  { %v5156_v45 = vmul.f32 0.03125, %v5149_v55 }
0x3146   :  { %v5159_v30 = vsub.f32 %v12894_v59, %v5156_v45 }
0x3147   :  { %v5152_v36 = vpop.xlane.xlu1 %5151 }
0x3148   :  { %v5157_v41 = vmul.f32 0.03125, %v5152_v36  ;;  %v5162_v57 = vmul.f32 %v5159_v30, %v5159_v30 }
0x314a   :  { %v5160_v43 = vsub.f32 %v12901_v29, %v5157_v41  ;;  %v5165_v31 = vsel %vm2237_vm5, %v5162_v57, 0.0 }
0x314b   :  { %5166 = vadd.xlane.f32.xlu0 %v5165_v31  ;;  %v5155_v39 = vpop.xlane.xlu0 %5154 }
0x314c   :  { %v5158_v6 = vmul.f32 0.03125, %v5155_v39  ;;  %v5163_v56 = vmul.f32 %v5160_v43, %v5160_v43 }
0x314e   :  { %v5161_v58 = vsub.f32 %v12908_v52, %v5158_v6  ;;  %v5168_v2 = vsel %vm2237_vm5, %v5163_v56, 0.0 }
0x314f   :  { %5169 = vadd.xlane.f32.xlu0 %v5168_v2 }
0x3150   :  { %v5164_v0 = vmul.f32 %v5161_v58, %v5161_v58 }
0x3152   :  { %v5171_v51 = vsel %vm2241_vm4, %v5164_v0, 0.0 }
0x3153   :  { %5172 = vadd.xlane.f32.xlu1 %v5171_v51 }
0x31d8   :  { %v5167_v22 = vpop.xlane.xlu0 %5166 }
0x31d9   :  { %v5174_v60 = vmul.f32 0.03125, %v5167_v22 }
0x31db   :  { %v5177_v38 = vadd.f32 1e-06, %v5174_v60 }
0x31dc   :  { %v5170_v16 = vpop.xlane.xlu0 %5169 }
0x31dd   :  { %11486 = vrsqrt.f32 %v5177_v38  ;;  %v5175_v42 = vmul.f32 0.03125, %v5170_v16 }
0x31df   :  { %v5178_v19 = vadd.f32 1e-06, %v5175_v42 }
0x31e0   :  { %v5173_v44 = vpop.xlane.xlu1 %5172 }
0x31e1   :  { %11488 = vrsqrt.f32 %v5178_v19  ;;  %v5176_v48 = vmul.f32 0.03125, %v5173_v44 }
0x31e3   :  { %v5179_v34 = vadd.f32 1e-06, %v5176_v48 }
0x31e5   :  { %11490 = vrsqrt.f32 %v5179_v34 }
0x31e7   :  { %v11487_v47 = vpop.eup %11486 }
0x31e8   :  { %v5183_v54 = vmul.f32 %v11487_v47, %v5159_v30 }
0x31ea   :  { %v5190_v49 = vmul.f32 %v8880_v53, %v5183_v54 }
0x31eb   :  { %v11489_v12 = vpop.eup %11488 }
0x31ec   :  { %v5197_v61 = vadd.f32 %v8881_v4, %v5190_v49  ;;  %v5184_v21 = vmul.f32 %v11489_v12, %v5160_v43 }
0x31ee   :  { %10112 = vmatmul.mubr.msk.f32.vlgmr.msra.gmra.mrb[46].mxu0 %vm2237_vm5, %v5197_v61  ;;  %v5191_v20 = vmul.f32 %v8880_v53, %v5184_v21 }
0x31ef   :  { %v11491_v11 = vpop.eup %11490  ;;  %10114 = vmatprep.mubr.msk.f32.mxu0 %vm11655_vm1, %v11656_v40 }
0x31f0   :  { %v5198_v15 = vadd.f32 %v8881_v4, %v5191_v20  ;;  %v5185_v10 = vmul.f32 %v11491_v11, %v5161_v58 }
0x31f2   :  { %10115 = vmatmul.mubr.msk.f32.gmra.mrb[48].mxu0 %vm2237_vm5, %v5198_v15  ;;  %v5192_v23 = vmul.f32 %v8880_v53, %v5185_v10 }
0x31f3   :  { %10117 = vmatprep.mubr.msk.f32.mxu0 %vm11655_vm1, %v11656_v40 }
0x31f4   :  { %v5199_v25 = vadd.f32 %v8881_v4, %v5192_v23 }
0x31f6   :  { %10118 = vmatmul.mubr.msk.f32.gmra.mrb[50].mxu0 %vm2237_vm5, %v5199_v25 }
0x31f7   :  { %10141 = vmatprep.mubr.msk.f32.mxu0 %vm11655_vm1, %v11656_v40 }
0x32c1   :  { %v5288_v28 = vpop.f32.mrb[46].mxu0 }
0x32c2   :  { %v10113_v63 = vpop.f32.mrb[47].mxu0  ;;  %v5289_v35 = vadd.f32 %v12962_v26, %v5288_v28 }
0x32c5   :  { %v5293_v32 = vpop.f32.mrb[48].mxu0 }
0x32c6   :  { %v5294_v33 = vadd.f32 %v12962_v26, %v5293_v32  ;;  %v10116_v37 = vpop.f32.mrb[49].mxu0 }
0x32c8   :  { %v12966_v55 = vpack.i.bf16 %v5294_v33, %v5289_v35 }
0x32c9   :  { %v5298_v45 = vpop.f32.mrb[50].mxu0 }
0x32ca   :  { %v12969_v30 = vadd.f32 %v12962_v26, %v5298_v45  ;;  %11271 = vrot.lane.b32.xlu0 %v12966_v55, %s11659_s17  ;;  %v10119_v36 = vpop.f32.mrb[51].mxu0 }
0x32cc   :  { %5309 = vrot.lane.b32.xlu1 %v12969_v30, %s11659_s17 }
0x32ce   :  { %5562 = vrot.lane.b32.xlu0 %v12969_v30, %s11661_s14 }
0x32d0   :  { %11276 = vrot.lane.b32.xlu1 %v12966_v55, %s11661_s14 }
0x32d2   :  { %5552 = vrot.lane.b32.xlu0 %v5289_v35, %s14014_s28 }
0x32d4   :  { %11281 = vrot.lane.b32.xlu1 %v12966_v55, %s14027_s12 }
0x32d6   :  { %5556 = vrot.lane.b32.xlu0 %v12969_v30, %s14014_s28 }
0x32d8   :  { %5554 = vrot.lane.b32.xlu1 %v5294_v33, %s14014_s28 }
0x32da   :  { %11286 = vrot.lane.b32.xlu0 %v12966_v55, %s14028_s0 }
0x32dc   :  { %5804 = vrot.lane.b32.xlu1 %v12969_v30, %s14027_s12 }
0x32de   :  { %5796 = vrot.lane.b32.xlu0 %v5294_v33, %s11657_s23 }
0x32e0   :  { %5794 = vrot.lane.b32.xlu1 %v5289_v35, %s11657_s23 }
0x32e2   :  { %6046 = vrot.lane.b32.xlu0 %v12969_v30, %s14028_s0 }
0x32e4   :  { %5798 = vrot.lane.b32.xlu1 %v12969_v30, %s11657_s23 }
0x32e6   :  { %6038 = vrot.lane.b32.xlu0 %v5294_v33, %s14029_s15 }
0x32e8   :  { %6036 = vrot.lane.b32.xlu1 %v5289_v35, %s14029_s15 }
0x32ea   :  { %5406 = vrot.lane.b32.xlu0 %v12835_v62, %s11674_s27 }
0x32ec   :  { %6040 = vrot.lane.b32.xlu1 %v12969_v30, %s14029_s15 }
0x32ee   :  { %5410 = vrot.lane.b32.xlu0 %v12862_v46, %s11674_s27 }
0x32f0   :  { %5408 = vrot.lane.b32.xlu1 %v12855_v3, %s11674_s27  ;;  %s11677_s27 = smov [#allocation2]  }
0x32f1   :  { %s8722_s30 = sshll.u32 %s11677_s27, 4  ;;  %s8723_s30 = int_to_ptr.vmem [resolvable:$true] %s8722_s30 }
0x32f2   :  { %5457 = vrot.lane.b32.xlu0 %v12969_v30, %s11658_s13  ;;  %s11630_s18 = scalar_lea.vmem %s8723_s30, 16  ;;  %s11634_s28 = scalar_lea.vmem %s8723_s30, 32 }
0x32f3   :  { %p11631_p0 = scmp.ne.s32.totalorder %s8723_s30, %s11630_s18  ;;  %p11635_p1 = scmp.lt.s32.totalorder %s8723_s30, %s8723_s30 }
0x32f4   :  { %11291 = vrot.lane.b32.xlu1 %v12966_v55, %s11658_s13  ;;  %p11636_p2 = scmp.lt.s32.totalorder %s11634_s28, %s11630_s18 }
0x32f6   :  { %p11637_p3 = por %p11636_p2, %p11635_p1 }
0x32f8   :  { %p11638_p4 = pnand %p11637_p3, %p11631_p0 }
0x333c   :  { %v11272_v41 = vpop.permute.xlu0 %11271 }
0x333d   :  { %v11274_v57 = vunpack.i.h.bf16 %v11272_v41  ;;  %v11273_v43 = vunpack.i.l.bf16 %v11272_v41 }
0x333e   :  { %v5310_v31 = vpop.permute.xlu1 %5309 }
0x333f   :  { %v10960_v39 = vpack.c.bf16 %v11274_v57, %v11273_v43 }
0x3340   :  { %v5563_v6 = vpop.permute.xlu0 %5562 }
0x3341   :  { %10962 = vmatpush3.bf16.xpose.msk.msra.mxu1 %vm12356_vm6, %v10960_v39 }
0x3342   :  { %v11277_v62 = vpop.permute.xlu1 %11276  ;;  %10124 = vmatprep.subr.mxu1 %v11656_v40 }
0x3343   :  { %v11279_v56 = vunpack.i.h.bf16 %v11277_v62  ;;  %v11278_v58 = vunpack.i.l.bf16 %v11277_v62 }
0x3344   :  { %v5553_v46 = vpop.permute.xlu0 %5552 }
0x3345   :  { %v10967_v51 = vpack.c.bf16 %v11279_v56, %v11278_v58 }
0x3346   :  { %v11282_v3 = vpop.permute.xlu1 %11281 }
0x3347   :  { %v11284_v38 = vunpack.i.h.bf16 %v11282_v3  ;;  %v11283_v16 = vunpack.i.l.bf16 %v11282_v3 }
0x3348   :  { %v5557_v2 = vpop.permute.xlu0 %5556 }
0x3349   :  { %10125 = vmatpush3.xpose.msk.msra.mxu1 %vm1910_vm3, %v5310_v31  ;;  %v10974_v44 = vpack.c.bf16 %v11284_v38, %v11283_v16 }
0x334a   :  { %v5555_v0 = vpop.permute.xlu1 %5554  ;;  %10966 = vmatprep.subr.bf16.mxu1 %v11654_v5 }
0x334c   :  { %v11287_v50 = vpop.permute.xlu0 %11286  ;;  %10127 = vmatmul.mubr.msk.f32.vlgmr.msra.gmra.mrb[56].mxu1 %vm1910_vm3, %v5289_v35 }
0x334d   :  { %10969 = vmatpush3.bf16.xpose.msk.msra.mxu1 %vm12356_vm6, %v10967_v51  ;;  %10129 = vmatprep.mubr.msk.f32.mxu1 %vm11655_vm1, %v11656_v40  ;;  %v11289_v53 = vunpack.i.h.bf16 %v11287_v50  ;;  %v11288_v54 = vunpack.i.l.bf16 %v11287_v50 }
0x334e   :  { %v5805_v27 = vpop.permute.xlu1 %5804  ;;  %10154 = vmatprep.subr.mxu1 %v11656_v40 }
0x334f   :  { %v10981_v12 = vpack.c.bf16 %v11289_v53, %v11288_v54 }
0x3350   :  { %v5797_v22 = vpop.permute.xlu0 %5796  ;;  %10130 = vmatmul.mubr.msk.f32.gmra.mrb[58].mxu1 %vm1910_vm3, %v5294_v33 }
0x3351   :  { %10132 = vmatprep.mubr.msk.f32.mxu1 %vm11655_vm1, %v11656_v40 }
0x3352   :  { %v5795_v60 = vpop.permute.xlu1 %5794 }
0x3354   :  { %10133 = vmatmul.mubr.msk.f32.gmra.mrb[60].mxu1 %vm1910_vm3, %v12969_v30  ;;  %v6047_v42 = vpop.permute.xlu0 %6046 }
0x3355   :  { %10155 = vmatpush3.xpose.msk.msra.mxu1 %vm1910_vm3, %v5563_v6  ;;  %10156 = vmatprep.mubr.msk.f32.mxu1 %vm11655_vm1, %v11656_v40 }
0x3356   :  { %v5799_v19 = vpop.permute.xlu1 %5798  ;;  %10973 = vmatprep.subr.bf16.mxu1 %v11654_v5 }
0x3358   :  { %10157 = vmatmul.mubr.msk.f32.vlgmr.msra.gmra.mrb[62].mxu1 %vm1910_vm3, %v5553_v46  ;;  %v6039_v34 = vpop.permute.xlu0 %6038 }
0x3359   :  { %10976 = vmatpush3.bf16.xpose.msk.msra.mxu1 %vm12356_vm6, %v10974_v44  ;;  %10159 = vmatprep.mubr.msk.f32.mxu1 %vm11655_vm1, %v11656_v40 }
0x335a   :  { %v6037_v48 = vpop.permute.xlu1 %6036  ;;  %10184 = vmatprep.subr.mxu1 %v11656_v40 }
0x335c   :  { %10160 = vmatmul.mubr.msk.f32.gmra.mrb[64].mxu1 %vm1910_vm3, %v5555_v0  ;;  %v13039_v4 = vpop.permute.xlu0 %5406 }
0x335d   :  { %10162 = vmatprep.mubr.msk.f32.mxu1 %vm11655_vm1, %v11656_v40 }
0x335e   :  { %v6041_v47 = vpop.permute.xlu1 %6040 }
0x3360   :  { %10163 = vmatmul.mubr.msk.f32.gmra.mrb[66].mxu1 %vm1910_vm3, %v5557_v2  ;;  %v13050_v11 = vpop.permute.xlu0 %5410 }
0x3361   :  { %10185 = vmatpush3.xpose.msk.msra.mxu1 %vm1910_vm3, %v5805_v27  ;;  %10186 = vmatprep.mubr.msk.f32.mxu1 %vm11655_vm1, %v11656_v40 }
0x3362   :  { %v13041_v49 = vpop.permute.xlu1 %5408  ;;  %10980 = vmatprep.subr.bf16.mxu1 %v11654_v5 }
0x3364   :  { %10187 = vmatmul.mubr.msk.f32.vlgmr.msra.gmra.mrb[68].mxu1 %vm1910_vm3, %v5795_v60  ;;  %v5458_v10 = vpop.permute.xlu0 %5457 }
0x3365   :  { %10983 = vmatpush3.bf16.xpose.msk.msra.mxu1 %vm12356_vm6, %v10981_v12  ;;  %10189 = vmatprep.mubr.msk.f32.mxu1 %vm11655_vm1, %v11656_v40 }
0x3366   :  { %v11292_v61 = vpop.permute.xlu1 %11291  ;;  %10214 = vmatprep.subr.mxu1 %v11656_v40 }
0x3367   :  { %v11294_v21 = vunpack.i.h.bf16 %v11292_v61  ;;  %v11293_v20 = vunpack.i.l.bf16 %v11292_v61 }
0x3368   :  { %10190 = vmatmul.mubr.msk.f32.gmra.mrb[70].mxu1 %vm1910_vm3, %v5797_v22 }
0x3369   :  { %v10964_v15 = vpack.c.bf16 %v11294_v21, %v11293_v20  ;;  %10192 = vmatprep.mubr.msk.f32.mxu1 %vm11655_vm1, %v11656_v40 }
0x336b   :  { %10965 = vmatpush3.bf16.msra.mxu0 %v10964_v15 }
0x336c   :  { %10193 = vmatmul.mubr.msk.f32.gmra.mrb[72].mxu1 %vm1910_vm3, %v5799_v19  ;;  %10139 = vmatprep.subr.mxu0 %v11656_v40 }
0x336d   :  { %10215 = vmatpush3.xpose.msk.msra.mxu1 %vm1910_vm3, %v6047_v42  ;;  %10216 = vmatprep.mubr.msk.f32.mxu1 %vm11655_vm1, %v11656_v40 }
0x336e   :  { %10987 = vmatprep.subr.bf16.mxu1 %v11654_v5 }
0x336f   :  { %10140 = vmatpush3.msk.msra.mxu0 %vm2504_vm9, %v5458_v10 }
0x3370   :  { %10217 = vmatmul.mubr.msk.f32.vlgmr.msra.gmra.mrb[74].mxu1 %vm1910_vm3, %v6037_v48  ;;  %10970 = vmatprep.subr.bf16.mxu0 %v11654_v5 }
0x3371   :  { %10219 = vmatprep.mubr.msk.f32.mxu1 %vm11655_vm1, %v11656_v40 }
0x3374   :  { %10220 = vmatmul.mubr.msk.f32.gmra.mrb[76].mxu1 %vm1910_vm3, %v6039_v34 }
0x3375   :  { %10222 = vmatprep.mubr.msk.f32.mxu1 %vm11655_vm1, %v11656_v40 }
0x3378   :  { %10223 = vmatmul.mubr.msk.f32.gmra.mrb[78].mxu1 %vm1910_vm3, %v6041_v47 }
0x3379   :  { %10248 = vmatprep.mubr.msk.f32.mxu1 %vm11655_vm1, %v11656_v40 }
0x341f   :  { %v5389_v23 = vpop.f32.mrb[56].mxu1 }
0x3420   :  { %v5403_v25 = vmul.f32 0.35355338, %v5389_v23  ;;  %v10128_v28 = vpop.f32.mrb[57].mxu1 }
0x3422   :  { %v13073_v63 = vadd.f32 %v13039_v4, %v5403_v25 }
0x3423   :  { %v5394_v32 = vpop.f32.mrb[58].mxu1 }
0x3424   :  { %v5404_v35 = vmul.f32 0.35355338, %v5394_v32  ;;  %v10131_v33 = vpop.f32.mrb[59].mxu1  ;;  %v5419_v37 = vsel %vm5418_vm13, %v13073_v63, -inf }
0x3425   :  { %5420 = vmax.xlane.f32.xlu1 %v5419_v37 }
0x3426   :  { %v13078_v45 = vadd.f32 %v13041_v49, %v5404_v35 }
0x3427   :  { %v5399_v36 = vpop.f32.mrb[60].mxu1 }
0x3428   :  { %v5405_v41 = vmul.f32 0.35355338, %v5399_v36  ;;  %v10134_v57 = vpop.f32.mrb[61].mxu1  ;;  %v5422_v43 = vsel %vm5418_vm13, %v13078_v45, -inf }
0x3429   :  { %5423 = vmax.xlane.f32.xlu0 %v5422_v43 }
0x342a   :  { %v13083_v31 = vadd.f32 %v13050_v11, %v5405_v41 }
0x342b   :  { %v5642_v39 = vpop.f32.mrb[62].mxu1 }
0x342c   :  { %v5656_v6 = vmul.f32 0.35355338, %v5642_v39  ;;  %v10158_v62 = vpop.f32.mrb[63].mxu1  ;;  %v5426_v46 = vsel %vm5425_vm14, %v13083_v31, -inf }
0x342d   :  { %5427 = vmax.xlane.f32.xlu0 %v5426_v46 }
0x342e   :  { %v13088_v3 = vadd.f32 %v5656_v6, %v13039_v4 }
0x342f   :  { %v5647_v56 = vpop.f32.mrb[64].mxu1 }
0x3430   :  { %v5657_v58 = vmul.f32 0.35355338, %v5647_v56  ;;  %v10161_v2 = vpop.f32.mrb[65].mxu1  ;;  %v5662_v0 = vsel %vm5418_vm13, %v13088_v3, -inf }
0x3431   :  { %5663 = vmax.xlane.f32.xlu1 %v5662_v0 }
0x3432   :  { %v13093_v51 = vadd.f32 %v5657_v58, %v13041_v49 }
0x3433   :  { %v5652_v50 = vpop.f32.mrb[66].mxu1 }
0x3434   :  { %v5658_v27 = vmul.f32 0.35355338, %v5652_v50  ;;  %v10164_v22 = vpop.f32.mrb[67].mxu1  ;;  %v5665_v60 = vsel %vm5418_vm13, %v13093_v51, -inf }
0x3435   :  { %5666 = vmax.xlane.f32.xlu0 %v5665_v60 }
0x3436   :  { %v13098_v38 = vadd.f32 %v5658_v27, %v13050_v11 }
0x3437   :  { %v5884_v16 = vpop.f32.mrb[68].mxu1 }
0x3438   :  { %v5898_v42 = vmul.f32 0.35355338, %v5884_v16  ;;  %v10188_v19 = vpop.f32.mrb[69].mxu1  ;;  %v5668_v44 = vsel %vm5425_vm14, %v13098_v38, -inf }
0x3439   :  { %5669 = vmax.xlane.f32.xlu1 %v5668_v44 }
0x343a   :  { %v13103_v48 = vadd.f32 %v5898_v42, %v13039_v4 }
0x343b   :  { %v5889_v34 = vpop.f32.mrb[70].mxu1 }
0x343c   :  { %v5899_v47 = vmul.f32 0.35355338, %v5889_v34  ;;  %v10191_v53 = vpop.f32.mrb[71].mxu1  ;;  %v5904_v54 = vsel %vm5418_vm13, %v13103_v48, -inf }
0x343d   :  { %5905 = vmax.xlane.f32.xlu0 %v5904_v54 }
0x343e   :  { %v5902_v12 = vadd.f32 %v5899_v47, %v13041_v49 }
0x343f   :  { %v5894_v61 = vpop.f32.mrb[72].mxu1 }
0x3440   :  { %v10194_v21 = vpop.f32.mrb[73].mxu1  ;;  %v5907_v20 = vsel %vm5418_vm13, %v5902_v12, -inf  ;;  %v5900_v43 = vmul.f32 0.35355338, %v5894_v61 }
0x3441   :  { %5908 = vmax.xlane.f32.xlu1 %v5907_v20 }
0x3442   :  { %v13121_v39 = vadd.f32 %v5900_v43, %v13050_v11 }
0x3443   :  { %v6126_v15 = vpop.f32.mrb[74].mxu1 }
0x3444   :  { %v6140_v10 = vmul.f32 0.35355338, %v6126_v15  ;;  %v10218_v23 = vpop.f32.mrb[75].mxu1  ;;  %v5910_v46 = vsel %vm5425_vm14, %v13121_v39, -inf }
0x3446   :  { %v6143_v25 = vadd.f32 %v6140_v10, %v13039_v4 }
0x3447   :  { %v6131_v28 = vpop.f32.mrb[76].mxu1 }
0x3448   :  { %v10221_v32 = vpop.f32.mrb[77].mxu1  ;;  %v6146_v35 = vsel %vm5418_vm13, %v6143_v25, -inf  ;;  %v6141_v6 = vmul.f32 0.35355338, %v6131_v28 }
0x3449   :  { %6147 = vmax.xlane.f32.xlu1 %v6146_v35 }
0x344a   :  { %v13124_v62 = vadd.f32 %v6141_v6, %v13041_v49 }
0x344b   :  { %v6136_v33 = vpop.f32.mrb[78].mxu1 }
0x344c   :  { %v6142_v37 = vmul.f32 0.35355338, %v6136_v33  ;;  %v10224_v36 = vpop.f32.mrb[79].mxu1  ;;  %v6149_v56 = vsel %vm5418_vm13, %v13124_v62, -inf }
0x344e   :  { %v13112_v41 = vadd.f32 %v6142_v37, %v13050_v11 }
0x3450   :  { %v6152_v57 = vsel %vm5425_vm14, %v13112_v41, -inf }
0x3451   :  { %6153 = vmax.xlane.f32.xlu1 %v6152_v57 }
0x3453   :  { %11296 = vrot.lane.b32.xlu0 %v12966_v55, %s14030_s9 }
0x3462   :  { %5699 = vrot.lane.b32.xlu1 %v12969_v30, %s14030_s9 }
0x3472   :  { %5911 = vmax.xlane.f32.xlu0 %v5910_v46 }
0x3476   :  { %6150 = vmax.xlane.f32.xlu0 %v6149_v56 }
0x34b2   :  { %v5421_v58 = vpop.xlane.xlu1 %5420 }
0x34b3   :  { %v5429_v2 = vsub.f32 %v13073_v63, %v5421_v58 }
0x34b5   :  { %v5432_v0 = vmul.f32 1.442695, %v5429_v2 }
0x34b6   :  { %v5424_v50 = vpop.xlane.xlu0 %5423 }
0x34b7   :  { %11492 = vpow2.f32 %v5432_v0  ;;  %v5430_v27 = vsub.f32 %v13078_v45, %v5424_v50 }
0x34b9   :  { %v5434_v22 = vmul.f32 1.442695, %v5430_v27 }
0x34ba   :  { %v5428_v28 = vpop.xlane.xlu0 %5427 }
0x34bb   :  { %11494 = vpow2.f32 %v5434_v22  ;;  %v5431_v32 = vsub.f32 %v13083_v31, %v5428_v28 }
0x34bd   :  { %v5436_v33 = vmul.f32 1.442695, %v5431_v32 }
0x34be   :  { %v5664_v60 = vpop.xlane.xlu1 %5663 }
0x34bf   :  { %v5671_v16 = vsub.f32 %v13088_v3, %v5664_v60 }
0x34c1   :  { %v13133_v42 = vpop.eup %11492  ;;  %v5674_v19 = vmul.f32 1.442695, %v5671_v16 }
0x34c2   :  { %v5438_v44 = vsel %vm5418_vm13, %v13133_v42, 0.0 }
0x34c3   :  { %11496 = vpow2.f32 %v5674_v19  ;;  %5439 = vadd.xlane.f32.xlu0 %v5438_v44 }
0x34c5   :  { %v13137_v34 = vpop.eup %11494 }
0x34c6   :  { %v5441_v63 = vsel %vm5418_vm13, %v13137_v34, 0.0  ;;  %v5670_v45 = vpop.xlane.xlu1 %5669 }
0x34c7   :  { %5442 = vadd.xlane.f32.xlu1 %v5441_v63  ;;  %v5673_v57 = vsub.f32 %v13098_v38, %v5670_v45 }
0x34c9   :  { %v5678_v6 = vmul.f32 1.442695, %v5673_v57 }
0x34cd   :  { %v13141_v47 = vpop.eup %11496 }
0x34ce   :  { %v5909_v53 = vpop.xlane.xlu1 %5908  ;;  %v5680_v3 = vsel %vm5418_vm13, %v13141_v47, 0.0 }
0x34cf   :  { %v5914_v54 = vsub.f32 %v5902_v12, %v5909_v53  ;;  %5681 = vadd.xlane.f32.xlu1 %v5680_v3  ;;  %v5667_v12 = vpop.xlane.xlu0 %5666 }
0x34d1   :  { %v5918_v61 = vmul.f32 1.442695, %v5914_v54 }
0x34d3   :  { %11498 = vpow2.f32 %v5918_v61  ;;  %v5906_v43 = vpop.xlane.xlu0 %5905 }
0x34d4   :  { %v5913_v46 = vsub.f32 %v13103_v48, %v5906_v43 }
0x34d6   :  { %v6148_v21 = vpop.xlane.xlu1 %6147  ;;  %v5916_v31 = vmul.f32 1.442695, %v5913_v46 }
0x34d7   :  { %v6155_v20 = vsub.f32 %v6143_v25, %v6148_v21  ;;  %v5672_v25 = vsub.f32 %v13093_v51, %v5667_v12  ;;  %v11297_v38 = vpop.permute.xlu0 %11296 }
0x34d8   :  { %v11299_v28 = vunpack.i.h.bf16 %v11297_v38  ;;  %v11298_v32 = vunpack.i.l.bf16 %v11297_v38 }
0x34d9   :  { %v6158_v15 = vmul.f32 1.442695, %v6155_v20  ;;  %11301 = vrot.lane.b32.xlu0 %v12966_v55, %s14031_s29  ;;  %v5676_v36 = vmul.f32 1.442695, %v5672_v25 }
0x34da   :  { %v10971_v25 = vpack.c.bf16 %v11299_v28, %v11298_v32 }
0x34db   :  { %11500 = vpow2.f32 %v6158_v15 }
0x34dc   :  { %11502 = vpow2.f32 %v5436_v33 }
0x34dd   :  { %v13147_v10 = vpop.eup %11498  ;;  %11504 = vpow2.f32 %v5676_v36 }
0x34de   :  { %v5925_v23 = vsel %vm5418_vm13, %v13147_v10, 0.0  ;;  %11506 = vpow2.f32 %v5678_v6  ;;  %v6154_v16 = vpop.xlane.xlu1 %6153 }
0x34df   :  { %5926 = vadd.xlane.f32.xlu1 %v5925_v23  ;;  %11508 = vpow2.f32 %v5916_v31  ;;  %v6157_v45 = vsub.f32 %v13112_v41, %v6154_v16 }
0x34e1   :  { %v6162_v3 = vmul.f32 1.442695, %v6157_v45 }
0x34e2   :  { %v5700_v20 = vpop.permute.xlu1 %5699 }
0x34e5   :  { %v13152_v35 = vpop.eup %11500 }
0x34e6   :  { %v6164_v37 = vsel %vm5418_vm13, %v13152_v35, 0.0  ;;  %v13159_v56 = vpop.eup %11502 }
0x34e7   :  { %6165 = vadd.xlane.f32.xlu1 %v6164_v37  ;;  %v5444_v51 = vsel %vm5425_vm14, %v13159_v56, 0.0  ;;  %v13163_v58 = vpop.eup %11504 }
0x34e8   :  { %v5683_v2 = vsel %vm5418_vm13, %v13163_v58, 0.0  ;;  %v13169_v0 = vpop.eup %11506 }
0x34e9   :  { %v5686_v50 = vsel %vm5425_vm14, %v13169_v0, 0.0  ;;  %v13173_v27 = vpop.eup %11508 }
0x34ea   :  { %v5922_v44 = vsel %vm5418_vm13, %v13173_v27, 0.0 }
0x34f8   :  { %5445 = vadd.xlane.f32.xlu0 %v5444_v51  ;;  %5941 = vrot.lane.b32.xlu1 %v12969_v30, %s14031_s29 }
0x34fc   :  { %5684 = vadd.xlane.f32.xlu0 %v5683_v2 }
0x34ff   :  { %v5912_v48 = vpop.xlane.xlu0 %5911 }
0x3500   :  { %v5915_v22 = vsub.f32 %v13121_v39, %v5912_v48  ;;  %5687 = vadd.xlane.f32.xlu0 %v5686_v50 }
0x3502   :  { %v5920_v60 = vmul.f32 1.442695, %v5915_v22 }
0x3503   :  { %v6151_v19 = vpop.xlane.xlu0 %6150 }
0x3504   :  { %11510 = vpow2.f32 %v5920_v60  ;;  %v6156_v63 = vsub.f32 %v13124_v62, %v6151_v19  ;;  %5923 = vadd.xlane.f32.xlu0 %v5922_v44 }
0x3506   :  { %v6160_v53 = vmul.f32 1.442695, %v6156_v63 }
0x3508   :  { %11512 = vpow2.f32 %v6160_v53 }
0x3509   :  { %11514 = vpow2.f32 %v6162_v3 }
0x350e   :  { %v13180_v54 = vpop.eup %11510 }
0x350f   :  { %v5928_v39 = vsel %vm5425_vm14, %v13180_v54, 0.0 }
0x3510   :  { %5929 = vadd.xlane.f32.xlu0 %v5928_v39 }
0x3512   :  { %v13184_v61 = vpop.eup %11512 }
0x3513   :  { %v6167_v21 = vsel %vm5418_vm13, %v13184_v61, 0.0  ;;  %v13188_v62 = vpop.eup %11514 }
0x3514   :  { %6168 = vadd.xlane.f32.xlu0 %v6167_v21  ;;  %v6170_v41 = vsel %vm5425_vm14, %v13188_v62, 0.0 }
0x351c   :  { %6171 = vadd.xlane.f32.xlu1 %v6170_v41 }
0x352a   :  { %11306 = vrot.lane.b32.xlu0 %v12966_v55, %s14023_s26 }
0x352e   :  { %6183 = vrot.lane.b32.xlu0 %v12969_v30, %s14023_s26 }
0x3550   :  { %v5440_v15 = vpop.xlane.xlu0 %5439 }
0x3551   :  { %11516 = vrcp.f32 %v5440_v15 }
0x3554   :  { %v5443_v23 = vpop.xlane.xlu1 %5442  ;;  %v11302_v30 = vpop.permute.xlu0 %11301 }
0x3555   :  { %11518 = vrcp.f32 %v5443_v23  ;;  %v11304_v38 = vunpack.i.h.bf16 %v11302_v30  ;;  %v11303_v2 = vunpack.i.l.bf16 %v11302_v30 }
0x3557   :  { %v10978_v60 = vpack.c.bf16 %v11304_v38, %v11303_v2 }
0x355b   :  { %v11517_v12 = vpop.eup %11516 }
0x355c   :  { %v5450_v33 = vmul.f32 %v11517_v12, %v13133_v42  ;;  %v5682_v42 = vpop.xlane.xlu1 %5681 }
0x355e   :  { %10142 = vmatmul.mubr.msk.f32.vlgmr.msra.gmra.mrb[52].mxu0 %vm5418_vm13, %v5450_v33  ;;  %v11310_v33 = vpack.i.bf16 %v12926_v17, %v12921_v24 }
0x355f   :  { %v11519_v37 = vpop.eup %11518  ;;  %10972 = vmatpush3.bf16.msra.mxu0 %v10971_v25  ;;  %10144 = vmatprep.mubr.msk.f32.mxu0 %vm11655_vm1, %v11656_v40 }
0x3560   :  { %10169 = vmatprep.subr.mxu0 %v11656_v40  ;;  %v5451_v55 = vmul.f32 %v11519_v37, %v13137_v34  ;;  %11311 = vrot.lane.b32.xlu0 %v11310_v33, %s14022_s25 }
0x3562   :  { %10145 = vmatmul.mubr.msk.f32.gmra.mrb[54].mxu0 %vm5418_vm13, %v5451_v55 }
0x3563   :  { %10170 = vmatpush3.msk.msra.mxu0 %vm2504_vm9, %v5700_v20  ;;  %10147 = vmatprep.mubr.msk.f32.mxu0 %vm11655_vm1, %v11656_v40 }
0x3564   :  { %10977 = vmatprep.subr.bf16.mxu0 %v11654_v5 }
0x356c   :  { %v5927_v34 = vpop.xlane.xlu1 %5926 }
0x3574   :  { %v6166_v50 = vpop.xlane.xlu1 %6165 }
0x3578   :  { %v5942_v19 = vpop.permute.xlu1 %5941 }
0x3585   :  { %v5446_v36 = vpop.xlane.xlu0 %5445 }
0x3586   :  { %11520 = vrcp.f32 %v5446_v36 }
0x3587   :  { %11522 = vrcp.f32 %v5682_v42 }
0x3589   :  { %v5685_v57 = vpop.xlane.xlu0 %5684 }
0x358a   :  { %11524 = vrcp.f32 %v5685_v57 }
0x358d   :  { %v5688_v43 = vpop.xlane.xlu0 %5687 }
0x358e   :  { %11526 = vrcp.f32 %v5688_v43 }
0x3590   :  { %v11521_v6 = vpop.eup %11520 }
0x3591   :  { %v5924_v46 = vpop.xlane.xlu0 %5923  ;;  %v5452_v31 = vmul.f32 %v11521_v6, %v13159_v56  ;;  %v11523_v51 = vpop.eup %11522 }
0x3592   :  { %11528 = vrcp.f32 %v5924_v46  ;;  %v5692_v48 = vmul.f32 %v11523_v51, %v13141_v47 }
0x3593   :  { %10148 = vmatmul.mubr.msk.f32.gmra.mrb[56].mxu0 %vm5418_vm13, %v5452_v31  ;;  %11530 = vrcp.f32 %v5927_v34 }
0x3594   :  { %10171 = vmatprep.mubr.msk.f32.mxu0 %vm11655_vm1, %v11656_v40  ;;  %v11525_v22 = vpop.eup %11524 }
0x3595   :  { %v5693_v56 = vmul.f32 %v11525_v22, %v13163_v58 }
0x3597   :  { %10172 = vmatmul.mubr.msk.f32.vlgmr.msra.gmra.mrb[58].mxu0 %vm5418_vm13, %v5692_v48 }
0x3598   :  { %10979 = vmatpush3.bf16.msra.mxu0 %v10978_v60  ;;  %10174 = vmatprep.mubr.msk.f32.mxu0 %vm11655_vm1, %v11656_v40  ;;  %v11527_v16 = vpop.eup %11526 }
0x3599   :  { %10199 = vmatprep.subr.mxu0 %v11656_v40  ;;  %v5694_v44 = vmul.f32 %v11527_v16, %v13169_v0 }
0x359b   :  { %10175 = vmatmul.mubr.msk.f32.gmra.mrb[60].mxu0 %vm5418_vm13, %v5693_v56 }
0x359c   :  { %10200 = vmatpush3.msk.msra.mxu0 %vm2504_vm9, %v5942_v19  ;;  %10177 = vmatprep.mubr.msk.f32.mxu0 %vm11655_vm1, %v11656_v40  ;;  %v11529_v63 = vpop.eup %11528 }
0x359d   :  { %v5930_v47 = vpop.xlane.xlu0 %5929  ;;  %10984 = vmatprep.subr.bf16.mxu0 %v11654_v5  ;;  %v5934_v58 = vmul.f32 %v11529_v63, %v13173_v27  ;;  %v11531_v53 = vpop.eup %11530 }
0x359e   :  { %11532 = vrcp.f32 %v5930_v47  ;;  %v5935_v3 = vmul.f32 %v11531_v53, %v13147_v10 }
0x359f   :  { %10178 = vmatmul.mubr.msk.f32.gmra.mrb[62].mxu0 %vm5418_vm13, %v5694_v44  ;;  %11534 = vrcp.f32 %v6166_v50 }
0x35a0   :  { %10201 = vmatprep.mubr.msk.f32.mxu0 %vm11655_vm1, %v11656_v40 }
0x35a1   :  { %v6169_v45 = vpop.xlane.xlu0 %6168 }
0x35a2   :  { %11536 = vrcp.f32 %v6169_v45 }
0x35a3   :  { %10202 = vmatmul.mubr.msk.f32.vlgmr.msra.gmra.mrb[64].mxu0 %vm5418_vm13, %v5934_v58 }
0x35a4   :  { %10204 = vmatprep.mubr.msk.f32.mxu0 %vm11655_vm1, %v11656_v40 }
0x35a5   :  { %v11307_v0 = vpop.permute.xlu0 %11306 }
0x35a6   :  { %v11309_v39 = vunpack.i.h.bf16 %v11307_v0  ;;  %v11308_v21 = vunpack.i.l.bf16 %v11307_v0 }
0x35a7   :  { %10205 = vmatmul.mubr.msk.f32.gmra.mrb[66].mxu0 %vm5418_vm13, %v5935_v3 }
0x35a8   :  { %v11533_v41 = vpop.eup %11532  ;;  %v10985_v20 = vpack.c.bf16 %v11309_v39, %v11308_v21  ;;  %10207 = vmatprep.mubr.msk.f32.mxu0 %vm11655_vm1, %v11656_v40 }
0x35a9   :  { %v6172_v27 = vpop.xlane.xlu1 %6171  ;;  %v5936_v15 = vmul.f32 %v11533_v41, %v13180_v54  ;;  %v11535_v23 = vpop.eup %11534 }
0x35aa   :  { %11538 = vrcp.f32 %v6172_v27  ;;  %10986 = vmatpush3.bf16.msra.mxu0 %v10985_v20  ;;  %v6176_v10 = vmul.f32 %v11535_v23, %v13152_v35  ;;  %v6184_v28 = vpop.permute.xlu0 %6183 }
0x35ab   :  { %10208 = vmatmul.mubr.msk.f32.gmra.mrb[68].mxu0 %vm5418_vm13, %v5936_v15  ;;  %10229 = vmatprep.subr.mxu0 %v11656_v40 }
0x35ac   :  { %10231 = vmatprep.mubr.msk.f32.mxu0 %vm11655_vm1, %v11656_v40  ;;  %v11537_v32 = vpop.eup %11536 }
0x35ad   :  { %v6177_v54 = vmul.f32 %v11537_v32, %v13184_v61  ;;  %v11315_v61 = vpack.i.bf16 %v12939_v1, %v12934_v18 }
0x35ae   :  { %10230 = vmatpush3.msk.msra.mxu0 %vm2504_vm9, %v6184_v28 }
0x35af   :  { %10232 = vmatmul.mubr.msk.f32.vlgmr.msra.gmra.mrb[70].mxu0 %vm5418_vm13, %v6176_v10  ;;  %10993 = vmatprep.subr.bf16.mxu0 %v11654_v5 }
0x35b0   :  { %10234 = vmatprep.mubr.msk.f32.mxu0 %vm11655_vm1, %v11656_v40  ;;  %11316 = vrot.lane.b32.xlu0 %v11315_v61, %s14022_s25 }
0x35b3   :  { %10235 = vmatmul.mubr.msk.f32.gmra.mrb[72].mxu0 %vm5418_vm13, %v6177_v54 }
0x35b4   :  { %v11539_v12 = vpop.eup %11538  ;;  %10237 = vmatprep.mubr.msk.f32.mxu0 %vm11655_vm1, %v11656_v40 }
0x35b5   :  { %v6178_v35 = vmul.f32 %v11539_v12, %v13188_v62 }
0x35b7   :  { %10238 = vmatmul.mubr.msk.f32.gmra.mrb[74].mxu0 %vm5418_vm13, %v6178_v35 }
0x35b8   :  { %10265 = vmatprep.mubr.msk.f32.mxu0 %vm11655_vm1, %v11656_v40 }
0x35d2   :  { %v11312_v25 = vpop.permute.xlu0 %11311 }
0x35d3   :  { %v11314_v37 = vunpack.i.h.bf16 %v11312_v25  ;;  %v11313_v55 = vunpack.i.l.bf16 %v11312_v25 }
0x35d5   :  { %v10988_v30 = vpack.c.bf16 %v11314_v37, %v11313_v55 }
0x35d7   :  { %10989 = vmatpush3.bf16.msra.mxu1 %v10988_v30 }
0x35d8   :  { %10990 = vmatprep.subr.bf16.mxu1 %v11654_v5 }
0x3622   :  { %v11317_v36 = vpop.permute.xlu0 %11316 }
0x3623   :  { %v11319_v57 = vunpack.i.h.bf16 %v11317_v36  ;;  %v11318_v43 = vunpack.i.l.bf16 %v11317_v36 }
0x3625   :  { %v10991_v6 = vpack.c.bf16 %v11319_v57, %v11318_v43 }
0x3627   :  { %10992 = vmatpush3.bf16.msra.mxu1 %v10991_v6 }
0x3628   :  { %10999 = vmatprep.subr.bf16.mxu1 %v11654_v5 }
0x3631   :  { %v5538_v24 = vpop.f32.mrb[52].mxu0 }
0x3632   :  { %v10143_v17 = vpop.f32.mrb[53].mxu0 }
0x3635   :  { %v5543_v62 = vpop.f32.mrb[54].mxu0 }
0x3636   :  { %v10146_v42 = vpop.f32.mrb[55].mxu0 }
0x3666   :  { %v5548_v18 = vpop.f32.mrb[56].mxu0 }
0x3667   :  { %v10149_v1 = vpop.f32.mrb[57].mxu0 }
0x366a   :  { %v5780_v34 = vpop.f32.mrb[58].mxu0 }
0x366b   :  { %6281 = vrot.lane.b32.xlu0 %v5780_v34, %s14024_s21  ;;  %v10173_v46 = vpop.f32.mrb[59].mxu0 }
0x366e   :  { %v5785_v31 = vpop.f32.mrb[60].mxu0 }
0x366f   :  { %v10176_v51 = vpop.f32.mrb[61].mxu0 }
0x3672   :  { %v5790_v38 = vpop.f32.mrb[62].mxu0 }
0x3673   :  { %v10179_v2 = vpop.f32.mrb[63].mxu0 }
0x3676   :  { %v6022_v48 = vpop.f32.mrb[64].mxu0 }
0x3677   :  { %6293 = vrot.lane.b32.xlu0 %v6022_v48, %s14025_s22  ;;  %v10203_v50 = vpop.f32.mrb[65].mxu0 }
0x367a   :  { %v6027_v22 = vpop.f32.mrb[66].mxu0 }
0x367b   :  { %6283 = vrot.lane.b32.xlu0 %v5785_v31, %s14024_s21  ;;  %v10206_v60 = vpop.f32.mrb[67].mxu0 }
0x367e   :  { %v6032_v56 = vpop.f32.mrb[68].mxu0 }
0x367f   :  { %6295 = vrot.lane.b32.xlu0 %v6027_v22, %s14025_s22  ;;  %v10209_v16 = vpop.f32.mrb[69].mxu0 }
0x3682   :  { %v6264_v19 = vpop.f32.mrb[70].mxu0 }
0x3683   :  { %6305 = vrot.lane.b32.xlu1 %v6264_v19, %s14026_s19  ;;  %v10233_v47 = vpop.f32.mrb[71].mxu0 }
0x3684   :  { %v8938_v47 = vld [vmem:[%s13982_s6 + $0x40] sm:$0xff] }
0x3686   :  { %v6269_v44 = vpop.f32.mrb[72].mxu0 }
0x3687   :  { %6297 = vrot.lane.b32.xlu1 %v6032_v56, %s14025_s22  ;;  %6307 = vrot.lane.b32.xlu0 %v6269_v44, %s14026_s19  ;;  %v10236_v63 = vpop.f32.mrb[73].mxu0  ;;  %v8939_v44 = vld [vmem:[%s13982_s6 + $0x48] sm:$0xff] }
0x3688   :  { %v10994_v63 = vpack.c.bf16 %v8939_v44, %v8938_v47 }
0x368a   :  { %v6274_v58 = vpop.f32.mrb[74].mxu0  ;;  %10995 = vmatpush3.bf16.msra.mxu0 %v10994_v63 }
0x368b   :  { %6285 = vrot.lane.b32.xlu0 %v5790_v38, %s14024_s21  ;;  %v10239_v45 = vpop.f32.mrb[75].mxu0  ;;  %6431 = vrot.lane.b32.xlu1 %v12962_v26, %s14022_s25 }
0x368c   :  { %10996 = vmatprep.subr.bf16.mxu0 %v11654_v5  ;;  %v8941_v45 = vld [vmem:[%s13982_s6 + $0x58] sm:$0xff] }
0x368f   :  { %6309 = vrot.lane.b32.xlu0 %v6274_v58, %s14026_s19  ;;  %v8940_v58 = vld [vmem:[%s13982_s6 + $0x50] sm:$0xff] }
0x36dd   :  { %v6282_v53 = vpop.permute.xlu0 %6281 }
0x36de   :  { %v6314_v39 = vsel %vm1910_vm3, %v5538_v24, %v6282_v53  ;;  %v10997_v53 = vpack.c.bf16 %v8941_v45, %v8940_v58 }
0x36e0   :  { %10998 = vmatpush3.bf16.msra.mxu0 %v10997_v53 }
0x36e1   :  { %11011 = vmatprep.subr.bf16.mxu0 %v11654_v5 }
0x36e9   :  { %v6294_v0 = vpop.permute.xlu0 %6293 }
0x36ea   :  { %v6317_v21 = vsel %vm253_vm2, %v6314_v39, %v6294_v0  ;;  %v13328_v0 = vld [vmem:[%s13984_s8 + $0x2] ss:$0 sm:$0xff] }
0x36ed   :  { %v6284_v3 = vpop.permute.xlu0 %6283 }
0x36ee   :  { %v6315_v15 = vsel %vm1910_vm3, %v5543_v62, %v6284_v3 }
0x36f1   :  { %v6296_v41 = vpop.permute.xlu0 %6295 }
0x36f2   :  { %v6318_v26 = vsel %vm253_vm2, %v6315_v15, %v6296_v41 }
0x36f5   :  { %v6306_v20 = vpop.permute.xlu1 %6305 }
0x36f6   :  { %v6320_v27 = vsel %vm3225_vm12, %v6317_v21, %v6306_v20 }
0x36f7   :  { %10249 = vmatmul.mubr.msk.f32.vlgmr.msra.gmra.mrb[80].mxu1 %vm2237_vm5, %v6320_v27 }
0x36f8   :  { %10251 = vmatprep.mubr.msk.f32.mxu1 %vm11655_vm1, %v11656_v40 }
0x36f9   :  { %v6308_v23 = vpop.permute.xlu0 %6307  ;;  %v6298_v54 = vpop.permute.xlu1 %6297 }
0x36fa   :  { %v6321_v10 = vsel %vm3225_vm12, %v6318_v26, %v6308_v23 }
0x36fb   :  { %10252 = vmatmul.mubr.msk.f32.gmra.mrb[82].mxu1 %vm2237_vm5, %v6321_v10  ;;  %v8936_v10 = vld [vmem:[%s13981_s5 + $0xa] ss:$0 sm:$0xff] }
0x36fc   :  { %10254 = vmatprep.mubr.msk.f32.mxu1 %vm11655_vm1, %v11656_v40 }
0x36fd   :  { %v6286_v28 = vpop.permute.xlu0 %6285  ;;  %v6432_v25 = vpop.permute.xlu1 %6431 }
0x36fe   :  { %v6316_v32 = vsel %vm1910_vm3, %v5548_v18, %v6286_v28 }
0x36ff   :  { %v6319_v35 = vsel %vm253_vm2, %v6316_v32, %v6298_v54  ;;  %v8937_v54 = vld [vmem:[%s13981_s5 + $0xb] ss:$0 sm:$0xff] }
0x3701   :  { %v6310_v12 = vpop.permute.xlu0 %6309 }
0x3702   :  { %v6322_v33 = vsel %vm3225_vm12, %v6319_v35, %v6310_v12 }
0x3703   :  { %10255 = vmatmul.mubr.msk.f32.gmra.mrb[84].mxu1 %vm2237_vm5, %v6322_v33 }
0x3704   :  { %10290 = vmatprep.mubr.msk.f32.mxu1 %vm11655_vm1, %v11656_v40 }
0x37ca   :  { %v6414_v61 = vpop.f32.mrb[80].mxu1 }
0x37cb   :  { %v6428_v37 = vadd.f32 %v6414_v61, %v12894_v59  ;;  %v10250_v55 = vpop.f32.mrb[81].mxu1 }
0x37cd   :  { %v13291_v30 = vadd.f32 %v6432_v25, %v6428_v37 }
0x37ce   :  { %v6419_v24 = vpop.f32.mrb[82].mxu1 }
0x37cf   :  { %v6429_v17 = vadd.f32 %v6419_v24, %v12901_v29  ;;  %v10253_v62 = vpop.f32.mrb[83].mxu1  ;;  %v6439_v42 = vsel %vm2237_vm5, %v13291_v30, 0.0 }
0x37d0   :  { %6440 = vadd.xlane.f32.xlu0 %v6439_v42  ;;  %v8947_v42 = vld [vmem:[%s13983_s7 + $0x80] sm:$0xff] }
0x37d1   :  { %v13296_v36 = vadd.f32 %v6432_v25, %v6429_v17 }
0x37d3   :  { %v6442_v57 = vsel %vm2237_vm5, %v13296_v36, 0.0 }
0x37d4   :  { %6443 = vadd.xlane.f32.xlu1 %v6442_v57  ;;  %v8948_v57 = vld [vmem:[%s13983_s7 + $0x88] sm:$0xff] }
0x37d6   :  { %v6424_v43 = vpop.f32.mrb[84].mxu1 }
0x37d7   :  { %v6430_v59 = vadd.f32 %v6424_v43, %v12908_v52  ;;  %v10256_v6 = vpop.f32.mrb[85].mxu1  ;;  %v11000_v43 = vpack.c.bf16 %v8948_v57, %v8947_v42 }
0x37d8   :  { %v8950_v6 = vld [vmem:[%s13983_s7 + $0x98] sm:$0xff] }
0x37d9   :  { %v13301_v18 = vadd.f32 %v6432_v25, %v6430_v59  ;;  %11001 = vmatpush3.bf16.msra.mxu1 %v11000_v43  ;;  %v8949_v59 = vld [vmem:[%s13983_s7 + $0x90] sm:$0xff] }
0x37da   :  { %11002 = vmatprep.subr.bf16.mxu1 %v11654_v5 }
0x37db   :  { %v6445_v29 = vsel %vm2241_vm4, %v13301_v18, 0.0 }
0x37dc   :  { %6446 = vadd.xlane.f32.xlu0 %v6445_v29  ;;  %v11003_v29 = vpack.c.bf16 %v8950_v6, %v8949_v59 }
0x37de   :  { %11004 = vmatpush3.bf16.msra.mxu1 %v11003_v29 }
0x37df   :  { %11005 = vmatprep.subr.bf16.mxu1 %v11654_v5 }
0x385d   :  { %v6441_v1 = vpop.xlane.xlu0 %6440 }
0x385e   :  { %v6448_v34 = vmul.f32 0.03125, %v6441_v1  ;;  %v8951_v1 = vld [vmem:[%s13983_s7 + $0xa0] sm:$0xff] }
0x3860   :  { %v6451_v46 = vsub.f32 %v13291_v30, %v6448_v34  ;;  %v8952_v34 = vld [vmem:[%s13983_s7 + $0xa8] sm:$0xff] }
0x3861   :  { %v6444_v31 = vpop.xlane.xlu1 %6443 }
0x3862   :  { %v6449_v51 = vmul.f32 0.03125, %v6444_v31  ;;  %v6454_v38 = vmul.f32 %v6451_v46, %v6451_v46  ;;  %v8953_v31 = vld [vmem:[%s13983_s7 + $0xb0] sm:$0xff] }
0x3864   :  { %v6452_v2 = vsub.f32 %v13296_v36, %v6449_v51  ;;  %v6457_v48 = vsel %vm2237_vm5, %v6454_v38, 0.0  ;;  %v8954_v51 = vld [vmem:[%s13983_s7 + $0xb8] sm:$0xff] }
0x3865   :  { %6458 = vadd.xlane.f32.xlu0 %v6457_v48  ;;  %v11009_v38 = vpack.c.bf16 %v8954_v51, %v8953_v31 }
0x3866   :  { %v6455_v52 = vmul.f32 %v6452_v2, %v6452_v2 }
0x3868   :  { %v6460_v50 = vsel %vm2237_vm5, %v6455_v52, 0.0 }
0x3869   :  { %6461 = vadd.xlane.f32.xlu1 %v6460_v50  ;;  %v6447_v22 = vpop.xlane.xlu0 %6446 }
0x386a   :  { %v6450_v60 = vmul.f32 0.03125, %v6447_v22 }
0x386c   :  { %v6453_v56 = vsub.f32 %v13301_v18, %v6450_v60 }
0x386e   :  { %v6456_v16 = vmul.f32 %v6453_v56, %v6453_v56 }
0x3870   :  { %v6463_v19 = vsel %vm2241_vm4, %v6456_v16, 0.0 }
0x3871   :  { %6464 = vadd.xlane.f32.xlu0 %v6463_v19 }
0x387a   :  { %6722 = vrot.lane.b32.xlu1 %v13328_v0, %s11658_s13 }
0x38f2   :  { %v6459_v3 = vpop.xlane.xlu0 %6458 }
0x38f3   :  { %v6466_v39 = vmul.f32 0.03125, %v6459_v3 }
0x38f5   :  { %v6469_v21 = vadd.f32 1e-06, %v6466_v39 }
0x38f6   :  { %v6462_v41 = vpop.xlane.xlu1 %6461 }
0x38f7   :  { %11540 = vrsqrt.f32 %v6469_v21  ;;  %v6467_v20 = vmul.f32 0.03125, %v6462_v41 }
0x38f9   :  { %v6470_v27 = vadd.f32 1e-06, %v6467_v20 }
0x38fb   :  { %11542 = vrsqrt.f32 %v6470_v27 }
0x38fe   :  { %v6465_v15 = vpop.xlane.xlu0 %6464 }
0x38ff   :  { %v6468_v26 = vmul.f32 0.03125, %v6465_v15 }
0x3901   :  { %v11541_v23 = vpop.eup %11540  ;;  %v6471_v28 = vadd.f32 1e-06, %v6468_v26 }
0x3902   :  { %v6475_v32 = vmul.f32 %v11541_v23, %v6451_v46  ;;  %v11006_v46 = vpack.c.bf16 %v8952_v34, %v8951_v1 }
0x3903   :  { %11544 = vrsqrt.f32 %v6471_v28 }
0x3904   :  { %v6482_v12 = vmul.f32 %v8936_v10, %v6475_v32  ;;  %11007 = vmatpush3.bf16.msra.mxu1 %v11006_v46 }
0x3905   :  { %v11543_v35 = vpop.eup %11542  ;;  %11008 = vmatprep.subr.bf16.mxu1 %v11654_v5 }
0x3906   :  { %v6489_v33 = vadd.f32 %v8937_v54, %v6482_v12  ;;  %v6476_v61 = vmul.f32 %v11543_v35, %v6452_v2 }
0x3908   :  { %10266 = vmatmul.mubr.msk.f32.vlgmr.msra.gmra.mrb[76].mxu0 %vm2237_vm5, %v6489_v33  ;;  %v6483_v25 = vmul.f32 %v8936_v10, %v6476_v61  ;;  %11010 = vmatpush3.bf16.msra.mxu1 %v11009_v38 }
0x3909   :  { %10268 = vmatprep.mubr.msk.f32.mxu0 %vm11655_vm1, %v11656_v40  ;;  %11017 = vmatprep.subr.bf16.mxu1 %v11654_v5 }
0x390a   :  { %v6490_v37 = vadd.f32 %v8937_v54, %v6483_v25 }
0x390c   :  { %10269 = vmatmul.mubr.msk.f32.gmra.mrb[78].mxu0 %vm2237_vm5, %v6490_v37 }
0x390d   :  { %v11545_v55 = vpop.eup %11544  ;;  %10271 = vmatprep.mubr.msk.f32.mxu0 %vm11655_vm1, %v11656_v40 }
0x390e   :  { %v6477_v24 = vmul.f32 %v11545_v55, %v6453_v56 }
0x3910   :  { %v6484_v17 = vmul.f32 %v8936_v10, %v6477_v24 }
0x3912   :  { %v6491_v62 = vadd.f32 %v8937_v54, %v6484_v17  ;;  %v6723_v17 = vpop.permute.xlu1 %6722 }
0x3914   :  { %10272 = vmatmul.mubr.msk.f32.gmra.mrb[80].mxu0 %vm2237_vm5, %v6491_v62 }
0x3915   :  { %10307 = vmatprep.mubr.msk.f32.mxu0 %vm11655_vm1, %v11656_v40 }
0x39db   :  { %v6580_v2 = vpop.f32.mrb[76].mxu0 }
0x39dc   :  { %v6581_v48 = vadd.f32 %v13328_v0, %v6580_v2  ;;  %v10267_v52 = vpop.f32.mrb[77].mxu0 }
0x39de   :  { %v6597_v50 = vmul.f32 0.044715, %v6581_v48  ;;  %v6594_v28 = vmul.f32 0.5, %v6581_v48 }
0x39df   :  { %v6585_v22 = vpop.f32.mrb[78].mxu0 }
0x39e0   :  { %v6600_v60 = vmul.f32 %v6597_v50, %v6581_v48  ;;  %v6586_v56 = vadd.f32 %v13328_v0, %v6585_v22  ;;  %v10270_v16 = vpop.f32.mrb[79].mxu0 }
0x39e2   :  { %v6603_v19 = vmul.f32 %v6600_v60, %v6581_v48  ;;  %v6598_v47 = vmul.f32 0.044715, %v6586_v56  ;;  %v6595_v35 = vmul.f32 0.5, %v6586_v56 }
0x39e4   :  { %v6606_v44 = vadd.f32 %v6603_v19, %v6581_v48  ;;  %v6601_v63 = vmul.f32 %v6598_v47, %v6586_v56 }
0x39e6   :  { %v6609_v58 = vmul.f32 0.7978846, %v6606_v44  ;;  %v6604_v45 = vmul.f32 %v6601_v63, %v6586_v56 }
0x39e7   :  { %v6590_v53 = vpop.f32.mrb[80].mxu0 }
0x39e8   :  { %11546 = vtanh.f32 %v6609_v58  ;;  %v6607_v3 = vadd.f32 %v6604_v45, %v6586_v56  ;;  %v6591_v39 = vadd.f32 %v13328_v0, %v6590_v53  ;;  %v10273_v21 = vpop.f32.mrb[81].mxu0  ;;  %v13411_v45 = vld [vmem:[%s13979_s3 + $0x60] sm:$0xff]  ;;  %v13416_v53 = vld [vmem:[%s13979_s3 + $0x68] sm:$0xff] }
0x39e9   :  { %v13429_v21 = vld [vmem:[%s13979_s3 + $0x78] sm:$0xff] }
0x39ea   :  { %v6599_v41 = vmul.f32 0.044715, %v6591_v39  ;;  %v6610_v20 = vmul.f32 0.7978846, %v6607_v3  ;;  %v6596_v25 = vmul.f32 0.5, %v6591_v39  ;;  %v11012_v3 = vpack.c.bf16 %v13416_v53, %v13411_v45 }
0x39ec   :  { %v6602_v27 = vmul.f32 %v6599_v41, %v6591_v39  ;;  %11548 = vtanh.f32 %v6610_v20  ;;  %11013 = vmatpush3.bf16.msra.mxu0 %v11012_v3 }
0x39ed   :  { %11014 = vmatprep.subr.bf16.mxu0 %v11654_v5 }
0x39ee   :  { %v6605_v15 = vmul.f32 %v6602_v27, %v6591_v39 }
0x39f0   :  { %v6608_v26 = vadd.f32 %v6605_v15, %v6591_v39  ;;  %v13424_v39 = vld [vmem:[%s13979_s3 + $0x70] sm:$0xff] }
0x39f1   :  { %v11015_v41 = vpack.c.bf16 %v13429_v21, %v13424_v39 }
0x39f2   :  { %v11547_v23 = vpop.eup %11546  ;;  %v6611_v10 = vmul.f32 0.7978846, %v6608_v26 }
0x39f3   :  { %v6615_v32 = vadd.f32 1.0, %v11547_v23  ;;  %11016 = vmatpush3.bf16.msra.mxu0 %v11015_v41 }
0x39f4   :  { %11550 = vtanh.f32 %v6611_v10  ;;  %11021 = vmatprep.subr.bf16.mxu0 %v11654_v5 }
0x39f5   :  { %v6618_v54 = vmul.f32 %v6615_v32, %v6594_v28 }
0x39f6   :  { %v11549_v12 = vpop.eup %11548 }
0x39f7   :  { %10291 = vmatmul.mubr.msk.f32.vlgmr.msra.gmra.mrb[86].mxu1 %vm93_vm0, %v6618_v54  ;;  %v6616_v33 = vadd.f32 1.0, %v11549_v12  ;;  %v8960_v12 = vld [vmem:[%s13981_s5 + $0xc] ss:$0 sm:$0xff] }
0x39f8   :  { %10293 = vmatprep.mubr.msk.f32.mxu1 %vm11655_vm1, %v11656_v40 }
0x39f9   :  { %v6619_v0 = vmul.f32 %v6616_v33, %v6595_v35 }
0x39fb   :  { %10294 = vmatmul.mubr.msk.f32.gmra.mrb[88].mxu1 %vm93_vm0, %v6619_v0  ;;  %v8961_v0 = vld [vmem:[%s13981_s5 + $0xd] ss:$0 sm:$0xff] }
0x39fc   :  { %10296 = vmatprep.mubr.msk.f32.mxu1 %vm11655_vm1, %v11656_v40 }
0x39fe   :  { %v11551_v61 = vpop.eup %11550 }
0x39ff   :  { %v6617_v37 = vadd.f32 1.0, %v11551_v61 }
0x3a01   :  { %v6620_v55 = vmul.f32 %v6617_v37, %v6596_v25 }
0x3a03   :  { %10297 = vmatmul.mubr.msk.f32.gmra.mrb[90].mxu1 %vm93_vm0, %v6620_v55 }
0x3a04   :  { %10322 = vmatprep.mubr.msk.f32.mxu1 %vm11655_vm1, %v11656_v40 }
0x3aca   :  { %v6705_v24 = vpop.f32.mrb[86].mxu1 }
0x3acb   :  { %v6719_v62 = vadd.f32 %v6705_v24, %v13291_v30  ;;  %v10292_v42 = vpop.f32.mrb[87].mxu1 }
0x3acd   :  { %v13388_v57 = vadd.f32 %v6723_v17, %v6719_v62 }
0x3ace   :  { %v6710_v43 = vpop.f32.mrb[88].mxu1 }
0x3acf   :  { %v6720_v59 = vadd.f32 %v6710_v43, %v13296_v36  ;;  %v10295_v6 = vpop.f32.mrb[89].mxu1  ;;  %v6731_v29 = vsel %vm2237_vm5, %v13388_v57, 0.0 }
0x3ad0   :  { %6732 = vadd.xlane.f32.xlu0 %v6731_v29 }
0x3ad1   :  { %v13393_v1 = vadd.f32 %v6723_v17, %v6720_v59 }
0x3ad3   :  { %v6734_v34 = vsel %vm2237_vm5, %v13393_v1, 0.0 }
0x3ad4   :  { %6735 = vadd.xlane.f32.xlu0 %v6734_v34  ;;  %v13452_v34 = vld [vmem:[%s13980_s4 + $0x3] ss:$0 sm:$0xff]  ;;  %s14032_s4 = smov 120  }
0x3ad6   :  { %v6715_v46 = vpop.f32.mrb[90].mxu1 }
0x3ad7   :  { %v6721_v30 = vadd.f32 %v6715_v46, %v13301_v18  ;;  %v10298_v31 = vpop.f32.mrb[91].mxu1 }
0x3ad9   :  { %v13398_v51 = vadd.f32 %v6723_v17, %v6721_v30 }
0x3adb   :  { %v6737_v36 = vsel %vm2241_vm4, %v13398_v51, 0.0 }
0x3adc   :  { %6738 = vadd.xlane.f32.xlu0 %v6737_v36 }
0x3b5d   :  { %v6733_v38 = vpop.xlane.xlu0 %6732 }
0x3b5e   :  { %v6740_v2 = vmul.f32 0.03125, %v6733_v38 }
0x3b60   :  { %v6743_v48 = vsub.f32 %v13388_v57, %v6740_v2 }
0x3b61   :  { %v6736_v52 = vpop.xlane.xlu0 %6735 }
0x3b62   :  { %v6741_v50 = vmul.f32 0.03125, %v6736_v52  ;;  %v6746_v22 = vmul.f32 %v6743_v48, %v6743_v48 }
0x3b64   :  { %v6744_v60 = vsub.f32 %v13393_v1, %v6741_v50  ;;  %v6749_v56 = vsel %vm2237_vm5, %v6746_v22, 0.0 }
0x3b65   :  { %6750 = vadd.xlane.f32.xlu0 %v6749_v56 }
0x3b66   :  { %v6747_v18 = vmul.f32 %v6744_v60, %v6744_v60 }
0x3b68   :  { %v6752_v16 = vsel %vm2237_vm5, %v6747_v18, 0.0 }
0x3b69   :  { %6753 = vadd.xlane.f32.xlu1 %v6752_v16  ;;  %v6739_v19 = vpop.xlane.xlu0 %6738 }
0x3b6a   :  { %v6742_v47 = vmul.f32 0.03125, %v6739_v19 }
0x3b6c   :  { %v6745_v44 = vsub.f32 %v13398_v51, %v6742_v47 }
0x3b6e   :  { %v6748_v63 = vmul.f32 %v6745_v44, %v6745_v44 }
0x3b70   :  { %v6755_v58 = vsel %vm2241_vm4, %v6748_v63, 0.0 }
0x3b71   :  { %6756 = vadd.xlane.f32.xlu0 %v6755_v58 }
0x3bf2   :  { %v6751_v20 = vpop.xlane.xlu0 %6750 }
0x3bf3   :  { %v6758_v27 = vmul.f32 0.03125, %v6751_v20 }
0x3bf5   :  { %v6761_v15 = vadd.f32 1e-06, %v6758_v27 }
0x3bf6   :  { %v6754_v26 = vpop.xlane.xlu1 %6753 }
0x3bf7   :  { %11552 = vrsqrt.f32 %v6761_v15  ;;  %v6759_v23 = vmul.f32 0.03125, %v6754_v26 }
0x3bf9   :  { %v6762_v10 = vadd.f32 1e-06, %v6759_v23 }
0x3bfb   :  { %11554 = vrsqrt.f32 %v6762_v10 }
0x3bfe   :  { %v6757_v28 = vpop.xlane.xlu0 %6756 }
0x3bff   :  { %v6760_v32 = vmul.f32 0.03125, %v6757_v28 }
0x3c01   :  { %v11553_v54 = vpop.eup %11552  ;;  %v6763_v35 = vadd.f32 1e-06, %v6760_v32 }
0x3c02   :  { %v6767_v33 = vmul.f32 %v11553_v54, %v6743_v48 }
0x3c03   :  { %11556 = vrsqrt.f32 %v6763_v35 }
0x3c04   :  { %v6774_v61 = vmul.f32 %v8960_v12, %v6767_v33 }
0x3c05   :  { %v11555_v25 = vpop.eup %11554 }
0x3c06   :  { %v6781_v37 = vadd.f32 %v8961_v0, %v6774_v61  ;;  %v6768_v55 = vmul.f32 %v11555_v25, %v6744_v60 }
0x3c08   :  { %10308 = vmatmul.mubr.msk.f32.vlgmr.msra.gmra.mrb[82].mxu0 %vm2237_vm5, %v6781_v37  ;;  %v6775_v24 = vmul.f32 %v8960_v12, %v6768_v55 }
0x3c09   :  { %10310 = vmatprep.mubr.msk.f32.mxu0 %vm11655_vm1, %v11656_v40 }
0x3c0a   :  { %v6782_v17 = vadd.f32 %v8961_v0, %v6775_v24 }
0x3c0c   :  { %10311 = vmatmul.mubr.msk.f32.gmra.mrb[84].mxu0 %vm2237_vm5, %v6782_v17 }
0x3c0d   :  { %v11557_v62 = vpop.eup %11556  ;;  %10313 = vmatprep.mubr.msk.f32.mxu0 %vm11655_vm1, %v11656_v40 }
0x3c0e   :  { %v6769_v42 = vmul.f32 %v11557_v62, %v6745_v44 }
0x3c10   :  { %v6776_v43 = vmul.f32 %v8960_v12, %v6769_v42 }
0x3c12   :  { %v6783_v59 = vadd.f32 %v8961_v0, %v6776_v43 }
0x3c14   :  { %10314 = vmatmul.mubr.msk.f32.gmra.mrb[86].mxu0 %vm2237_vm5, %v6783_v59 }
0x3c15   :  { %10337 = vmatprep.mubr.msk.f32.mxu0 %vm11655_vm1, %v11656_v40 }
0x3cdb   :  { %v6872_v6 = vpop.f32.mrb[82].mxu0 }
0x3cdc   :  { %v10309_v29 = vpop.f32.mrb[83].mxu0  ;;  %v6873_v30 = vadd.f32 %v13452_v34, %v6872_v6 }
0x3cdf   :  { %v6877_v46 = vpop.f32.mrb[84].mxu0 }
0x3ce0   :  { %v6878_v31 = vadd.f32 %v13452_v34, %v6877_v46  ;;  %v10312_v36 = vpop.f32.mrb[85].mxu0 }
0x3ce2   :  { %v13456_v38 = vpack.i.bf16 %v6878_v31, %v6873_v30 }
0x3ce4   :  { %11331 = vrot.lane.b32.xlu1 %v13456_v38, %s14027_s12  ;;  %11321 = vrot.lane.b32.xlu0 %v13456_v38, %s11659_s17 }
0x3ce7   :  { %v6882_v2 = vpop.f32.mrb[86].mxu0 }
0x3ce8   :  { %v13463_v48 = vadd.f32 %v13452_v34, %v6882_v2  ;;  %11336 = vrot.lane.b32.xlu1 %v13456_v38, %s14028_s0  ;;  %v10315_v52 = vpop.f32.mrb[87].mxu0 }
0x3cea   :  { %6893 = vrot.lane.b32.xlu0 %v13463_v48, %s11659_s17 }
0x3cec   :  { %7369 = vrot.lane.b32.xlu1 %v6878_v31, %s11657_s23 }
0x3cee   :  { %11326 = vrot.lane.b32.xlu0 %v13456_v38, %s11661_s14 }
0x3cf0   :  { %7619 = vrot.lane.b32.xlu1 %v13463_v48, %s14028_s0 }
0x3cf2   :  { %7125 = vrot.lane.b32.xlu0 %v6873_v30, %s14032_s4 }
0x3cf4   :  { %7611 = vrot.lane.b32.xlu1 %v6878_v31, %s14029_s15 }
0x3cf6   :  { %7135 = vrot.lane.b32.xlu0 %v13463_v48, %s11661_s14 }
0x3cfa   :  { %7127 = vrot.lane.b32.xlu0 %v6878_v31, %s14032_s4 }
0x3cfe   :  { %7129 = vrot.lane.b32.xlu0 %v13463_v48, %s14032_s4 }
0x3d02   :  { %7377 = vrot.lane.b32.xlu0 %v13463_v48, %s14027_s12 }
0x3d06   :  { %7367 = vrot.lane.b32.xlu0 %v6873_v30, %s11657_s23 }
0x3d0a   :  { %7371 = vrot.lane.b32.xlu0 %v13463_v48, %s11657_s23 }
0x3d0e   :  { %7609 = vrot.lane.b32.xlu0 %v6873_v30, %s14029_s15 }
0x3d12   :  { %7613 = vrot.lane.b32.xlu0 %v13463_v48, %s14029_s15 }
0x3d56   :  { %v11322_v50 = vpop.permute.xlu0 %11321  ;;  %v11332_v3 = vpop.permute.xlu1 %11331 }
0x3d57   :  { %v11324_v22 = vunpack.i.h.bf16 %v11322_v50  ;;  %v11323_v60 = vunpack.i.l.bf16 %v11322_v50  ;;  %v11334_v20 = vunpack.i.h.bf16 %v11332_v3  ;;  %v11333_v27 = vunpack.i.l.bf16 %v11332_v3 }
0x3d59   :  { %v11018_v56 = vpack.c.bf16 %v11324_v22, %v11323_v60  ;;  %v11032_v15 = vpack.c.bf16 %v11334_v20, %v11333_v27 }
0x3d5a   :  { %v11337_v23 = vpop.permute.xlu1 %11336 }
0x3d5b   :  { %11020 = vmatpush3.bf16.xpose.msk.msra.mxu1 %vm12356_vm6, %v11018_v56  ;;  %v11339_v28 = vunpack.i.h.bf16 %v11337_v23  ;;  %v11338_v32 = vunpack.i.l.bf16 %v11337_v23 }
0x3d5c   :  { %v6894_v18 = vpop.permute.xlu0 %6893  ;;  %10320 = vmatprep.subr.mxu1 %v11656_v40 }
0x3d5d   :  { %v11039_v54 = vpack.c.bf16 %v11339_v28, %v11338_v32 }
0x3d5e   :  { %v7370_v35 = vpop.permute.xlu1 %7369 }
0x3d60   :  { %v11327_v16 = vpop.permute.xlu0 %11326 }
0x3d61   :  { %v11329_v19 = vunpack.i.h.bf16 %v11327_v16  ;;  %v11328_v47 = vunpack.i.l.bf16 %v11327_v16 }
0x3d62   :  { %v7620_v0 = vpop.permute.xlu1 %7619 }
0x3d63   :  { %10321 = vmatpush3.xpose.msk.msra.mxu1 %vm1910_vm3, %v6894_v18  ;;  %v11025_v63 = vpack.c.bf16 %v11329_v19, %v11328_v47 }
0x3d64   :  { %v7126_v44 = vpop.permute.xlu0 %7125  ;;  %11024 = vmatprep.subr.bf16.mxu1 %v11654_v5 }
0x3d66   :  { %10323 = vmatmul.mubr.msk.f32.vlgmr.msra.gmra.mrb[92].mxu1 %vm1910_vm3, %v6873_v30  ;;  %v7612_v61 = vpop.permute.xlu1 %7611 }
0x3d67   :  { %11027 = vmatpush3.bf16.xpose.msk.msra.mxu1 %vm12356_vm6, %v11025_v63  ;;  %10325 = vmatprep.mubr.msk.f32.mxu1 %vm11655_vm1, %v11656_v40 }
0x3d68   :  { %v7136_v58 = vpop.permute.xlu0 %7135  ;;  %10350 = vmatprep.subr.mxu1 %v11656_v40 }
0x3d6a   :  { %10326 = vmatmul.mubr.msk.f32.gmra.mrb[94].mxu1 %vm1910_vm3, %v6878_v31 }
0x3d6b   :  { %10328 = vmatprep.mubr.msk.f32.mxu1 %vm11655_vm1, %v11656_v40 }
0x3d6c   :  { %v7128_v41 = vpop.permute.xlu0 %7127 }
0x3d6e   :  { %10329 = vmatmul.mubr.msk.f32.gmra.mrb[96].mxu1 %vm1910_vm3, %v13463_v48 }
0x3d6f   :  { %10351 = vmatpush3.xpose.msk.msra.mxu1 %vm1910_vm3, %v7136_v58  ;;  %10352 = vmatprep.mubr.msk.f32.mxu1 %vm11655_vm1, %v11656_v40 }
0x3d70   :  { %11031 = vmatprep.subr.bf16.mxu1 %v11654_v5  ;;  %v7130_v26 = vpop.permute.xlu0 %7129 }
0x3d72   :  { %10353 = vmatmul.mubr.msk.f32.vlgmr.msra.gmra.mrb[98].mxu1 %vm1910_vm3, %v7126_v44 }
0x3d73   :  { %11034 = vmatpush3.bf16.xpose.msk.msra.mxu1 %vm12356_vm6, %v11032_v15  ;;  %10355 = vmatprep.mubr.msk.f32.mxu1 %vm11655_vm1, %v11656_v40 }
0x3d74   :  { %10380 = vmatprep.subr.mxu1 %v11656_v40  ;;  %v7378_v10 = vpop.permute.xlu0 %7377 }
0x3d76   :  { %10356 = vmatmul.mubr.msk.f32.gmra.mrb[100].mxu1 %vm1910_vm3, %v7128_v41 }
0x3d77   :  { %10358 = vmatprep.mubr.msk.f32.mxu1 %vm11655_vm1, %v11656_v40 }
0x3d78   :  { %v7368_v12 = vpop.permute.xlu0 %7367 }
0x3d7a   :  { %10359 = vmatmul.mubr.msk.f32.gmra.mrb[102].mxu1 %vm1910_vm3, %v7130_v26 }
0x3d7b   :  { %10381 = vmatpush3.xpose.msk.msra.mxu1 %vm1910_vm3, %v7378_v10  ;;  %10382 = vmatprep.mubr.msk.f32.mxu1 %vm11655_vm1, %v11656_v40 }
0x3d7c   :  { %11038 = vmatprep.subr.bf16.mxu1 %v11654_v5  ;;  %v7372_v33 = vpop.permute.xlu0 %7371 }
0x3d7e   :  { %10383 = vmatmul.mubr.msk.f32.vlgmr.msra.gmra.mrb[104].mxu1 %vm1910_vm3, %v7368_v12 }
0x3d7f   :  { %11041 = vmatpush3.bf16.xpose.msk.msra.mxu1 %vm12356_vm6, %v11039_v54  ;;  %10385 = vmatprep.mubr.msk.f32.mxu1 %vm11655_vm1, %v11656_v40 }
0x3d80   :  { %10410 = vmatprep.subr.mxu1 %v11656_v40  ;;  %v7610_v7 = vpop.permute.xlu0 %7609 }
0x3d82   :  { %10386 = vmatmul.mubr.msk.f32.gmra.mrb[106].mxu1 %vm1910_vm3, %v7370_v35 }
0x3d83   :  { %10388 = vmatprep.mubr.msk.f32.mxu1 %vm11655_vm1, %v11656_v40 }
0x3d84   :  { %v7614_v25 = vpop.permute.xlu0 %7613 }
0x3d86   :  { %10389 = vmatmul.mubr.msk.f32.gmra.mrb[108].mxu1 %vm1910_vm3, %v7372_v33 }
0x3d87   :  { %10411 = vmatpush3.xpose.msk.msra.mxu1 %vm1910_vm3, %v7620_v0  ;;  %10412 = vmatprep.mubr.msk.f32.mxu1 %vm11655_vm1, %v11656_v40 }
0x3d88   :  { %11045 = vmatprep.subr.bf16.mxu1 %v11654_v5 }
0x3d8a   :  { %10413 = vmatmul.mubr.msk.f32.vlgmr.msra.gmra.mrb[110].mxu1 %vm1910_vm3, %v7610_v7 }
0x3d8b   :  { %10415 = vmatprep.mubr.msk.f32.mxu1 %vm11655_vm1, %v11656_v40 }
0x3d8e   :  { %10416 = vmatmul.mubr.msk.f32.gmra.mrb[112].mxu1 %vm1910_vm3, %v7612_v61 }
0x3d8f   :  { %10418 = vmatprep.mubr.msk.f32.mxu1 %vm11655_vm1, %v11656_v40 }
0x3d92   :  { %10419 = vmatmul.mubr.msk.f32.gmra.mrb[114].mxu1 %vm1910_vm3, %v7614_v25 }
0x3d93   :  { %10444 = vmatprep.mubr.msk.f32.mxu1 %vm11655_vm1, %v11656_v40 }
0x3e39   :  { %v6973_v37 = vpop.f32.mrb[92].mxu1 }
0x3e3a   :  { %v6987_v55 = vmul.f32 0.35355338, %v6973_v37  ;;  %v10324_v24 = vpop.f32.mrb[93].mxu1 }
0x3e3c   :  { %v13547_v17 = vadd.f32 %v6987_v55, %v13039_v4 }
0x3e3d   :  { %v6978_v62 = vpop.f32.mrb[94].mxu1 }
0x3e3e   :  { %v6988_v42 = vmul.f32 0.35355338, %v6978_v62  ;;  %v10327_v43 = vpop.f32.mrb[95].mxu1  ;;  %v6993_v59 = vsel %vm5418_vm13, %v13547_v17, -inf }
0x3e3f   :  { %6994 = vmax.xlane.f32.xlu1 %v6993_v59 }
0x3e40   :  { %v13552_v6 = vadd.f32 %v6988_v42, %v13041_v49 }
0x3e41   :  { %v6983_v29 = vpop.f32.mrb[96].mxu1 }
0x3e42   :  { %v6989_v46 = vmul.f32 0.35355338, %v6983_v29  ;;  %v10330_v30 = vpop.f32.mrb[97].mxu1  ;;  %v6996_v31 = vsel %vm5418_vm13, %v13552_v6, -inf }
0x3e43   :  { %6997 = vmax.xlane.f32.xlu0 %v6996_v31 }
0x3e44   :  { %v13557_v36 = vadd.f32 %v6989_v46, %v13050_v11 }
0x3e45   :  { %v7215_v2 = vpop.f32.mrb[98].mxu1 }
0x3e46   :  { %v7229_v52 = vmul.f32 0.35355338, %v7215_v2  ;;  %v10354_v50 = vpop.f32.mrb[99].mxu1  ;;  %v6999_v22 = vsel %vm5425_vm14, %v13557_v36, -inf }
0x3e47   :  { %7000 = vmax.xlane.f32.xlu0 %v6999_v22 }
0x3e48   :  { %v13562_v60 = vadd.f32 %v7229_v52, %v13039_v4 }
0x3e49   :  { %v7220_v56 = vpop.f32.mrb[100].mxu1 }
0x3e4a   :  { %v7230_v18 = vmul.f32 0.35355338, %v7220_v56  ;;  %v10357_v16 = vpop.f32.mrb[101].mxu1  ;;  %v7235_v19 = vsel %vm5418_vm13, %v13562_v60, -inf }
0x3e4b   :  { %7236 = vmax.xlane.f32.xlu1 %v7235_v19 }
0x3e4c   :  { %v13567_v47 = vadd.f32 %v7230_v18, %v13041_v49 }
0x3e4d   :  { %v7225_v44 = vpop.f32.mrb[102].mxu1 }
0x3e4e   :  { %v7231_v63 = vmul.f32 0.35355338, %v7225_v44  ;;  %v10360_v58 = vpop.f32.mrb[103].mxu1  ;;  %v7238_v3 = vsel %vm5418_vm13, %v13567_v47, -inf }
0x3e4f   :  { %7239 = vmax.xlane.f32.xlu0 %v7238_v3 }
0x3e50   :  { %v13572_v41 = vadd.f32 %v7231_v63, %v13050_v11 }
0x3e51   :  { %v7457_v20 = vpop.f32.mrb[104].mxu1 }
0x3e52   :  { %v7471_v27 = vmul.f32 0.35355338, %v7457_v20  ;;  %v10384_v15 = vpop.f32.mrb[105].mxu1  ;;  %v7241_v26 = vsel %vm5425_vm14, %v13572_v41, -inf }
0x3e53   :  { %7242 = vmax.xlane.f32.xlu1 %v7241_v26 }
0x3e54   :  { %v13577_v23 = vadd.f32 %v7471_v27, %v13039_v4 }
0x3e55   :  { %v7462_v10 = vpop.f32.mrb[106].mxu1 }
0x3e56   :  { %v7472_v28 = vmul.f32 0.35355338, %v7462_v10  ;;  %v10387_v32 = vpop.f32.mrb[107].mxu1  ;;  %v7477_v54 = vsel %vm5418_vm13, %v13577_v23, -inf }
0x3e57   :  { %7478 = vmax.xlane.f32.xlu0 %v7477_v54 }
0x3e58   :  { %v13582_v12 = vadd.f32 %v7472_v28, %v13041_v49 }
0x3e59   :  { %v7467_v35 = vpop.f32.mrb[108].mxu1 }
0x3e5a   :  { %v7473_v33 = vmul.f32 0.35355338, %v7467_v35  ;;  %v10390_v0 = vpop.f32.mrb[109].mxu1  ;;  %v7480_v7 = vsel %vm5418_vm13, %v13582_v12, -inf }
0x3e5b   :  { %7481 = vmax.xlane.f32.xlu1 %v7480_v7 }
0x3e5c   :  { %v13587_v61 = vadd.f32 %v7473_v33, %v13050_v11 }
0x3e5d   :  { %v7699_v25 = vpop.f32.mrb[110].mxu1 }
0x3e5e   :  { %v7713_v37 = vmul.f32 0.35355338, %v7699_v25  ;;  %v10414_v55 = vpop.f32.mrb[111].mxu1  ;;  %v7483_v24 = vsel %vm5425_vm14, %v13587_v61, -inf }
0x3e5f   :  { %7484 = vmax.xlane.f32.xlu0 %v7483_v24 }
0x3e60   :  { %v13592_v62 = vadd.f32 %v7713_v37, %v13039_v4 }
0x3e61   :  { %v7704_v42 = vpop.f32.mrb[112].mxu1 }
0x3e62   :  { %v7714_v43 = vmul.f32 0.35355338, %v7704_v42  ;;  %v10417_v59 = vpop.f32.mrb[113].mxu1  ;;  %v7719_v29 = vsel %vm5418_vm13, %v13592_v62, -inf }
0x3e63   :  { %7720 = vmax.xlane.f32.xlu1 %v7719_v29 }
0x3e64   :  { %v13597_v46 = vadd.f32 %v7714_v43, %v13041_v49 }
0x3e65   :  { %v7709_v30 = vpop.f32.mrb[114].mxu1 }
0x3e66   :  { %v7715_v31 = vmul.f32 0.35355338, %v7709_v30  ;;  %v10420_v2 = vpop.f32.mrb[115].mxu1  ;;  %v7722_v52 = vsel %vm5418_vm13, %v13597_v46, -inf }
0x3e67   :  { %7723 = vmax.xlane.f32.xlu0 %v7722_v52 }
0x3e68   :  { %v13602_v4 = vadd.f32 %v7715_v31, %v13050_v11 }
0x3e6a   :  { %v7725_v50 = vsel %vm5425_vm14, %v13602_v4, -inf }
0x3e6b   :  { %7726 = vmax.xlane.f32.xlu1 %v7725_v50 }
0x3e7c   :  { %11341 = vrot.lane.b32.xlu1 %v13456_v38, %s11658_s13 }
0x3e7d   :  { %7030 = vrot.lane.b32.xlu0 %v13463_v48, %s11658_s13 }
0x3e81   :  { %11346 = vrot.lane.b32.xlu0 %v13456_v38, %s14030_s9 }
0x3ecc   :  { %v6995_v49 = vpop.xlane.xlu1 %6994 }
0x3ecd   :  { %v7002_v22 = vsub.f32 %v13547_v17, %v6995_v49 }
0x3ecf   :  { %v7005_v56 = vmul.f32 1.442695, %v7002_v22 }
0x3ed0   :  { %v6998_v18 = vpop.xlane.xlu0 %6997 }
0x3ed1   :  { %11558 = vpow2.f32 %v7005_v56  ;;  %v7003_v11 = vsub.f32 %v13552_v6, %v6998_v18 }
0x3ed3   :  { %v7007_v16 = vmul.f32 1.442695, %v7003_v11 }
0x3ed4   :  { %v7001_v19 = vpop.xlane.xlu0 %7000 }
0x3ed5   :  { %11560 = vpow2.f32 %v7007_v16  ;;  %v7004_v44 = vsub.f32 %v13557_v36, %v7001_v19 }
0x3ed7   :  { %v7009_v63 = vmul.f32 1.442695, %v7004_v44 }
0x3ed8   :  { %v7237_v58 = vpop.xlane.xlu1 %7236 }
0x3ed9   :  { %11562 = vpow2.f32 %v7009_v63  ;;  %v7244_v3 = vsub.f32 %v13562_v60, %v7237_v58 }
0x3edb   :  { %v13616_v20 = vpop.eup %11558  ;;  %v7247_v27 = vmul.f32 1.442695, %v7244_v3 }
0x3edc   :  { %v7240_v15 = vpop.xlane.xlu0 %7239  ;;  %v7011_v17 = vsel %vm5418_vm13, %v13616_v20, 0.0 }
0x3edd   :  { %11564 = vpow2.f32 %v7247_v27  ;;  %v7245_v6 = vsub.f32 %v13567_v47, %v7240_v15  ;;  %7012 = vadd.xlane.f32.xlu0 %v7011_v17 }
0x3edf   :  { %v13621_v26 = vpop.eup %11560  ;;  %v7249_v10 = vmul.f32 1.442695, %v7245_v6 }
0x3ee0   :  { %v7243_v36 = vpop.xlane.xlu1 %7242  ;;  %v7014_v28 = vsel %vm5418_vm13, %v13621_v26, 0.0 }
0x3ee1   :  { %11566 = vpow2.f32 %v7249_v10  ;;  %v7246_v60 = vsub.f32 %v13572_v41, %v7243_v36  ;;  %7015 = vadd.xlane.f32.xlu1 %v7014_v28 }
0x3ee3   :  { %v13626_v32 = vpop.eup %11562  ;;  %v7251_v54 = vmul.f32 1.442695, %v7246_v60 }
0x3ee4   :  { %v7479_v35 = vpop.xlane.xlu0 %7478  ;;  %v7017_v33 = vsel %vm5425_vm14, %v13626_v32, 0.0 }
0x3ee5   :  { %11568 = vpow2.f32 %v7251_v54  ;;  %v7486_v47 = vsub.f32 %v13577_v23, %v7479_v35  ;;  %7018 = vadd.xlane.f32.xlu0 %v7017_v33 }
0x3ee7   :  { %v13631_v0 = vpop.eup %11564  ;;  %v7489_v7 = vmul.f32 1.442695, %v7486_v47 }
0x3ee8   :  { %v7482_v25 = vpop.xlane.xlu1 %7481  ;;  %v7253_v37 = vsel %vm5418_vm13, %v13631_v0, 0.0 }
0x3ee9   :  { %11570 = vpow2.f32 %v7489_v7  ;;  %v7487_v41 = vsub.f32 %v13582_v12, %v7482_v25  ;;  %7254 = vadd.xlane.f32.xlu1 %v7253_v37 }
0x3eeb   :  { %v13636_v55 = vpop.eup %11566  ;;  %v7491_v24 = vmul.f32 1.442695, %v7487_v41 }
0x3eec   :  { %v7485_v42 = vpop.xlane.xlu0 %7484  ;;  %v7256_v43 = vsel %vm5418_vm13, %v13636_v55, 0.0 }
0x3eed   :  { %11572 = vpow2.f32 %v7491_v24  ;;  %v7488_v23 = vsub.f32 %v13587_v61, %v7485_v42  ;;  %7257 = vadd.xlane.f32.xlu0 %v7256_v43 }
0x3eef   :  { %v13641_v59 = vpop.eup %11568  ;;  %v7493_v29 = vmul.f32 1.442695, %v7488_v23 }
0x3ef0   :  { %v7721_v30 = vpop.xlane.xlu1 %7720  ;;  %v7259_v31 = vsel %vm5425_vm14, %v13641_v59, 0.0 }
0x3ef1   :  { %11574 = vpow2.f32 %v7493_v29  ;;  %v7728_v12 = vsub.f32 %v13592_v62, %v7721_v30  ;;  %7260 = vadd.xlane.f32.xlu0 %v7259_v31 }
0x3ef3   :  { %v13646_v2 = vpop.eup %11570  ;;  %v7731_v52 = vmul.f32 1.442695, %v7728_v12 }
0x3ef4   :  { %v7495_v50 = vsel %vm5418_vm13, %v13646_v2, 0.0  ;;  %v7724_v44 = vpop.xlane.xlu0 %7723 }
0x3ef5   :  { %11576 = vpow2.f32 %v7731_v52  ;;  %7496 = vadd.xlane.f32.xlu0 %v7495_v50  ;;  %v7729_v27 = vsub.f32 %v13597_v46, %v7724_v44 }
0x3ef7   :  { %v13650_v61 = vpop.eup %11572  ;;  %v7733_v15 = vmul.f32 1.442695, %v7729_v27 }
0x3ef8   :  { %v7727_v49 = vpop.xlane.xlu1 %7726  ;;  %v7498_v22 = vsel %vm5418_vm13, %v13650_v61, 0.0  ;;  %v7031_v3 = vpop.permute.xlu0 %7030 }
0x3ef9   :  { %7499 = vadd.xlane.f32.xlu1 %v7498_v22  ;;  %v7730_v17 = vsub.f32 %v13602_v4, %v7727_v49  ;;  %11578 = vpow2.f32 %v7733_v15 }
0x3efb   :  { %v13654_v56 = vpop.eup %11574  ;;  %v7735_v6 = vmul.f32 1.442695, %v7730_v17 }
0x3efc   :  { %v11342_v18 = vpop.permute.xlu1 %11341  ;;  %v7501_v62 = vsel %vm5425_vm14, %v13654_v56, 0.0  ;;  %v11347_v46 = vpop.permute.xlu0 %11346 }
0x3efd   :  { %v11344_v11 = vunpack.i.h.bf16 %v11342_v18  ;;  %7502 = vadd.xlane.f32.xlu0 %v7501_v62  ;;  %v11343_v16 = vunpack.i.l.bf16 %v11342_v18  ;;  %11580 = vpow2.f32 %v7735_v6  ;;  %v11349_v33 = vunpack.i.h.bf16 %v11347_v46 }
0x3efe   :  { %v11348_v47 = vunpack.i.l.bf16 %v11347_v46 }
0x3eff   :  { %v13658_v19 = vpop.eup %11576  ;;  %v11022_v63 = vpack.c.bf16 %v11344_v11, %v11343_v16 }
0x3f00   :  { %v7737_v58 = vsel %vm5418_vm13, %v13658_v19, 0.0  ;;  %v11029_v37 = vpack.c.bf16 %v11349_v33, %v11348_v47 }
0x3f01   :  { %7738 = vadd.xlane.f32.xlu1 %v7737_v58  ;;  %11023 = vmatpush3.bf16.msra.mxu0 %v11022_v63 }
0x3f02   :  { %10335 = vmatprep.subr.mxu0 %v11656_v40 }
0x3f03   :  { %v13671_v10 = vpop.eup %11578 }
0x3f04   :  { %v7740_v36 = vsel %vm5418_vm13, %v13671_v10, 0.0 }
0x3f05   :  { %10336 = vmatpush3.msk.msra.mxu0 %vm2504_vm9, %v7031_v3 }
0x3f06   :  { %11028 = vmatprep.subr.bf16.mxu0 %v11654_v5 }
0x3f07   :  { %v13675_v28 = vpop.eup %11580 }
0x3f08   :  { %v7743_v60 = vsel %vm5425_vm14, %v13675_v28, 0.0 }
0x3f12   :  { %7272 = vrot.lane.b32.xlu1 %v13463_v48, %s14030_s9 }
0x3f13   :  { %11351 = vrot.lane.b32.xlu0 %v13456_v38, %s14031_s29 }
0x3f32   :  { %7741 = vadd.xlane.f32.xlu0 %v7740_v36 }
0x3f36   :  { %7744 = vadd.xlane.f32.xlu1 %v7743_v60 }
0x3f48   :  { %7514 = vrot.lane.b32.xlu0 %v13463_v48, %s14031_s29 }
0x3f4c   :  { %11356 = vrot.lane.b32.xlu0 %v13456_v38, %s14023_s26 }
0x3f50   :  { %7756 = vrot.lane.b32.xlu0 %v13463_v48, %s14023_s26  ;;  %s11675_s26 = smov 102  }
0x3f6a   :  { %v7013_v4 = vpop.xlane.xlu0 %7012 }
0x3f6b   :  { %11582 = vrcp.f32 %v7013_v4 }
0x3f6e   :  { %v7016_v54 = vpop.xlane.xlu1 %7015 }
0x3f6f   :  { %11584 = vrcp.f32 %v7016_v54 }
0x3f72   :  { %v7019_v35 = vpop.xlane.xlu0 %7018 }
0x3f73   :  { %11586 = vrcp.f32 %v7019_v35  ;;  %v11360_v35 = vpack.i.bf16 %v13416_v53, %v13411_v45 }
0x3f75   :  { %v11583_v7 = vpop.eup %11582  ;;  %11361 = vrot.lane.b32.xlu0 %v11360_v35, %s14022_s25 }
0x3f76   :  { %v7023_v25 = vmul.f32 %v11583_v7, %v13616_v20  ;;  %v7255_v43 = vpop.xlane.xlu1 %7254 }
0x3f77   :  { %11588 = vrcp.f32 %v7255_v43 }
0x3f78   :  { %10338 = vmatmul.mubr.msk.f32.vlgmr.msra.gmra.mrb[88].mxu0 %vm5418_vm13, %v7023_v25 }
0x3f79   :  { %v11585_v41 = vpop.eup %11584  ;;  %11030 = vmatpush3.bf16.msra.mxu0 %v11029_v37  ;;  %10340 = vmatprep.mubr.msk.f32.mxu0 %vm11655_vm1, %v11656_v40 }
0x3f7a   :  { %v7258_v38 = vpop.xlane.xlu0 %7257  ;;  %v7024_v48 = vmul.f32 %v11585_v41, %v13621_v26  ;;  %10365 = vmatprep.subr.mxu0 %v11656_v40 }
0x3f7b   :  { %11590 = vrcp.f32 %v7258_v38 }
0x3f7c   :  { %10341 = vmatmul.mubr.msk.f32.gmra.mrb[90].mxu0 %vm5418_vm13, %v7024_v48 }
0x3f7d   :  { %v11587_v24 = vpop.eup %11586  ;;  %10343 = vmatprep.mubr.msk.f32.mxu0 %vm11655_vm1, %v11656_v40 }
0x3f7e   :  { %v7025_v20 = vmul.f32 %v11587_v24, %v13626_v32  ;;  %v7261_v42 = vpop.xlane.xlu0 %7260 }
0x3f7f   :  { %11592 = vrcp.f32 %v7261_v42 }
0x3f80   :  { %10344 = vmatmul.mubr.msk.f32.gmra.mrb[92].mxu0 %vm5418_vm13, %v7025_v20 }
0x3f81   :  { %10367 = vmatprep.mubr.msk.f32.mxu0 %vm11655_vm1, %v11656_v40  ;;  %v11589_v12 = vpop.eup %11588 }
0x3f82   :  { %v7497_v23 = vpop.xlane.xlu0 %7496  ;;  %v7265_v32 = vmul.f32 %v11589_v12, %v13631_v0 }
0x3f83   :  { %11594 = vrcp.f32 %v7497_v23 }
0x3f85   :  { %v11591_v22 = vpop.eup %11590 }
0x3f86   :  { %v7500_v26 = vpop.xlane.xlu1 %7499  ;;  %v7266_v62 = vmul.f32 %v11591_v22, %v13636_v55 }
0x3f87   :  { %11596 = vrcp.f32 %v7500_v26 }
0x3f89   :  { %v11593_v11 = vpop.eup %11592 }
0x3f8a   :  { %v7503_v29 = vpop.xlane.xlu0 %7502  ;;  %v7267_v0 = vmul.f32 %v11593_v11, %v13641_v59 }
0x3f8b   :  { %11598 = vrcp.f32 %v7503_v29 }
0x3f8d   :  { %v11595_v55 = vpop.eup %11594 }
0x3f8e   :  { %v11352_v30 = vpop.permute.xlu0 %11351  ;;  %v7739_v31 = vpop.xlane.xlu1 %7738  ;;  %v7507_v44 = vmul.f32 %v11595_v55, %v13646_v2 }
0x3f8f   :  { %v11354_v52 = vunpack.i.h.bf16 %v11352_v30  ;;  %v11353_v50 = vunpack.i.l.bf16 %v11352_v30  ;;  %11600 = vrcp.f32 %v7739_v31 }
0x3f91   :  { %v11036_v18 = vpack.c.bf16 %v11354_v52, %v11353_v50  ;;  %v11597_v58 = vpop.eup %11596 }
0x3f92   :  { %v7273_v49 = vpop.permute.xlu1 %7272  ;;  %v7508_v27 = vmul.f32 %v11597_v58, %v13650_v61 }
0x3f93   :  { %10366 = vmatpush3.msk.msra.mxu0 %vm2504_vm9, %v7273_v49 }
0x3f94   :  { %10368 = vmatmul.mubr.msk.f32.vlgmr.msra.gmra.mrb[94].mxu0 %vm5418_vm13, %v7265_v32  ;;  %11035 = vmatprep.subr.bf16.mxu0 %v11654_v5 }
0x3f95   :  { %11037 = vmatpush3.bf16.msra.mxu0 %v11036_v18  ;;  %10370 = vmatprep.mubr.msk.f32.mxu0 %vm11655_vm1, %v11656_v40  ;;  %v11599_v15 = vpop.eup %11598 }
0x3f96   :  { %10395 = vmatprep.subr.mxu0 %v11656_v40  ;;  %v7509_v36 = vmul.f32 %v11599_v15, %v13654_v56 }
0x3f98   :  { %10371 = vmatmul.mubr.msk.f32.gmra.mrb[96].mxu0 %vm5418_vm13, %v7266_v62 }
0x3f99   :  { %10373 = vmatprep.mubr.msk.f32.mxu0 %vm11655_vm1, %v11656_v40  ;;  %v11601_v60 = vpop.eup %11600 }
0x3f9a   :  { %v7749_v61 = vmul.f32 %v11601_v60, %v13658_v19 }
0x3f9c   :  { %10374 = vmatmul.mubr.msk.f32.gmra.mrb[98].mxu0 %vm5418_vm13, %v7267_v0 }
0x3f9d   :  { %10397 = vmatprep.mubr.msk.f32.mxu0 %vm11655_vm1, %v11656_v40 }
0x3fbf   :  { %v7742_v16 = vpop.xlane.xlu0 %7741 }
0x3fc0   :  { %11602 = vrcp.f32 %v7742_v16 }
0x3fc3   :  { %v7515_v63 = vpop.permute.xlu0 %7514  ;;  %v7745_v59 = vpop.xlane.xlu1 %7744 }
0x3fc4   :  { %10396 = vmatpush3.msk.msra.mxu0 %vm2504_vm9, %v7515_v63  ;;  %11604 = vrcp.f32 %v7745_v59 }
0x3fc5   :  { %10398 = vmatmul.mubr.msk.f32.vlgmr.msra.gmra.mrb[100].mxu0 %vm5418_vm13, %v7507_v44  ;;  %11042 = vmatprep.subr.bf16.mxu0 %v11654_v5 }
0x3fc6   :  { %10400 = vmatprep.mubr.msk.f32.mxu0 %vm11655_vm1, %v11656_v40 }
0x3fc7   :  { %v11357_v3 = vpop.permute.xlu0 %11356 }
0x3fc8   :  { %v11359_v17 = vunpack.i.h.bf16 %v11357_v3  ;;  %v11358_v6 = vunpack.i.l.bf16 %v11357_v3 }
0x3fc9   :  { %10401 = vmatmul.mubr.msk.f32.gmra.mrb[102].mxu0 %vm5418_vm13, %v7508_v27 }
0x3fca   :  { %v11043_v2 = vpack.c.bf16 %v11359_v17, %v11358_v6  ;;  %10403 = vmatprep.mubr.msk.f32.mxu0 %vm11655_vm1, %v11656_v40  ;;  %v11603_v4 = vpop.eup %11602 }
0x3fcb   :  { %v7757_v46 = vpop.permute.xlu0 %7756  ;;  %v7750_v56 = vmul.f32 %v11603_v4, %v13671_v10  ;;  %v11365_v10 = vpack.i.bf16 %v13429_v21, %v13424_v39 }
0x3fcc   :  { %11044 = vmatpush3.bf16.msra.mxu0 %v11043_v2 }
0x3fcd   :  { %10404 = vmatmul.mubr.msk.f32.gmra.mrb[104].mxu0 %vm5418_vm13, %v7509_v36  ;;  %10425 = vmatprep.subr.mxu0 %v11656_v40 }
0x3fce   :  { %10427 = vmatprep.mubr.msk.f32.mxu0 %vm11655_vm1, %v11656_v40  ;;  %v11605_v54 = vpop.eup %11604  ;;  %11366 = vrot.lane.b32.xlu0 %v11365_v10, %s14022_s25 }
0x3fcf   :  { %v7751_v19 = vmul.f32 %v11605_v54, %v13675_v28 }
0x3fd0   :  { %10426 = vmatpush3.msk.msra.mxu0 %vm2504_vm9, %v7757_v46 }
0x3fd1   :  { %10428 = vmatmul.mubr.msk.f32.vlgmr.msra.gmra.mrb[106].mxu0 %vm5418_vm13, %v7749_v61  ;;  %11051 = vmatprep.subr.bf16.mxu0 %v11654_v5 }
0x3fd2   :  { %10430 = vmatprep.mubr.msk.f32.mxu0 %vm11655_vm1, %v11656_v40 }
0x3fd5   :  { %10431 = vmatmul.mubr.msk.f32.gmra.mrb[108].mxu0 %vm5418_vm13, %v7750_v56 }
0x3fd6   :  { %10433 = vmatprep.mubr.msk.f32.mxu0 %vm11655_vm1, %v11656_v40 }
0x3fd9   :  { %10434 = vmatmul.mubr.msk.f32.gmra.mrb[110].mxu0 %vm5418_vm13, %v7751_v19 }
0x3fda   :  { %10461 = vmatprep.mubr.msk.f32.mxu0 %vm11655_vm1, %v11656_v40 }
0x3fe7   :  { %v11362_v45 = vpop.permute.xlu0 %11361 }
0x3fe8   :  { %v11364_v53 = vunpack.i.h.bf16 %v11362_v45  ;;  %v11363_v33 = vunpack.i.l.bf16 %v11362_v45 }
0x3fea   :  { %v11046_v7 = vpack.c.bf16 %v11364_v53, %v11363_v33 }
0x3fec   :  { %11047 = vmatpush3.bf16.msra.mxu1 %v11046_v7 }
0x3fed   :  { %11048 = vmatprep.subr.bf16.mxu1 %v11654_v5 }
0x4040   :  { %v11367_v48 = vpop.permute.xlu0 %11366 }
0x4041   :  { %v11369_v24 = vunpack.i.h.bf16 %v11367_v48  ;;  %v11368_v20 = vunpack.i.l.bf16 %v11367_v48 }
0x4043   :  { %v11049_v42 = vpack.c.bf16 %v11369_v24, %v11368_v20 }
0x4045   :  { %11050 = vmatpush3.bf16.msra.mxu1 %v11049_v42 }
0x4046   :  { %11057 = vmatprep.subr.bf16.mxu1 %v11654_v5 }
0x404b   :  { %v7111_v47 = vpop.f32.mrb[88].mxu0 }
0x404c   :  { %v10339_v25 = vpop.f32.mrb[89].mxu0 }
0x404f   :  { %v7116_v28 = vpop.f32.mrb[90].mxu0 }
0x4050   :  { %v10342_v37 = vpop.f32.mrb[91].mxu0 }
0x4053   :  { %v7121_v41 = vpop.f32.mrb[92].mxu0 }
0x4054   :  { %v10345_v38 = vpop.f32.mrb[93].mxu0 }
0x4067   :  { %v7353_v39 = vpop.f32.mrb[94].mxu0 }
0x4068   :  { %7854 = vrot.lane.b32.xlu1 %v7353_v39, %s14024_s21  ;;  %v10369_v21 = vpop.f32.mrb[95].mxu0 }
0x406b   :  { %v7358_v43 = vpop.f32.mrb[96].mxu0 }
0x406c   :  { %7856 = vrot.lane.b32.xlu0 %v7358_v43, %s14024_s21  ;;  %v10372_v23 = vpop.f32.mrb[97].mxu0 }
0x406f   :  { %v7363_v26 = vpop.f32.mrb[98].mxu0 }
0x4070   :  { %v10375_v29 = vpop.f32.mrb[99].mxu0 }
0x4098   :  { %v7595_v30 = vpop.f32.mrb[100].mxu0 }
0x4099   :  { %7866 = vrot.lane.b32.xlu0 %v7595_v30, %s14025_s22  ;;  %v10399_v31 = vpop.f32.mrb[101].mxu0 }
0x409c   :  { %v7600_v12 = vpop.f32.mrb[102].mxu0 }
0x409d   :  { %7868 = vrot.lane.b32.xlu0 %v7600_v12, %s14025_s22  ;;  %v10402_v52 = vpop.f32.mrb[103].mxu0 }
0x409e   :  { %v9018_v52 = vld [vmem:[%s13982_s6 + $0x60] sm:$0xff] }
0x40a0   :  { %v7605_v50 = vpop.f32.mrb[104].mxu0 }
0x40a1   :  { %v10405_v32 = vpop.f32.mrb[105].mxu0 }
0x40a4   :  { %v7837_v49 = vpop.f32.mrb[106].mxu0 }
0x40a5   :  { %7878 = vrot.lane.b32.xlu0 %v7837_v49, %s14026_s19  ;;  %v10429_v22 = vpop.f32.mrb[107].mxu0  ;;  %v9020_v49 = vld [vmem:[%s13982_s6 + $0x70] sm:$0xff] }
0x40a6   :  { %v9021_v22 = vld [vmem:[%s13982_s6 + $0x78] sm:$0xff] }
0x40a8   :  { %v7842_v18 = vpop.f32.mrb[108].mxu0 }
0x40a9   :  { %7858 = vrot.lane.b32.xlu0 %v7363_v26, %s14024_s21  ;;  %7880 = vrot.lane.b32.xlu1 %v7842_v18, %s14026_s19  ;;  %v10432_v62 = vpop.f32.mrb[109].mxu0  ;;  %v11055_v18 = vpack.c.bf16 %v9021_v22, %v9020_v49 }
0x40aa   :  { %v13817_v62 = vld [vmem:[%s13984_s8 + $0x3] ss:$0 sm:$0xff] }
0x40ac   :  { %v7847_v11 = vpop.f32.mrb[110].mxu0 }
0x40ad   :  { %7870 = vrot.lane.b32.xlu1 %v7605_v50, %s14025_s22  ;;  %7882 = vrot.lane.b32.xlu0 %v7847_v11, %s14026_s19  ;;  %v10435_v0 = vpop.f32.mrb[111].mxu0  ;;  %v9019_v50 = vld [vmem:[%s13982_s6 + $0x68] sm:$0xff] }
0x40ae   :  { %v11052_v32 = vpack.c.bf16 %v9019_v50, %v9018_v52 }
0x40b0   :  { %11053 = vmatpush3.bf16.msra.mxu0 %v11052_v32 }
0x40b1   :  { %8004 = vrot.lane.b32.xlu1 %v13452_v34, %s14022_s25  ;;  %11054 = vmatprep.subr.bf16.mxu0 %v11654_v5 }
0x40b4   :  { %11056 = vmatpush3.bf16.msra.mxu0 %v11055_v18 }
0x40b5   :  { %11069 = vmatprep.subr.bf16.mxu0 %v11654_v5 }
0x40da   :  { %v7855_v44 = vpop.permute.xlu1 %7854 }
0x40db   :  { %v7887_v58 = vsel %vm1910_vm3, %v7111_v47, %v7855_v44 }
0x40de   :  { %v7857_v16 = vpop.permute.xlu0 %7856 }
0x40df   :  { %v7888_v15 = vsel %vm1910_vm3, %v7116_v28, %v7857_v16 }
0x410b   :  { %v7867_v55 = vpop.permute.xlu0 %7866 }
0x410c   :  { %v7890_v59 = vsel %vm253_vm2, %v7887_v58, %v7867_v55 }
0x410f   :  { %v7869_v63 = vpop.permute.xlu0 %7868 }
0x4110   :  { %v7891_v34 = vsel %vm253_vm2, %v7888_v15, %v7869_v63  ;;  %v9016_v15 = vld [vmem:[%s13981_s5 + $0xe] ss:$0 sm:$0xff] }
0x4117   :  { %v7879_v3 = vpop.permute.xlu0 %7878 }
0x4118   :  { %v7893_v27 = vsel %vm3225_vm12, %v7890_v59, %v7879_v3 }
0x4119   :  { %10445 = vmatmul.mubr.msk.f32.vlgmr.msra.gmra.mrb[116].mxu1 %vm2237_vm5, %v7893_v27 }
0x411a   :  { %10447 = vmatprep.mubr.msk.f32.mxu1 %vm11655_vm1, %v11656_v40 }
0x411b   :  { %v7859_v17 = vpop.permute.xlu0 %7858  ;;  %v7881_v6 = vpop.permute.xlu1 %7880 }
0x411c   :  { %v7894_v2 = vsel %vm3225_vm12, %v7891_v34, %v7881_v6  ;;  %v7889_v36 = vsel %vm1910_vm3, %v7121_v41, %v7859_v17  ;;  %v9017_v17 = vld [vmem:[%s13981_s5 + $0xf] ss:$0 sm:$0xff]  ;;  %vm8686_vm3 = vcmask 1024  }
0x411d   :  { %10448 = vmatmul.mubr.msk.f32.gmra.mrb[118].mxu1 %vm2237_vm5, %v7894_v2 }
0x411e   :  { %10450 = vmatprep.mubr.msk.f32.mxu1 %vm11655_vm1, %v11656_v40 }
0x411f   :  { %v7871_v60 = vpop.permute.xlu1 %7870  ;;  %v7883_v61 = vpop.permute.xlu0 %7882 }
0x4120   :  { %v7892_v46 = vsel %vm253_vm2, %v7889_v36, %v7871_v60 }
0x4121   :  { %v7895_v4 = vsel %vm3225_vm12, %v7892_v46, %v7883_v61 }
0x4122   :  { %10451 = vmatmul.mubr.msk.f32.gmra.mrb[120].mxu1 %vm2237_vm5, %v7895_v4 }
0x4123   :  { %10486 = vmatprep.mubr.msk.f32.mxu1 %vm11655_vm1, %v11656_v40  ;;  %v8005_v54 = vpop.permute.xlu1 %8004 }
0x41ec   :  { %v7987_v56 = vpop.f32.mrb[116].mxu1 }
0x41ed   :  { %v8001_v35 = vadd.f32 %v7987_v56, %v13388_v57  ;;  %v10446_v19 = vpop.f32.mrb[117].mxu1 }
0x41ee   :  { %v9027_v19 = vld [vmem:[%s13983_s7 + $0xc0] sm:$0xff] }
0x41ef   :  { %v13780_v10 = vadd.f32 %v8005_v54, %v8001_v35 }
0x41f0   :  { %v7992_v45 = vpop.f32.mrb[118].mxu1 }
0x41f1   :  { %v8002_v53 = vadd.f32 %v7992_v45, %v13393_v1  ;;  %v10449_v33 = vpop.f32.mrb[119].mxu1  ;;  %v8012_v47 = vsel %vm2237_vm5, %v13780_v10, 0.0  ;;  %v9028_v45 = vld [vmem:[%s13983_s7 + $0xc8] sm:$0xff] }
0x41f2   :  { %8013 = vadd.xlane.f32.xlu0 %v8012_v47  ;;  %v9029_v33 = vld [vmem:[%s13983_s7 + $0xd0] sm:$0xff]  ;;  %v9030_v47 = vld [vmem:[%s13983_s7 + $0xd8] sm:$0xff] }
0x41f3   :  { %v13785_v7 = vadd.f32 %v8005_v54, %v8002_v53  ;;  %v11058_v53 = vpack.c.bf16 %v9028_v45, %v9027_v19 }
0x41f5   :  { %v7997_v25 = vpop.f32.mrb[120].mxu1  ;;  %v8015_v28 = vsel %vm2237_vm5, %v13785_v7, 0.0  ;;  %11059 = vmatpush3.bf16.msra.mxu1 %v11058_v53 }
0x41f6   :  { %v8003_v37 = vadd.f32 %v7997_v25, %v13398_v51  ;;  %8016 = vadd.xlane.f32.xlu1 %v8015_v28  ;;  %v10452_v57 = vpop.f32.mrb[121].mxu1  ;;  %11060 = vmatprep.subr.bf16.mxu1 %v11654_v5  ;;  %v11061_v25 = vpack.c.bf16 %v9030_v47, %v9029_v33  ;;  %v9031_v28 = vld [vmem:[%s13983_s7 + $0xe0] sm:$0xff] }
0x41f8   :  { %v13790_v41 = vadd.f32 %v8005_v54, %v8003_v37  ;;  %v9032_v37 = vld [vmem:[%s13983_s7 + $0xe8] sm:$0xff] }
0x41f9   :  { %11062 = vmatpush3.bf16.msra.mxu1 %v11061_v25  ;;  %v11064_v57 = vpack.c.bf16 %v9032_v37, %v9031_v28  ;;  %v13892_v37 = vld [vmem:[%s13977_s1 + $0x10] sm:$0x3] }
0x41fa   :  { %v8018_v1 = vsel %vm2241_vm4, %v13790_v41, 0.0  ;;  %11063 = vmatprep.subr.bf16.mxu1 %v11654_v5 }
0x41fb   :  { %8019 = vadd.xlane.f32.xlu0 %v8018_v1  ;;  %v9033_v1 = vld [vmem:[%s13983_s7 + $0xf0] sm:$0xff] }
0x41fd   :  { %11065 = vmatpush3.bf16.msra.mxu1 %v11064_v57 }
0x41fe   :  { %11066 = vmatprep.subr.bf16.mxu1 %v11654_v5 }
0x427f   :  { %v8014_v38 = vpop.xlane.xlu0 %8013 }
0x4280   :  { %v8021_v48 = vmul.f32 0.03125, %v8014_v38  ;;  %v9034_v38 = vld [vmem:[%s13983_s7 + $0xf8] sm:$0xff] }
0x4282   :  { %v8024_v24 = vsub.f32 %v13780_v10, %v8021_v48  ;;  %v11067_v48 = vpack.c.bf16 %v9034_v38, %v9033_v1 }
0x4283   :  { %v8017_v20 = vpop.xlane.xlu1 %8016 }
0x4284   :  { %v8022_v42 = vmul.f32 0.03125, %v8017_v20  ;;  %v8027_v39 = vmul.f32 %v8024_v24, %v8024_v24  ;;  %11068 = vmatpush3.bf16.msra.mxu1 %v11067_v48 }
0x4285   :  { %11075 = vmatprep.subr.bf16.mxu1 %v11654_v5 }
0x4286   :  { %v8025_v21 = vsub.f32 %v13785_v7, %v8022_v42  ;;  %v8030_v43 = vsel %vm2237_vm5, %v8027_v39, 0.0 }
0x4287   :  { %8031 = vadd.xlane.f32.xlu0 %v8030_v43 }
0x4288   :  { %v8020_v51 = vpop.xlane.xlu0 %8019  ;;  %v8028_v23 = vmul.f32 %v8025_v21, %v8025_v21 }
0x4289   :  { %v8023_v26 = vmul.f32 0.03125, %v8020_v51 }
0x428a   :  { %v8033_v29 = vsel %vm2237_vm5, %v8028_v23, 0.0 }
0x428b   :  { %v8026_v30 = vsub.f32 %v13790_v41, %v8023_v26  ;;  %8034 = vadd.xlane.f32.xlu0 %v8033_v29 }
0x428d   :  { %v8029_v31 = vmul.f32 %v8026_v30, %v8026_v30 }
0x428f   :  { %v8036_v12 = vsel %vm2241_vm4, %v8029_v31, 0.0 }
0x4290   :  { %8037 = vadd.xlane.f32.xlu1 %v8036_v12 }
0x42a1   :  { %8295 = vrot.lane.b32.xlu0 %v13817_v62, %s11658_s13 }
0x4314   :  { %v8032_v11 = vpop.xlane.xlu0 %8031 }
0x4315   :  { %v8039_v0 = vmul.f32 0.03125, %v8032_v11 }
0x4317   :  { %v8042_v16 = vadd.f32 1e-06, %v8039_v0 }
0x4318   :  { %v8035_v55 = vpop.xlane.xlu0 %8034 }
0x4319   :  { %11606 = vrsqrt.f32 %v8042_v16  ;;  %v8040_v44 = vmul.f32 0.03125, %v8035_v55 }
0x431b   :  { %v8043_v63 = vadd.f32 1e-06, %v8040_v44 }
0x431d   :  { %11608 = vrsqrt.f32 %v8043_v63  ;;  %v8038_v58 = vpop.xlane.xlu1 %8037 }
0x431e   :  { %v8041_v59 = vmul.f32 0.03125, %v8038_v58 }
0x4320   :  { %v8044_v3 = vadd.f32 1e-06, %v8041_v59 }
0x4322   :  { %11610 = vrsqrt.f32 %v8044_v3 }
0x4323   :  { %v11607_v27 = vpop.eup %11606 }
0x4324   :  { %v8048_v34 = vmul.f32 %v11607_v27, %v8024_v24 }
0x4326   :  { %v8055_v6 = vmul.f32 %v9016_v15, %v8048_v34 }
0x4327   :  { %v11609_v2 = vpop.eup %11608 }
0x4328   :  { %v8062_v36 = vadd.f32 %v9017_v17, %v8055_v6  ;;  %v8049_v60 = vmul.f32 %v11609_v2, %v8025_v21 }
0x432a   :  { %10462 = vmatmul.mubr.msk.f32.vlgmr.msra.gmra.mrb[112].mxu0 %vm2237_vm5, %v8062_v36  ;;  %v8056_v61 = vmul.f32 %v9016_v15, %v8049_v60 }
0x432b   :  { %10464 = vmatprep.mubr.msk.f32.mxu0 %vm11655_vm1, %v11656_v40 }
0x432c   :  { %v11611_v46 = vpop.eup %11610  ;;  %v8063_v4 = vadd.f32 %v9017_v17, %v8056_v61  ;;  %v8296_v61 = vpop.permute.xlu0 %8295 }
0x432d   :  { %v8050_v56 = vmul.f32 %v11611_v46, %v8026_v30 }
0x432e   :  { %10465 = vmatmul.mubr.msk.f32.gmra.mrb[114].mxu0 %vm2237_vm5, %v8063_v4 }
0x432f   :  { %10467 = vmatprep.mubr.msk.f32.mxu0 %vm11655_vm1, %v11656_v40  ;;  %v8057_v54 = vmul.f32 %v9016_v15, %v8050_v56 }
0x4331   :  { %v8064_v35 = vadd.f32 %v9017_v17, %v8057_v54 }
0x4333   :  { %10468 = vmatmul.mubr.msk.f32.gmra.mrb[116].mxu0 %vm2237_vm5, %v8064_v35 }
0x4334   :  { %10503 = vmatprep.mubr.msk.f32.mxu0 %vm11655_vm1, %v11656_v40 }
0x43fd   :  { %v8153_v24 = vpop.f32.mrb[112].mxu0 }
0x43fe   :  { %v8154_v20 = vadd.f32 %v13817_v62, %v8153_v24  ;;  %v10463_v42 = vpop.f32.mrb[113].mxu0 }
0x4400   :  { %v8170_v39 = vmul.f32 0.044715, %v8154_v20  ;;  %v8167_v58 = vmul.f32 0.5, %v8154_v20 }
0x4401   :  { %v8158_v21 = vpop.f32.mrb[114].mxu0 }
0x4402   :  { %v8173_v43 = vmul.f32 %v8170_v39, %v8154_v20  ;;  %v8159_v51 = vadd.f32 %v13817_v62, %v8158_v21  ;;  %v10466_v23 = vpop.f32.mrb[115].mxu0 }
0x4404   :  { %v8176_v26 = vmul.f32 %v8173_v43, %v8154_v20  ;;  %v8171_v29 = vmul.f32 0.044715, %v8159_v51 }
0x4406   :  { %v8179_v30 = vadd.f32 %v8176_v26, %v8154_v20  ;;  %v8174_v31 = vmul.f32 %v8171_v29, %v8159_v51  ;;  %v8163_v12 = vpop.f32.mrb[116].mxu0 }
0x4407   :  { %v8164_v52 = vadd.f32 %v13817_v62, %v8163_v12  ;;  %v10469_v50 = vpop.f32.mrb[117].mxu0  ;;  %v8168_v62 = vmul.f32 0.5, %v8159_v51  ;;  %v13907_v12 = vld [vmem:[%s13977_s1 + $0x8] sm:$0xff] }
0x4408   :  { %v8182_v32 = vmul.f32 0.7978846, %v8179_v30  ;;  %v8177_v49 = vmul.f32 %v8174_v31, %v8159_v51  ;;  %v8356_v30 = vld [vmem:[%s13986_s10] sm:$0xff]  ;;  %v8357_v31 = vld [vmem:[%s13986_s10 + $0x8] sm:$0xff]  ;;  %v8358_v50 = vld [vmem:[%s13986_s10 + $0x10] sm:$0xff] }
0x4409   :  { %v8172_v22 = vmul.f32 0.044715, %v8164_v52  ;;  %v8169_v6 = vmul.f32 0.5, %v8164_v52 }
0x440a   :  { %11612 = vtanh.f32 %v8182_v32  ;;  %v8180_v18 = vadd.f32 %v8177_v49, %v8159_v51  ;;  %v8359_v32 = vld [vmem:[%s13986_s10 + $0x18] sm:$0xff] }
0x440b   :  { %v8175_v11 = vmul.f32 %v8172_v22, %v8164_v52  ;;  %v11073_v49 = vpack.c.bf16 %v8359_v32, %v8358_v50 }
0x440c   :  { %v8183_v0 = vmul.f32 0.7978846, %v8180_v18 }
0x440d   :  { %v8178_v16 = vmul.f32 %v8175_v11, %v8164_v52 }
0x440e   :  { %11614 = vtanh.f32 %v8183_v0 }
0x440f   :  { %v8181_v55 = vadd.f32 %v8178_v16, %v8164_v52  ;;  %v11070_v52 = vpack.c.bf16 %v8357_v31, %v8356_v30 }
0x4411   :  { %v8184_v44 = vmul.f32 0.7978846, %v8181_v55  ;;  %11071 = vmatpush3.bf16.msra.mxu0 %v11070_v52 }
0x4412   :  { %11072 = vmatprep.subr.bf16.mxu0 %v11654_v5 }
0x4413   :  { %11616 = vtanh.f32 %v8184_v44 }
0x4414   :  { %v11613_v63 = vpop.eup %11612 }
0x4415   :  { %v8188_v59 = vadd.f32 1.0, %v11613_v63  ;;  %11074 = vmatpush3.bf16.msra.mxu0 %v11073_v49 }
0x4416   :  { %11078 = vmatprep.subr.bf16.mxu0 %v11654_v5 }
0x4417   :  { %v8191_v3 = vmul.f32 %v8188_v59, %v8167_v58 }
0x4418   :  { %v11615_v27 = vpop.eup %11614 }
0x4419   :  { %10487 = vmatmul.mubr.msk.f32.vlgmr.msra.gmra.mrb[122].mxu1 %vm93_vm0, %v8191_v3  ;;  %v8189_v15 = vadd.f32 1.0, %v11615_v27  ;;  %v9038_v27 = vld [vmem:[%s13986_s10 + $0x20] ss:$0 sm:$0xff] }
0x441a   :  { %10489 = vmatprep.mubr.msk.f32.mxu1 %vm11655_vm1, %v11656_v40  ;;  %11077 = vmatpush3.bf16.msra.mxu1 %v11799_v13 }
0x441b   :  { %v8192_v34 = vmul.f32 %v8189_v15, %v8168_v62 }
0x441d   :  { %v11617_v17 = vpop.eup %11616  ;;  %10490 = vmatmul.mubr.msk.f32.gmra.mrb[124].mxu1 %vm93_vm0, %v8192_v34  ;;  %v9039_v34 = vld [vmem:[%s13986_s10 + $0x21] ss:$0 sm:$0xff] }
0x441e   :  { %10492 = vmatprep.mubr.msk.f32.mxu1 %vm11655_vm1, %v11656_v40  ;;  %v8190_v2 = vadd.f32 1.0, %v11617_v17 }
0x4420   :  { %v8193_v36 = vmul.f32 %v8190_v2, %v8169_v6 }
0x4422   :  { %10493 = vmatmul.mubr.msk.f32.gmra.mrb[126].mxu1 %vm93_vm0, %v8193_v36 }
0x4423   :  { %10516 = vmatprep.mubr.msk.f32.mxu1 %vm11655_vm1, %v11656_v40 }
0x44ec   :  { %v8278_v60 = vpop.f32.mrb[122].mxu1 }
0x44ed   :  { %v8292_v46 = vadd.f32 %v8278_v60, %v13780_v10  ;;  %v10488_v13 = vpop.f32.mrb[123].mxu1 }
0x44ef   :  { %v8298_v4 = vadd.f32 %v8296_v61, %v8292_v46 }
0x44f0   :  { %v8283_v56 = vpop.f32.mrb[124].mxu1 }
0x44f1   :  { %v8293_v54 = vadd.f32 %v8283_v56, %v13785_v7  ;;  %v10491_v35 = vpop.f32.mrb[125].mxu1  ;;  %v8303_v19 = vsel %vm2237_vm5, %v8298_v4, 0.0  ;;  %v13886_v7 = vld [vmem:[%s13977_s1] sm:$0xff] }
0x44f2   :  { %8304 = vadd.xlane.f32.xlu1 %v8303_v19  ;;  %8454 = vrot.lane.b32.xlu0 %v13886_v7, %s11675_s26 }
0x44f3   :  { %v8299_v45 = vadd.f32 %v8296_v61, %v8293_v54 }
0x44f5   :  { %v8288_v53 = vpop.f32.mrb[126].mxu1  ;;  %v8306_v33 = vsel %vm2237_vm5, %v8299_v45, 0.0 }
0x44f6   :  { %v8294_v47 = vadd.f32 %v8288_v53, %v13790_v41  ;;  %8307 = vadd.xlane.f32.xlu1 %v8306_v33  ;;  %v10494_v25 = vpop.f32.mrb[127].mxu1  ;;  %8458 = vrot.lane.b32.xlu0 %v13892_v37, %s11675_s26 }
0x44f8   :  { %v8300_v28 = vadd.f32 %v8296_v61, %v8294_v47 }
0x44fa   :  { %v8309_v10 = vsel %vm2241_vm4, %v8300_v28, 0.0 }
0x44fb   :  { %8310 = vadd.xlane.f32.xlu1 %v8309_v10 }
0x4564   :  { %v8455_v22 = vpop.permute.xlu0 %8454 }
0x4565   :  { %10517 = vmatmul.mubr.msk.f32.vlgmr.msra.gmra.mrb[128].mxu1 %vm253_vm2, %v8455_v22 }
0x4566   :  { %10519 = vmatprep.mubr.msk.f32.mxu1 %vm11655_vm1, %v11656_v40 }
0x4568   :  { %v8459_v62 = vpop.permute.xlu0 %8458 }
0x457f   :  { %v8305_v41 = vpop.xlane.xlu1 %8304 }
0x4580   :  { %v8312_v57 = vmul.f32 0.03125, %v8305_v41 }
0x4582   :  { %v8315_v1 = vsub.f32 %v8298_v4, %v8312_v57 }
0x4583   :  { %v8308_v38 = vpop.xlane.xlu1 %8307 }
0x4584   :  { %v8313_v48 = vmul.f32 0.03125, %v8308_v38  ;;  %v8318_v24 = vmul.f32 %v8315_v1, %v8315_v1 }
0x4586   :  { %v8316_v20 = vsub.f32 %v8299_v45, %v8313_v48  ;;  %v8321_v42 = vsel %vm2237_vm5, %v8318_v24, 0.0  ;;  %v9040_v45 = vld [vmem:[%s13986_s10 + $0x22] ss:$0 sm:$0xff]  ;;  %s11676_s10 = smov 86  }
0x4587   :  { %8322 = vadd.xlane.f32.xlu1 %v8321_v42 }
0x4588   :  { %v8311_v39 = vpop.xlane.xlu1 %8310  ;;  %v8319_v21 = vmul.f32 %v8316_v20, %v8316_v20 }
0x4589   :  { %v8314_v43 = vmul.f32 0.03125, %v8311_v39 }
0x458a   :  { %v8324_v51 = vsel %vm2237_vm5, %v8319_v21, 0.0 }
0x458b   :  { %v8317_v23 = vsub.f32 %v8300_v28, %v8314_v43  ;;  %8325 = vadd.xlane.f32.xlu1 %v8324_v51 }
0x458d   :  { %v8320_v26 = vmul.f32 %v8317_v23, %v8317_v23 }
0x458f   :  { %v8327_v29 = vsel %vm2241_vm4, %v8320_v26, 0.0  ;;  %vm8714_vm4 = vcmask 0  }
0x4590   :  { %8328 = vadd.xlane.f32.xlu1 %v8327_v29 }
0x45a1   :  { %8456 = vrot.lane.b32.xlu1 %v13907_v12, %s11675_s26 }
0x4614   :  { %v8323_v18 = vpop.xlane.xlu1 %8322 }
0x4615   :  { %v8330_v11 = vmul.f32 0.03125, %v8323_v18 }
0x4617   :  { %v8333_v0 = vadd.f32 1e-06, %v8330_v11 }
0x4618   :  { %v8326_v16 = vpop.xlane.xlu1 %8325 }
0x4619   :  { %11618 = vrsqrt.f32 %v8333_v0  ;;  %v8331_v55 = vmul.f32 0.03125, %v8326_v16 }
0x461b   :  { %v8334_v44 = vadd.f32 1e-06, %v8331_v55 }
0x461d   :  { %11620 = vrsqrt.f32 %v8334_v44  ;;  %v8329_v63 = vpop.xlane.xlu1 %8328 }
0x461e   :  { %v8332_v58 = vmul.f32 0.03125, %v8329_v63 }
0x4620   :  { %v8335_v59 = vadd.f32 1e-06, %v8332_v58 }
0x4621   :  { %v8457_v3 = vpop.permute.xlu1 %8456 }
0x4622   :  { %11622 = vrsqrt.f32 %v8335_v59  ;;  %10520 = vmatmul.mubr.msk.f32.gmra.mrb[130].mxu1 %vm253_vm2, %v8457_v3 }
0x4623   :  { %v11619_v5 = vpop.eup %11618  ;;  %10522 = vmatprep.mubr.msk.f32.mxu1 %vm11655_vm1, %v11656_v40 }
0x4624   :  { %v8339_v15 = vmul.f32 %v11619_v5, %v8315_v1 }
0x4626   :  { %v8346_v17 = vmul.f32 %v9038_v27, %v8339_v15  ;;  %10523 = vmatmul.mubr.msk.f32.gmra.mrb[132].mxu1 %vm253_vm2, %v8459_v62 }
0x4627   :  { %v11621_v6 = vpop.eup %11620 }
0x4628   :  { %v8353_v2 = vadd.f32 %v9039_v34, %v8346_v17  ;;  %v8340_v36 = vmul.f32 %v11621_v6, %v8316_v20 }
0x462a   :  { %10504 = vmatmul.mubr.msk.f32.vlgmr.msra.gmra.mrb[118].mxu0 %vm2237_vm5, %v8353_v2  ;;  %v8347_v60 = vmul.f32 %v9038_v27, %v8340_v36 }
0x462b   :  { %11080 = vmatpush3.bf16.msra.mxu0 %v11079_v14  ;;  %10506 = vmatprep.mubr.msk.f32.mxu0 %vm11655_vm1, %v11656_v40 }
0x462c   :  { %v11623_v61 = vpop.eup %11622  ;;  %v8354_v46 = vadd.f32 %v9039_v34, %v8347_v60 }
0x462d   :  { %v8341_v13 = vmul.f32 %v11623_v61, %v8317_v23 }
0x462e   :  { %10507 = vmatmul.mubr.msk.f32.gmra.mrb[120].mxu0 %vm2237_vm5, %v8354_v46 }
0x462f   :  { %10509 = vmatprep.mubr.msk.f32.mxu0 %vm11655_vm1, %v11656_v40  ;;  %v8348_v4 = vmul.f32 %v9038_v27, %v8341_v13 }
0x4631   :  { %v8355_v56 = vadd.f32 %v9039_v34, %v8348_v4 }
0x4633   :  { %10510 = vmatmul.mubr.msk.f32.gmra.mrb[122].mxu0 %vm2237_vm5, %v8355_v56 }
0x4634   :  { %10529 = vmatprep.mubr.msk.f32.mxu0 %vm11655_vm1, %v11656_v40 }
0x4637   :  { %10530 = vmatmul.mubr.msk.f32.vlgmr.msra.gmra.mrb[124].mxu0 %vm253_vm2, %v8455_v22 }
0x4638   :  { %10532 = vmatprep.mubr.msk.f32.mxu0 %vm11655_vm1, %v11656_v40  ;;  %v8532_v8 = vpop.f32.mrb[128].mxu1 }
0x4639   :  { %v10518_v9 = vpop.f32.mrb[129].mxu1 }
0x463b   :  { %10533 = vmatmul.mubr.msk.f32.gmra.mrb[126].mxu0 %vm253_vm2, %v8457_v3 }
0x463c   :  { %10535 = vmatprep.mubr.msk.f32.mxu0 %vm11655_vm1, %v11656_v40  ;;  %vm8699_vm1 = vcmask 345424  }
0x463d   :  { %v8700_v49 = vsel %vm8699_vm1, %v13892_v37, 0.0 }
0x463f   :  { %10536 = vmatmul.mubr.msk.f32.gmra.mrb[128].mxu0 %vm253_vm2, %v8459_v62  ;;  %vm8682_vm2 = vcmask 7168  }
0x46f5   :  { %v8537_v14 = vpop.f32.mrb[130].mxu1 }
0x46f6   :  { %v10521_v54 = vpop.f32.mrb[131].mxu1 }
0x46f9   :  { %v8542_v35 = vpop.f32.mrb[132].mxu1 }
0x46fa   :  { %v10524_v19 = vpop.f32.mrb[133].mxu1 }
0x46fd   :  { %v8440_v53 = vpop.f32.mrb[118].mxu0 }
0x46fe   :  { %v8441_v33 = vadd.f32 %v9040_v45, %v8440_v53  ;;  %v10505_v47 = vpop.f32.mrb[119].mxu0 }
0x4700   :  { %v8546_v25 = vsub.f32 %v8532_v8, %v8441_v33 }
0x4701   :  { %v8445_v28 = vpop.f32.mrb[120].mxu0 }
0x4702   :  { %v8549_v10 = vmul.f32 %v8546_v25, %v8546_v25  ;;  %v8446_v41 = vadd.f32 %v9040_v45, %v8445_v28  ;;  %v10508_v40 = vpop.f32.mrb[121].mxu0 }
0x4704   :  { %v8547_v57 = vsub.f32 %v8537_v14, %v8446_v41  ;;  %v8552_v1 = vsel %vm93_vm0, %v8549_v10, 0.0 }
0x4705   :  { %8553 = vadd.xlane.f32.xlu0 %v8552_v1 }
0x4706   :  { %v8550_v38 = vmul.f32 %v8547_v57, %v8547_v57  ;;  %v8450_v48 = vpop.f32.mrb[122].mxu0 }
0x4707   :  { %v8451_v24 = vadd.f32 %v9040_v45, %v8450_v48  ;;  %v10511_v20 = vpop.f32.mrb[123].mxu0 }
0x4708   :  { %v8555_v42 = vsel %vm93_vm0, %v8550_v38, 0.0  ;;  %vm8695_vm0 = vcmask 351568  }
0x4709   :  { %v8548_v39 = vsub.f32 %v8542_v35, %v8451_v24  ;;  %8556 = vadd.xlane.f32.xlu1 %v8555_v42  ;;  %v8696_v52 = vsel %vm8695_vm0, %v13886_v7, 0.0  ;;  %v8697_v50 = vsel %vm8695_vm0, %v13907_v12, 0.0 }
0x470a   :  { %v8632_v21 = vpop.f32.mrb[124].mxu0  ;;  %v8698_v32 = vadd.f32 %v8697_v50, %v8696_v52 }
0x470b   :  { %v8551_v43 = vmul.f32 %v8548_v39, %v8548_v39  ;;  %v10531_v51 = vpop.f32.mrb[125].mxu0 }
0x470c   :  { %v8701_v22 = vadd.f32 %v8700_v49, %v8698_v32 }
0x470d   :  { %v8559_v23 = vsel %vm8558_vm15, %v8551_v43, 0.0 }
0x470e   :  { %8560 = vadd.xlane.f32.xlu0 %v8559_v23  ;;  %v8637_v26 = vpop.f32.mrb[126].mxu0  ;;  %v8702_v18 = vrot.slane %v8701_v22, 4 }
0x470f   :  { %v10534_v29 = vpop.f32.mrb[127].mxu0 }
0x4710   :  { %v8703_v11 = vadd.f32 %v8702_v18, %v8701_v22 }
0x4712   :  { %v8642_v30 = vpop.f32.mrb[128].mxu0  ;;  %v8704_v0 = vrot.slane %v8703_v11, 2 }
0x4713   :  { %v10537_v31 = vpop.f32.mrb[129].mxu0 }
0x4714   :  { %v8705_v44 = vadd.f32 %v8704_v0, %v8703_v11 }
0x4716   :  { %v8706_v3 = vrot.slane %v8705_v44, 1 }
0x4718   :  { %v8707_v62 = vadd.f32 %v8706_v3, %v8705_v44 }
0x471a   :  { %8648 = vrot.lane.b32.xlu1 %v13907_v12, %s11676_s10 }
0x4724   :  { %8646 = vrot.lane.b32.xlu0 %v13886_v7, %s11676_s10 }
0x4728   :  { %8650 = vrot.lane.b32.xlu0 %v13892_v37, %s11676_s10 }
0x4792   :  { %v8554_v16 = vpop.xlane.xlu0 %8553 }
0x4793   :  { %v8563_v55 = vmul.f32 0.015625, %v8554_v16 }
0x4795   :  { %v8658_v63 = vmul.f32 %v13886_v7, %v8563_v55 }
0x4796   :  { %v8557_v58 = vpop.xlane.xlu1 %8556 }
0x4797   :  { %v8564_v59 = vmul.f32 0.015625, %v8557_v58  ;;  %8664 = vrot.lane.b32.xlu0 %v8658_v63, %s11676_s10 }
0x4799   :  { %v8659_v5 = vmul.f32 %v13907_v12, %v8564_v59 }
0x479a   :  { %v8649_v36 = vpop.permute.xlu1 %8648 }
0x479b   :  { %8666 = vrot.lane.b32.xlu1 %v8659_v5, %s11676_s10  ;;  %v8561_v27 = vpop.xlane.xlu0 %8560  ;;  %v8656_v61 = vmul.f32 %v8649_v36, %v8637_v26 }
0x479c   :  { %v8565_v15 = vmul.f32 0.015625, %v8561_v27 }
0x479e   :  { %v8660_v34 = vmul.f32 %v13892_v37, %v8565_v15 }
0x479f   :  { %8709 = vrot.lane.b32.xlu1 %v8707_v62, %s11676_s10  ;;  %v8647_v17 = vpop.permute.xlu0 %8646 }
0x47a0   :  { %8668 = vrot.lane.b32.xlu0 %v8660_v34, %s11676_s10  ;;  %v8655_v2 = vmul.f32 %v8647_v17, %v8632_v21 }
0x47a3   :  { %v8651_v6 = vpop.permute.xlu0 %8650 }
0x47a4   :  { %v8657_v8 = vmul.f32 %v8651_v6, %v8642_v30 }
0x4809   :  { %v8665_v60 = vpop.permute.xlu0 %8664 }
0x480a   :  { %v8673_v7 = vsub.f32 %v8655_v2, %v8665_v60 }
0x480c   :  { %v8676_v46 = vmul.f32 %v8673_v7, %v8673_v7 }
0x480d   :  { %v8667_v13 = vpop.permute.xlu1 %8666 }
0x480e   :  { %v8674_v4 = vsub.f32 %v8656_v61, %v8667_v13  ;;  %v8679_v56 = vmul.f32 %v8676_v46, %v8647_v17 }
0x4810   :  { %v8677_v12 = vmul.f32 %v8674_v4, %v8674_v4  ;;  %v8683_v37 = vsel %vm8682_vm2, %v8679_v56, 0.0 }
0x4811   :  { %v8710_v33 = vpop.permute.xlu1 %8709 }
0x4812   :  { %v8680_v9 = vmul.f32 %v8677_v12, %v8649_v36  ;;  %v8669_v14 = vpop.permute.xlu0 %8668  ;;  %11624 = vrcp.f32 %v8710_v33 }
0x4813   :  { %v8675_v54 = vsub.f32 %v8657_v8, %v8669_v14 }
0x4814   :  { %v8684_v35 = vsel %vm8682_vm2, %v8680_v9, 0.0 }
0x4815   :  { %v8685_v19 = vadd.f32 %v8684_v35, %v8683_v37  ;;  %v8678_v45 = vmul.f32 %v8675_v54, %v8675_v54 }
0x4817   :  { %v8681_v53 = vmul.f32 %v8678_v45, %v8651_v6 }
0x4819   :  { %v8687_v47 = vsel %vm8686_vm3, %v8681_v53, 0.0 }
0x481a   :  { %v8688_v25 = vadd.f32 %v8687_v47, %v8685_v19 }
0x481c   :  { %v8689_v28 = vrot.slane %v8688_v25, 4  ;;  %v11625_v1 = vpop.eup %11624 }
0x481e   :  { %v8690_v10 = vadd.f32 %v8689_v28, %v8688_v25 }
0x4820   :  { %v8691_v41 = vrot.slane %v8690_v10, 2 }
0x4822   :  { %v8692_v40 = vadd.f32 %v8691_v41, %v8690_v10 }
0x4824   :  { %v8693_v57 = vrot.slane %v8692_v40, 1 }
0x4826   :  { %v8694_v38 = vadd.f32 %v8693_v57, %v8692_v40 }
0x4828   :  { %v8713_v48 = vmul.f32 %v11625_v1, %v8694_v38 }
0x482a   :  { %8715 = vst.msk [vmem:[#allocation2] sm:$0x1] %vm8714_vm4, %v8713_v48 }
0x482b   :  { %11641 = shalt.err (!%p11638_p4)
}
0x482c   :  { %s11642_s17 = scalar_lea.hbm %s13992_s16, 16 }
0x482d   :  { %p11643_p5 = scmp.ne.s32.totalorder %s13992_s16, %s11642_s17  ;;  %p11646_p6 = scmp.lt.u32.totalorder %s11642_s17, %s13992_s16 }
0x482f   :  { %p11648_p7 = pnand %p11646_p6, %p11643_p5 }
0x4831   :  { %11651 = shalt.err (!%p11648_p7)
}
0x4832   :  { %8725 = dma.vmem_to_hbm [thread:$0]  %s8723_s30, 16, %s13992_s16, [#allocation3]  }
0x4833   :  { %11652 = dma.done.wait [#allocation3], 16  }
0x4834   :  { %11653 = vsyncadd [#allocation3], 4294967280 }
0x4835   :  { %8729 = vsyncpa [#allocation3], 1 }

</bundles_post_ra>
